<compile_context>
chip_gen: v5e
topology: v5e:2x2
jax: 0.10.0
libtpu: 0.0.40
codegen_flags: <defaults>
</compile_context>

<pallas_src>
import jax
import jax.numpy as jnp
from jax.experimental import pallas as pl
from jax.experimental.pallas import tpu as pltpu

IN_FEATURES = 32 * 32 * 3   # 3072
HIDDEN = 512
OUT_FEATURES = 2
OUT_PAD = 128               # lane-padded output width inside the kernel
SUBLANE_BF16 = 16           # bf16 packs 16 sublanes per vreg
MAX_TILE_B = 256            # fills the MXU M dimension on v6e/v7x


def _round_up(n, m):
    return ((n + m - 1) // m) * m


def _mlp_kernel(x_ref, w1_ref, b1_ref, w2_ref, b2_ref, w3_ref, b3_ref,
                w4_ref, b4_ref, o_ref):
    # All matmuls: bf16 x bf16 -> f32 accumulation on the MXU.
    # Layer 1: (TB, 3072) @ (3072, 512) + (1, 512), ReLU
    h = jnp.dot(x_ref[...], w1_ref[...], preferred_element_type=jnp.float32)
    h = jnp.maximum(h + b1_ref[...], 0.0).astype(jnp.bfloat16)
    # Layer 2: (TB, 512) @ (512, 512) + (1, 512), ReLU
    h = jnp.dot(h, w2_ref[...], preferred_element_type=jnp.float32)
    h = jnp.maximum(h + b2_ref[...], 0.0).astype(jnp.bfloat16)
    # Layer 3: (TB, 512) @ (512, 512) + (1, 512), ReLU
    h = jnp.dot(h, w3_ref[...], preferred_element_type=jnp.float32)
    h = jnp.maximum(h + b3_ref[...], 0.0).astype(jnp.bfloat16)
    # Layer 4 (logits, no activation): (TB, 512) @ (512, 128) + (1, 128)
    o_ref[...] = (jnp.dot(h, w4_ref[...], preferred_element_type=jnp.float32)
                  + b4_ref[...])


@jax.jit
def cnn_forward(x, params):
    """x: (B, 3, 32, 32) float32 NCHW.  Returns logits (B, 2) float32."""
    w1, b1, w2, b2, w3, b3, w4p, b4p = params
    B = x.shape[0]
    # Glue: flatten (start_dim=1) like torch.flatten(x, 1), cast to bf16.
    x2 = x.reshape(B, -1).astype(jnp.bfloat16)                 # (B, 3072)

    # Batch tile: 256 at real batch sizes, otherwise the bf16-packed minimum.
    tile_b = min(MAX_TILE_B, _round_up(B, SUBLANE_BF16))
    Bp = _round_up(B, tile_b)
    x2 = jnp.pad(x2, ((0, Bp - B), (0, 0)))
    nb = Bp // tile_b

    batch_map = lambda i: (i, 0)   # tile moves along the batch
    const_map = lambda i: (0, 0)   # weights/biases stay resident in VMEM

    out = pl.pallas_call(
        _mlp_kernel,
        out_shape=jax.ShapeDtypeStruct((Bp, OUT_PAD), jnp.float32),
        grid=(nb,),
        in_specs=[
            pl.BlockSpec((tile_b, IN_FEATURES), batch_map),
            pl.BlockSpec((IN_FEATURES, HIDDEN), const_map),
            pl.BlockSpec((1, HIDDEN), const_map),
            pl.BlockSpec((HIDDEN, HIDDEN), const_map),
            pl.BlockSpec((1, HIDDEN), const_map),
            pl.BlockSpec((HIDDEN, HIDDEN), const_map),
            pl.BlockSpec((1, HIDDEN), const_map),
            pl.BlockSpec((HIDDEN, OUT_PAD), const_map),
            pl.BlockSpec((1, OUT_PAD), const_map),
        ],
        out_specs=pl.BlockSpec((tile_b, OUT_PAD), batch_map),
        compiler_params=pltpu.CompilerParams(
            dimension_semantics=("parallel",),
            vmem_limit_bytes=40 * 1024 * 1024),
    )(x2, w1, b1, w2, b2, w3, b3, w4p, b4p)

    return out[:B, :OUT_FEATURES]


def init_params(key):
    """Init matching nn.Linear defaults (uniform +-1/sqrt(fan_in)).

    Weights stored transposed vs PyTorch, shape (in, out), cast to bf16.
    Biases kept f32.  Last layer pre-padded to 128 output lanes (zeros)."""
    keys = jax.random.split(key, 8)
    dims = [(IN_FEATURES, HIDDEN), (HIDDEN, HIDDEN), (HIDDEN, HIDDEN),
            (HIDDEN, OUT_FEATURES)]
    params = []
    for i, (fan_in, fan_out) in enumerate(dims):
        bound = 1.0 / (fan_in ** 0.5)
        w = jax.random.uniform(keys[2 * i], (fan_in, fan_out),
                               minval=-bound, maxval=bound, dtype=jnp.float32)
        b = jax.random.uniform(keys[2 * i + 1], (1, fan_out),
                               minval=-bound, maxval=bound, dtype=jnp.float32)
        if fan_out == OUT_FEATURES:  # pre-pad the final layer once, at init
            w = jnp.pad(w, ((0, 0), (0, OUT_PAD - OUT_FEATURES)))
            b = jnp.pad(b, ((0, 0), (0, OUT_PAD - OUT_FEATURES)))
        params += [w.astype(jnp.bfloat16), b]
    return tuple(params)


def _reference_forward(x, params):
    """Pure-JAX reference mimicking the kernel's bf16 numerics."""
    w1, b1, w2, b2, w3, b3, w4p, b4p = params
    h = x.reshape(x.shape[0], -1).astype(jnp.bfloat16)

    def dense_relu(h, w, b):
        y = jnp.dot(h.astype(jnp.float32), w.astype(jnp.float32)) + b
        return jnp.maximum(y, 0.0).astype(jnp.bfloat16)

    h = dense_relu(h, w1, b1)
    h = dense_relu(h, w2, b2)
    h = dense_relu(h, w3, b3)
    y = jnp.dot(h.astype(jnp.float32), w4p.astype(jnp.float32)) + b4p
    return y[:, :OUT_FEATURES]


if __name__ == "__main__":
    key = jax.random.PRNGKey(0)
    k_x, k_p = jax.random.split(key)
    # Small batch; module implies 32x32x3 inputs (CIFAR-like), NCHW.
    x = jax.random.normal(k_x, (2, 3, 32, 32), dtype=jnp.float32)
    params = init_params(k_p)

    logits = cnn_forward(x, params)
    logits = jax.block_until_ready(logits)

    ref = _reference_forward(x, params)
    assert logits.shape == (2, 2), logits.shape
    assert jnp.allclose(logits, ref, atol=1e-2, rtol=1e-2), (
        "mismatch vs reference")
    print("KERNEL_OK")
</pallas_src>

<mosaic_0001>
module attributes {stable_mosaic.version = 11 : i64} {
  func.func @_mlp_kernel(%arg0: i32, %arg1: memref<16x3072xbf16, #tpu.memory_space<vmem>>, %arg2: memref<3072x512xbf16, #tpu.memory_space<vmem>>, %arg3: memref<1x512xf32, #tpu.memory_space<vmem>>, %arg4: memref<512x512xbf16, #tpu.memory_space<vmem>>, %arg5: memref<1x512xf32, #tpu.memory_space<vmem>>, %arg6: memref<512x512xbf16, #tpu.memory_space<vmem>>, %arg7: memref<1x512xf32, #tpu.memory_space<vmem>>, %arg8: memref<512x128xbf16, #tpu.memory_space<vmem>>, %arg9: memref<1x128xf32, #tpu.memory_space<vmem>>, %arg10: memref<16x128xf32, #tpu.memory_space<vmem>>) attributes {dimension_semantics = [#tpu.dimension_semantics<parallel>], iteration_bounds = array<i64: 1>, scalar_prefetch = 0 : i64, scratch_operands = 0 : i64, tpu.core_type = #tpu.core_type<tc>, window_params = [{transform_indices = @transform_0, window_bounds = array<i64: 16, 3072>}, {pipeline_mode = #tpu.pipeline_mode<synchronous>, transform_indices = @transform_1, window_bounds = array<i64: 3072, 512>}, {pipeline_mode = #tpu.pipeline_mode<synchronous>, transform_indices = @transform_2, window_bounds = array<i64: 1, 512>}, {pipeline_mode = #tpu.pipeline_mode<synchronous>, transform_indices = @transform_3, window_bounds = array<i64: 512, 512>}, {pipeline_mode = #tpu.pipeline_mode<synchronous>, transform_indices = @transform_4, window_bounds = array<i64: 1, 512>}, {pipeline_mode = #tpu.pipeline_mode<synchronous>, transform_indices = @transform_5, window_bounds = array<i64: 512, 512>}, {pipeline_mode = #tpu.pipeline_mode<synchronous>, transform_indices = @transform_6, window_bounds = array<i64: 1, 512>}, {pipeline_mode = #tpu.pipeline_mode<synchronous>, transform_indices = @transform_7, window_bounds = array<i64: 512, 128>}, {pipeline_mode = #tpu.pipeline_mode<synchronous>, transform_indices = @transform_8, window_bounds = array<i64: 1, 128>}, {transform_indices = @transform_9, window_bounds = array<i64: 16, 128>}]} {
    %c0 = arith.constant 0 : index
    %c0_0 = arith.constant 0 : index
    %0 = vector.load %arg1[%c0, %c0_0] : memref<16x3072xbf16, #tpu.memory_space<vmem>>, vector<16x3072xbf16>
    %c0_1 = arith.constant 0 : index
    %c0_2 = arith.constant 0 : index
    %1 = vector.load %arg2[%c0_1, %c0_2] : memref<3072x512xbf16, #tpu.memory_space<vmem>>, vector<3072x512xbf16>
    %cst = arith.constant dense<0.000000e+00> : vector<16x512xf32>
    %2 = tpu.matmul %0, %1, %cst {dimension_numbers = #tpu.dot_dimension_numbers<[1], [0], [0], [1], [0, 0, 1, 1], [], []>} : vector<16x3072xbf16>, vector<3072x512xbf16>, vector<16x512xf32> -> vector<16x512xf32>
    %c0_3 = arith.constant 0 : index
    %c0_4 = arith.constant 0 : index
    %3 = vector.load %arg3[%c0_3, %c0_4] : memref<1x512xf32, #tpu.memory_space<vmem>>, vector<1x512xf32>
    %4 = vector.broadcast %3 : vector<1x512xf32> to vector<16x512xf32>
    %5 = arith.addf %2, %4 : vector<16x512xf32>
    %cst_5 = arith.constant 0.000000e+00 : f32
    %6 = vector.broadcast %cst_5 : f32 to vector<16x512xf32>
    %7 = arith.maximumf %5, %6 : vector<16x512xf32>
    %8 = arith.truncf %7 : vector<16x512xf32> to vector<16x512xbf16>
    %c0_6 = arith.constant 0 : index
    %c0_7 = arith.constant 0 : index
    %9 = vector.load %arg4[%c0_6, %c0_7] : memref<512x512xbf16, #tpu.memory_space<vmem>>, vector<512x512xbf16>
    %cst_8 = arith.constant dense<0.000000e+00> : vector<16x512xf32>
    %10 = tpu.matmul %8, %9, %cst_8 {dimension_numbers = #tpu.dot_dimension_numbers<[1], [0], [0], [1], [0, 0, 1, 1], [], []>} : vector<16x512xbf16>, vector<512x512xbf16>, vector<16x512xf32> -> vector<16x512xf32>
    %c0_9 = arith.constant 0 : index
    %c0_10 = arith.constant 0 : index
    %11 = vector.load %arg5[%c0_9, %c0_10] : memref<1x512xf32, #tpu.memory_space<vmem>>, vector<1x512xf32>
    %12 = vector.broadcast %11 : vector<1x512xf32> to vector<16x512xf32>
    %13 = arith.addf %10, %12 : vector<16x512xf32>
    %cst_11 = arith.constant 0.000000e+00 : f32
    %14 = vector.broadcast %cst_11 : f32 to vector<16x512xf32>
    %15 = arith.maximumf %13, %14 : vector<16x512xf32>
    %16 = arith.truncf %15 : vector<16x512xf32> to vector<16x512xbf16>
    %c0_12 = arith.constant 0 : index
    %c0_13 = arith.constant 0 : index
    %17 = vector.load %arg6[%c0_12, %c0_13] : memref<512x512xbf16, #tpu.memory_space<vmem>>, vector<512x512xbf16>
    %cst_14 = arith.constant dense<0.000000e+00> : vector<16x512xf32>
    %18 = tpu.matmul %16, %17, %cst_14 {dimension_numbers = #tpu.dot_dimension_numbers<[1], [0], [0], [1], [0, 0, 1, 1], [], []>} : vector<16x512xbf16>, vector<512x512xbf16>, vector<16x512xf32> -> vector<16x512xf32>
    %c0_15 = arith.constant 0 : index
    %c0_16 = arith.constant 0 : index
    %19 = vector.load %arg7[%c0_15, %c0_16] : memref<1x512xf32, #tpu.memory_space<vmem>>, vector<1x512xf32>
    %20 = vector.broadcast %19 : vector<1x512xf32> to vector<16x512xf32>
    %21 = arith.addf %18, %20 : vector<16x512xf32>
    %cst_17 = arith.constant 0.000000e+00 : f32
    %22 = vector.broadcast %cst_17 : f32 to vector<16x512xf32>
    %23 = arith.maximumf %21, %22 : vector<16x512xf32>
    %24 = arith.truncf %23 : vector<16x512xf32> to vector<16x512xbf16>
    %c0_18 = arith.constant 0 : index
    %c0_19 = arith.constant 0 : index
    %25 = vector.load %arg8[%c0_18, %c0_19] : memref<512x128xbf16, #tpu.memory_space<vmem>>, vector<512x128xbf16>
    %cst_20 = arith.constant dense<0.000000e+00> : vector<16x128xf32>
    %26 = tpu.matmul %24, %25, %cst_20 {dimension_numbers = #tpu.dot_dimension_numbers<[1], [0], [0], [1], [0, 0, 1, 1], [], []>} : vector<16x512xbf16>, vector<512x128xbf16>, vector<16x128xf32> -> vector<16x128xf32>
    %c0_21 = arith.constant 0 : index
    %c0_22 = arith.constant 0 : index
    %27 = vector.load %arg9[%c0_21, %c0_22] : memref<1x128xf32, #tpu.memory_space<vmem>>, vector<1x128xf32>
    %28 = vector.broadcast %27 : vector<1x128xf32> to vector<16x128xf32>
    %29 = arith.addf %26, %28 : vector<16x128xf32>
    %c0_23 = arith.constant 0 : index
    %c0_24 = arith.constant 0 : index
    %30 = vector.load %arg10[%c0_23, %c0_24] : memref<16x128xf32, #tpu.memory_space<vmem>>, vector<16x128xf32>
    tpu.vector_store %arg10[%c0_23, %c0_24], %29 {strides = array<i32>} : memref<16x128xf32, #tpu.memory_space<vmem>>, vector<16x128xf32>,
    return
  }
  func.func @transform_0(%arg0: i32) -> (i32, i32) {
    %c0_i32 = arith.constant 0 : i32
    %c0_i32_0 = arith.constant 0 : i32
    return %arg0, %c0_i32 : i32, i32
  }
  func.func @transform_1(%arg0: i32) -> (i32, i32) {
    %c0_i32 = arith.constant 0 : i32
    %c0_i32_0 = arith.constant 0 : i32
    %c0_i32_1 = arith.constant 0 : i32
    return %c0_i32, %c0_i32_0 : i32, i32
  }
  func.func @transform_2(%arg0: i32) -> (i32, i32) {
    %c0_i32 = arith.constant 0 : i32
    %c0_i32_0 = arith.constant 0 : i32
    %c0_i32_1 = arith.constant 0 : i32
    return %c0_i32, %c0_i32_0 : i32, i32
  }
  func.func @transform_3(%arg0: i32) -> (i32, i32) {
    %c0_i32 = arith.constant 0 : i32
    %c0_i32_0 = arith.constant 0 : i32
    %c0_i32_1 = arith.constant 0 : i32
    return %c0_i32, %c0_i32_0 : i32, i32
  }
  func.func @transform_4(%arg0: i32) -> (i32, i32) {
    %c0_i32 = arith.constant 0 : i32
    %c0_i32_0 = arith.constant 0 : i32
    %c0_i32_1 = arith.constant 0 : i32
    return %c0_i32, %c0_i32_0 : i32, i32
  }
  func.func @transform_5(%arg0: i32) -> (i32, i32) {
    %c0_i32 = arith.constant 0 : i32
    %c0_i32_0 = arith.constant 0 : i32
    %c0_i32_1 = arith.constant 0 : i32
    return %c0_i32, %c0_i32_0 : i32, i32
  }
  func.func @transform_6(%arg0: i32) -> (i32, i32) {
    %c0_i32 = arith.constant 0 : i32
    %c0_i32_0 = arith.constant 0 : i32
    %c0_i32_1 = arith.constant 0 : i32
    return %c0_i32, %c0_i32_0 : i32, i32
  }
  func.func @transform_7(%arg0: i32) -> (i32, i32) {
    %c0_i32 = arith.constant 0 : i32
    %c0_i32_0 = arith.constant 0 : i32
    %c0_i32_1 = arith.constant 0 : i32
    return %c0_i32, %c0_i32_0 : i32, i32
  }
  func.func @transform_8(%arg0: i32) -> (i32, i32) {
    %c0_i32 = arith.constant 0 : i32
    %c0_i32_0 = arith.constant 0 : i32
    %c0_i32_1 = arith.constant 0 : i32
    return %c0_i32, %c0_i32_0 : i32, i32
  }
  func.func @transform_9(%arg0: i32) -> (i32, i32) {
    %c0_i32 = arith.constant 0 : i32
    %c0_i32_0 = arith.constant 0 : i32
    return %arg0, %c0_i32 : i32, i32
  }
}

</mosaic_0001>

<bundles_post_ra>
// kernel: cnn_forward.1
= control target key start
LH: loop header
LB: loop body
LE: loop exit
PB: predicated region body
PF: predicated region fallthrough
CT: control target
= control target key end

     0   :  { %14 = vsyncpa [#allocation3], 0  ;;  %s15078_s0 = inlined_call_operand.vmem [shape: bf16[16,3072], index: 0, kind: input, shape index: {}]   ;;  %s15079_s1 = inlined_call_operand.hbm [shape: bf16[3072,512], index: 1, kind: input, shape index: {}]   ;;  %s15080_s2 = inlined_call_operand.hbm [shape: f32[1,512], index: 2, kind: input, shape index: {}]   ;;  %s15081_s3 = inlined_call_operand.hbm [shape: bf16[512,512], index: 3, kind: input, shape index: {}]   ;;  %s15082_s4 = inlined_call_operand.hbm [shape: f32[1,512], index: 4, kind: input, shape index: {}]   ;;  %s15083_s5 = inlined_call_operand.hbm [shape: bf16[512,512], index: 5, kind: input, shape index: {}]   ;;  %s15084_s6 = inlined_call_operand.hbm [shape: f32[1,512], index: 6, kind: input, shape index: {}]   ;;  %s15085_s7 = inlined_call_operand.hbm [shape: bf16[512,128], index: 7, kind: input, shape index: {}]   ;;  %s15086_s8 = inlined_call_operand.hbm [shape: f32[1,128], index: 8, kind: input, shape index: {}]   ;;  %s15087_s9 = inlined_call_operand.vmem [shape: f32[16,128], index: 9, kind: output, shape index: {}]  }
   0x1   :  { %15 = vsyncpa [#allocation5], 0 }
   0x2   :  { %16 = vsyncpa [#allocation8], 0 }
   0x3   :  { %17 = vsyncpa [#allocation11], 0  ;;  %s39_s11 = sshll.u32 %s15080_s2, 4  ;;  %s40_s11 = int_to_ptr.hbm [resolvable:$true] %s39_s11 }
   0x4   :  { %18 = vsyncpa [#allocation14], 0  ;;  %s14240_s12 = smov [#allocation4]   ;;  %s63_s16 = sshll.u32 %s15082_s4, 4  ;;  %s64_s16 = int_to_ptr.hbm [resolvable:$true] %s63_s16 }
   0x5   :  { %s41_s13 = sshll.u32 %s14240_s12, 4  ;;  %s14241_s17 = smov [#allocation7]   ;;  %s42_s13 = int_to_ptr.vmem [resolvable:$true] %s41_s13 }
   0x6   :  { %44 = dma.hbm_to_vmem [thread:$0]  %s40_s11, 64, %s42_s13, [#allocation5]  }
   0x7   :  { %s65_s18 = sshll.u32 %s14241_s17, 4  ;;  %s87_s21 = sshll.u32 %s15084_s6, 4  ;;  %s66_s18 = int_to_ptr.vmem [resolvable:$true] %s65_s18  ;;  %s88_s21 = int_to_ptr.hbm [resolvable:$true] %s87_s21 }
   0x8   :  { %68 = dma.hbm_to_vmem [thread:$0]  %s64_s16, 64, %s66_s18, [#allocation8]  }
   0x9   :  { %s25_s23 = sshll.u32 %s15079_s1, 4  ;;  %s14242_s24 = smov [#allocation10]   ;;  %s26_s23 = int_to_ptr.hbm [resolvable:$true] %s25_s23 }
   0xa   :  { %s89_s25 = sshll.u32 %s14242_s24, 4  ;;  %s14243_s4 = smov [#allocation2]   ;;  %s90_s25 = int_to_ptr.vmem [resolvable:$true] %s89_s25 }
   0xb   :  { %92 = dma.hbm_to_vmem [thread:$0]  %s88_s21, 64, %s90_s25, [#allocation11]  }
   0xc   :  { %s27_s26 = sshll.u32 %s14243_s4, 4  ;;  %s14244_s27 = smov 256   ;;  %s28_s26 = int_to_ptr.vmem [resolvable:$true] %s27_s26 }
   0xd   :  { %s14245_s28 = smov 16   ;;  %s49_s30 = sshll.u32 %s15081_s3, 4  ;;  %s50_s30 = int_to_ptr.hbm [resolvable:$true] %s49_s30 }
   0xe   :  { %33 = dma.hbm_to_vmem [thread:$0]  %s26_s23, 98304, %s28_s26, [#allocation3], %s14244_s27, %s14244_s27, %s14245_s28  }
   0xf   :  { %s14246_s10 = smov [#allocation6]   ;;  %s73_s13 = sshll.u32 %s15083_s5, 4  ;;  %s74_s13 = int_to_ptr.hbm [resolvable:$true] %s73_s13 }
  0x10   :  { %s51_s11 = sshll.u32 %s14246_s10, 4  ;;  %s14247_s14 = smov [#allocation9]   ;;  %s52_s11 = int_to_ptr.vmem [resolvable:$true] %s51_s11 }
  0x11   :  { %57 = dma.hbm_to_vmem [thread:$0]  %s50_s30, 16384, %s52_s11, [#allocation5], %s14244_s27, %s14244_s27, %s14245_s28  }
  0x12   :  { %s75_s15 = sshll.u32 %s14247_s14, 4  ;;  %s97_s18 = sshll.u32 %s15085_s7, 4  ;;  %s76_s15 = int_to_ptr.vmem [resolvable:$true] %s75_s15  ;;  %s98_s18 = int_to_ptr.hbm [resolvable:$true] %s97_s18 }
  0x13   :  { %81 = dma.hbm_to_vmem [thread:$0]  %s74_s13, 16384, %s76_s15, [#allocation8], %s14244_s27, %s14244_s27, %s14245_s28  }
  0x14   :  { %s14248_s3 = smov [#allocation12]   ;;  %s111_s2 = sshll.u32 %s15086_s8, 4  ;;  %s112_s2 = int_to_ptr.hbm [resolvable:$true] %s111_s2 }
  0x15   :  { %s99_s19 = sshll.u32 %s14248_s3, 4  ;;  %s14249_s22 = smov 64   ;;  %s100_s19 = int_to_ptr.vmem [resolvable:$true] %s99_s19 }
  0x16   :  { %s14250_s5 = smov 4   ;;  %s14251_s23 = smov [#allocation13]  }
  0x17   :  { %105 = dma.hbm_to_vmem [thread:$0]  %s98_s18, 4096, %s100_s19, [#allocation11], %s14249_s22, %s14249_s22, %s14250_s5  }
  0x18   :  { %s113_s24 = sshll.u32 %s14251_s23, 4  ;;  %s114_s24 = int_to_ptr.vmem [resolvable:$true] %s113_s24 }
  0x19   :  { %116 = dma.hbm_to_vmem [thread:$0]  %s112_s2, 16, %s114_s24, [#allocation14]  }
  0x1a   :  { %14230 = dma.done.wait [#allocation3], 98304  }
  0x1b   :  { %14231 = vsyncadd [#allocation3], 4294868992 }
  0x1c   :  { %14232 = dma.done.wait [#allocation5], 16448  }
  0x1d   :  { %14233 = vsyncadd [#allocation5], 4294950848 }
  0x1e   :  { %14234 = dma.done.wait [#allocation8], 16448  }
  0x1f   :  { %14235 = vsyncadd [#allocation8], 4294950848 }
  0x20   :  { %14236 = dma.done.wait [#allocation11], 4160  }
  0x21   :  { %14237 = vsyncadd [#allocation11], 4294963136 }
  0x22   :  { %14238 = dma.done.wait [#allocation14], 16  }
  0x23   :  { %14239 = vsyncadd [#allocation14], 4294967280  ;;  %v8832_v0 = vld [vmem:[#allocation2 + $0xe0] sm:$0xf]  ;;  %v12996_v1 = vld [vmem:[#allocation2 + $0xec] sm:$0xf0] }
  0x24   :  { %v8960_v2 = vld [vmem:[#allocation2 + $0x1e0] sm:$0xf]  ;;  %v8833_v3 = vor.u32 %v12996_v1, %v8832_v0  ;;  %v13028_v4 = vld [vmem:[#allocation2 + $0x1ec] sm:$0xf0] }
  0x25   :  { %v9088_v5 = vld [vmem:[#allocation2 + $0x2e0] sm:$0xf]  ;;  %v13060_v6 = vld [vmem:[#allocation2 + $0x2ec] sm:$0xf0]  ;;  %v8961_v7 = vor.u32 %v13028_v4, %v8960_v2 }
  0x26   :  { %v9089_v8 = vor.u32 %v13060_v6, %v9088_v5  ;;  %v9216_v9 = vld [vmem:[#allocation2 + $0x3e0] sm:$0xf]  ;;  %v13092_v10 = vld [vmem:[#allocation2 + $0x3ec] sm:$0xf0]  ;;  %4911 = vmatpush.bf16.msra.mxu0 %v8833_v3 }
  0x27   :  { %v8816_v11 = vld [vmem:[#allocation2 + $0xc0] sm:$0xf]  ;;  %v9217_v12 = vor.u32 %v13092_v10, %v9216_v9  ;;  %v12992_v13 = vld [vmem:[#allocation2 + $0xcc] sm:$0xf0]  ;;  %4925 = vmatpush.bf16.msra.mxu1 %v8961_v7 }
  0x28   :  { %v8944_v14 = vld [vmem:[#allocation2 + $0x1c0] sm:$0xf]  ;;  %v13024_v15 = vld [vmem:[#allocation2 + $0x1cc] sm:$0xf0]  ;;  %4939 = vmatpush.bf16.msra.mxu2 %v9089_v8  ;;  %v8817_v16 = vor.u32 %v12992_v13, %v8816_v11 }
  0x29   :  { %v8945_v17 = vor.u32 %v13024_v15, %v8944_v14  ;;  %v9072_v18 = vld [vmem:[#allocation2 + $0x2c0] sm:$0xf]  ;;  %v13056_v19 = vld [vmem:[#allocation2 + $0x2cc] sm:$0xf0]  ;;  %4953 = vmatpush.bf16.msra.mxu3 %v9217_v12 }
  0x2a   :  { %v9200_v20 = vld [vmem:[#allocation2 + $0x3c0] sm:$0xf]  ;;  %v9073_v21 = vor.u32 %v13056_v19, %v9072_v18  ;;  %v13088_v22 = vld [vmem:[#allocation2 + $0x3cc] sm:$0xf0]  ;;  %4912 = vmatpush.bf16.msra.mxu0 %v8817_v16 }
  0x2b   :  { %v8800_v23 = vld [vmem:[#allocation2 + $0xa0] sm:$0xf]  ;;  %v12988_v24 = vld [vmem:[#allocation2 + $0xac] sm:$0xf0]  ;;  %v9201_v25 = vor.u32 %v13088_v22, %v9200_v20  ;;  %4926 = vmatpush.bf16.msra.mxu1 %v8945_v17 }
  0x2c   :  { %v8928_v26 = vld [vmem:[#allocation2 + $0x1a0] sm:$0xf]  ;;  %v13020_v27 = vld [vmem:[#allocation2 + $0x1ac] sm:$0xf0]  ;;  %v8801_v29 = vor.u32 %v12988_v24, %v8800_v23  ;;  %4940 = vmatpush.bf16.msra.mxu2 %v9073_v21 }
  0x2d   :  { %v9056_v28 = vld [vmem:[#allocation2 + $0x2a0] sm:$0xf]  ;;  %v13052_v30 = vld [vmem:[#allocation2 + $0x2ac] sm:$0xf0]  ;;  %v8929_v33 = vor.u32 %v13020_v27, %v8928_v26  ;;  %4954 = vmatpush.bf16.msra.mxu3 %v9201_v25 }
  0x2e   :  { %v9184_v31 = vld [vmem:[#allocation2 + $0x3a0] sm:$0xf]  ;;  %v13084_v32 = vld [vmem:[#allocation2 + $0x3ac] sm:$0xf0]  ;;  %v9057_v34 = vor.u32 %v13052_v30, %v9056_v28  ;;  %4913 = vmatpush.bf16.msra.mxu0 %v8801_v29 }
  0x2f   :  { %v8784_v35 = vld [vmem:[#allocation2 + $0x80] sm:$0xf]  ;;  %v12984_v36 = vld [vmem:[#allocation2 + $0x8c] sm:$0xf0]  ;;  %v9185_v38 = vor.u32 %v13084_v32, %v9184_v31  ;;  %4927 = vmatpush.bf16.msra.mxu1 %v8929_v33 }
  0x30   :  { %v8912_v37 = vld [vmem:[#allocation2 + $0x180] sm:$0xf]  ;;  %v13016_v39 = vld [vmem:[#allocation2 + $0x18c] sm:$0xf0]  ;;  %v8785_v44 = vor.u32 %v12984_v36, %v8784_v35  ;;  %4941 = vmatpush.bf16.msra.mxu2 %v9057_v34 }
  0x31   :  { %v9040_v40 = vld [vmem:[#allocation2 + $0x280] sm:$0xf]  ;;  %v13048_v41 = vld [vmem:[#allocation2 + $0x28c] sm:$0xf0]  ;;  %v8913_v45 = vor.u32 %v13016_v39, %v8912_v37  ;;  %4955 = vmatpush.bf16.msra.mxu3 %v9185_v38 }
  0x32   :  { %v9168_v42 = vld [vmem:[#allocation2 + $0x380] sm:$0xf]  ;;  %v13080_v43 = vld [vmem:[#allocation2 + $0x38c] sm:$0xf0]  ;;  %v9041_v46 = vor.u32 %v13048_v41, %v9040_v40  ;;  %4914 = vmatpush.bf16.msra.mxu0 %v8785_v44 }
  0x33   :  { %v8768_v47 = vld [vmem:[#allocation2 + $0x60] sm:$0xf]  ;;  %v12980_v48 = vld [vmem:[#allocation2 + $0x6c] sm:$0xf0]  ;;  %v9169_v50 = vor.u32 %v13080_v43, %v9168_v42  ;;  %4928 = vmatpush.bf16.msra.mxu1 %v8913_v45 }
  0x34   :  { %v8896_v49 = vld [vmem:[#allocation2 + $0x160] sm:$0xf]  ;;  %v13012_v51 = vld [vmem:[#allocation2 + $0x16c] sm:$0xf0]  ;;  %v8769_v56 = vor.u32 %v12980_v48, %v8768_v47  ;;  %4942 = vmatpush.bf16.msra.mxu2 %v9041_v46 }
  0x35   :  { %v9024_v52 = vld [vmem:[#allocation2 + $0x260] sm:$0xf]  ;;  %v13044_v53 = vld [vmem:[#allocation2 + $0x26c] sm:$0xf0]  ;;  %v8897_v57 = vor.u32 %v13012_v51, %v8896_v49  ;;  %4956 = vmatpush.bf16.msra.mxu3 %v9169_v50 }
  0x36   :  { %v9152_v54 = vld [vmem:[#allocation2 + $0x360] sm:$0xf]  ;;  %v13076_v55 = vld [vmem:[#allocation2 + $0x36c] sm:$0xf0]  ;;  %v9025_v58 = vor.u32 %v13044_v53, %v9024_v52  ;;  %4915 = vmatpush.bf16.msra.mxu0 %v8769_v56 }
  0x37   :  { %v8752_v59 = vld [vmem:[#allocation2 + $0x40] sm:$0xf]  ;;  %v12976_v60 = vld [vmem:[#allocation2 + $0x4c] sm:$0xf0]  ;;  %v9153_v62 = vor.u32 %v13076_v55, %v9152_v54  ;;  %4929 = vmatpush.bf16.msra.mxu1 %v8897_v57  ;;  %v8632_v54 = vld [vmem:[%s15078_s0 + $0x8] sm:$0xf] }
  0x38   :  { %v8880_v61 = vld [vmem:[#allocation2 + $0x140] sm:$0xf]  ;;  %v13008_v63 = vld [vmem:[#allocation2 + $0x14c] sm:$0xf0]  ;;  %v8753_v4 = vor.u32 %v12976_v60, %v8752_v59  ;;  %4943 = vmatpush.bf16.msra.mxu2 %v9025_v58  ;;  %v12955_v59 = vld [vmem:[%s15078_s0 + $0x64] sm:$0xf0] }
  0x39   :  { %v9008_v0 = vld [vmem:[#allocation2 + $0x240] sm:$0xf]  ;;  %v13040_v1 = vld [vmem:[#allocation2 + $0x24c] sm:$0xf0]  ;;  %v8881_v5 = vor.u32 %v13008_v63, %v8880_v61  ;;  %4957 = vmatpush.bf16.msra.mxu3 %v9153_v62 }
  0x3a   :  { %v9136_v2 = vld [vmem:[#allocation2 + $0x340] sm:$0xf]  ;;  %v13072_v3 = vld [vmem:[#allocation2 + $0x34c] sm:$0xf0]  ;;  %v9009_v6 = vor.u32 %v13040_v1, %v9008_v0  ;;  %4916 = vmatpush.bf16.msra.mxu0 %v8753_v4  ;;  %v14340_v1 = vor.u32 %v12955_v59, %v8632_v54 }
  0x3b   :  { %v8736_v7 = vld [vmem:[#allocation2 + $0x20] sm:$0xf]  ;;  %v12972_v8 = vld [vmem:[#allocation2 + $0x2c] sm:$0xf0]  ;;  %v9137_v10 = vor.u32 %v13072_v3, %v9136_v2  ;;  %4930 = vmatpush.bf16.msra.mxu1 %v8881_v5 }
  0x3c   :  { %v8864_v9 = vld [vmem:[#allocation2 + $0x120] sm:$0xf]  ;;  %v13004_v11 = vld [vmem:[#allocation2 + $0x12c] sm:$0xf0]  ;;  %v8737_v16 = vor.u32 %v12972_v8, %v8736_v7  ;;  %4944 = vmatpush.bf16.msra.mxu2 %v9009_v6  ;;  %v12942_v6 = vld [vmem:[%s15078_s0 + $0x4] sm:$0xf] }
  0x3d   :  { %v8992_v12 = vld [vmem:[#allocation2 + $0x220] sm:$0xf]  ;;  %v13036_v13 = vld [vmem:[#allocation2 + $0x22c] sm:$0xf0]  ;;  %v8865_v19 = vor.u32 %v13004_v11, %v8864_v9  ;;  %4958 = vmatpush.bf16.msra.mxu3 %v9137_v10  ;;  %v8626_v7 = vld [vmem:[%s15078_s0 + $0x60] sm:$0xf0] }
  0x3e   :  { %v9120_v14 = vld [vmem:[#allocation2 + $0x320] sm:$0xf]  ;;  %v13068_v15 = vld [vmem:[#allocation2 + $0x32c] sm:$0xf0]  ;;  %v8993_v20 = vor.u32 %v13036_v13, %v8992_v12  ;;  %4917 = vmatpush.bf16.msra.mxu0 %v8737_v16  ;;  %v12943_v8 = vld [vmem:[%s15078_s0 + $0xc] sm:$0xf]  ;;  %v14353_v10 = vor.u32 %v12942_v6, %v8626_v7 }
  0x3f   :  { %v8720_v17 = vld [vmem:[#allocation2] sm:$0xf]  ;;  %v12968_v18 = vld [vmem:[#allocation2 + $0xc] sm:$0xf0]  ;;  %v9121_v24 = vor.u32 %v13068_v15, %v9120_v14  ;;  %4931 = vmatpush.bf16.msra.mxu1 %v8865_v19  ;;  %v8634_v11 = vld [vmem:[%s15078_s0 + $0x68] sm:$0xf0] }
  0x40   :  { %v8848_v21 = vld [vmem:[#allocation2 + $0x100] sm:$0xf]  ;;  %v13000_v22 = vld [vmem:[#allocation2 + $0x10c] sm:$0xf0]  ;;  %v8721_v31 = vor.u32 %v12968_v18, %v8720_v17  ;;  %4945 = vmatpush.bf16.msra.mxu2 %v8993_v20  ;;  %v14358_v17 = vor.u32 %v12943_v8, %v8634_v11 }
  0x41   :  { %v8976_v23 = vld [vmem:[#allocation2 + $0x200] sm:$0xf]  ;;  %v13032_v25 = vld [vmem:[#allocation2 + $0x20c] sm:$0xf0]  ;;  %v8849_v35 = vor.u32 %v13000_v22, %v8848_v21  ;;  %4959 = vmatpush.bf16.msra.mxu3 %v9121_v24 }
  0x42   :  { %v9104_v26 = vld [vmem:[#allocation2 + $0x300] sm:$0xf]  ;;  %v13064_v27 = vld [vmem:[#allocation2 + $0x30c] sm:$0xf0]  ;;  %v8977_v36 = vor.u32 %v13032_v25, %v8976_v23  ;;  %4918 = vmatpush.bf16.msra.mxu0 %v8721_v31 }
  0x43   :  { %v9344_v28 = vld [vmem:[#allocation2 + $0x4e0] sm:$0xf]  ;;  %v13124_v29 = vld [vmem:[#allocation2 + $0x4ec] sm:$0xf0]  ;;  %v9105_v39 = vor.u32 %v13064_v27, %v9104_v26  ;;  %4932 = vmatpush.bf16.msra.mxu1 %v8849_v35 }
  0x44   :  { %v9472_v30 = vld [vmem:[#allocation2 + $0x5e0] sm:$0xf]  ;;  %v13156_v32 = vld [vmem:[#allocation2 + $0x5ec] sm:$0xf0]  ;;  %v9345_v40 = vor.u32 %v13124_v29, %v9344_v28  ;;  %4946 = vmatpush.bf16.msra.mxu2 %v8977_v36 }
  0x45   :  { %v9600_v33 = vld [vmem:[#allocation2 + $0x6e0] sm:$0xf]  ;;  %v13188_v34 = vld [vmem:[#allocation2 + $0x6ec] sm:$0xf0]  ;;  %v9473_v43 = vor.u32 %v13156_v32, %v9472_v30  ;;  %4960 = vmatpush.bf16.msra.mxu3 %v9105_v39 }
  0x46   :  { %v9728_v37 = vld [vmem:[#allocation2 + $0x7e0] sm:$0xf]  ;;  %v13220_v38 = vld [vmem:[#allocation2 + $0x7ec] sm:$0xf0]  ;;  %v9601_v44 = vor.u32 %v13188_v34, %v9600_v33  ;;  %4967 = vmatpush.bf16.msrb.mxu0 %v9345_v40  ;;  %4933 = vmatmul.bf16.vlgmr.msra.gmra.mxu1 %v14353_v10 }
  0x47   :  { %v9328_v41 = vld [vmem:[#allocation2 + $0x4c0] sm:$0xf]  ;;  %v13120_v42 = vld [vmem:[#allocation2 + $0x4cc] sm:$0xf0]  ;;  %v9729_v48 = vor.u32 %v13220_v38, %v9728_v37  ;;  %4981 = vmatpush.bf16.msrb.mxu1 %v9473_v43  ;;  %4947 = vmatmul.bf16.vlgmr.msra.gmra.mxu2 %v14340_v1 }
  0x48   :  { %v9456_v45 = vld [vmem:[#allocation2 + $0x5c0] sm:$0xf]  ;;  %v13152_v46 = vld [vmem:[#allocation2 + $0x5cc] sm:$0xf0]  ;;  %v9329_v55 = vor.u32 %v13120_v42, %v9328_v41  ;;  %4995 = vmatpush.bf16.msrb.mxu2 %v9601_v44  ;;  %4961 = vmatmul.bf16.vlgmr.msra.gmra.mxu3 %v14358_v17 }
  0x49   :  { %v9584_v47 = vld [vmem:[#allocation2 + $0x6c0] sm:$0xf]  ;;  %v13184_v49 = vld [vmem:[#allocation2 + $0x6cc] sm:$0xf0]  ;;  %v9457_v60 = vor.u32 %v13152_v46, %v9456_v45  ;;  %5009 = vmatpush.bf16.msrb.mxu3 %v9729_v48 }
  0x4a   :  { %v9712_v50 = vld [vmem:[#allocation2 + $0x7c0] sm:$0xf]  ;;  %v13216_v51 = vld [vmem:[#allocation2 + $0x7cc] sm:$0xf0]  ;;  %v9585_v61 = vor.u32 %v13184_v49, %v9584_v47  ;;  %4968 = vmatpush.bf16.msrb.mxu0 %v9329_v55 }
  0x4b   :  { %v8624_v52 = vld [vmem:[%s15078_s0] sm:$0xf]  ;;  %v13116_v57 = vld [vmem:[#allocation2 + $0x4ac] sm:$0xf0]  ;;  %v9713_v2 = vor.u32 %v13216_v51, %v9712_v50  ;;  %4982 = vmatpush.bf16.msrb.mxu1 %v9457_v60 }
  0x4c   :  { %v12954_v53 = vld [vmem:[%s15078_s0 + $0x5c] sm:$0xf0]  ;;  %v13148_v63 = vld [vmem:[#allocation2 + $0x5ac] sm:$0xf0]  ;;  %4996 = vmatpush.bf16.msrb.mxu2 %v9585_v61 }
  0x4d   :  { %v9312_v56 = vld [vmem:[#allocation2 + $0x4a0] sm:$0xf]  ;;  %v14335_v58 = vor.u32 %v12954_v53, %v8624_v52  ;;  %v13180_v3 = vld [vmem:[#allocation2 + $0x6ac] sm:$0xf0]  ;;  %5010 = vmatpush.bf16.msrb.mxu3 %v9713_v2 }
  0x4e   :  { %v9440_v62 = vld [vmem:[#allocation2 + $0x5a0] sm:$0xf]  ;;  %v13212_v5 = vld [vmem:[#allocation2 + $0x7ac] sm:$0xf0]  ;;  %v9313_v9 = vor.u32 %v13116_v57, %v9312_v56 }
  0x4f   :  { %v9568_v0 = vld [vmem:[#allocation2 + $0x6a0] sm:$0xf]  ;;  %4919 = vmatmul.bf16.vlgmr.msra.gmra.mxu0 %v14335_v58  ;;  %v9441_v12 = vor.u32 %v13148_v63, %v9440_v62  ;;  %v13112_v15 = vld [vmem:[#allocation2 + $0x48c] sm:$0xf0] }
  0x50   :  { %v9696_v4 = vld [vmem:[#allocation2 + $0x7a0] sm:$0xf]  ;;  %v9569_v13 = vor.u32 %v13180_v3, %v9568_v0  ;;  %v13144_v19 = vld [vmem:[#allocation2 + $0x58c] sm:$0xf0]  ;;  %4969 = vmatpush.bf16.msrb.mxu0 %v9313_v9 }
  0x51   :  { %v9296_v14 = vld [vmem:[#allocation2 + $0x480] sm:$0xf]  ;;  %v9697_v18 = vor.u32 %v13212_v5, %v9696_v4  ;;  %v13176_v21 = vld [vmem:[#allocation2 + $0x68c] sm:$0xf0]  ;;  %4983 = vmatpush.bf16.msrb.mxu1 %v9441_v12 }
  0x52   :  { %v9424_v16 = vld [vmem:[#allocation2 + $0x580] sm:$0xf]  ;;  %v13208_v23 = vld [vmem:[#allocation2 + $0x78c] sm:$0xf0]  ;;  %v9297_v24 = vor.u32 %v13112_v15, %v9296_v14  ;;  %4997 = vmatpush.bf16.msrb.mxu2 %v9569_v13 }
  0x53   :  { %v9552_v20 = vld [vmem:[#allocation2 + $0x680] sm:$0xf]  ;;  %v9425_v25 = vor.u32 %v13144_v19, %v9424_v16  ;;  %v13108_v28 = vld [vmem:[#allocation2 + $0x46c] sm:$0xf0]  ;;  %5011 = vmatpush.bf16.msrb.mxu3 %v9697_v18 }
  0x54   :  { %v9680_v22 = vld [vmem:[#allocation2 + $0x780] sm:$0xf]  ;;  %v9553_v26 = vor.u32 %v13176_v21, %v9552_v20  ;;  %v13140_v31 = vld [vmem:[#allocation2 + $0x56c] sm:$0xf0]  ;;  %4970 = vmatpush.bf16.msrb.mxu0 %v9297_v24 }
  0x55   :  { %v9280_v27 = vld [vmem:[#allocation2 + $0x460] sm:$0xf]  ;;  %v9681_v30 = vor.u32 %v13208_v23, %v9680_v22  ;;  %v13172_v33 = vld [vmem:[#allocation2 + $0x66c] sm:$0xf0]  ;;  %4984 = vmatpush.bf16.msrb.mxu1 %v9425_v25  ;;  %v8648_v25 = vld [vmem:[%s15078_s0 + $0x18] sm:$0xf] }
  0x56   :  { %v9408_v29 = vld [vmem:[#allocation2 + $0x560] sm:$0xf]  ;;  %v13204_v35 = vld [vmem:[#allocation2 + $0x76c] sm:$0xf0]  ;;  %v9281_v36 = vor.u32 %v13108_v28, %v9280_v27  ;;  %4998 = vmatpush.bf16.msrb.mxu2 %v9553_v26  ;;  %v12957_v26 = vld [vmem:[%s15078_s0 + $0x74] sm:$0xf0] }
  0x57   :  { %v9536_v32 = vld [vmem:[#allocation2 + $0x660] sm:$0xf]  ;;  %v9409_v37 = vor.u32 %v13140_v31, %v9408_v29  ;;  %v13104_v40 = vld [vmem:[#allocation2 + $0x44c] sm:$0xf0]  ;;  %5012 = vmatpush.bf16.msrb.mxu3 %v9681_v30  ;;  %v12944_v27 = vld [vmem:[%s15078_s0 + $0x14] sm:$0xf] }
  0x58   :  { %v9664_v34 = vld [vmem:[#allocation2 + $0x760] sm:$0xf]  ;;  %v9537_v38 = vor.u32 %v13172_v33, %v9536_v32  ;;  %v13136_v43 = vld [vmem:[#allocation2 + $0x54c] sm:$0xf0]  ;;  %4971 = vmatpush.bf16.msrb.mxu0 %v9281_v36  ;;  %v8642_v30 = vld [vmem:[%s15078_s0 + $0x70] sm:$0xf0] }
  0x59   :  { %v9264_v39 = vld [vmem:[#allocation2 + $0x440] sm:$0xf]  ;;  %v9665_v42 = vor.u32 %v13204_v35, %v9664_v34  ;;  %v13168_v45 = vld [vmem:[#allocation2 + $0x64c] sm:$0xf0]  ;;  %4985 = vmatpush.bf16.msrb.mxu1 %v9409_v37  ;;  %v12945_v31 = vld [vmem:[%s15078_s0 + $0x1c] sm:$0xf] }
  0x5a   :  { %v9392_v41 = vld [vmem:[#allocation2 + $0x540] sm:$0xf]  ;;  %v13200_v47 = vld [vmem:[#allocation2 + $0x74c] sm:$0xf0]  ;;  %v9265_v48 = vor.u32 %v13104_v40, %v9264_v39  ;;  %4999 = vmatpush.bf16.msrb.mxu2 %v9537_v38  ;;  %v8650_v32 = vld [vmem:[%s15078_s0 + $0x78] sm:$0xf0] }
  0x5b   :  { %v9520_v44 = vld [vmem:[#allocation2 + $0x640] sm:$0xf]  ;;  %v9393_v50 = vor.u32 %v13136_v43, %v9392_v41  ;;  %v13100_v52 = vld [vmem:[#allocation2 + $0x42c] sm:$0xf0]  ;;  %5013 = vmatpush.bf16.msrb.mxu3 %v9665_v42  ;;  %v14388_v43 = vor.u32 %v12957_v26, %v8648_v25 }
  0x5c   :  { %v9648_v46 = vld [vmem:[#allocation2 + $0x740] sm:$0xf]  ;;  %v9521_v51 = vor.u32 %v13168_v45, %v9520_v44  ;;  %v13132_v54 = vld [vmem:[#allocation2 + $0x52c] sm:$0xf0]  ;;  %4972 = vmatpush.bf16.msrb.mxu0 %v9265_v48  ;;  %v14390_v44 = vor.u32 %v12944_v27, %v8642_v30 }
  0x5d   :  { %v9248_v49 = vld [vmem:[#allocation2 + $0x420] sm:$0xf]  ;;  %v9649_v55 = vor.u32 %v13200_v47, %v9648_v46  ;;  %v13164_v57 = vld [vmem:[#allocation2 + $0x62c] sm:$0xf0]  ;;  %4986 = vmatpush.bf16.msrb.mxu1 %v9393_v50  ;;  %v14392_v47 = vor.u32 %v12945_v31, %v8650_v32 }
  0x5e   :  { %v9376_v53 = vld [vmem:[#allocation2 + $0x520] sm:$0xf]  ;;  %v13196_v60 = vld [vmem:[#allocation2 + $0x72c] sm:$0xf0]  ;;  %v9249_v63 = vor.u32 %v13100_v52, %v9248_v49  ;;  %5000 = vmatpush.bf16.msrb.mxu2 %v9521_v51 }
  0x5f   :  { %v9504_v56 = vld [vmem:[#allocation2 + $0x620] sm:$0xf]  ;;  %v13096_v62 = vld [vmem:[#allocation2 + $0x40c] sm:$0xf0]  ;;  %v9377_v5 = vor.u32 %v13132_v54, %v9376_v53  ;;  %5014 = vmatpush.bf16.msrb.mxu3 %v9649_v55 }
  0x60   :  { %v9632_v59 = vld [vmem:[#allocation2 + $0x720] sm:$0xf]  ;;  %v13128_v2 = vld [vmem:[#allocation2 + $0x50c] sm:$0xf0]  ;;  %v9505_v6 = vor.u32 %v13164_v57, %v9504_v56  ;;  %4973 = vmatpush.bf16.msrb.mxu0 %v9249_v63 }
  0x61   :  { %v9232_v61 = vld [vmem:[#allocation2 + $0x400] sm:$0xf]  ;;  %v13160_v4 = vld [vmem:[#allocation2 + $0x60c] sm:$0xf0]  ;;  %v9633_v11 = vor.u32 %v13196_v60, %v9632_v59  ;;  %4987 = vmatpush.bf16.msrb.mxu1 %v9377_v5 }
  0x62   :  { %v9360_v0 = vld [vmem:[#allocation2 + $0x500] sm:$0xf]  ;;  %v13192_v8 = vld [vmem:[#allocation2 + $0x70c] sm:$0xf0]  ;;  %v9233_v19 = vor.u32 %v13096_v62, %v9232_v61  ;;  %5001 = vmatpush.bf16.msrb.mxu2 %v9505_v6 }
  0x63   :  { %v9488_v3 = vld [vmem:[#allocation2 + $0x600] sm:$0xf]  ;;  %v13252_v12 = vld [vmem:[#allocation2 + $0x8ec] sm:$0xf0]  ;;  %v9361_v23 = vor.u32 %v13128_v2, %v9360_v0  ;;  %5015 = vmatpush.bf16.msrb.mxu3 %v9633_v11 }
  0x64   :  { %v9616_v7 = vld [vmem:[#allocation2 + $0x700] sm:$0xf]  ;;  %v13284_v14 = vld [vmem:[#allocation2 + $0x9ec] sm:$0xf0]  ;;  %v9489_v24 = vor.u32 %v13160_v4, %v9488_v3  ;;  %4974 = vmatpush.bf16.msrb.mxu0 %v9233_v19 }
  0x65   :  { %v9856_v9 = vld [vmem:[#allocation2 + $0x8e0] sm:$0xf]  ;;  %v13316_v16 = vld [vmem:[#allocation2 + $0xaec] sm:$0xf0]  ;;  %v9617_v28 = vor.u32 %v13192_v8, %v9616_v7  ;;  %4988 = vmatpush.bf16.msrb.mxu1 %v9361_v23 }
  0x66   :  { %v9984_v13 = vld [vmem:[#allocation2 + $0x9e0] sm:$0xf]  ;;  %v13348_v20 = vld [vmem:[#allocation2 + $0xbec] sm:$0xf0]  ;;  %v9857_v29 = vor.u32 %v13252_v12, %v9856_v9  ;;  %5002 = vmatpush.bf16.msrb.mxu2 %v9489_v24 }
  0x67   :  { %v10112_v15 = vld [vmem:[#allocation2 + $0xae0] sm:$0xf]  ;;  %v8640_v21 = vld [vmem:[%s15078_s0 + $0x10] sm:$0xf]  ;;  %v9985_v33 = vor.u32 %v13284_v14, %v9984_v13  ;;  %5016 = vmatpush.bf16.msrb.mxu3 %v9617_v28 }
  0x68   :  { %v10240_v18 = vld [vmem:[#allocation2 + $0xbe0] sm:$0xf]  ;;  %v12956_v22 = vld [vmem:[%s15078_s0 + $0x6c] sm:$0xf0]  ;;  %v10113_v34 = vor.u32 %v13316_v16, %v10112_v15  ;;  %5023 = vmatpush.bf16.msra.mxu0 %v9857_v29  ;;  %4989 = vmatmul.bf16.vlgmr.msrb.gmra.mxu1 %v14390_v44 }
  0x69   :  { %v9840_v35 = vld [vmem:[#allocation2 + $0x8c0] sm:$0xf]  ;;  %v13248_v36 = vld [vmem:[#allocation2 + $0x8cc] sm:$0xf0]  ;;  %v10241_v38 = vor.u32 %v13348_v20, %v10240_v18  ;;  %v14386_v39 = vor.u32 %v12956_v22, %v8640_v21  ;;  %5037 = vmatpush.bf16.msra.mxu1 %v9985_v33  ;;  %5003 = vmatmul.bf16.vlgmr.msrb.gmra.mxu2 %v14388_v43 }
  0x6a   :  { %v9968_v37 = vld [vmem:[#allocation2 + $0x9c0] sm:$0xf]  ;;  %v13280_v40 = vld [vmem:[#allocation2 + $0x9cc] sm:$0xf0]  ;;  %v9841_v48 = vor.u32 %v13248_v36, %v9840_v35  ;;  %5051 = vmatpush.bf16.msra.mxu2 %v10113_v34  ;;  %5017 = vmatmul.bf16.vlgmr.msrb.gmra.mxu3 %v14392_v47 }
  0x6b   :  { %v10096_v41 = vld [vmem:[#allocation2 + $0xac0] sm:$0xf]  ;;  %v13312_v42 = vld [vmem:[#allocation2 + $0xacc] sm:$0xf0]  ;;  %v9969_v49 = vor.u32 %v13280_v40, %v9968_v37  ;;  %5065 = vmatpush.bf16.msra.mxu3 %v10241_v38  ;;  %4975 = vmatmul.bf16.vlgmr.msrb.gmra.mxu0 %v14386_v39 }
  0x6c   :  { %v10224_v45 = vld [vmem:[#allocation2 + $0xbc0] sm:$0xf]  ;;  %v13344_v46 = vld [vmem:[#allocation2 + $0xbcc] sm:$0xf0]  ;;  %v10097_v50 = vor.u32 %v13312_v42, %v10096_v41  ;;  %5024 = vmatpush.bf16.msra.mxu0 %v9841_v48 }
  0x6d   :  { %v9824_v51 = vld [vmem:[#allocation2 + $0x8a0] sm:$0xf]  ;;  %v13244_v52 = vld [vmem:[#allocation2 + $0x8ac] sm:$0xf0]  ;;  %v10225_v54 = vor.u32 %v13344_v46, %v10224_v45  ;;  %5038 = vmatpush.bf16.msra.mxu1 %v9969_v49 }
  0x6e   :  { %v9952_v53 = vld [vmem:[#allocation2 + $0x9a0] sm:$0xf]  ;;  %v13276_v55 = vld [vmem:[#allocation2 + $0x9ac] sm:$0xf0]  ;;  %v9825_v61 = vor.u32 %v13244_v52, %v9824_v51  ;;  %5052 = vmatpush.bf16.msra.mxu2 %v10097_v50 }
  0x6f   :  { %v10080_v56 = vld [vmem:[#allocation2 + $0xaa0] sm:$0xf]  ;;  %v13308_v57 = vld [vmem:[#allocation2 + $0xaac] sm:$0xf0]  ;;  %v9953_v62 = vor.u32 %v13276_v55, %v9952_v53  ;;  %5066 = vmatpush.bf16.msra.mxu3 %v10225_v54 }
  0x70   :  { %v10208_v59 = vld [vmem:[#allocation2 + $0xba0] sm:$0xf]  ;;  %v13340_v60 = vld [vmem:[#allocation2 + $0xbac] sm:$0xf0]  ;;  %v10081_v63 = vor.u32 %v13308_v57, %v10080_v56  ;;  %5025 = vmatpush.bf16.msra.mxu0 %v9825_v61 }
  0x71   :  { %v9808_v0 = vld [vmem:[#allocation2 + $0x880] sm:$0xf]  ;;  %v13240_v2 = vld [vmem:[#allocation2 + $0x88c] sm:$0xf0]  ;;  %v10209_v4 = vor.u32 %v13340_v60, %v10208_v59  ;;  %5039 = vmatpush.bf16.msra.mxu1 %v9953_v62 }
  0x72   :  { %v9936_v3 = vld [vmem:[#allocation2 + $0x980] sm:$0xf]  ;;  %v13272_v5 = vld [vmem:[#allocation2 + $0x98c] sm:$0xf0]  ;;  %v9809_v11 = vor.u32 %v13240_v2, %v9808_v0  ;;  %5053 = vmatpush.bf16.msra.mxu2 %v10081_v63 }
  0x73   :  { %v10064_v6 = vld [vmem:[#allocation2 + $0xa80] sm:$0xf]  ;;  %v13304_v7 = vld [vmem:[#allocation2 + $0xa8c] sm:$0xf0]  ;;  %v9937_v12 = vor.u32 %v13272_v5, %v9936_v3  ;;  %5067 = vmatpush.bf16.msra.mxu3 %v10209_v4 }
  0x74   :  { %v10192_v8 = vld [vmem:[#allocation2 + $0xb80] sm:$0xf]  ;;  %v13336_v9 = vld [vmem:[#allocation2 + $0xb8c] sm:$0xf0]  ;;  %v10065_v13 = vor.u32 %v13304_v7, %v10064_v6  ;;  %5026 = vmatpush.bf16.msra.mxu0 %v9809_v11 }
  0x75   :  { %v9792_v14 = vld [vmem:[#allocation2 + $0x860] sm:$0xf]  ;;  %v13236_v15 = vld [vmem:[#allocation2 + $0x86c] sm:$0xf0]  ;;  %v10193_v18 = vor.u32 %v13336_v9, %v10192_v8  ;;  %5040 = vmatpush.bf16.msra.mxu1 %v9937_v12 }
  0x76   :  { %v9920_v16 = vld [vmem:[#allocation2 + $0x960] sm:$0xf]  ;;  %v13268_v19 = vld [vmem:[#allocation2 + $0x96c] sm:$0xf0]  ;;  %v9793_v24 = vor.u32 %v13236_v15, %v9792_v14  ;;  %5054 = vmatpush.bf16.msra.mxu2 %v10065_v13 }
  0x77   :  { %v10048_v20 = vld [vmem:[#allocation2 + $0xa60] sm:$0xf]  ;;  %v13300_v21 = vld [vmem:[#allocation2 + $0xa6c] sm:$0xf0]  ;;  %v9921_v25 = vor.u32 %v13268_v19, %v9920_v16  ;;  %5068 = vmatpush.bf16.msra.mxu3 %v10193_v18  ;;  %v8664_v16 = vld [vmem:[%s15078_s0 + $0x28] sm:$0xf] }
  0x78   :  { %v10176_v22 = vld [vmem:[#allocation2 + $0xb60] sm:$0xf]  ;;  %v13332_v23 = vld [vmem:[#allocation2 + $0xb6c] sm:$0xf0]  ;;  %v10049_v26 = vor.u32 %v13300_v21, %v10048_v20  ;;  %5027 = vmatpush.bf16.msra.mxu0 %v9793_v24  ;;  %v12959_v18 = vld [vmem:[%s15078_s0 + $0x84] sm:$0xf0] }
  0x79   :  { %v9776_v27 = vld [vmem:[#allocation2 + $0x840] sm:$0xf]  ;;  %v13232_v28 = vld [vmem:[#allocation2 + $0x84c] sm:$0xf0]  ;;  %v10177_v30 = vor.u32 %v13332_v23, %v10176_v22  ;;  %5041 = vmatpush.bf16.msra.mxu1 %v9921_v25  ;;  %v12946_v19 = vld [vmem:[%s15078_s0 + $0x24] sm:$0xf] }
  0x7a   :  { %v9904_v29 = vld [vmem:[#allocation2 + $0x940] sm:$0xf]  ;;  %v13264_v31 = vld [vmem:[#allocation2 + $0x94c] sm:$0xf0]  ;;  %v9777_v36 = vor.u32 %v13232_v28, %v9776_v27  ;;  %5055 = vmatpush.bf16.msra.mxu2 %v10049_v26  ;;  %v8658_v22 = vld [vmem:[%s15078_s0 + $0x80] sm:$0xf0] }
  0x7b   :  { %v10032_v32 = vld [vmem:[#allocation2 + $0xa40] sm:$0xf]  ;;  %v13296_v33 = vld [vmem:[#allocation2 + $0xa4c] sm:$0xf0]  ;;  %v9905_v38 = vor.u32 %v13264_v31, %v9904_v29  ;;  %5069 = vmatpush.bf16.msra.mxu3 %v10177_v30  ;;  %v12947_v23 = vld [vmem:[%s15078_s0 + $0x2c] sm:$0xf] }
  0x7c   :  { %v10160_v34 = vld [vmem:[#allocation2 + $0xb40] sm:$0xf]  ;;  %v13328_v35 = vld [vmem:[#allocation2 + $0xb4c] sm:$0xf0]  ;;  %v10033_v40 = vor.u32 %v13296_v33, %v10032_v32  ;;  %5028 = vmatpush.bf16.msra.mxu0 %v9777_v36  ;;  %v8666_v24 = vld [vmem:[%s15078_s0 + $0x88] sm:$0xf0]  ;;  %v14426_v36 = vor.u32 %v12946_v19, %v8658_v22 }
  0x7d   :  { %v9760_v37 = vld [vmem:[#allocation2 + $0x820] sm:$0xf]  ;;  %v13228_v41 = vld [vmem:[#allocation2 + $0x82c] sm:$0xf0]  ;;  %v10161_v46 = vor.u32 %v13328_v35, %v10160_v34  ;;  %5042 = vmatpush.bf16.msra.mxu1 %v9905_v38  ;;  %v14424_v35 = vor.u32 %v12959_v18, %v8664_v16 }
  0x7e   :  { %v9888_v42 = vld [vmem:[#allocation2 + $0x920] sm:$0xf]  ;;  %v13260_v45 = vld [vmem:[#allocation2 + $0x92c] sm:$0xf0]  ;;  %v9761_v54 = vor.u32 %v13228_v41, %v9760_v37  ;;  %5056 = vmatpush.bf16.msra.mxu2 %v10033_v40  ;;  %v14428_v40 = vor.u32 %v12947_v23, %v8666_v24 }
  0x7f   :  { %v10016_v48 = vld [vmem:[#allocation2 + $0xa20] sm:$0xf]  ;;  %v13292_v49 = vld [vmem:[#allocation2 + $0xa2c] sm:$0xf0]  ;;  %v9889_v60 = vor.u32 %v13260_v45, %v9888_v42  ;;  %5070 = vmatpush.bf16.msra.mxu3 %v10161_v46 }
  0x80   :  { %v10144_v50 = vld [vmem:[#allocation2 + $0xb20] sm:$0xf]  ;;  %v13324_v51 = vld [vmem:[#allocation2 + $0xb2c] sm:$0xf0]  ;;  %v10017_v61 = vor.u32 %v13292_v49, %v10016_v48  ;;  %5029 = vmatpush.bf16.msra.mxu0 %v9761_v54 }
  0x81   :  { %v9744_v52 = vld [vmem:[#allocation2 + $0x800] sm:$0xf]  ;;  %v13224_v53 = vld [vmem:[#allocation2 + $0x80c] sm:$0xf0]  ;;  %v10145_v2 = vor.u32 %v13324_v51, %v10144_v50  ;;  %5043 = vmatpush.bf16.msra.mxu1 %v9889_v60 }
  0x82   :  { %v9872_v55 = vld [vmem:[#allocation2 + $0x900] sm:$0xf]  ;;  %v13256_v56 = vld [vmem:[#allocation2 + $0x90c] sm:$0xf0]  ;;  %v9745_v9 = vor.u32 %v13224_v53, %v9744_v52  ;;  %5057 = vmatpush.bf16.msra.mxu2 %v10017_v61 }
  0x83   :  { %v10000_v57 = vld [vmem:[#allocation2 + $0xa00] sm:$0xf]  ;;  %v13288_v59 = vld [vmem:[#allocation2 + $0xa0c] sm:$0xf0]  ;;  %v9873_v14 = vor.u32 %v13256_v56, %v9872_v55  ;;  %5071 = vmatpush.bf16.msra.mxu3 %v10145_v2 }
  0x84   :  { %v10128_v62 = vld [vmem:[#allocation2 + $0xb00] sm:$0xf]  ;;  %v13320_v63 = vld [vmem:[#allocation2 + $0xb0c] sm:$0xf0]  ;;  %v10001_v15 = vor.u32 %v13288_v59, %v10000_v57  ;;  %5030 = vmatpush.bf16.msra.mxu0 %v9745_v9 }
  0x85   :  { %v10368_v0 = vld [vmem:[#allocation2 + $0xce0] sm:$0xf]  ;;  %v13380_v3 = vld [vmem:[#allocation2 + $0xcec] sm:$0xf0]  ;;  %v10129_v20 = vor.u32 %v13320_v63, %v10128_v62  ;;  %5044 = vmatpush.bf16.msra.mxu1 %v9873_v14 }
  0x86   :  { %v10496_v4 = vld [vmem:[#allocation2 + $0xde0] sm:$0xf]  ;;  %v13412_v5 = vld [vmem:[#allocation2 + $0xdec] sm:$0xf0]  ;;  %v10369_v21 = vor.u32 %v13380_v3, %v10368_v0  ;;  %5058 = vmatpush.bf16.msra.mxu2 %v10001_v15 }
  0x87   :  { %v10624_v6 = vld [vmem:[#allocation2 + $0xee0] sm:$0xf]  ;;  %v13444_v7 = vld [vmem:[#allocation2 + $0xeec] sm:$0xf0]  ;;  %v10497_v25 = vor.u32 %v13412_v5, %v10496_v4  ;;  %5072 = vmatpush.bf16.msra.mxu3 %v10129_v20 }
  0x88   :  { %v10752_v8 = vld [vmem:[#allocation2 + $0xfe0] sm:$0xf]  ;;  %v13476_v11 = vld [vmem:[#allocation2 + $0xfec] sm:$0xf0]  ;;  %v10625_v26 = vor.u32 %v13444_v7, %v10624_v6  ;;  %5079 = vmatpush.bf16.msrb.mxu0 %v10369_v21  ;;  %5045 = vmatmul.bf16.vlgmr.msra.gmra.mxu1 %v14426_v36 }
  0x89   :  { %v8656_v12 = vld [vmem:[%s15078_s0 + $0x20] sm:$0xf]  ;;  %v13376_v28 = vld [vmem:[#allocation2 + $0xccc] sm:$0xf0]  ;;  %v10753_v30 = vor.u32 %v13476_v11, %v10752_v8  ;;  %5093 = vmatpush.bf16.msrb.mxu1 %v10497_v25  ;;  %5059 = vmatmul.bf16.vlgmr.msra.gmra.mxu2 %v14424_v35 }
  0x8a   :  { %v12958_v13 = vld [vmem:[%s15078_s0 + $0x7c] sm:$0xf0]  ;;  %v13408_v32 = vld [vmem:[#allocation2 + $0xdcc] sm:$0xf0]  ;;  %5107 = vmatpush.bf16.msrb.mxu2 %v10625_v26  ;;  %5073 = vmatmul.bf16.vlgmr.msra.gmra.mxu3 %v14428_v40 }
  0x8b   :  { %v10352_v27 = vld [vmem:[#allocation2 + $0xcc0] sm:$0xf]  ;;  %v14422_v31 = vor.u32 %v12958_v13, %v8656_v12  ;;  %v13440_v34 = vld [vmem:[#allocation2 + $0xecc] sm:$0xf0]  ;;  %5121 = vmatpush.bf16.msrb.mxu3 %v10753_v30 }
  0x8c   :  { %v10480_v29 = vld [vmem:[#allocation2 + $0xdc0] sm:$0xf]  ;;  %v13472_v38 = vld [vmem:[#allocation2 + $0xfcc] sm:$0xf0]  ;;  %v10353_v41 = vor.u32 %v13376_v28, %v10352_v27 }
  0x8d   :  { %v10608_v33 = vld [vmem:[#allocation2 + $0xec0] sm:$0xf]  ;;  %v10481_v42 = vor.u32 %v13408_v32, %v10480_v29  ;;  %v13372_v48 = vld [vmem:[#allocation2 + $0xcac] sm:$0xf0]  ;;  %5031 = vmatmul.bf16.vlgmr.msra.gmra.mxu0 %v14422_v31 }
  0x8e   :  { %v10736_v37 = vld [vmem:[#allocation2 + $0xfc0] sm:$0xf]  ;;  %v10609_v45 = vor.u32 %v13440_v34, %v10608_v33  ;;  %v13404_v51 = vld [vmem:[#allocation2 + $0xdac] sm:$0xf0]  ;;  %5080 = vmatpush.bf16.msrb.mxu0 %v10353_v41 }
  0x8f   :  { %v10336_v46 = vld [vmem:[#allocation2 + $0xca0] sm:$0xf]  ;;  %v10737_v50 = vor.u32 %v13472_v38, %v10736_v37  ;;  %v13436_v53 = vld [vmem:[#allocation2 + $0xeac] sm:$0xf0]  ;;  %5094 = vmatpush.bf16.msrb.mxu1 %v10481_v42 }
  0x90   :  { %v10464_v49 = vld [vmem:[#allocation2 + $0xda0] sm:$0xf]  ;;  %v13468_v55 = vld [vmem:[#allocation2 + $0xfac] sm:$0xf0]  ;;  %v10337_v56 = vor.u32 %v13372_v48, %v10336_v46  ;;  %5108 = vmatpush.bf16.msrb.mxu2 %v10609_v45 }
  0x91   :  { %v10592_v52 = vld [vmem:[#allocation2 + $0xea0] sm:$0xf]  ;;  %v10465_v57 = vor.u32 %v13404_v51, %v10464_v49  ;;  %v13368_v61 = vld [vmem:[#allocation2 + $0xc8c] sm:$0xf0]  ;;  %5122 = vmatpush.bf16.msrb.mxu3 %v10737_v50 }
  0x92   :  { %v10720_v54 = vld [vmem:[#allocation2 + $0xfa0] sm:$0xf]  ;;  %v10593_v59 = vor.u32 %v13436_v53, %v10592_v52  ;;  %v13400_v0 = vld [vmem:[#allocation2 + $0xd8c] sm:$0xf0]  ;;  %5081 = vmatpush.bf16.msrb.mxu0 %v10337_v56 }
  0x93   :  { %v10320_v60 = vld [vmem:[#allocation2 + $0xc80] sm:$0xf]  ;;  %v10721_v63 = vor.u32 %v13468_v55, %v10720_v54  ;;  %v13432_v3 = vld [vmem:[#allocation2 + $0xe8c] sm:$0xf0]  ;;  %5095 = vmatpush.bf16.msrb.mxu1 %v10465_v57 }
  0x94   :  { %v10448_v62 = vld [vmem:[#allocation2 + $0xd80] sm:$0xf]  ;;  %v13464_v5 = vld [vmem:[#allocation2 + $0xf8c] sm:$0xf0]  ;;  %v10321_v6 = vor.u32 %v13368_v61, %v10320_v60  ;;  %5109 = vmatpush.bf16.msrb.mxu2 %v10593_v59 }
  0x95   :  { %v10576_v2 = vld [vmem:[#allocation2 + $0xe80] sm:$0xf]  ;;  %v10449_v7 = vor.u32 %v13400_v0, %v10448_v62  ;;  %v13364_v11 = vld [vmem:[#allocation2 + $0xc6c] sm:$0xf0]  ;;  %5123 = vmatpush.bf16.msrb.mxu3 %v10721_v63 }
  0x96   :  { %v10704_v4 = vld [vmem:[#allocation2 + $0xf80] sm:$0xf]  ;;  %v10577_v8 = vor.u32 %v13432_v3, %v10576_v2  ;;  %v13396_v14 = vld [vmem:[#allocation2 + $0xd6c] sm:$0xf0]  ;;  %5082 = vmatpush.bf16.msrb.mxu0 %v10321_v6 }
  0x97   :  { %v10304_v9 = vld [vmem:[#allocation2 + $0xc60] sm:$0xf]  ;;  %v10705_v13 = vor.u32 %v13464_v5, %v10704_v4  ;;  %v13428_v16 = vld [vmem:[#allocation2 + $0xe6c] sm:$0xf0]  ;;  %5096 = vmatpush.bf16.msrb.mxu1 %v10449_v7 }
  0x98   :  { %v10432_v12 = vld [vmem:[#allocation2 + $0xd60] sm:$0xf]  ;;  %v13460_v19 = vld [vmem:[#allocation2 + $0xf6c] sm:$0xf0]  ;;  %v10305_v20 = vor.u32 %v13364_v11, %v10304_v9  ;;  %5110 = vmatpush.bf16.msrb.mxu2 %v10577_v8 }
  0x99   :  { %v10560_v15 = vld [vmem:[#allocation2 + $0xe60] sm:$0xf]  ;;  %v10433_v21 = vor.u32 %v13396_v14, %v10432_v12  ;;  %v13360_v24 = vld [vmem:[#allocation2 + $0xc4c] sm:$0xf0]  ;;  %5124 = vmatpush.bf16.msrb.mxu3 %v10705_v13 }
  0x9a   :  { %v10688_v18 = vld [vmem:[#allocation2 + $0xf60] sm:$0xf]  ;;  %v10561_v22 = vor.u32 %v13428_v16, %v10560_v15  ;;  %v13392_v27 = vld [vmem:[#allocation2 + $0xd4c] sm:$0xf0]  ;;  %5083 = vmatpush.bf16.msrb.mxu0 %v10305_v20  ;;  %v8680_v16 = vld [vmem:[%s15078_s0 + $0x38] sm:$0xf] }
  0x9b   :  { %v10288_v23 = vld [vmem:[#allocation2 + $0xc40] sm:$0xf]  ;;  %v10689_v26 = vor.u32 %v13460_v19, %v10688_v18  ;;  %v13424_v29 = vld [vmem:[#allocation2 + $0xe4c] sm:$0xf0]  ;;  %5097 = vmatpush.bf16.msrb.mxu1 %v10433_v21  ;;  %v12961_v18 = vld [vmem:[%s15078_s0 + $0x94] sm:$0xf0] }
  0x9c   :  { %v10416_v25 = vld [vmem:[#allocation2 + $0xd40] sm:$0xf]  ;;  %v13456_v32 = vld [vmem:[#allocation2 + $0xf4c] sm:$0xf0]  ;;  %v10289_v33 = vor.u32 %v13360_v24, %v10288_v23  ;;  %5111 = vmatpush.bf16.msrb.mxu2 %v10561_v22  ;;  %v12948_v19 = vld [vmem:[%s15078_s0 + $0x34] sm:$0xf] }
  0x9d   :  { %v10544_v28 = vld [vmem:[#allocation2 + $0xe40] sm:$0xf]  ;;  %v13356_v37 = vld [vmem:[#allocation2 + $0xc2c] sm:$0xf0]  ;;  %v10417_v38 = vor.u32 %v13392_v27, %v10416_v25  ;;  %5125 = vmatpush.bf16.msrb.mxu3 %v10689_v26  ;;  %v8674_v22 = vld [vmem:[%s15078_s0 + $0x90] sm:$0xf0] }
  0x9e   :  { %v10672_v30 = vld [vmem:[#allocation2 + $0xf40] sm:$0xf]  ;;  %v10545_v41 = vor.u32 %v13424_v29, %v10544_v28  ;;  %v13388_v45 = vld [vmem:[#allocation2 + $0xd2c] sm:$0xf0]  ;;  %5084 = vmatpush.bf16.msrb.mxu0 %v10289_v33  ;;  %v12949_v23 = vld [vmem:[%s15078_s0 + $0x3c] sm:$0xf] }
  0x9f   :  { %v10272_v34 = vld [vmem:[#allocation2 + $0xc20] sm:$0xf]  ;;  %v10673_v48 = vor.u32 %v13456_v32, %v10672_v30  ;;  %v13420_v49 = vld [vmem:[#allocation2 + $0xe2c] sm:$0xf0]  ;;  %5098 = vmatpush.bf16.msrb.mxu1 %v10417_v38  ;;  %v8682_v24 = vld [vmem:[%s15078_s0 + $0x98] sm:$0xf0]  ;;  %v14460_v38 = vor.u32 %v12961_v18, %v8680_v16 }
  0xa0   :  { %v10400_v42 = vld [vmem:[#allocation2 + $0xd20] sm:$0xf]  ;;  %v13452_v51 = vld [vmem:[#allocation2 + $0xf2c] sm:$0xf0]  ;;  %v10273_v54 = vor.u32 %v13356_v37, %v10272_v34  ;;  %5112 = vmatpush.bf16.msrb.mxu2 %v10545_v41  ;;  %v14462_v41 = vor.u32 %v12948_v19, %v8674_v22 }
  0xa1   :  { %v10528_v46 = vld [vmem:[#allocation2 + $0xe20] sm:$0xf]  ;;  %v13352_v53 = vld [vmem:[#allocation2 + $0xc0c] sm:$0xf0]  ;;  %v10401_v60 = vor.u32 %v13388_v45, %v10400_v42  ;;  %5126 = vmatpush.bf16.msrb.mxu3 %v10673_v48 }
  0xa2   :  { %v10656_v50 = vld [vmem:[#allocation2 + $0xf20] sm:$0xf]  ;;  %v13384_v56 = vld [vmem:[#allocation2 + $0xd0c] sm:$0xf0]  ;;  %v10529_v61 = vor.u32 %v13420_v49, %v10528_v46  ;;  %5085 = vmatpush.bf16.msrb.mxu0 %v10273_v54  ;;  %v14464_v46 = vor.u32 %v12949_v23, %v8682_v24 }
  0xa3   :  { %v10256_v52 = vld [vmem:[#allocation2 + $0xc00] sm:$0xf]  ;;  %v13416_v59 = vld [vmem:[#allocation2 + $0xe0c] sm:$0xf0]  ;;  %v10657_v2 = vor.u32 %v13452_v51, %v10656_v50  ;;  %5099 = vmatpush.bf16.msrb.mxu1 %v10401_v60 }
  0xa4   :  { %v10384_v55 = vld [vmem:[#allocation2 + $0xd00] sm:$0xf]  ;;  %v13448_v63 = vld [vmem:[#allocation2 + $0xf0c] sm:$0xf0]  ;;  %v10257_v9 = vor.u32 %v13352_v53, %v10256_v52  ;;  %5113 = vmatpush.bf16.msrb.mxu2 %v10529_v61 }
  0xa5   :  { %v10512_v57 = vld [vmem:[#allocation2 + $0xe00] sm:$0xf]  ;;  %v13508_v3 = vld [vmem:[#allocation2 + $0x10ec] sm:$0xf0]  ;;  %v10385_v14 = vor.u32 %v13384_v56, %v10384_v55  ;;  %5127 = vmatpush.bf16.msrb.mxu3 %v10657_v2 }
  0xa6   :  { %v10640_v62 = vld [vmem:[#allocation2 + $0xf00] sm:$0xf]  ;;  %v13540_v5 = vld [vmem:[#allocation2 + $0x11ec] sm:$0xf0]  ;;  %v10513_v15 = vor.u32 %v13416_v59, %v10512_v57  ;;  %5086 = vmatpush.bf16.msrb.mxu0 %v10257_v9 }
  0xa7   :  { %v10880_v0 = vld [vmem:[#allocation2 + $0x10e0] sm:$0xf]  ;;  %v13572_v7 = vld [vmem:[#allocation2 + $0x12ec] sm:$0xf0]  ;;  %v10641_v20 = vor.u32 %v13448_v63, %v10640_v62  ;;  %5100 = vmatpush.bf16.msrb.mxu1 %v10385_v14 }
  0xa8   :  { %v11008_v4 = vld [vmem:[#allocation2 + $0x11e0] sm:$0xf]  ;;  %v13604_v11 = vld [vmem:[#allocation2 + $0x13ec] sm:$0xf0]  ;;  %v10881_v21 = vor.u32 %v13508_v3, %v10880_v0  ;;  %5114 = vmatpush.bf16.msrb.mxu2 %v10513_v15 }
  0xa9   :  { %v11136_v6 = vld [vmem:[#allocation2 + $0x12e0] sm:$0xf]  ;;  %v8672_v12 = vld [vmem:[%s15078_s0 + $0x30] sm:$0xf]  ;;  %v11009_v25 = vor.u32 %v13540_v5, %v11008_v4  ;;  %5128 = vmatpush.bf16.msrb.mxu3 %v10641_v20 }
  0xaa   :  { %v11264_v8 = vld [vmem:[#allocation2 + $0x13e0] sm:$0xf]  ;;  %v12960_v13 = vld [vmem:[%s15078_s0 + $0x8c] sm:$0xf0]  ;;  %v11137_v26 = vor.u32 %v13572_v7, %v11136_v6  ;;  %5135 = vmatpush.bf16.msra.mxu0 %v10881_v21  ;;  %5101 = vmatmul.bf16.vlgmr.msrb.gmra.mxu1 %v14462_v41 }
  0xab   :  { %v10864_v27 = vld [vmem:[#allocation2 + $0x10c0] sm:$0xf]  ;;  %v13504_v28 = vld [vmem:[#allocation2 + $0x10cc] sm:$0xf0]  ;;  %v11265_v30 = vor.u32 %v13604_v11, %v11264_v8  ;;  %v14458_v32 = vor.u32 %v12960_v13, %v8672_v12  ;;  %5149 = vmatpush.bf16.msra.mxu1 %v11009_v25  ;;  %5115 = vmatmul.bf16.vlgmr.msrb.gmra.mxu2 %v14460_v38 }
  0xac   :  { %v10992_v29 = vld [vmem:[#allocation2 + $0x11c0] sm:$0xf]  ;;  %v13536_v33 = vld [vmem:[#allocation2 + $0x11cc] sm:$0xf0]  ;;  %v10865_v48 = vor.u32 %v13504_v28, %v10864_v27  ;;  %5163 = vmatpush.bf16.msra.mxu2 %v11137_v26  ;;  %5129 = vmatmul.bf16.vlgmr.msrb.gmra.mxu3 %v14464_v46 }
  0xad   :  { %v11120_v34 = vld [vmem:[#allocation2 + $0x12c0] sm:$0xf]  ;;  %v13568_v37 = vld [vmem:[#allocation2 + $0x12cc] sm:$0xf0]  ;;  %v10993_v49 = vor.u32 %v13536_v33, %v10992_v29  ;;  %5177 = vmatpush.bf16.msra.mxu3 %v11265_v30  ;;  %5087 = vmatmul.bf16.vlgmr.msrb.gmra.mxu0 %v14458_v32 }
  0xae   :  { %v11248_v42 = vld [vmem:[#allocation2 + $0x13c0] sm:$0xf]  ;;  %v13600_v45 = vld [vmem:[#allocation2 + $0x13cc] sm:$0xf0]  ;;  %v11121_v50 = vor.u32 %v13568_v37, %v11120_v34  ;;  %5136 = vmatpush.bf16.msra.mxu0 %v10865_v48 }
  0xaf   :  { %v10848_v51 = vld [vmem:[#allocation2 + $0x10a0] sm:$0xf]  ;;  %v13500_v52 = vld [vmem:[#allocation2 + $0x10ac] sm:$0xf0]  ;;  %v11249_v54 = vor.u32 %v13600_v45, %v11248_v42  ;;  %5150 = vmatpush.bf16.msra.mxu1 %v10993_v49 }
  0xb0   :  { %v10976_v53 = vld [vmem:[#allocation2 + $0x11a0] sm:$0xf]  ;;  %v13532_v55 = vld [vmem:[#allocation2 + $0x11ac] sm:$0xf0]  ;;  %v10849_v61 = vor.u32 %v13500_v52, %v10848_v51  ;;  %5164 = vmatpush.bf16.msra.mxu2 %v11121_v50 }
  0xb1   :  { %v11104_v56 = vld [vmem:[#allocation2 + $0x12a0] sm:$0xf]  ;;  %v13564_v57 = vld [vmem:[#allocation2 + $0x12ac] sm:$0xf0]  ;;  %v10977_v62 = vor.u32 %v13532_v55, %v10976_v53  ;;  %5178 = vmatpush.bf16.msra.mxu3 %v11249_v54 }
  0xb2   :  { %v11232_v59 = vld [vmem:[#allocation2 + $0x13a0] sm:$0xf]  ;;  %v13596_v60 = vld [vmem:[#allocation2 + $0x13ac] sm:$0xf0]  ;;  %v11105_v63 = vor.u32 %v13564_v57, %v11104_v56  ;;  %5137 = vmatpush.bf16.msra.mxu0 %v10849_v61 }
  0xb3   :  { %v10832_v0 = vld [vmem:[#allocation2 + $0x1080] sm:$0xf]  ;;  %v13496_v2 = vld [vmem:[#allocation2 + $0x108c] sm:$0xf0]  ;;  %v11233_v4 = vor.u32 %v13596_v60, %v11232_v59  ;;  %5151 = vmatpush.bf16.msra.mxu1 %v10977_v62 }
  0xb4   :  { %v10960_v3 = vld [vmem:[#allocation2 + $0x1180] sm:$0xf]  ;;  %v13528_v5 = vld [vmem:[#allocation2 + $0x118c] sm:$0xf0]  ;;  %v10833_v11 = vor.u32 %v13496_v2, %v10832_v0  ;;  %5165 = vmatpush.bf16.msra.mxu2 %v11105_v63 }
  0xb5   :  { %v11088_v6 = vld [vmem:[#allocation2 + $0x1280] sm:$0xf]  ;;  %v13560_v7 = vld [vmem:[#allocation2 + $0x128c] sm:$0xf0]  ;;  %v10961_v12 = vor.u32 %v13528_v5, %v10960_v3  ;;  %5179 = vmatpush.bf16.msra.mxu3 %v11233_v4 }
  0xb6   :  { %v11216_v8 = vld [vmem:[#allocation2 + $0x1380] sm:$0xf]  ;;  %v13592_v9 = vld [vmem:[#allocation2 + $0x138c] sm:$0xf0]  ;;  %v11089_v13 = vor.u32 %v13560_v7, %v11088_v6  ;;  %5138 = vmatpush.bf16.msra.mxu0 %v10833_v11 }
  0xb7   :  { %v10816_v14 = vld [vmem:[#allocation2 + $0x1060] sm:$0xf]  ;;  %v13492_v15 = vld [vmem:[#allocation2 + $0x106c] sm:$0xf0]  ;;  %v11217_v18 = vor.u32 %v13592_v9, %v11216_v8  ;;  %5152 = vmatpush.bf16.msra.mxu1 %v10961_v12 }
  0xb8   :  { %v10944_v16 = vld [vmem:[#allocation2 + $0x1160] sm:$0xf]  ;;  %v13524_v19 = vld [vmem:[#allocation2 + $0x116c] sm:$0xf0]  ;;  %v10817_v24 = vor.u32 %v13492_v15, %v10816_v14  ;;  %5166 = vmatpush.bf16.msra.mxu2 %v11089_v13 }
  0xb9   :  { %v11072_v20 = vld [vmem:[#allocation2 + $0x1260] sm:$0xf]  ;;  %v13556_v21 = vld [vmem:[#allocation2 + $0x126c] sm:$0xf0]  ;;  %v10945_v25 = vor.u32 %v13524_v19, %v10944_v16  ;;  %5180 = vmatpush.bf16.msra.mxu3 %v11217_v18 }
  0xba   :  { %v11200_v22 = vld [vmem:[#allocation2 + $0x1360] sm:$0xf]  ;;  %v13588_v23 = vld [vmem:[#allocation2 + $0x136c] sm:$0xf0]  ;;  %v11073_v26 = vor.u32 %v13556_v21, %v11072_v20  ;;  %5139 = vmatpush.bf16.msra.mxu0 %v10817_v24 }
  0xbb   :  { %v10800_v27 = vld [vmem:[#allocation2 + $0x1040] sm:$0xf]  ;;  %v13488_v28 = vld [vmem:[#allocation2 + $0x104c] sm:$0xf0]  ;;  %v11201_v30 = vor.u32 %v13588_v23, %v11200_v22  ;;  %5153 = vmatpush.bf16.msra.mxu1 %v10945_v25  ;;  %v8696_v25 = vld [vmem:[%s15078_s0 + $0x48] sm:$0xf] }
  0xbc   :  { %v10928_v29 = vld [vmem:[#allocation2 + $0x1140] sm:$0xf]  ;;  %v13520_v33 = vld [vmem:[#allocation2 + $0x114c] sm:$0xf0]  ;;  %v10801_v48 = vor.u32 %v13488_v28, %v10800_v27  ;;  %5167 = vmatpush.bf16.msra.mxu2 %v11073_v26  ;;  %v12963_v26 = vld [vmem:[%s15078_s0 + $0xa4] sm:$0xf0] }
  0xbd   :  { %v11056_v34 = vld [vmem:[#allocation2 + $0x1240] sm:$0xf]  ;;  %v13552_v37 = vld [vmem:[#allocation2 + $0x124c] sm:$0xf0]  ;;  %v10929_v50 = vor.u32 %v13520_v33, %v10928_v29  ;;  %5181 = vmatpush.bf16.msra.mxu3 %v11201_v30  ;;  %v12950_v27 = vld [vmem:[%s15078_s0 + $0x44] sm:$0xf] }
  0xbe   :  { %v11184_v42 = vld [vmem:[#allocation2 + $0x1340] sm:$0xf]  ;;  %v13584_v45 = vld [vmem:[#allocation2 + $0x134c] sm:$0xf0]  ;;  %v11057_v51 = vor.u32 %v13552_v37, %v11056_v34  ;;  %5140 = vmatpush.bf16.msra.mxu0 %v10801_v48  ;;  %v8690_v30 = vld [vmem:[%s15078_s0 + $0xa0] sm:$0xf0] }
  0xbf   :  { %v10784_v49 = vld [vmem:[#allocation2 + $0x1020] sm:$0xf]  ;;  %v13484_v52 = vld [vmem:[#allocation2 + $0x102c] sm:$0xf0]  ;;  %v11185_v55 = vor.u32 %v13584_v45, %v11184_v42  ;;  %5154 = vmatpush.bf16.msra.mxu1 %v10929_v50  ;;  %v12951_v33 = vld [vmem:[%s15078_s0 + $0x4c] sm:$0xf] }
  0xc0   :  { %v10912_v53 = vld [vmem:[#allocation2 + $0x1120] sm:$0xf]  ;;  %v13516_v54 = vld [vmem:[#allocation2 + $0x112c] sm:$0xf0]  ;;  %v10785_v63 = vor.u32 %v13484_v52, %v10784_v49  ;;  %5168 = vmatpush.bf16.msra.mxu2 %v11057_v51  ;;  %v8698_v34 = vld [vmem:[%s15078_s0 + $0xa8] sm:$0xf0] }
  0xc1   :  { %v11040_v56 = vld [vmem:[#allocation2 + $0x1220] sm:$0xf]  ;;  %v13548_v57 = vld [vmem:[#allocation2 + $0x122c] sm:$0xf0]  ;;  %v10913_v5 = vor.u32 %v13516_v54, %v10912_v53  ;;  %5182 = vmatpush.bf16.msra.mxu3 %v11185_v55  ;;  %v14496_v55 = vor.u32 %v12963_v26, %v8696_v25 }
  0xc2   :  { %v11168_v59 = vld [vmem:[#allocation2 + $0x1320] sm:$0xf]  ;;  %v13580_v60 = vld [vmem:[#allocation2 + $0x132c] sm:$0xf0]  ;;  %v11041_v6 = vor.u32 %v13548_v57, %v11040_v56  ;;  %5141 = vmatpush.bf16.msra.mxu0 %v10785_v63  ;;  %v14498_v56 = vor.u32 %v12950_v27, %v8690_v30 }
  0xc3   :  { %v10768_v61 = vld [vmem:[#allocation2 + $0x1000] sm:$0xf]  ;;  %v13480_v62 = vld [vmem:[#allocation2 + $0x100c] sm:$0xf0]  ;;  %v11169_v11 = vor.u32 %v13580_v60, %v11168_v59  ;;  %5155 = vmatpush.bf16.msra.mxu1 %v10913_v5  ;;  %v14500_v60 = vor.u32 %v12951_v33, %v8698_v34 }
  0xc4   :  { %v10896_v0 = vld [vmem:[#allocation2 + $0x1100] sm:$0xf]  ;;  %v13512_v2 = vld [vmem:[#allocation2 + $0x110c] sm:$0xf0]  ;;  %v10769_v19 = vor.u32 %v13480_v62, %v10768_v61  ;;  %5169 = vmatpush.bf16.msra.mxu2 %v11041_v6 }
  0xc5   :  { %v11024_v3 = vld [vmem:[#allocation2 + $0x1200] sm:$0xf]  ;;  %v13544_v4 = vld [vmem:[#allocation2 + $0x120c] sm:$0xf0]  ;;  %v10897_v23 = vor.u32 %v13512_v2, %v10896_v0  ;;  %5183 = vmatpush.bf16.msra.mxu3 %v11169_v11 }
  0xc6   :  { %v11152_v7 = vld [vmem:[#allocation2 + $0x1300] sm:$0xf]  ;;  %v13576_v8 = vld [vmem:[#allocation2 + $0x130c] sm:$0xf0]  ;;  %v11025_v24 = vor.u32 %v13544_v4, %v11024_v3  ;;  %5142 = vmatpush.bf16.msra.mxu0 %v10769_v19 }
  0xc7   :  { %v11392_v9 = vld [vmem:[#allocation2 + $0x14e0] sm:$0xf]  ;;  %v13636_v12 = vld [vmem:[#allocation2 + $0x14ec] sm:$0xf0]  ;;  %v11153_v28 = vor.u32 %v13576_v8, %v11152_v7  ;;  %5156 = vmatpush.bf16.msra.mxu1 %v10897_v23 }
  0xc8   :  { %v11520_v13 = vld [vmem:[#allocation2 + $0x15e0] sm:$0xf]  ;;  %v13668_v14 = vld [vmem:[#allocation2 + $0x15ec] sm:$0xf0]  ;;  %v11393_v29 = vor.u32 %v13636_v12, %v11392_v9  ;;  %5170 = vmatpush.bf16.msra.mxu2 %v11025_v24 }
  0xc9   :  { %v11648_v15 = vld [vmem:[#allocation2 + $0x16e0] sm:$0xf]  ;;  %v13700_v16 = vld [vmem:[#allocation2 + $0x16ec] sm:$0xf0]  ;;  %v11521_v37 = vor.u32 %v13668_v14, %v11520_v13  ;;  %5184 = vmatpush.bf16.msra.mxu3 %v11153_v28 }
  0xca   :  { %v11776_v18 = vld [vmem:[#allocation2 + $0x17e0] sm:$0xf]  ;;  %v13732_v20 = vld [vmem:[#allocation2 + $0x17ec] sm:$0xf0]  ;;  %v11649_v42 = vor.u32 %v13700_v16, %v11648_v15  ;;  %5191 = vmatpush.bf16.msrb.mxu0 %v11393_v29  ;;  %5157 = vmatmul.bf16.vlgmr.msra.gmra.mxu1 %v14498_v56 }
  0xcb   :  { %v8688_v21 = vld [vmem:[%s15078_s0 + $0x40] sm:$0xf]  ;;  %v13632_v48 = vld [vmem:[#allocation2 + $0x14cc] sm:$0xf0]  ;;  %v11777_v50 = vor.u32 %v13732_v20, %v11776_v18  ;;  %5205 = vmatpush.bf16.msrb.mxu1 %v11521_v37  ;;  %5171 = vmatmul.bf16.vlgmr.msra.gmra.mxu2 %v14496_v55 }
  0xcc   :  { %v12962_v22 = vld [vmem:[%s15078_s0 + $0x9c] sm:$0xf0]  ;;  %v13664_v52 = vld [vmem:[#allocation2 + $0x15cc] sm:$0xf0]  ;;  %5219 = vmatpush.bf16.msrb.mxu2 %v11649_v42  ;;  %5185 = vmatmul.bf16.vlgmr.msra.gmra.mxu3 %v14500_v60  ;;  %v4920_v26 = vpop.f32.mrf.mxu0 }
  0xcd   :  { %v11376_v45 = vld [vmem:[#allocation2 + $0x14c0] sm:$0xf]  ;;  %v14494_v51 = vor.u32 %v12962_v22, %v8688_v21  ;;  %v13696_v54 = vld [vmem:[#allocation2 + $0x16cc] sm:$0xf0]  ;;  %5233 = vmatpush.bf16.msrb.mxu3 %v11777_v50 }
  0xce   :  { %v11504_v49 = vld [vmem:[#allocation2 + $0x15c0] sm:$0xf]  ;;  %v13728_v59 = vld [vmem:[#allocation2 + $0x17cc] sm:$0xf0]  ;;  %v11377_v61 = vor.u32 %v13632_v48, %v11376_v45 }
  0xcf   :  { %v11632_v53 = vld [vmem:[#allocation2 + $0x16c0] sm:$0xf]  ;;  %v11505_v63 = vor.u32 %v13664_v52, %v11504_v49  ;;  %v13628_v2 = vld [vmem:[#allocation2 + $0x14ac] sm:$0xf0]  ;;  %5143 = vmatmul.bf16.vlgmr.msra.gmra.mxu0 %v14494_v51 }
  0xd0   :  { %v11760_v57 = vld [vmem:[#allocation2 + $0x17c0] sm:$0xf]  ;;  %v11633_v0 = vor.u32 %v13696_v54, %v11632_v53  ;;  %v13660_v6 = vld [vmem:[#allocation2 + $0x15ac] sm:$0xf0]  ;;  %5192 = vmatpush.bf16.msrb.mxu0 %v11377_v61  ;;  %v4934_v53 = vpop.f32.mrf.mxu1 }
  0xd1   :  { %v11360_v62 = vld [vmem:[#allocation2 + $0x14a0] sm:$0xf]  ;;  %v11761_v5 = vor.u32 %v13728_v59, %v11760_v57  ;;  %v13692_v8 = vld [vmem:[#allocation2 + $0x16ac] sm:$0xf0]  ;;  %5206 = vmatpush.bf16.msrb.mxu1 %v11505_v63 }
  0xd2   :  { %v11488_v3 = vld [vmem:[#allocation2 + $0x15a0] sm:$0xf]  ;;  %v13724_v11 = vld [vmem:[#allocation2 + $0x17ac] sm:$0xf0]  ;;  %v11361_v12 = vor.u32 %v13628_v2, %v11360_v62  ;;  %5220 = vmatpush.bf16.msrb.mxu2 %v11633_v0 }
  0xd3   :  { %v14502_v4 = vld [vmem:[#allocation4] sm:$0xf]  ;;  %v11489_v14 = vor.u32 %v13660_v6, %v11488_v3  ;;  %v13624_v18 = vld [vmem:[#allocation2 + $0x148c] sm:$0xf0]  ;;  %5234 = vmatpush.bf16.msrb.mxu3 %v11761_v5 }
  0xd4   :  { %v11616_v7 = vld [vmem:[#allocation2 + $0x16a0] sm:$0xf]  ;;  %v15088_v13 = vperm.slane %v14502_v4, 0  ;;  %v13656_v21 = vld [vmem:[#allocation2 + $0x158c] sm:$0xf0]  ;;  %5193 = vmatpush.bf16.msrb.mxu0 %v11361_v12 }
  0xd5   :  { %v11744_v9 = vld [vmem:[#allocation2 + $0x17a0] sm:$0xf]  ;;  %v11617_v15 = vor.u32 %v13692_v8, %v11616_v7  ;;  %v13688_v23 = vld [vmem:[#allocation2 + $0x168c] sm:$0xf0]  ;;  %5207 = vmatpush.bf16.msrb.mxu1 %v11489_v14  ;;  %v4948_v7 = vpop.f32.mrf.mxu2 }
  0xd6   :  { %v11344_v16 = vld [vmem:[#allocation2 + $0x1480] sm:$0xf]  ;;  %v11745_v20 = vor.u32 %v13724_v11, %v11744_v9  ;;  %v13720_v25 = vld [vmem:[#allocation2 + $0x178c] sm:$0xf0]  ;;  %v4921_v28 = vadd.f32 %v4920_v26, %v15088_v13  ;;  %v13278_v13 = vld [vmem:[#allocation2 + $0x9c4] sm:$0xf] }
  0xd7   :  { %v11472_v19 = vld [vmem:[#allocation2 + $0x1580] sm:$0xf]  ;;  %v11345_v27 = vor.u32 %v13624_v18, %v11344_v16  ;;  %5221 = vmatpush.bf16.msrb.mxu2 %v11617_v15  ;;  %v13620_v34 = vld [vmem:[#allocation2 + $0x146c] sm:$0xf0] }
  0xd8   :  { %v11600_v22 = vld [vmem:[#allocation2 + $0x1680] sm:$0xf]  ;;  %v11473_v29 = vor.u32 %v13656_v21, %v11472_v19  ;;  %5235 = vmatpush.bf16.msrb.mxu3 %v11745_v20  ;;  %v13652_v45 = vld [vmem:[#allocation2 + $0x156c] sm:$0xf0]  ;;  %v4935_v57 = vadd.f32 %v4934_v53, %v4921_v28 }
  0xd9   :  { %v11728_v24 = vld [vmem:[#allocation2 + $0x1780] sm:$0xf]  ;;  %v11601_v30 = vor.u32 %v13688_v23, %v11600_v22  ;;  %v13684_v49 = vld [vmem:[#allocation2 + $0x166c] sm:$0xf0]  ;;  %5194 = vmatpush.bf16.msrb.mxu0 %v11345_v27 }
  0xda   :  { %v11328_v33 = vld [vmem:[#allocation2 + $0x1460] sm:$0xf]  ;;  %v11729_v42 = vor.u32 %v13720_v25, %v11728_v24  ;;  %v13716_v52 = vld [vmem:[#allocation2 + $0x176c] sm:$0xf0]  ;;  %5208 = vmatpush.bf16.msrb.mxu1 %v11473_v29  ;;  %v4949_v11 = vadd.f32 %v4948_v7, %v4935_v57  ;;  %v4962_v25 = vpop.f32.mrf.mxu3  ;;  %v13026_v57 = vld [vmem:[#allocation2 + $0x1e4] sm:$0xf] }
  0xdb   :  { %v11456_v37 = vld [vmem:[#allocation2 + $0x1560] sm:$0xf]  ;;  %v11329_v54 = vor.u32 %v13620_v34, %v11328_v33  ;;  %5222 = vmatpush.bf16.msrb.mxu2 %v11601_v30  ;;  %v13616_v63 = vld [vmem:[#allocation2 + $0x144c] sm:$0xf0] }
  0xdc   :  { %v11584_v48 = vld [vmem:[#allocation2 + $0x1660] sm:$0xf]  ;;  %v11457_v59 = vor.u32 %v13652_v45, %v11456_v37  ;;  %5236 = vmatpush.bf16.msrb.mxu3 %v11729_v42  ;;  %v13648_v3 = vld [vmem:[#allocation2 + $0x154c] sm:$0xf0]  ;;  %v14511_v29 = vadd.f32 %v4962_v25, %v4949_v11  ;;  %v12952_v11 = vld [vmem:[%s15078_s0 + $0x54] sm:$0xf] }
  0xdd   :  { %v11712_v50 = vld [vmem:[#allocation2 + $0x1760] sm:$0xf]  ;;  %v11585_v61 = vor.u32 %v13684_v49, %v11584_v48  ;;  %v13680_v6 = vld [vmem:[#allocation2 + $0x164c] sm:$0xf0]  ;;  %5195 = vmatpush.bf16.msrb.mxu0 %v11329_v54  ;;  %v8834_v54 = vld [vmem:[#allocation2 + $0xf0] sm:$0xf0] }
  0xde   :  { %v11312_v62 = vld [vmem:[#allocation2 + $0x1440] sm:$0xf]  ;;  %v11713_v2 = vor.u32 %v13716_v52, %v11712_v50  ;;  %v13712_v9 = vld [vmem:[#allocation2 + $0x174c] sm:$0xf0]  ;;  %5209 = vmatpush.bf16.msrb.mxu1 %v11457_v59  ;;  %v12994_v52 = vld [vmem:[#allocation2 + $0xe4] sm:$0xf] }
  0xdf   :  { %v11440_v0 = vld [vmem:[#allocation2 + $0x1540] sm:$0xf]  ;;  %v11313_v12 = vor.u32 %v13616_v63, %v11312_v62  ;;  %5223 = vmatpush.bf16.msrb.mxu2 %v11585_v61  ;;  %v13612_v18 = vld [vmem:[#allocation2 + $0x142c] sm:$0xf0]  ;;  %v8962_v59 = vld [vmem:[#allocation2 + $0x1f0] sm:$0xf0] }
  0xe0   :  { %v11568_v5 = vld [vmem:[#allocation2 + $0x1640] sm:$0xf]  ;;  %v11441_v15 = vor.u32 %v13648_v3, %v11440_v0  ;;  %v13644_v20 = vld [vmem:[#allocation2 + $0x152c] sm:$0xf0]  ;;  %5237 = vmatpush.bf16.msrb.mxu3 %v11713_v2  ;;  %v13058_v61 = vld [vmem:[#allocation2 + $0x2e4] sm:$0xf] }
  0xe1   :  { %v11696_v8 = vld [vmem:[#allocation2 + $0x1740] sm:$0xf]  ;;  %v11569_v16 = vor.u32 %v13680_v6, %v11568_v5  ;;  %v13676_v23 = vld [vmem:[#allocation2 + $0x162c] sm:$0xf0]  ;;  %5196 = vmatpush.bf16.msrb.mxu0 %v11313_v12  ;;  %v9090_v62 = vld [vmem:[#allocation2 + $0x2f0] sm:$0xf0] }
  0xe2   :  { %v11296_v14 = vld [vmem:[#allocation2 + $0x1420] sm:$0xf]  ;;  %v11697_v21 = vor.u32 %v13712_v9, %v11696_v8  ;;  %v13708_v26 = vld [vmem:[#allocation2 + $0x172c] sm:$0xf0]  ;;  %5210 = vmatpush.bf16.msrb.mxu1 %v11441_v15  ;;  %v13090_v63 = vld [vmem:[#allocation2 + $0x3e4] sm:$0xf] }
  0xe3   :  { %v11424_v19 = vld [vmem:[#allocation2 + $0x1520] sm:$0xf]  ;;  %v13608_v28 = vld [vmem:[#allocation2 + $0x140c] sm:$0xf0]  ;;  %v11297_v30 = vor.u32 %v13612_v18, %v11296_v14  ;;  %5224 = vmatpush.bf16.msrb.mxu2 %v11569_v16  ;;  %v9218_v2 = vld [vmem:[#allocation2 + $0x3f0] sm:$0xf0]  ;;  %v8837_v14 = vor.u32 %v12994_v52, %v8834_v54 }
  0xe4   :  { %v11552_v22 = vld [vmem:[#allocation2 + $0x1620] sm:$0xf]  ;;  %v13640_v34 = vld [vmem:[#allocation2 + $0x150c] sm:$0xf0]  ;;  %v11425_v45 = vor.u32 %v13644_v20, %v11424_v19  ;;  %5238 = vmatpush.bf16.msrb.mxu3 %v11697_v21  ;;  %v8712_v8 = vld [vmem:[%s15078_s0 + $0x58] sm:$0xf]  ;;  %v8965_v19 = vor.u32 %v13026_v57, %v8962_v59  ;;  %v9093_v20 = vor.u32 %v13058_v61, %v9090_v62  ;;  %v14537_v21 = vpop.f32.mrf.mxu0  ;;  %v9221_v25 = vor.u32 %v13090_v63, %v9218_v2 }
  0xe5   :  { %v11680_v24 = vld [vmem:[#allocation2 + $0x1720] sm:$0xf]  ;;  %v13672_v42 = vld [vmem:[#allocation2 + $0x160c] sm:$0xf0]  ;;  %v11553_v48 = vor.u32 %v13676_v23, %v11552_v22  ;;  %5197 = vmatpush.bf16.msrb.mxu0 %v11297_v30  ;;  %v12965_v9 = vld [vmem:[%s15078_s0 + $0xb4] sm:$0xf0] }
  0xe6   :  { %v11280_v27 = vld [vmem:[#allocation2 + $0x1400] sm:$0xf]  ;;  %v13704_v50 = vld [vmem:[#allocation2 + $0x170c] sm:$0xf0]  ;;  %v11681_v53 = vor.u32 %v13708_v26, %v11680_v24  ;;  %5211 = vmatpush.bf16.msrb.mxu1 %v11425_v45  ;;  %v8706_v15 = vld [vmem:[%s15078_s0 + $0xb0] sm:$0xf0]  ;;  %v14545_v45 = vpop.f32.mrf.mxu1 }
  0xe7   :  { %v11408_v33 = vld [vmem:[#allocation2 + $0x1500] sm:$0xf]  ;;  %v11281_v0 = vor.u32 %v13608_v28, %v11280_v27  ;;  %v8704_v3 = vld [vmem:[%s15078_s0 + $0x50] sm:$0xf]  ;;  %5225 = vmatpush.bf16.msrb.mxu2 %v11553_v48  ;;  %v12953_v16 = vld [vmem:[%s15078_s0 + $0x5c] sm:$0xf] }
  0xe8   :  { %v11536_v37 = vld [vmem:[#allocation2 + $0x1600] sm:$0xf]  ;;  %v12964_v5 = vld [vmem:[%s15078_s0 + $0xac] sm:$0xf0]  ;;  %v11409_v6 = vor.u32 %v13640_v34, %v11408_v33  ;;  %5239 = vmatpush.bf16.msrb.mxu3 %v11681_v53  ;;  %v8714_v18 = vld [vmem:[%s15078_s0 + $0xb8] sm:$0xf0]  ;;  %v14541_v33 = vor.u32 %v12965_v9, %v8712_v8  ;;  %v14543_v34 = vor.u32 %v12952_v11, %v8706_v15 }
  0xe9   :  { %v11664_v49 = vld [vmem:[#allocation2 + $0x1700] sm:$0xf]  ;;  %v11537_v7 = vor.u32 %v13672_v42, %v11536_v37  ;;  %v12990_v22 = vld [vmem:[#allocation2 + $0xc4] sm:$0xf]  ;;  %v8818_v23 = vld [vmem:[#allocation2 + $0xd0] sm:$0xf0]  ;;  %5198 = vmatpush.bf16.msrb.mxu0 %v11281_v0  ;;  %v14539_v26 = vor.u32 %v12964_v5, %v8704_v3  ;;  %v14547_v48 = vor.u32 %v12953_v16, %v8714_v18  ;;  %v14553_v5 = vpop.f32.mrf.mxu2 }
  0xea   :  { %v11665_v12 = vor.u32 %v13704_v50, %v11664_v49  ;;  %v13022_v24 = vld [vmem:[#allocation2 + $0x1c4] sm:$0xf]  ;;  %v8946_v27 = vld [vmem:[#allocation2 + $0x1d0] sm:$0xf0]  ;;  %5212 = vmatpush.bf16.msrb.mxu1 %v11409_v6  ;;  %v8821_v49 = vor.u32 %v12990_v22, %v8818_v23 }
  0xeb   :  { %v13054_v28 = vld [vmem:[#allocation2 + $0x2c4] sm:$0xf]  ;;  %v9074_v30 = vld [vmem:[#allocation2 + $0x2d0] sm:$0xf0]  ;;  %5226 = vmatpush.bf16.msrb.mxu2 %v11537_v7  ;;  %v8949_v50 = vor.u32 %v13022_v24, %v8946_v27 }
  0xec   :  { %v13086_v37 = vld [vmem:[#allocation2 + $0x3c4] sm:$0xf]  ;;  %v9202_v42 = vld [vmem:[#allocation2 + $0x3d0] sm:$0xf0]  ;;  %5240 = vmatpush.bf16.msrb.mxu3 %v11665_v12  ;;  %v9077_v52 = vor.u32 %v13054_v28, %v9074_v30  ;;  %5199 = vmatmul.bf16.vlgmr.msrb.gmra.mxu0 %v14539_v26 }
  0xed   :  { %5247 = vmatpush.bf16.msra.mxu0 %v8837_v14  ;;  %v12986_v53 = vld [vmem:[#allocation2 + $0xa4] sm:$0xf]  ;;  %v8802_v54 = vld [vmem:[#allocation2 + $0xb0] sm:$0xf0]  ;;  %v9205_v59 = vor.u32 %v13086_v37, %v9202_v42  ;;  %5213 = vmatmul.bf16.vlgmr.msrb.gmra.mxu1 %v14543_v34  ;;  %v14555_v14 = vpop.f32.mrf.mxu3 }
  0xee   :  { %5261 = vmatpush.bf16.msra.mxu1 %v8965_v19  ;;  %v13018_v57 = vld [vmem:[#allocation2 + $0x1a4] sm:$0xf]  ;;  %v8930_v61 = vld [vmem:[#allocation2 + $0x1b0] sm:$0xf0]  ;;  %5227 = vmatmul.bf16.vlgmr.msrb.gmra.mxu2 %v14541_v33  ;;  %v8805_v3 = vor.u32 %v12986_v53, %v8802_v54  ;;  %15090 = vst [vmem:[#allocation20_spill] sm:$0xff] %v14555_v14  ;;  %v4976_v19 = vpop.f32.mrf.mxu0  ;;  %v4990_v28 = vpop.f32.mrf.mxu1 }
  0xef   :  { %5275 = vmatpush.bf16.msra.mxu2 %v9093_v20  ;;  %v13050_v62 = vld [vmem:[#allocation2 + $0x2a4] sm:$0xf]  ;;  %v9058_v63 = vld [vmem:[#allocation2 + $0x2b0] sm:$0xf0]  ;;  %5241 = vmatmul.bf16.vlgmr.msrb.gmra.mxu3 %v14547_v48  ;;  %v8933_v6 = vor.u32 %v13018_v57, %v8930_v61  ;;  %v4977_v23 = vadd.f32 %v4976_v19, %v14511_v29  ;;  %v13185_v14 = vld [vmem:[#allocation2 + $0x6d4] sm:$0xf0] }
  0xf0   :  { %5289 = vmatpush.bf16.msra.mxu3 %v9221_v25  ;;  %v13082_v0 = vld [vmem:[#allocation2 + $0x3a4] sm:$0xf]  ;;  %v9186_v2 = vld [vmem:[#allocation2 + $0x3b0] sm:$0xf0]  ;;  %v9061_v7 = vor.u32 %v13050_v62, %v9058_v63 }
  0xf1   :  { %5248 = vmatpush.bf16.msra.mxu0 %v8821_v49  ;;  %v12982_v8 = vld [vmem:[#allocation2 + $0x84] sm:$0xf]  ;;  %v8786_v9 = vld [vmem:[#allocation2 + $0x90] sm:$0xf0]  ;;  %v9189_v12 = vor.u32 %v13082_v0, %v9186_v2 }
  0xf2   :  { %5262 = vmatpush.bf16.msra.mxu1 %v8949_v50  ;;  %v13014_v11 = vld [vmem:[#allocation2 + $0x184] sm:$0xf]  ;;  %v8914_v15 = vld [vmem:[#allocation2 + $0x190] sm:$0xf0]  ;;  %v8789_v24 = vor.u32 %v12982_v8, %v8786_v9  ;;  %v4991_v50 = vadd.f32 %v4990_v28, %v4977_v23 }
  0xf3   :  { %5276 = vmatpush.bf16.msra.mxu2 %v9077_v52  ;;  %v13046_v16 = vld [vmem:[#allocation2 + $0x284] sm:$0xf]  ;;  %v9042_v18 = vld [vmem:[#allocation2 + $0x290] sm:$0xf0]  ;;  %v8917_v25 = vor.u32 %v13014_v11, %v8914_v15 }
  0xf4   :  { %5290 = vmatpush.bf16.msra.mxu3 %v9205_v59  ;;  %v13078_v20 = vld [vmem:[#allocation2 + $0x384] sm:$0xf]  ;;  %v9170_v22 = vld [vmem:[#allocation2 + $0x390] sm:$0xf0]  ;;  %v9045_v27 = vor.u32 %v13046_v16, %v9042_v18 }
  0xf5   :  { %5249 = vmatpush.bf16.msra.mxu0 %v8805_v3  ;;  %v12978_v30 = vld [vmem:[#allocation2 + $0x64] sm:$0xf]  ;;  %v8770_v37 = vld [vmem:[#allocation2 + $0x70] sm:$0xf0]  ;;  %v9173_v49 = vor.u32 %v13078_v20, %v9170_v22  ;;  %v5018_v16 = vpop.f32.mrf.mxu3 }
  0xf6   :  { %5263 = vmatpush.bf16.msra.mxu1 %v8933_v6  ;;  %v13010_v42 = vld [vmem:[#allocation2 + $0x164] sm:$0xf]  ;;  %v8898_v52 = vld [vmem:[#allocation2 + $0x170] sm:$0xf0]  ;;  %v8773_v61 = vor.u32 %v12978_v30, %v8770_v37  ;;  %v5004_v6 = vpop.f32.mrf.mxu2 }
  0xf7   :  { %5277 = vmatpush.bf16.msra.mxu2 %v9061_v7  ;;  %v13042_v53 = vld [vmem:[#allocation2 + $0x264] sm:$0xf]  ;;  %v9026_v54 = vld [vmem:[#allocation2 + $0x270] sm:$0xf0]  ;;  %v8901_v29 = vor.u32 %v13010_v42, %v8898_v52  ;;  %v5005_v11 = vadd.f32 %v5004_v6, %v4991_v50 }
  0xf8   :  { %5291 = vmatpush.bf16.msra.mxu3 %v9189_v12  ;;  %v13074_v57 = vld [vmem:[#allocation2 + $0x364] sm:$0xf]  ;;  %v9154_v59 = vld [vmem:[#allocation2 + $0x370] sm:$0xf0]  ;;  %v9029_v62 = vor.u32 %v13042_v53, %v9026_v54 }
  0xf9   :  { %5250 = vmatpush.bf16.msra.mxu0 %v8789_v24  ;;  %v12974_v63 = vld [vmem:[#allocation2 + $0x44] sm:$0xf]  ;;  %v8754_v0 = vld [vmem:[#allocation2 + $0x50] sm:$0xf0]  ;;  %v9157_v3 = vor.u32 %v13074_v57, %v9154_v59  ;;  %v14558_v19 = vadd.f32 %v5018_v16, %v5005_v11 }
  0xfa   :  { %5264 = vmatpush.bf16.msra.mxu1 %v8917_v25  ;;  %v13006_v2 = vld [vmem:[#allocation2 + $0x144] sm:$0xf]  ;;  %v8882_v7 = vld [vmem:[#allocation2 + $0x150] sm:$0xf0]  ;;  %v8757_v18 = vor.u32 %v12974_v63, %v8754_v0 }
  0xfb   :  { %5278 = vmatpush.bf16.msra.mxu2 %v9045_v27  ;;  %v13038_v8 = vld [vmem:[#allocation2 + $0x244] sm:$0xf]  ;;  %v9010_v9 = vld [vmem:[#allocation2 + $0x250] sm:$0xf0]  ;;  %v8885_v20 = vor.u32 %v13006_v2, %v8882_v7 }
  0xfc   :  { %5292 = vmatpush.bf16.msra.mxu3 %v9173_v49  ;;  %v13070_v12 = vld [vmem:[#allocation2 + $0x344] sm:$0xf]  ;;  %v9138_v15 = vld [vmem:[#allocation2 + $0x350] sm:$0xf0]  ;;  %v9013_v22 = vor.u32 %v13038_v8, %v9010_v9 }
  0xfd   :  { %5251 = vmatpush.bf16.msra.mxu0 %v8773_v61  ;;  %v12970_v23 = vld [vmem:[#allocation2 + $0x24] sm:$0xf]  ;;  %v8738_v24 = vld [vmem:[#allocation2 + $0x30] sm:$0xf0]  ;;  %v9141_v27 = vor.u32 %v13070_v12, %v9138_v15 }
  0xfe   :  { %5265 = vmatpush.bf16.msra.mxu1 %v8901_v29  ;;  %v13002_v25 = vld [vmem:[#allocation2 + $0x124] sm:$0xf]  ;;  %v8866_v28 = vld [vmem:[#allocation2 + $0x130] sm:$0xf0]  ;;  %v8741_v50 = vor.u32 %v12970_v23, %v8738_v24 }
  0xff   :  { %5279 = vmatpush.bf16.msra.mxu2 %v9029_v62  ;;  %v13034_v30 = vld [vmem:[#allocation2 + $0x224] sm:$0xf]  ;;  %v8994_v37 = vld [vmem:[#allocation2 + $0x230] sm:$0xf0]  ;;  %v8869_v54 = vor.u32 %v13002_v25, %v8866_v28 }
 0x100   :  { %5293 = vmatpush.bf16.msra.mxu3 %v9157_v3  ;;  %v13066_v42 = vld [vmem:[#allocation2 + $0x324] sm:$0xf]  ;;  %v9122_v49 = vld [vmem:[#allocation2 + $0x330] sm:$0xf0]  ;;  %v8997_v57 = vor.u32 %v13034_v30, %v8994_v37 }
 0x101   :  { %5252 = vmatpush.bf16.msra.mxu0 %v8757_v18  ;;  %v12966_v52 = vld [vmem:[#allocation2 + $0x4] sm:$0xf]  ;;  %v8722_v53 = vld [vmem:[#allocation2 + $0x10] sm:$0xf0]  ;;  %v9125_v62 = vor.u32 %v13066_v42, %v9122_v49 }
 0x102   :  { %5266 = vmatpush.bf16.msra.mxu1 %v8885_v20  ;;  %v12998_v59 = vld [vmem:[#allocation2 + $0x104] sm:$0xf]  ;;  %v8850_v61 = vld [vmem:[#allocation2 + $0x110] sm:$0xf0]  ;;  %v8725_v8 = vor.u32 %v12966_v52, %v8722_v53  ;;  %v14560_v52 = vpop.f32.mrf.mxu0 }
 0x103   :  { %5280 = vmatpush.bf16.msra.mxu2 %v9013_v22  ;;  %v13030_v29 = vld [vmem:[#allocation2 + $0x204] sm:$0xf]  ;;  %v8978_v63 = vld [vmem:[#allocation2 + $0x210] sm:$0xf0]  ;;  %v8853_v15 = vor.u32 %v12998_v59, %v8850_v61  ;;  %15091 = vst [vmem:[#allocation21_spill] sm:$0xff] %v14560_v52 }
 0x104   :  { %5294 = vmatpush.bf16.msra.mxu3 %v9141_v27  ;;  %v13062_v0 = vld [vmem:[#allocation2 + $0x304] sm:$0xf]  ;;  %v9106_v2 = vld [vmem:[#allocation2 + $0x310] sm:$0xf0]  ;;  %v8981_v16 = vor.u32 %v13030_v29, %v8978_v63  ;;  %v13121_v52 = vld [vmem:[#allocation2 + $0x4d4] sm:$0xf0] }
 0x105   :  { %v13122_v3 = vld [vmem:[#allocation2 + $0x4e4] sm:$0xf]  ;;  %v9346_v6 = vld [vmem:[#allocation2 + $0x4f0] sm:$0xf0]  ;;  %5253 = vmatpush.bf16.msra.mxu0 %v8741_v50  ;;  %v9109_v22 = vor.u32 %v13062_v0, %v9106_v2 }
 0x106   :  { %v13154_v7 = vld [vmem:[#allocation2 + $0x5e4] sm:$0xf]  ;;  %v9474_v9 = vld [vmem:[#allocation2 + $0x5f0] sm:$0xf0]  ;;  %5267 = vmatpush.bf16.msra.mxu1 %v8869_v54  ;;  %v9349_v23 = vor.u32 %v13122_v3, %v9346_v6 }
 0x107   :  { %v13186_v11 = vld [vmem:[#allocation2 + $0x6e4] sm:$0xf]  ;;  %v9602_v12 = vld [vmem:[#allocation2 + $0x6f0] sm:$0xf0]  ;;  %5281 = vmatpush.bf16.msra.mxu2 %v8997_v57  ;;  %v9477_v24 = vor.u32 %v13154_v7, %v9474_v9  ;;  %v14562_v57 = vpop.f32.mrf.mxu1 }
 0x108   :  { %v13218_v18 = vld [vmem:[#allocation2 + $0x7e4] sm:$0xf]  ;;  %v9730_v20 = vld [vmem:[#allocation2 + $0x7f0] sm:$0xf0]  ;;  %5295 = vmatpush.bf16.msra.mxu3 %v9125_v62  ;;  %v9605_v25 = vor.u32 %v13186_v11, %v9602_v12  ;;  %15092 = vst [vmem:[#allocation22_spill] sm:$0xff] %v14562_v57 }
 0x109   :  { %v13118_v27 = vld [vmem:[#allocation2 + $0x4c4] sm:$0xf]  ;;  %v9330_v28 = vld [vmem:[#allocation2 + $0x4d0] sm:$0xf0]  ;;  %5254 = vmatpush.bf16.msra.mxu0 %v8725_v8  ;;  %v9733_v37 = vor.u32 %v13218_v18, %v9730_v20  ;;  %v13077_v57 = vld [vmem:[#allocation2 + $0x374] sm:$0xf0] }
 0x10a   :  { %v13150_v30 = vld [vmem:[#allocation2 + $0x5c4] sm:$0xf]  ;;  %v9458_v42 = vld [vmem:[#allocation2 + $0x5d0] sm:$0xf0]  ;;  %5268 = vmatpush.bf16.msra.mxu1 %v8853_v15  ;;  %v9333_v59 = vor.u32 %v13118_v27, %v9330_v28  ;;  %v14570_v28 = vpop.f32.mrf.mxu3 }
 0x10b   :  { %v13182_v49 = vld [vmem:[#allocation2 + $0x6c4] sm:$0xf]  ;;  %v9586_v50 = vld [vmem:[#allocation2 + $0x6d0] sm:$0xf0]  ;;  %5282 = vmatpush.bf16.msra.mxu2 %v8981_v16  ;;  %v9461_v61 = vor.u32 %v13150_v30, %v9458_v42  ;;  %15094 = vst [vmem:[#allocation24_spill] sm:$0xff] %v14570_v28  ;;  %v5032_v30 = vpop.f32.mrf.mxu0 }
 0x10c   :  { %v13214_v53 = vld [vmem:[#allocation2 + $0x7c4] sm:$0xf]  ;;  %v9714_v54 = vld [vmem:[#allocation2 + $0x7d0] sm:$0xf0]  ;;  %5296 = vmatpush.bf16.msra.mxu3 %v9109_v22  ;;  %v9589_v29 = vor.u32 %v13182_v49, %v9586_v50  ;;  %5255 = vmatmul.bf16.vlgmr.msra.gmra.mxu0 %v14335_v58  ;;  %v14568_v22 = vpop.f32.mrf.mxu2  ;;  %v5033_v49 = vadd.f32 %v5032_v30, %v14558_v19 }
 0x10d   :  { %5303 = vmatpush.bf16.msrb.mxu0 %v9349_v23  ;;  %v13114_v62 = vld [vmem:[#allocation2 + $0x4a4] sm:$0xf]  ;;  %v9314_v63 = vld [vmem:[#allocation2 + $0x4b0] sm:$0xf0]  ;;  %v9717_v2 = vor.u32 %v13214_v53, %v9714_v54  ;;  %5269 = vmatmul.bf16.vlgmr.msra.gmra.mxu1 %v14353_v10  ;;  %15093 = vst [vmem:[#allocation23_spill] sm:$0xff] %v14568_v22 }
 0x10e   :  { %5317 = vmatpush.bf16.msrb.mxu1 %v9477_v24  ;;  %v13146_v0 = vld [vmem:[#allocation2 + $0x5a4] sm:$0xf]  ;;  %v9442_v3 = vld [vmem:[#allocation2 + $0x5b0] sm:$0xf0]  ;;  %5283 = vmatmul.bf16.vlgmr.msra.gmra.mxu2 %v14340_v1  ;;  %v9317_v11 = vor.u32 %v13114_v62, %v9314_v63 }
 0x10f   :  { %5331 = vmatpush.bf16.msrb.mxu2 %v9605_v25  ;;  %v13178_v6 = vld [vmem:[#allocation2 + $0x6a4] sm:$0xf]  ;;  %v9570_v7 = vld [vmem:[#allocation2 + $0x6b0] sm:$0xf0]  ;;  %5297 = vmatmul.bf16.vlgmr.msra.gmra.mxu3 %v14358_v17  ;;  %v9445_v12 = vor.u32 %v13146_v0, %v9442_v3  ;;  %v5046_v53 = vpop.f32.mrf.mxu1 }
 0x110   :  { %5345 = vmatpush.bf16.msrb.mxu3 %v9733_v37  ;;  %v13210_v8 = vld [vmem:[#allocation2 + $0x7a4] sm:$0xf]  ;;  %v9698_v9 = vld [vmem:[#allocation2 + $0x7b0] sm:$0xf0]  ;;  %v9573_v15 = vor.u32 %v13178_v6, %v9570_v7  ;;  %v5047_v0 = vadd.f32 %v5046_v53, %v5033_v49 }
 0x111   :  { %5304 = vmatpush.bf16.msrb.mxu0 %v9333_v59  ;;  %v13110_v16 = vld [vmem:[#allocation2 + $0x484] sm:$0xf]  ;;  %v9298_v18 = vld [vmem:[#allocation2 + $0x490] sm:$0xf0]  ;;  %v9701_v23 = vor.u32 %v13210_v8, %v9698_v9 }
 0x112   :  { %5318 = vmatpush.bf16.msrb.mxu1 %v9461_v61  ;;  %v13142_v20 = vld [vmem:[#allocation2 + $0x584] sm:$0xf]  ;;  %v9426_v24 = vld [vmem:[#allocation2 + $0x590] sm:$0xf0]  ;;  %v9301_v50 = vor.u32 %v13110_v16, %v9298_v18  ;;  %v5074_v30 = vpop.f32.mrf.mxu3 }
 0x113   :  { %5332 = vmatpush.bf16.msrb.mxu2 %v9589_v29  ;;  %v13174_v25 = vld [vmem:[#allocation2 + $0x684] sm:$0xf]  ;;  %v9554_v27 = vld [vmem:[#allocation2 + $0x690] sm:$0xf0]  ;;  %v9429_v54 = vor.u32 %v13142_v20, %v9426_v24  ;;  %v14575_v22 = vpop.f32.mrf.mxu0 }
 0x114   :  { %5346 = vmatpush.bf16.msrb.mxu3 %v9717_v2  ;;  %v13206_v37 = vld [vmem:[#allocation2 + $0x784] sm:$0xf]  ;;  %v9682_v42 = vld [vmem:[#allocation2 + $0x790] sm:$0xf0]  ;;  %v9557_v59 = vor.u32 %v13174_v25, %v9554_v27  ;;  %v5060_v20 = vpop.f32.mrf.mxu2  ;;  %15095 = vst [vmem:[#allocation25_spill] sm:$0xff] %v14575_v22 }
 0x115   :  { %5305 = vmatpush.bf16.msrb.mxu0 %v9317_v11  ;;  %v13106_v61 = vld [vmem:[#allocation2 + $0x464] sm:$0xf]  ;;  %v9282_v29 = vld [vmem:[#allocation2 + $0x470] sm:$0xf0]  ;;  %v9685_v63 = vor.u32 %v13206_v37, %v9682_v42  ;;  %v5061_v27 = vadd.f32 %v5060_v20, %v5047_v0 }
 0x116   :  { %5319 = vmatpush.bf16.msrb.mxu1 %v9445_v12  ;;  %v13138_v62 = vld [vmem:[#allocation2 + $0x564] sm:$0xf]  ;;  %v9410_v2 = vld [vmem:[#allocation2 + $0x570] sm:$0xf0]  ;;  %v9285_v9 = vor.u32 %v13106_v61, %v9282_v29 }
 0x117   :  { %5333 = vmatpush.bf16.msrb.mxu2 %v9573_v15  ;;  %v13170_v3 = vld [vmem:[#allocation2 + $0x664] sm:$0xf]  ;;  %v9538_v6 = vld [vmem:[#allocation2 + $0x670] sm:$0xf0]  ;;  %v9413_v19 = vor.u32 %v13138_v62, %v9410_v2 }
 0x118   :  { %5347 = vmatpush.bf16.msrb.mxu3 %v9701_v23  ;;  %v13202_v7 = vld [vmem:[#allocation2 + $0x764] sm:$0xf]  ;;  %v9666_v8 = vld [vmem:[#allocation2 + $0x770] sm:$0xf0]  ;;  %v9541_v11 = vor.u32 %v13170_v3, %v9538_v6 }
 0x119   :  { %5306 = vmatpush.bf16.msrb.mxu0 %v9301_v50  ;;  %v13102_v12 = vld [vmem:[#allocation2 + $0x444] sm:$0xf]  ;;  %v9266_v15 = vld [vmem:[#allocation2 + $0x450] sm:$0xf0]  ;;  %v9669_v18 = vor.u32 %v13202_v7, %v9666_v8  ;;  %v14573_v50 = vadd.f32 %v5074_v30, %v5061_v27 }
 0x11a   :  { %5320 = vmatpush.bf16.msrb.mxu1 %v9429_v54  ;;  %v13134_v16 = vld [vmem:[#allocation2 + $0x544] sm:$0xf]  ;;  %v9394_v23 = vld [vmem:[#allocation2 + $0x550] sm:$0xf0]  ;;  %v9269_v49 = vor.u32 %v13102_v12, %v9266_v15 }
 0x11b   :  { %5334 = vmatpush.bf16.msrb.mxu2 %v9557_v59  ;;  %v13166_v24 = vld [vmem:[#allocation2 + $0x644] sm:$0xf]  ;;  %v9522_v25 = vld [vmem:[#allocation2 + $0x650] sm:$0xf0]  ;;  %v9397_v53 = vor.u32 %v13134_v16, %v9394_v23 }
 0x11c   :  { %5348 = vmatpush.bf16.msrb.mxu3 %v9685_v63  ;;  %v13198_v37 = vld [vmem:[#allocation2 + $0x744] sm:$0xf]  ;;  %v9650_v42 = vld [vmem:[#allocation2 + $0x750] sm:$0xf0]  ;;  %v9525_v54 = vor.u32 %v13166_v24, %v9522_v25 }
 0x11d   :  { %5307 = vmatpush.bf16.msrb.mxu0 %v9285_v9  ;;  %v13098_v59 = vld [vmem:[#allocation2 + $0x424] sm:$0xf]  ;;  %v9250_v61 = vld [vmem:[#allocation2 + $0x430] sm:$0xf0]  ;;  %v9653_v62 = vor.u32 %v13198_v37, %v9650_v42 }
 0x11e   :  { %5321 = vmatpush.bf16.msrb.mxu1 %v9413_v19  ;;  %v13130_v29 = vld [vmem:[#allocation2 + $0x524] sm:$0xf]  ;;  %v9378_v63 = vld [vmem:[#allocation2 + $0x530] sm:$0xf0]  ;;  %v9253_v7 = vor.u32 %v13098_v59, %v9250_v61 }
 0x11f   :  { %5335 = vmatpush.bf16.msrb.mxu2 %v9541_v11  ;;  %v13162_v2 = vld [vmem:[#allocation2 + $0x624] sm:$0xf]  ;;  %v9506_v3 = vld [vmem:[#allocation2 + $0x630] sm:$0xf0]  ;;  %v9381_v19 = vor.u32 %v13130_v29, %v9378_v63 }
 0x120   :  { %5349 = vmatpush.bf16.msrb.mxu3 %v9669_v18  ;;  %v13194_v0 = vld [vmem:[#allocation2 + $0x724] sm:$0xf]  ;;  %v9634_v6 = vld [vmem:[#allocation2 + $0x730] sm:$0xf0]  ;;  %v9509_v11 = vor.u32 %v13162_v2, %v9506_v3 }
 0x121   :  { %5308 = vmatpush.bf16.msrb.mxu0 %v9269_v49  ;;  %v13094_v8 = vld [vmem:[#allocation2 + $0x404] sm:$0xf]  ;;  %v9234_v9 = vld [vmem:[#allocation2 + $0x410] sm:$0xf0]  ;;  %v9637_v20 = vor.u32 %v13194_v0, %v9634_v6 }
 0x122   :  { %5322 = vmatpush.bf16.msrb.mxu1 %v9397_v53  ;;  %v13126_v12 = vld [vmem:[#allocation2 + $0x504] sm:$0xf]  ;;  %v9362_v15 = vld [vmem:[#allocation2 + $0x510] sm:$0xf0]  ;;  %v9237_v37 = vor.u32 %v13094_v8, %v9234_v9 }
 0x123   :  { %5336 = vmatpush.bf16.msrb.mxu2 %v9525_v54  ;;  %v13158_v16 = vld [vmem:[#allocation2 + $0x604] sm:$0xf]  ;;  %v9490_v18 = vld [vmem:[#allocation2 + $0x610] sm:$0xf0]  ;;  %v9365_v53 = vor.u32 %v13126_v12, %v9362_v15  ;;  %v14577_v12 = vpop.f32.mrf.mxu1 }
 0x124   :  { %5350 = vmatpush.bf16.msrb.mxu3 %v9653_v62  ;;  %v13190_v23 = vld [vmem:[#allocation2 + $0x704] sm:$0xf]  ;;  %v9618_v24 = vld [vmem:[#allocation2 + $0x710] sm:$0xf0]  ;;  %v9493_v54 = vor.u32 %v13158_v16, %v9490_v18  ;;  %15096 = vst [vmem:[#allocation26_spill] sm:$0xff] %v14577_v12 }
 0x125   :  { %v13250_v25 = vld [vmem:[#allocation2 + $0x8e4] sm:$0xf]  ;;  %v9858_v27 = vld [vmem:[#allocation2 + $0x8f0] sm:$0xf0]  ;;  %5309 = vmatpush.bf16.msrb.mxu0 %v9253_v7  ;;  %v9621_v62 = vor.u32 %v13190_v23, %v9618_v24 }
 0x126   :  { %v13282_v30 = vld [vmem:[#allocation2 + $0x9e4] sm:$0xf]  ;;  %v9986_v42 = vld [vmem:[#allocation2 + $0x9f0] sm:$0xf0]  ;;  %5323 = vmatpush.bf16.msrb.mxu1 %v9381_v19  ;;  %v9861_v63 = vor.u32 %v13250_v25, %v9858_v27 }
 0x127   :  { %v13314_v49 = vld [vmem:[#allocation2 + $0xae4] sm:$0xf]  ;;  %v10114_v59 = vld [vmem:[#allocation2 + $0xaf0] sm:$0xf0]  ;;  %5337 = vmatpush.bf16.msrb.mxu2 %v9509_v11  ;;  %v9989_v2 = vor.u32 %v13282_v30, %v9986_v42 }
 0x128   :  { %v13346_v61 = vld [vmem:[#allocation2 + $0xbe4] sm:$0xf]  ;;  %v10242_v29 = vld [vmem:[#allocation2 + $0xbf0] sm:$0xf0]  ;;  %5351 = vmatpush.bf16.msrb.mxu3 %v9637_v20  ;;  %v10117_v3 = vor.u32 %v13314_v49, %v10114_v59 }
 0x129   :  { %v13246_v0 = vld [vmem:[#allocation2 + $0x8c4] sm:$0xf]  ;;  %v9842_v6 = vld [vmem:[#allocation2 + $0x8d0] sm:$0xf0]  ;;  %5310 = vmatpush.bf16.msrb.mxu0 %v9237_v37  ;;  %v10245_v7 = vor.u32 %v13346_v61, %v10242_v29  ;;  %v14583_v29 = vpop.f32.mrf.mxu2 }
 0x12a   :  { %v9970_v8 = vld [vmem:[#allocation2 + $0x9d0] sm:$0xf0]  ;;  %v13310_v9 = vld [vmem:[#allocation2 + $0xac4] sm:$0xf]  ;;  %5324 = vmatpush.bf16.msrb.mxu1 %v9365_v53  ;;  %v9845_v15 = vor.u32 %v13246_v0, %v9842_v6  ;;  %15097 = vst [vmem:[#allocation27_spill] sm:$0xff] %v14583_v29  ;;  %v14585_v0 = vpop.f32.mrf.mxu3  ;;  %v5088_v6 = vpop.f32.mrf.mxu0 }
 0x12b   :  { %v10098_v28 = vld [vmem:[#allocation2 + $0xad0] sm:$0xf0]  ;;  %5338 = vmatpush.bf16.msrb.mxu2 %v9493_v54  ;;  %v13342_v19 = vld [vmem:[#allocation2 + $0xbc4] sm:$0xf]  ;;  %v9973_v16 = vor.u32 %v13278_v13, %v9970_v8  ;;  %15098 = vst [vmem:[#allocation28_spill] sm:$0xff] %v14585_v0 }
 0x12c   :  { %v10226_v11 = vld [vmem:[#allocation2 + $0xbd0] sm:$0xf0]  ;;  %5352 = vmatpush.bf16.msrb.mxu3 %v9621_v62  ;;  %v10101_v20 = vor.u32 %v13310_v9, %v10098_v28  ;;  %v13242_v18 = vld [vmem:[#allocation2 + $0x8a4] sm:$0xf]  ;;  %5311 = vmatmul.bf16.vlgmr.msrb.gmra.mxu0 %v14386_v39  ;;  %v5089_v9 = vadd.f32 %v5088_v6, %v14573_v50 }
 0x12d   :  { %5359 = vmatpush.bf16.msra.mxu0 %v9861_v63  ;;  %v9826_v23 = vld [vmem:[#allocation2 + $0x8b0] sm:$0xf0]  ;;  %v13274_v24 = vld [vmem:[#allocation2 + $0x9a4] sm:$0xf]  ;;  %v10229_v25 = vor.u32 %v13342_v19, %v10226_v11  ;;  %5325 = vmatmul.bf16.vlgmr.msrb.gmra.mxu1 %v14390_v44  ;;  %v5102_v11 = vpop.f32.mrf.mxu1 }
 0x12e   :  { %5373 = vmatpush.bf16.msra.mxu1 %v9989_v2  ;;  %v9954_v27 = vld [vmem:[#allocation2 + $0x9b0] sm:$0xf0]  ;;  %v13306_v30 = vld [vmem:[#allocation2 + $0xaa4] sm:$0xf]  ;;  %5339 = vmatmul.bf16.vlgmr.msrb.gmra.mxu2 %v14388_v43  ;;  %v9829_v13 = vor.u32 %v13242_v18, %v9826_v23 }
 0x12f   :  { %5387 = vmatpush.bf16.msra.mxu2 %v10117_v3  ;;  %v10082_v37 = vld [vmem:[#allocation2 + $0xab0] sm:$0xf0]  ;;  %v13338_v42 = vld [vmem:[#allocation2 + $0xba4] sm:$0xf]  ;;  %5353 = vmatmul.bf16.vlgmr.msrb.gmra.mxu3 %v14392_v47  ;;  %v9957_v28 = vor.u32 %v13274_v24, %v9954_v27 }
 0x130   :  { %5401 = vmatpush.bf16.msra.mxu3 %v10245_v7  ;;  %v10210_v49 = vld [vmem:[#allocation2 + $0xbb0] sm:$0xf0]  ;;  %v10085_v59 = vor.u32 %v13306_v30, %v10082_v37  ;;  %v13238_v53 = vld [vmem:[#allocation2 + $0x884] sm:$0xf] }
 0x131   :  { %5360 = vmatpush.bf16.msra.mxu0 %v9845_v15  ;;  %v9810_v54 = vld [vmem:[#allocation2 + $0x890] sm:$0xf0]  ;;  %v13270_v61 = vld [vmem:[#allocation2 + $0x984] sm:$0xf]  ;;  %v10213_v62 = vor.u32 %v13338_v42, %v10210_v49 }
 0x132   :  { %5374 = vmatpush.bf16.msra.mxu1 %v9973_v16  ;;  %v9938_v63 = vld [vmem:[#allocation2 + $0x990] sm:$0xf0]  ;;  %v13302_v2 = vld [vmem:[#allocation2 + $0xa84] sm:$0xf]  ;;  %v9813_v19 = vor.u32 %v13238_v53, %v9810_v54  ;;  %v14590_v22 = vpop.f32.mrf.mxu0 }
 0x133   :  { %5388 = vmatpush.bf16.msra.mxu2 %v10101_v20  ;;  %v10066_v3 = vld [vmem:[#allocation2 + $0xa90] sm:$0xf0]  ;;  %v13334_v7 = vld [vmem:[#allocation2 + $0xb84] sm:$0xf]  ;;  %v9941_v15 = vor.u32 %v13270_v61, %v9938_v63  ;;  %v5116_v63 = vpop.f32.mrf.mxu2  ;;  %15099 = vst [vmem:[#allocation29_spill] sm:$0xff] %v14590_v22 }
 0x134   :  { %5402 = vmatpush.bf16.msra.mxu3 %v10229_v25  ;;  %v10194_v8 = vld [vmem:[#allocation2 + $0xb90] sm:$0xf0]  ;;  %v10069_v16 = vor.u32 %v13302_v2, %v10066_v3  ;;  %v13234_v20 = vld [vmem:[#allocation2 + $0x864] sm:$0xf]  ;;  %v5103_v25 = vadd.f32 %v5102_v11, %v5089_v9 }
 0x135   :  { %5361 = vmatpush.bf16.msra.mxu0 %v9829_v13  ;;  %v9794_v18 = vld [vmem:[#allocation2 + $0x870] sm:$0xf0]  ;;  %v13266_v23 = vld [vmem:[#allocation2 + $0x964] sm:$0xf]  ;;  %v10197_v24 = vor.u32 %v13334_v7, %v10194_v8  ;;  %v5130_v7 = vpop.f32.mrf.mxu3 }
 0x136   :  { %5375 = vmatpush.bf16.msra.mxu1 %v9957_v28  ;;  %v9922_v27 = vld [vmem:[#allocation2 + $0x970] sm:$0xf0]  ;;  %v13298_v30 = vld [vmem:[#allocation2 + $0xa64] sm:$0xf]  ;;  %v9797_v13 = vor.u32 %v13234_v20, %v9794_v18  ;;  %v5117_v6 = vadd.f32 %v5116_v63, %v5103_v25 }
 0x137   :  { %5389 = vmatpush.bf16.msra.mxu2 %v10085_v59  ;;  %v10050_v37 = vld [vmem:[#allocation2 + $0xa70] sm:$0xf0]  ;;  %v13330_v42 = vld [vmem:[#allocation2 + $0xb64] sm:$0xf]  ;;  %v9925_v50 = vor.u32 %v13266_v23, %v9922_v27 }
 0x138   :  { %5403 = vmatpush.bf16.msra.mxu3 %v10213_v62  ;;  %v10178_v49 = vld [vmem:[#allocation2 + $0xb70] sm:$0xf0]  ;;  %v10053_v28 = vor.u32 %v13298_v30, %v10050_v37  ;;  %v13230_v59 = vld [vmem:[#allocation2 + $0x844] sm:$0xf]  ;;  %v14588_v11 = vadd.f32 %v5130_v7, %v5117_v6 }
 0x139   :  { %5362 = vmatpush.bf16.msra.mxu0 %v9813_v19  ;;  %v9778_v53 = vld [vmem:[#allocation2 + $0x850] sm:$0xf0]  ;;  %v13262_v54 = vld [vmem:[#allocation2 + $0x944] sm:$0xf]  ;;  %v10181_v61 = vor.u32 %v13330_v42, %v10178_v49 }
 0x13a   :  { %5376 = vmatpush.bf16.msra.mxu1 %v9941_v15  ;;  %v9906_v62 = vld [vmem:[#allocation2 + $0x950] sm:$0xf0]  ;;  %v13294_v2 = vld [vmem:[#allocation2 + $0xa44] sm:$0xf]  ;;  %v9781_v19 = vor.u32 %v13230_v59, %v9778_v53 }
 0x13b   :  { %5390 = vmatpush.bf16.msra.mxu2 %v10069_v16  ;;  %v10034_v3 = vld [vmem:[#allocation2 + $0xa50] sm:$0xf0]  ;;  %v13326_v8 = vld [vmem:[#allocation2 + $0xb44] sm:$0xf]  ;;  %v9909_v15 = vor.u32 %v13262_v54, %v9906_v62 }
 0x13c   :  { %5404 = vmatpush.bf16.msra.mxu3 %v10197_v24  ;;  %v10162_v9 = vld [vmem:[#allocation2 + $0xb50] sm:$0xf0]  ;;  %v10037_v16 = vor.u32 %v13294_v2, %v10034_v3  ;;  %v13226_v20 = vld [vmem:[#allocation2 + $0x824] sm:$0xf] }
 0x13d   :  { %5363 = vmatpush.bf16.msra.mxu0 %v9797_v13  ;;  %v9762_v18 = vld [vmem:[#allocation2 + $0x830] sm:$0xf0]  ;;  %v13258_v23 = vld [vmem:[#allocation2 + $0x924] sm:$0xf]  ;;  %v10165_v24 = vor.u32 %v13326_v8, %v10162_v9 }
 0x13e   :  { %5377 = vmatpush.bf16.msra.mxu1 %v9925_v50  ;;  %v9890_v27 = vld [vmem:[#allocation2 + $0x930] sm:$0xf0]  ;;  %v13290_v30 = vld [vmem:[#allocation2 + $0xa24] sm:$0xf]  ;;  %v9765_v49 = vor.u32 %v13226_v20, %v9762_v18 }
 0x13f   :  { %5391 = vmatpush.bf16.msra.mxu2 %v10053_v28  ;;  %v10018_v37 = vld [vmem:[#allocation2 + $0xa30] sm:$0xf0]  ;;  %v13322_v25 = vld [vmem:[#allocation2 + $0xb24] sm:$0xf]  ;;  %v9893_v50 = vor.u32 %v13258_v23, %v9890_v27 }
 0x140   :  { %5405 = vmatpush.bf16.msra.mxu3 %v10181_v61  ;;  %v10146_v42 = vld [vmem:[#allocation2 + $0xb30] sm:$0xf0]  ;;  %v13222_v13 = vld [vmem:[#allocation2 + $0x804] sm:$0xf]  ;;  %v10021_v28 = vor.u32 %v13290_v30, %v10018_v37 }
 0x141   :  { %5364 = vmatpush.bf16.msra.mxu0 %v9781_v19  ;;  %v9746_v59 = vld [vmem:[#allocation2 + $0x810] sm:$0xf0]  ;;  %v13254_v53 = vld [vmem:[#allocation2 + $0x904] sm:$0xf]  ;;  %v10149_v62 = vor.u32 %v13322_v25, %v10146_v42 }
 0x142   :  { %5378 = vmatpush.bf16.msra.mxu1 %v9909_v15  ;;  %v9874_v54 = vld [vmem:[#allocation2 + $0x910] sm:$0xf0]  ;;  %v13286_v63 = vld [vmem:[#allocation2 + $0xa04] sm:$0xf]  ;;  %v9749_v9 = vor.u32 %v13222_v13, %v9746_v59 }
 0x143   :  { %5392 = vmatpush.bf16.msra.mxu2 %v10037_v16  ;;  %v10002_v61 = vld [vmem:[#allocation2 + $0xa10] sm:$0xf0]  ;;  %v13318_v2 = vld [vmem:[#allocation2 + $0xb04] sm:$0xf]  ;;  %v9877_v15 = vor.u32 %v13254_v53, %v9874_v54  ;;  %v14592_v53 = vpop.f32.mrf.mxu1 }
 0x144   :  { %5406 = vmatpush.bf16.msra.mxu3 %v10165_v24  ;;  %v10130_v3 = vld [vmem:[#allocation2 + $0xb10] sm:$0xf0]  ;;  %v13378_v6 = vld [vmem:[#allocation2 + $0xce4] sm:$0xf]  ;;  %v10005_v16 = vor.u32 %v13286_v63, %v10002_v61  ;;  %15100 = vst [vmem:[#allocation30_spill] sm:$0xff] %v14592_v53 }
 0x145   :  { %v10370_v7 = vld [vmem:[#allocation2 + $0xcf0] sm:$0xf0]  ;;  %v13410_v8 = vld [vmem:[#allocation2 + $0xde4] sm:$0xf]  ;;  %5365 = vmatpush.bf16.msra.mxu0 %v9765_v49  ;;  %v10133_v24 = vor.u32 %v13318_v2, %v10130_v3 }
 0x146   :  { %v10498_v19 = vld [vmem:[#allocation2 + $0xdf0] sm:$0xf0]  ;;  %v13442_v20 = vld [vmem:[#allocation2 + $0xee4] sm:$0xf]  ;;  %5379 = vmatpush.bf16.msra.mxu1 %v9893_v50  ;;  %v10373_v30 = vor.u32 %v13378_v6, %v10370_v7 }
 0x147   :  { %v10626_v18 = vld [vmem:[#allocation2 + $0xef0] sm:$0xf0]  ;;  %5393 = vmatpush.bf16.msra.mxu2 %v10021_v28  ;;  %v13474_v23 = vld [vmem:[#allocation2 + $0xfe4] sm:$0xf]  ;;  %v10501_v37 = vor.u32 %v13410_v8, %v10498_v19 }
 0x148   :  { %v10754_v27 = vld [vmem:[#allocation2 + $0xff0] sm:$0xf0]  ;;  %5407 = vmatpush.bf16.msra.mxu3 %v10149_v62  ;;  %v10629_v25 = vor.u32 %v13442_v20, %v10626_v18  ;;  %v13374_v42 = vld [vmem:[#allocation2 + $0xcc4] sm:$0xf] }
 0x149   :  { %v10354_v0 = vld [vmem:[#allocation2 + $0xcd0] sm:$0xf0]  ;;  %v13406_v29 = vld [vmem:[#allocation2 + $0xdc4] sm:$0xf]  ;;  %5366 = vmatpush.bf16.msra.mxu0 %v9749_v9  ;;  %v10757_v49 = vor.u32 %v13474_v23, %v10754_v27  ;;  %v14598_v23 = vpop.f32.mrf.mxu2 }
 0x14a   :  { %v10482_v13 = vld [vmem:[#allocation2 + $0xdd0] sm:$0xf0]  ;;  %v13438_v59 = vld [vmem:[#allocation2 + $0xec4] sm:$0xf]  ;;  %5380 = vmatpush.bf16.msra.mxu1 %v9877_v15  ;;  %v10357_v54 = vor.u32 %v13374_v42, %v10354_v0  ;;  %15101 = vst [vmem:[#allocation31_spill] sm:$0xff] %v14598_v23 }
 0x14b   :  { %v10610_v12 = vld [vmem:[#allocation2 + $0xed0] sm:$0xf0]  ;;  %5394 = vmatpush.bf16.msra.mxu2 %v10005_v16  ;;  %v13470_v50 = vld [vmem:[#allocation2 + $0xfc4] sm:$0xf]  ;;  %v10485_v63 = vor.u32 %v13406_v29, %v10482_v13 }
 0x14c   :  { %v10738_v28 = vld [vmem:[#allocation2 + $0xfd0] sm:$0xf0]  ;;  %5408 = vmatpush.bf16.msra.mxu3 %v10133_v24  ;;  %v10613_v62 = vor.u32 %v13438_v59, %v10610_v12  ;;  %v13370_v61 = vld [vmem:[#allocation2 + $0xca4] sm:$0xf]  ;;  %5367 = vmatmul.bf16.vlgmr.msra.gmra.mxu0 %v14422_v31  ;;  %v5144_v42 = vpop.f32.mrf.mxu0 }
 0x14d   :  { %5415 = vmatpush.bf16.msrb.mxu0 %v10373_v30  ;;  %v10338_v2 = vld [vmem:[#allocation2 + $0xcb0] sm:$0xf0]  ;;  %v13402_v3 = vld [vmem:[#allocation2 + $0xda4] sm:$0xf]  ;;  %v10741_v6 = vor.u32 %v13470_v50, %v10738_v28  ;;  %5381 = vmatmul.bf16.vlgmr.msra.gmra.mxu1 %v14426_v36  ;;  %v5145_v59 = vadd.f32 %v5144_v42, %v14588_v11  ;;  %v5158_v28 = vpop.f32.mrf.mxu1 }
 0x14e   :  { %5429 = vmatpush.bf16.msrb.mxu1 %v10501_v37  ;;  %v10466_v7 = vld [vmem:[#allocation2 + $0xdb0] sm:$0xf0]  ;;  %v13434_v8 = vld [vmem:[#allocation2 + $0xea4] sm:$0xf]  ;;  %5395 = vmatmul.bf16.vlgmr.msra.gmra.mxu2 %v14424_v35  ;;  %v10341_v12 = vor.u32 %v13370_v61, %v10338_v2 }
 0x14f   :  { %5443 = vmatpush.bf16.msrb.mxu2 %v10629_v25  ;;  %v10594_v9 = vld [vmem:[#allocation2 + $0xeb0] sm:$0xf0]  ;;  %v13466_v19 = vld [vmem:[#allocation2 + $0xfa4] sm:$0xf]  ;;  %5409 = vmatmul.bf16.vlgmr.msra.gmra.mxu3 %v14428_v40  ;;  %v10469_v29 = vor.u32 %v13402_v3, %v10466_v7  ;;  %v14600_v25 = vpop.f32.mrf.mxu3 }
 0x150   :  { %5457 = vmatpush.bf16.msrb.mxu3 %v10757_v49  ;;  %v10722_v0 = vld [vmem:[#allocation2 + $0xfb0] sm:$0xf0]  ;;  %v10597_v20 = vor.u32 %v13434_v8, %v10594_v9  ;;  %v13366_v18 = vld [vmem:[#allocation2 + $0xc84] sm:$0xf]  ;;  %15102 = vst [vmem:[#allocation32_spill] sm:$0xff] %v14600_v25 }
 0x151   :  { %5416 = vmatpush.bf16.msrb.mxu0 %v10357_v54  ;;  %v10322_v15 = vld [vmem:[#allocation2 + $0xc90] sm:$0xf0]  ;;  %v13398_v16 = vld [vmem:[#allocation2 + $0xd84] sm:$0xf]  ;;  %v10725_v27 = vor.u32 %v13466_v19, %v10722_v0 }
 0x152   :  { %5430 = vmatpush.bf16.msrb.mxu1 %v10485_v63  ;;  %v10450_v24 = vld [vmem:[#allocation2 + $0xd90] sm:$0xf0]  ;;  %v13430_v30 = vld [vmem:[#allocation2 + $0xe84] sm:$0xf]  ;;  %v10325_v50 = vor.u32 %v13366_v18, %v10322_v15 }
 0x153   :  { %5444 = vmatpush.bf16.msrb.mxu2 %v10613_v62  ;;  %v10578_v37 = vld [vmem:[#allocation2 + $0xe90] sm:$0xf0]  ;;  %v13462_v49 = vld [vmem:[#allocation2 + $0xf84] sm:$0xf]  ;;  %v10453_v54 = vor.u32 %v13398_v16, %v10450_v24  ;;  %v5172_v24 = vpop.f32.mrf.mxu2 }
 0x154   :  { %5458 = vmatpush.bf16.msrb.mxu3 %v10741_v6  ;;  %v10706_v13 = vld [vmem:[#allocation2 + $0xf90] sm:$0xf0]  ;;  %v10581_v63 = vor.u32 %v13430_v30, %v10578_v37  ;;  %v13362_v62 = vld [vmem:[#allocation2 + $0xc64] sm:$0xf]  ;;  %v5159_v6 = vadd.f32 %v5158_v28, %v5145_v59  ;;  %v14605_v22 = vpop.f32.mrf.mxu0 }
 0x155   :  { %5417 = vmatpush.bf16.msrb.mxu0 %v10341_v12  ;;  %v10306_v61 = vld [vmem:[#allocation2 + $0xc70] sm:$0xf0]  ;;  %v13394_v2 = vld [vmem:[#allocation2 + $0xd64] sm:$0xf]  ;;  %v10709_v3 = vor.u32 %v13462_v49, %v10706_v13  ;;  %15103 = vst [vmem:[#allocation33_spill] sm:$0xff] %v14605_v22 }
 0x156   :  { %5431 = vmatpush.bf16.msrb.mxu1 %v10469_v29  ;;  %v10434_v7 = vld [vmem:[#allocation2 + $0xd70] sm:$0xf0]  ;;  %v13426_v8 = vld [vmem:[#allocation2 + $0xe64] sm:$0xf]  ;;  %v10309_v12 = vor.u32 %v13362_v62, %v10306_v61  ;;  %v5173_v42 = vadd.f32 %v5172_v24, %v5159_v6  ;;  %v9080_v22 = vld [vmem:[#allocation2 + $0x2c8] sm:$0xf] }
 0x157   :  { %5445 = vmatpush.bf16.msrb.mxu2 %v10597_v20  ;;  %v10562_v9 = vld [vmem:[#allocation2 + $0xe70] sm:$0xf0]  ;;  %v13458_v19 = vld [vmem:[#allocation2 + $0xf64] sm:$0xf]  ;;  %v10437_v11 = vor.u32 %v13394_v2, %v10434_v7  ;;  %v5186_v49 = vpop.f32.mrf.mxu3 }
 0x158   :  { %5459 = vmatpush.bf16.msrb.mxu3 %v10725_v27  ;;  %v10690_v0 = vld [vmem:[#allocation2 + $0xf70] sm:$0xf0]  ;;  %v10565_v29 = vor.u32 %v13426_v8, %v10562_v9  ;;  %v13358_v20 = vld [vmem:[#allocation2 + $0xc44] sm:$0xf]  ;;  %v14603_v28 = vadd.f32 %v5186_v49, %v5173_v42 }
 0x159   :  { %5418 = vmatpush.bf16.msrb.mxu0 %v10325_v50  ;;  %v10290_v18 = vld [vmem:[#allocation2 + $0xc50] sm:$0xf0]  ;;  %v13390_v15 = vld [vmem:[#allocation2 + $0xd44] sm:$0xf]  ;;  %v10693_v16 = vor.u32 %v13458_v19, %v10690_v0 }
 0x15a   :  { %5432 = vmatpush.bf16.msrb.mxu1 %v10453_v54  ;;  %v10418_v27 = vld [vmem:[#allocation2 + $0xd50] sm:$0xf0]  ;;  %v13422_v30 = vld [vmem:[#allocation2 + $0xe44] sm:$0xf]  ;;  %v10293_v50 = vor.u32 %v13358_v20, %v10290_v18 }
 0x15b   :  { %5446 = vmatpush.bf16.msrb.mxu2 %v10581_v63  ;;  %v10546_v37 = vld [vmem:[#allocation2 + $0xe50] sm:$0xf0]  ;;  %v13454_v13 = vld [vmem:[#allocation2 + $0xf44] sm:$0xf]  ;;  %v10421_v54 = vor.u32 %v13390_v15, %v10418_v27 }
 0x15c   :  { %5460 = vmatpush.bf16.msrb.mxu3 %v10709_v3  ;;  %v10674_v59 = vld [vmem:[#allocation2 + $0xf50] sm:$0xf0]  ;;  %v10549_v63 = vor.u32 %v13422_v30, %v10546_v37  ;;  %v13354_v62 = vld [vmem:[#allocation2 + $0xc24] sm:$0xf] }
 0x15d   :  { %5419 = vmatpush.bf16.msrb.mxu0 %v10309_v12  ;;  %v10274_v61 = vld [vmem:[#allocation2 + $0xc30] sm:$0xf0]  ;;  %v13386_v2 = vld [vmem:[#allocation2 + $0xd24] sm:$0xf]  ;;  %v10677_v3 = vor.u32 %v13454_v13, %v10674_v59 }
 0x15e   :  { %5433 = vmatpush.bf16.msrb.mxu1 %v10437_v11  ;;  %v10402_v7 = vld [vmem:[#allocation2 + $0xd30] sm:$0xf0]  ;;  %v13418_v8 = vld [vmem:[#allocation2 + $0xe24] sm:$0xf]  ;;  %v10277_v0 = vor.u32 %v13354_v62, %v10274_v61 }
 0x15f   :  { %5447 = vmatpush.bf16.msrb.mxu2 %v10565_v29  ;;  %v10530_v9 = vld [vmem:[#allocation2 + $0xe30] sm:$0xf0]  ;;  %v13450_v6 = vld [vmem:[#allocation2 + $0xf24] sm:$0xf]  ;;  %v10405_v11 = vor.u32 %v13386_v2, %v10402_v7 }
 0x160   :  { %5461 = vmatpush.bf16.msrb.mxu3 %v10693_v16  ;;  %v10658_v19 = vld [vmem:[#allocation2 + $0xf30] sm:$0xf0]  ;;  %v13350_v12 = vld [vmem:[#allocation2 + $0xc04] sm:$0xf]  ;;  %v10533_v29 = vor.u32 %v13418_v8, %v10530_v9 }
 0x161   :  { %5420 = vmatpush.bf16.msrb.mxu0 %v10293_v50  ;;  %v10258_v20 = vld [vmem:[#allocation2 + $0xc10] sm:$0xf0]  ;;  %v13382_v18 = vld [vmem:[#allocation2 + $0xd04] sm:$0xf]  ;;  %v10661_v27 = vor.u32 %v13450_v6, %v10658_v19 }
 0x162   :  { %5434 = vmatpush.bf16.msrb.mxu1 %v10421_v54  ;;  %v10386_v15 = vld [vmem:[#allocation2 + $0xd10] sm:$0xf0]  ;;  %v13414_v24 = vld [vmem:[#allocation2 + $0xe04] sm:$0xf]  ;;  %v10261_v59 = vor.u32 %v13350_v12, %v10258_v20 }
 0x163   :  { %5448 = vmatpush.bf16.msrb.mxu2 %v10549_v63  ;;  %v10514_v16 = vld [vmem:[#allocation2 + $0xe10] sm:$0xf0]  ;;  %v13446_v30 = vld [vmem:[#allocation2 + $0xf04] sm:$0xf]  ;;  %v10389_v54 = vor.u32 %v13382_v18, %v10386_v15  ;;  %v14607_v18 = vpop.f32.mrf.mxu1 }
 0x164   :  { %5462 = vmatpush.bf16.msrb.mxu3 %v10677_v3  ;;  %v10642_v37 = vld [vmem:[#allocation2 + $0xf10] sm:$0xf0]  ;;  %v13506_v42 = vld [vmem:[#allocation2 + $0x10e4] sm:$0xf]  ;;  %v10517_v63 = vor.u32 %v13414_v24, %v10514_v16  ;;  %15104 = vst [vmem:[#allocation34_spill] sm:$0xff] %v14607_v18 }
 0x165   :  { %v10882_v49 = vld [vmem:[#allocation2 + $0x10f0] sm:$0xf0]  ;;  %v13538_v13 = vld [vmem:[#allocation2 + $0x11e4] sm:$0xf]  ;;  %5421 = vmatpush.bf16.msrb.mxu0 %v10277_v0  ;;  %v10645_v3 = vor.u32 %v13446_v30, %v10642_v37 }
 0x166   :  { %v11010_v50 = vld [vmem:[#allocation2 + $0x11f0] sm:$0xf0]  ;;  %v13570_v62 = vld [vmem:[#allocation2 + $0x12e4] sm:$0xf]  ;;  %5435 = vmatpush.bf16.msrb.mxu1 %v10405_v11  ;;  %v10885_v8 = vor.u32 %v13506_v42, %v10882_v49 }
 0x167   :  { %v11138_v61 = vld [vmem:[#allocation2 + $0x12f0] sm:$0xf0]  ;;  %5449 = vmatpush.bf16.msrb.mxu2 %v10533_v29  ;;  %v13602_v2 = vld [vmem:[#allocation2 + $0x13e4] sm:$0xf]  ;;  %v11013_v9 = vor.u32 %v13538_v13, %v11010_v50 }
 0x168   :  { %v11266_v7 = vld [vmem:[#allocation2 + $0x13f0] sm:$0xf0]  ;;  %5463 = vmatpush.bf16.msrb.mxu3 %v10661_v27  ;;  %v11141_v6 = vor.u32 %v13570_v62, %v11138_v61  ;;  %v13502_v19 = vld [vmem:[#allocation2 + $0x10c4] sm:$0xf] }
 0x169   :  { %v10866_v25 = vld [vmem:[#allocation2 + $0x10d0] sm:$0xf0]  ;;  %v13534_v23 = vld [vmem:[#allocation2 + $0x11c4] sm:$0xf]  ;;  %5422 = vmatpush.bf16.msrb.mxu0 %v10261_v59  ;;  %v11269_v0 = vor.u32 %v13602_v2, %v11266_v7  ;;  %v14613_v2 = vpop.f32.mrf.mxu2 }
 0x16a   :  { %v10994_v12 = vld [vmem:[#allocation2 + $0x11d0] sm:$0xf0]  ;;  %v13566_v20 = vld [vmem:[#allocation2 + $0x12c4] sm:$0xf]  ;;  %5436 = vmatpush.bf16.msrb.mxu1 %v10389_v54  ;;  %v10869_v15 = vor.u32 %v13502_v19, %v10866_v25  ;;  %15105 = vst [vmem:[#allocation35_spill] sm:$0xff] %v14613_v2  ;;  %v5200_v19 = vpop.f32.mrf.mxu0 }
 0x16b   :  { %v11122_v53 = vld [vmem:[#allocation2 + $0x12d0] sm:$0xf0]  ;;  %5450 = vmatpush.bf16.msrb.mxu2 %v10517_v63  ;;  %v13598_v11 = vld [vmem:[#allocation2 + $0x13c4] sm:$0xf]  ;;  %v10997_v24 = vor.u32 %v13534_v23, %v10994_v12 }
 0x16c   :  { %v11250_v29 = vld [vmem:[#allocation2 + $0x13d0] sm:$0xf0]  ;;  %5464 = vmatpush.bf16.msrb.mxu3 %v10645_v3  ;;  %v11125_v27 = vor.u32 %v13566_v20, %v11122_v53  ;;  %v13498_v16 = vld [vmem:[#allocation2 + $0x10a4] sm:$0xf]  ;;  %5423 = vmatmul.bf16.vlgmr.msrb.gmra.mxu0 %v14458_v32  ;;  %v5201_v20 = vadd.f32 %v5200_v19, %v14603_v28 }
 0x16d   :  { %5471 = vmatpush.bf16.msra.mxu0 %v10885_v8  ;;  %v10850_v30 = vld [vmem:[#allocation2 + $0x10b0] sm:$0xf0]  ;;  %v13530_v37 = vld [vmem:[#allocation2 + $0x11a4] sm:$0xf]  ;;  %v11253_v42 = vor.u32 %v13598_v11, %v11250_v29  ;;  %5437 = vmatmul.bf16.vlgmr.msrb.gmra.mxu1 %v14462_v41  ;;  %v5214_v29 = vpop.f32.mrf.mxu1 }
 0x16e   :  { %5485 = vmatpush.bf16.msra.mxu1 %v11013_v9  ;;  %v10978_v49 = vld [vmem:[#allocation2 + $0x11b0] sm:$0xf0]  ;;  %v13562_v13 = vld [vmem:[#allocation2 + $0x12a4] sm:$0xf]  ;;  %5451 = vmatmul.bf16.vlgmr.msrb.gmra.mxu2 %v14460_v38  ;;  %v10853_v53 = vor.u32 %v13498_v16, %v10850_v30 }
 0x16f   :  { %5499 = vmatpush.bf16.msra.mxu2 %v11141_v6  ;;  %v11106_v59 = vld [vmem:[#allocation2 + $0x12b0] sm:$0xf0]  ;;  %v13594_v50 = vld [vmem:[#allocation2 + $0x13a4] sm:$0xf]  ;;  %5465 = vmatmul.bf16.vlgmr.msrb.gmra.mxu3 %v14464_v46  ;;  %v10981_v23 = vor.u32 %v13530_v37, %v10978_v49  ;;  %v14615_v6 = vpop.f32.mrf.mxu3 }
 0x170   :  { %5513 = vmatpush.bf16.msra.mxu3 %v11269_v0  ;;  %v11234_v25 = vld [vmem:[#allocation2 + $0x13b0] sm:$0xf0]  ;;  %v11109_v62 = vor.u32 %v13562_v13, %v11106_v59  ;;  %v13494_v61 = vld [vmem:[#allocation2 + $0x1084] sm:$0xf]  ;;  %15106 = vst [vmem:[#allocation36_spill] sm:$0xff] %v14615_v6 }
 0x171   :  { %5472 = vmatpush.bf16.msra.mxu0 %v10869_v15  ;;  %v10834_v54 = vld [vmem:[#allocation2 + $0x1090] sm:$0xf0]  ;;  %v13526_v63 = vld [vmem:[#allocation2 + $0x1184] sm:$0xf]  ;;  %v11237_v7 = vor.u32 %v13594_v50, %v11234_v25 }
 0x172   :  { %5486 = vmatpush.bf16.msra.mxu1 %v10997_v24  ;;  %v10962_v3 = vld [vmem:[#allocation2 + $0x1190] sm:$0xf0]  ;;  %v13558_v8 = vld [vmem:[#allocation2 + $0x1284] sm:$0xf]  ;;  %v10837_v11 = vor.u32 %v13494_v61, %v10834_v54  ;;  %v14620_v18 = vpop.f32.mrf.mxu0 }
 0x173   :  { %5500 = vmatpush.bf16.msra.mxu2 %v11125_v27  ;;  %v11090_v9 = vld [vmem:[#allocation2 + $0x1290] sm:$0xf0]  ;;  %v13590_v0 = vld [vmem:[#allocation2 + $0x1384] sm:$0xf]  ;;  %v10965_v15 = vor.u32 %v13526_v63, %v10962_v3  ;;  %v5228_v3 = vpop.f32.mrf.mxu2  ;;  %15108 = vst [vmem:[#allocation38_spill] sm:$0xff] %v14620_v18 }
 0x174   :  { %5514 = vmatpush.bf16.msra.mxu3 %v11253_v42  ;;  %v11218_v12 = vld [vmem:[#allocation2 + $0x1390] sm:$0xf0]  ;;  %v11093_v24 = vor.u32 %v13558_v8, %v11090_v9  ;;  %v13490_v27 = vld [vmem:[#allocation2 + $0x1064] sm:$0xf]  ;;  %v5215_v42 = vadd.f32 %v5214_v29, %v5201_v20  ;;  %v12993_v18 = vld [vmem:[#allocation2 + $0xd4] sm:$0xf0] }
 0x175   :  { %5473 = vmatpush.bf16.msra.mxu0 %v10853_v53  ;;  %v10818_v16 = vld [vmem:[#allocation2 + $0x1070] sm:$0xf0]  ;;  %v13522_v30 = vld [vmem:[#allocation2 + $0x1164] sm:$0xf]  ;;  %v11221_v37 = vor.u32 %v13590_v0, %v11218_v12 }
 0x176   :  { %5487 = vmatpush.bf16.msra.mxu1 %v10981_v23  ;;  %v10946_v49 = vld [vmem:[#allocation2 + $0x1170] sm:$0xf0]  ;;  %v13554_v13 = vld [vmem:[#allocation2 + $0x1264] sm:$0xf]  ;;  %v10821_v53 = vor.u32 %v13490_v27, %v10818_v16  ;;  %v5229_v19 = vadd.f32 %v5228_v3, %v5215_v42 }
 0x177   :  { %5501 = vmatpush.bf16.msra.mxu2 %v11109_v62  ;;  %v11074_v59 = vld [vmem:[#allocation2 + $0x1270] sm:$0xf0]  ;;  %v13586_v50 = vld [vmem:[#allocation2 + $0x1364] sm:$0xf]  ;;  %v10949_v28 = vor.u32 %v13522_v30, %v10946_v49  ;;  %v5242_v0 = vpop.f32.mrf.mxu3 }
 0x178   :  { %5515 = vmatpush.bf16.msra.mxu3 %v11237_v7  ;;  %v11202_v25 = vld [vmem:[#allocation2 + $0x1370] sm:$0xf0]  ;;  %v11077_v23 = vor.u32 %v13554_v13, %v11074_v59  ;;  %v13486_v62 = vld [vmem:[#allocation2 + $0x1044] sm:$0xf]  ;;  %v14618_v29 = vadd.f32 %v5242_v0, %v5229_v19 }
 0x179   :  { %5474 = vmatpush.bf16.msra.mxu0 %v10837_v11  ;;  %v10802_v61 = vld [vmem:[#allocation2 + $0x1050] sm:$0xf0]  ;;  %v13518_v54 = vld [vmem:[#allocation2 + $0x1144] sm:$0xf]  ;;  %v11205_v63 = vor.u32 %v13586_v50, %v11202_v25 }
 0x17a   :  { %5488 = vmatpush.bf16.msra.mxu1 %v10965_v15  ;;  %v10930_v7 = vld [vmem:[#allocation2 + $0x1150] sm:$0xf0]  ;;  %v13550_v8 = vld [vmem:[#allocation2 + $0x1244] sm:$0xf]  ;;  %v10805_v11 = vor.u32 %v13486_v62, %v10802_v61  ;;  %15107 = vst [vmem:[#allocation37_spill] sm:$0xff] %v14618_v29 }
 0x17b   :  { %5502 = vmatpush.bf16.msra.mxu2 %v11093_v24  ;;  %v11058_v9 = vld [vmem:[#allocation2 + $0x1250] sm:$0xf0]  ;;  %v13582_v12 = vld [vmem:[#allocation2 + $0x1344] sm:$0xf]  ;;  %v10933_v15 = vor.u32 %v13518_v54, %v10930_v7 }
 0x17c   :  { %5516 = vmatpush.bf16.msra.mxu3 %v11221_v37  ;;  %v11186_v20 = vld [vmem:[#allocation2 + $0x1350] sm:$0xf0]  ;;  %v11061_v24 = vor.u32 %v13550_v8, %v11058_v9  ;;  %v13482_v27 = vld [vmem:[#allocation2 + $0x1024] sm:$0xf] }
 0x17d   :  { %5475 = vmatpush.bf16.msra.mxu0 %v10821_v53  ;;  %v10786_v16 = vld [vmem:[#allocation2 + $0x1030] sm:$0xf0]  ;;  %v13514_v30 = vld [vmem:[#allocation2 + $0x1124] sm:$0xf]  ;;  %v11189_v37 = vor.u32 %v13582_v12, %v11186_v20 }
 0x17e   :  { %5489 = vmatpush.bf16.msra.mxu1 %v10949_v28  ;;  %v10914_v49 = vld [vmem:[#allocation2 + $0x1130] sm:$0xf0]  ;;  %v13546_v13 = vld [vmem:[#allocation2 + $0x1224] sm:$0xf]  ;;  %v10789_v25 = vor.u32 %v13482_v27, %v10786_v16 }
 0x17f   :  { %5503 = vmatpush.bf16.msra.mxu2 %v11077_v23  ;;  %v11042_v59 = vld [vmem:[#allocation2 + $0x1230] sm:$0xf0]  ;;  %v13578_v42 = vld [vmem:[#allocation2 + $0x1324] sm:$0xf]  ;;  %v10917_v28 = vor.u32 %v13514_v30, %v10914_v49 }
 0x180   :  { %5517 = vmatpush.bf16.msra.mxu3 %v11205_v63  ;;  %v11170_v50 = vld [vmem:[#allocation2 + $0x1330] sm:$0xf0]  ;;  %v13478_v53 = vld [vmem:[#allocation2 + $0x1004] sm:$0xf]  ;;  %v11045_v23 = vor.u32 %v13546_v13, %v11042_v59 }
 0x181   :  { %5476 = vmatpush.bf16.msra.mxu0 %v10805_v11  ;;  %v10770_v62 = vld [vmem:[#allocation2 + $0x1010] sm:$0xf0]  ;;  %v13510_v61 = vld [vmem:[#allocation2 + $0x1104] sm:$0xf]  ;;  %v11173_v7 = vor.u32 %v13578_v42, %v11170_v50 }
 0x182   :  { %5490 = vmatpush.bf16.msra.mxu1 %v10933_v15  ;;  %v10898_v54 = vld [vmem:[#allocation2 + $0x1110] sm:$0xf0]  ;;  %v13542_v3 = vld [vmem:[#allocation2 + $0x1204] sm:$0xf]  ;;  %v10773_v20 = vor.u32 %v13478_v53, %v10770_v62 }
 0x183   :  { %5504 = vmatpush.bf16.msra.mxu2 %v11061_v24  ;;  %v11026_v63 = vld [vmem:[#allocation2 + $0x1210] sm:$0xf0]  ;;  %v13574_v8 = vld [vmem:[#allocation2 + $0x1304] sm:$0xf]  ;;  %v10901_v15 = vor.u32 %v13510_v61, %v10898_v54  ;;  %v14622_v54 = vpop.f32.mrf.mxu1 }
 0x184   :  { %5518 = vmatpush.bf16.msra.mxu3 %v11189_v37  ;;  %v11154_v9 = vld [vmem:[#allocation2 + $0x1310] sm:$0xf0]  ;;  %v13634_v19 = vld [vmem:[#allocation2 + $0x14e4] sm:$0xf]  ;;  %v11029_v24 = vor.u32 %v13542_v3, %v11026_v63  ;;  %15109 = vst [vmem:[#allocation39_spill] sm:$0xff] %v14622_v54 }
 0x185   :  { %v11394_v0 = vld [vmem:[#allocation2 + $0x14f0] sm:$0xf0]  ;;  %v13666_v12 = vld [vmem:[#allocation2 + $0x15e4] sm:$0xf]  ;;  %5477 = vmatpush.bf16.msra.mxu0 %v10789_v25  ;;  %v11157_v37 = vor.u32 %v13574_v8, %v11154_v9  ;;  %v8824_v54 = vld [vmem:[#allocation2 + $0xc8] sm:$0xf] }
 0x186   :  { %v11522_v11 = vld [vmem:[#allocation2 + $0x15f0] sm:$0xf0]  ;;  %v13698_v27 = vld [vmem:[#allocation2 + $0x16e4] sm:$0xf]  ;;  %5491 = vmatpush.bf16.msra.mxu1 %v10917_v28  ;;  %v11397_v13 = vor.u32 %v13634_v19, %v11394_v0 }
 0x187   :  { %v11650_v16 = vld [vmem:[#allocation2 + $0x16f0] sm:$0xf0]  ;;  %5505 = vmatpush.bf16.msra.mxu2 %v11045_v23  ;;  %v13730_v30 = vld [vmem:[#allocation2 + $0x17e4] sm:$0xf]  ;;  %v11525_v59 = vor.u32 %v13666_v12, %v11522_v11 }
 0x188   :  { %v11778_v49 = vld [vmem:[#allocation2 + $0x17f0] sm:$0xf0]  ;;  %5519 = vmatpush.bf16.msra.mxu3 %v11173_v7  ;;  %v11653_v42 = vor.u32 %v13698_v27, %v11650_v16  ;;  %v13630_v50 = vld [vmem:[#allocation2 + $0x14c4] sm:$0xf] }
 0x189   :  { %v11378_v29 = vld [vmem:[#allocation2 + $0x14d0] sm:$0xf0]  ;;  %v13662_v6 = vld [vmem:[#allocation2 + $0x15c4] sm:$0xf]  ;;  %5478 = vmatpush.bf16.msra.mxu0 %v10773_v20  ;;  %v11781_v25 = vor.u32 %v13730_v30, %v11778_v49 }
 0x18a   :  { %v11506_v53 = vld [vmem:[#allocation2 + $0x15d0] sm:$0xf0]  ;;  %v13694_v62 = vld [vmem:[#allocation2 + $0x16c4] sm:$0xf]  ;;  %5492 = vmatpush.bf16.msra.mxu1 %v10901_v15  ;;  %v11381_v61 = vor.u32 %v13630_v50, %v11378_v29 }
 0x18b   :  { %v11634_v2 = vld [vmem:[#allocation2 + $0x16d0] sm:$0xf0]  ;;  %5506 = vmatpush.bf16.msra.mxu2 %v11029_v24  ;;  %v13726_v28 = vld [vmem:[#allocation2 + $0x17c4] sm:$0xf]  ;;  %v11509_v3 = vor.u32 %v13662_v6, %v11506_v53  ;;  %v14628_v6 = vld [vmem:[#allocation4] sm:$0xf] }
 0x18c   :  { %v11762_v23 = vld [vmem:[#allocation2 + $0x17d0] sm:$0xf0]  ;;  %5520 = vmatpush.bf16.msra.mxu3 %v11157_v37  ;;  %v11637_v7 = vor.u32 %v13694_v62, %v11634_v2  ;;  %v13626_v63 = vld [vmem:[#allocation2 + $0x14a4] sm:$0xf]  ;;  %5479 = vmatmul.bf16.vlgmr.msra.gmra.mxu0 %v14494_v51  ;;  %v15089_v27 = vperm.slane %v14628_v6, 1  ;;  %v14631_v37 = vpop.f32.mrf.mxu2  ;;  %v5256_v62 = vpop.f32.mrf.mxu0 }
 0x18d   :  { %5527 = vmatpush.bf16.msrb.mxu0 %v11397_v13  ;;  %v11362_v8 = vld [vmem:[#allocation2 + $0x14b0] sm:$0xf0]  ;;  %v13658_v9 = vld [vmem:[#allocation2 + $0x15a4] sm:$0xf]  ;;  %v11765_v19 = vor.u32 %v13726_v28, %v11762_v23  ;;  %5493 = vmatmul.bf16.vlgmr.msra.gmra.mxu1 %v14498_v56  ;;  %15110 = vst [vmem:[#allocation40_spill] sm:$0xff] %v14631_v37  ;;  %v14633_v28 = vpop.f32.mrf.mxu3 }
 0x18e   :  { %5541 = vmatpush.bf16.msrb.mxu1 %v11525_v59  ;;  %v11490_v0 = vld [vmem:[#allocation2 + $0x15b0] sm:$0xf0]  ;;  %v13690_v12 = vld [vmem:[#allocation2 + $0x16a4] sm:$0xf]  ;;  %5507 = vmatmul.bf16.vlgmr.msra.gmra.mxu2 %v14496_v55  ;;  %v11365_v2 = vor.u32 %v13626_v63, %v11362_v8  ;;  %15111 = vst [vmem:[#allocation41_spill] sm:$0xff] %v14633_v28 }
 0x18f   :  { %5555 = vmatpush.bf16.msrb.mxu2 %v11653_v42  ;;  %v11618_v20 = vld [vmem:[#allocation2 + $0x16b0] sm:$0xf0]  ;;  %v13722_v29 = vld [vmem:[#allocation2 + $0x17a4] sm:$0xf]  ;;  %5521 = vmatmul.bf16.vlgmr.msra.gmra.mxu3 %v14500_v60  ;;  %v11493_v16 = vor.u32 %v13658_v9, %v11490_v0 }
 0x190   :  { %5569 = vmatpush.bf16.msrb.mxu3 %v11781_v25  ;;  %v11746_v11 = vld [vmem:[#allocation2 + $0x17b0] sm:$0xf0]  ;;  %v11621_v15 = vor.u32 %v13690_v12, %v11618_v20  ;;  %v13622_v24 = vld [vmem:[#allocation2 + $0x1484] sm:$0xf] }
 0x191   :  { %5528 = vmatpush.bf16.msrb.mxu0 %v11381_v61  ;;  %v11346_v30 = vld [vmem:[#allocation2 + $0x1490] sm:$0xf0]  ;;  %v13654_v49 = vld [vmem:[#allocation2 + $0x1584] sm:$0xf]  ;;  %v11749_v13 = vor.u32 %v13722_v29, %v11746_v11  ;;  %v5257_v61 = vadd.f32 %v5256_v62, %v15089_v27 }
 0x192   :  { %5542 = vmatpush.bf16.msrb.mxu1 %v11509_v3  ;;  %v11474_v59 = vld [vmem:[#allocation2 + $0x1590] sm:$0xf0]  ;;  %v13686_v42 = vld [vmem:[#allocation2 + $0x1684] sm:$0xf]  ;;  %v11349_v23 = vor.u32 %v13622_v24, %v11346_v30 }
 0x193   :  { %5556 = vmatpush.bf16.msrb.mxu2 %v11637_v7  ;;  %v11602_v50 = vld [vmem:[#allocation2 + $0x1690] sm:$0xf0]  ;;  %v13718_v25 = vld [vmem:[#allocation2 + $0x1784] sm:$0xf]  ;;  %v11477_v3 = vor.u32 %v13654_v49, %v11474_v59 }
 0x194   :  { %5570 = vmatpush.bf16.msrb.mxu3 %v11765_v19  ;;  %v11730_v53 = vld [vmem:[#allocation2 + $0x1790] sm:$0xf0]  ;;  %v11605_v7 = vor.u32 %v13686_v42, %v11602_v50  ;;  %v13618_v63 = vld [vmem:[#allocation2 + $0x1464] sm:$0xf]  ;;  %v5270_v19 = vpop.f32.mrf.mxu1 }
 0x195   :  { %5529 = vmatpush.bf16.msrb.mxu0 %v11365_v2  ;;  %v11330_v8 = vld [vmem:[#allocation2 + $0x1470] sm:$0xf0]  ;;  %v13650_v9 = vld [vmem:[#allocation2 + $0x1564] sm:$0xf]  ;;  %v11733_v0 = vor.u32 %v13718_v25, %v11730_v53  ;;  %v5271_v11 = vadd.f32 %v5270_v19, %v5257_v61  ;;  %v5284_v53 = vpop.f32.mrf.mxu2 }
 0x196   :  { %5543 = vmatpush.bf16.msrb.mxu1 %v11493_v16  ;;  %v11458_v12 = vld [vmem:[#allocation2 + $0x1570] sm:$0xf0]  ;;  %v13682_v20 = vld [vmem:[#allocation2 + $0x1664] sm:$0xf]  ;;  %v11333_v24 = vor.u32 %v13618_v63, %v11330_v8 }
 0x197   :  { %5557 = vmatpush.bf16.msrb.mxu2 %v11621_v15  ;;  %v11586_v29 = vld [vmem:[#allocation2 + $0x1670] sm:$0xf0]  ;;  %v13714_v28 = vld [vmem:[#allocation2 + $0x1764] sm:$0xf]  ;;  %v11461_v16 = vor.u32 %v13650_v9, %v11458_v12  ;;  %v5285_v61 = vadd.f32 %v5284_v53, %v5271_v11  ;;  %v8840_v53 = vld [vmem:[#allocation2 + $0xe8] sm:$0xf] }
 0x198   :  { %5571 = vmatpush.bf16.msrb.mxu3 %v11749_v13  ;;  %v11714_v2 = vld [vmem:[#allocation2 + $0x1770] sm:$0xf0]  ;;  %v11589_v15 = vor.u32 %v13682_v20, %v11586_v29  ;;  %v13614_v30 = vld [vmem:[#allocation2 + $0x1444] sm:$0xf] }
 0x199   :  { %5530 = vmatpush.bf16.msrb.mxu0 %v11349_v23  ;;  %v11314_v49 = vld [vmem:[#allocation2 + $0x1450] sm:$0xf0]  ;;  %v13646_v59 = vld [vmem:[#allocation2 + $0x1544] sm:$0xf]  ;;  %v11717_v42 = vor.u32 %v13714_v28, %v11714_v2  ;;  %v5298_v23 = vpop.f32.mrf.mxu3 }
 0x19a   :  { %5544 = vmatpush.bf16.msrb.mxu1 %v11477_v3  ;;  %v11442_v50 = vld [vmem:[#allocation2 + $0x1550] sm:$0xf0]  ;;  %v13678_v13 = vld [vmem:[#allocation2 + $0x1644] sm:$0xf]  ;;  %v11317_v19 = vor.u32 %v13614_v30, %v11314_v49  ;;  %v14637_v12 = vadd.f32 %v5298_v23, %v5285_v61  ;;  %v8968_v61 = vld [vmem:[#allocation2 + $0x1e8] sm:$0xf] }
 0x19b   :  { %5558 = vmatpush.bf16.msrb.mxu2 %v11605_v7  ;;  %v11570_v25 = vld [vmem:[#allocation2 + $0x1650] sm:$0xf0]  ;;  %v13710_v62 = vld [vmem:[#allocation2 + $0x1744] sm:$0xf]  ;;  %v11445_v3 = vor.u32 %v13646_v59, %v11442_v50  ;;  %v13029_v23 = vld [vmem:[#allocation2 + $0x1f4] sm:$0xf0] }
 0x19c   :  { %5572 = vmatpush.bf16.msrb.mxu3 %v11733_v0  ;;  %v11698_v27 = vld [vmem:[#allocation2 + $0x1750] sm:$0xf0]  ;;  %v11573_v7 = vor.u32 %v13678_v13, %v11570_v25  ;;  %v13610_v63 = vld [vmem:[#allocation2 + $0x1424] sm:$0xf] }
 0x19d   :  { %5531 = vmatpush.bf16.msrb.mxu0 %v11333_v24  ;;  %v11298_v8 = vld [vmem:[#allocation2 + $0x1430] sm:$0xf0]  ;;  %v13642_v9 = vld [vmem:[#allocation2 + $0x1524] sm:$0xf]  ;;  %v11701_v28 = vor.u32 %v13710_v62, %v11698_v27  ;;  %v12997_v62 = vld [vmem:[#allocation2 + $0xf4] sm:$0xf0] }
 0x19e   :  { %5545 = vmatpush.bf16.msrb.mxu1 %v11461_v16  ;;  %v11426_v0 = vld [vmem:[#allocation2 + $0x1530] sm:$0xf0]  ;;  %v13674_v20 = vld [vmem:[#allocation2 + $0x1624] sm:$0xf]  ;;  %v11301_v11 = vor.u32 %v13610_v63, %v11298_v8  ;;  %v9096_v63 = vld [vmem:[#allocation2 + $0x2e8] sm:$0xf] }
 0x19f   :  { %5559 = vmatpush.bf16.msrb.mxu2 %v11589_v15  ;;  %v11554_v29 = vld [vmem:[#allocation2 + $0x1630] sm:$0xf0]  ;;  %v13706_v2 = vld [vmem:[#allocation2 + $0x1724] sm:$0xf]  ;;  %v11429_v16 = vor.u32 %v13642_v9, %v11426_v0  ;;  %v13061_v8 = vld [vmem:[#allocation2 + $0x2f4] sm:$0xf0] }
 0x1a0   :  { %5573 = vmatpush.bf16.msrb.mxu3 %v11717_v42  ;;  %v11682_v37 = vld [vmem:[#allocation2 + $0x1730] sm:$0xf0]  ;;  %v13606_v24 = vld [vmem:[#allocation2 + $0x1404] sm:$0xf]  ;;  %v11557_v15 = vor.u32 %v13674_v20, %v11554_v29  ;;  %v9224_v9 = vld [vmem:[#allocation2 + $0x3e8] sm:$0xf]  ;;  %v8969_v20 = vor.u32 %v13029_v23, %v8968_v61  ;;  %v9097_v29 = vor.u32 %v13061_v8, %v9096_v63 }
 0x1a1   :  { %5532 = vmatpush.bf16.msrb.mxu0 %v11317_v19  ;;  %v11282_v30 = vld [vmem:[#allocation2 + $0x1410] sm:$0xf0]  ;;  %v13638_v49 = vld [vmem:[#allocation2 + $0x1504] sm:$0xf]  ;;  %v11685_v13 = vor.u32 %v13706_v2, %v11682_v37  ;;  %v13093_v0 = vld [vmem:[#allocation2 + $0x3f4] sm:$0xf0]  ;;  %v8841_v37 = vor.u32 %v12997_v62, %v8840_v53  ;;  %v14639_v2 = vpop.f32.mrf.mxu0 }
 0x1a2   :  { %5546 = vmatpush.bf16.msrb.mxu1 %v11445_v3  ;;  %v11410_v59 = vld [vmem:[#allocation2 + $0x1510] sm:$0xf0]  ;;  %v13670_v50 = vld [vmem:[#allocation2 + $0x1604] sm:$0xf]  ;;  %v11285_v19 = vor.u32 %v13606_v24, %v11282_v30  ;;  %v9225_v24 = vor.u32 %v13093_v0, %v9224_v9  ;;  %v13025_v30 = vld [vmem:[#allocation2 + $0x1d4] sm:$0xf0] }
 0x1a3   :  { %5560 = vmatpush.bf16.msrb.mxu2 %v11573_v7  ;;  %v11538_v42 = vld [vmem:[#allocation2 + $0x1610] sm:$0xf0]  ;;  %v13702_v27 = vld [vmem:[#allocation2 + $0x1704] sm:$0xf]  ;;  %v11413_v3 = vor.u32 %v13638_v49, %v11410_v59  ;;  %v13089_v49 = vld [vmem:[#allocation2 + $0x3d4] sm:$0xf0]  ;;  %v14641_v59 = vpop.f32.mrf.mxu1 }
 0x1a4   :  { %5574 = vmatpush.bf16.msrb.mxu3 %v11701_v28  ;;  %v11666_v25 = vld [vmem:[#allocation2 + $0x1710] sm:$0xf0]  ;;  %v11541_v7 = vor.u32 %v13670_v50, %v11538_v42  ;;  %v8825_v50 = vor.u32 %v12993_v18, %v8824_v54  ;;  %v8936_v53 = vld [vmem:[#allocation2 + $0x1a8] sm:$0xf]  ;;  %v13021_v61 = vld [vmem:[#allocation2 + $0x1b4] sm:$0xf0]  ;;  %v14647_v54 = vpop.f32.mrf.mxu2 }
 0x1a5   :  { %5533 = vmatpush.bf16.msrb.mxu0 %v11301_v11  ;;  %v11669_v28 = vor.u32 %v13702_v27, %v11666_v25  ;;  %v8952_v11 = vld [vmem:[#allocation2 + $0x1c8] sm:$0xf]  ;;  %v12989_v25 = vld [vmem:[#allocation2 + $0xb4] sm:$0xf0]  ;;  %15112 = vst [vmem:[#allocation42_spill] sm:$0xff] %v14647_v54  ;;  %v8937_v8 = vor.u32 %v13021_v61, %v8936_v53 }
 0x1a6   :  { %5547 = vmatpush.bf16.msrb.mxu1 %v11429_v16  ;;  %v13057_v16 = vld [vmem:[#allocation2 + $0x2d4] sm:$0xf0]  ;;  %v8808_v27 = vld [vmem:[#allocation2 + $0xa8] sm:$0xf] }
 0x1a7   :  { %5561 = vmatpush.bf16.msrb.mxu2 %v11557_v15  ;;  %v9208_v15 = vld [vmem:[#allocation2 + $0x3c8] sm:$0xf]  ;;  %v9081_v42 = vor.u32 %v13057_v16, %v9080_v22  ;;  %v13053_v23 = vld [vmem:[#allocation2 + $0x2b4] sm:$0xf0]  ;;  %v8809_v22 = vor.u32 %v12989_v25, %v8808_v27 }
 0x1a8   :  { %5575 = vmatpush.bf16.msrb.mxu3 %v11685_v13  ;;  %v8953_v13 = vor.u32 %v13025_v30, %v8952_v11  ;;  %v9209_v62 = vor.u32 %v13089_v49, %v9208_v15  ;;  %v9192_v63 = vld [vmem:[#allocation2 + $0x3a8] sm:$0xf]  ;;  %v13085_v18 = vld [vmem:[#allocation2 + $0x3b4] sm:$0xf0] }
 0x1a9   :  { %5534 = vmatpush.bf16.msrb.mxu0 %v11285_v19  ;;  %v9064_v19 = vld [vmem:[#allocation2 + $0x2a8] sm:$0xf]  ;;  %v12985_v9 = vld [vmem:[#allocation2 + $0x94] sm:$0xf0] }
 0x1aa   :  { %5548 = vmatpush.bf16.msrb.mxu1 %v11413_v3  ;;  %v9065_v3 = vor.u32 %v13053_v23, %v9064_v19  ;;  %v8920_v0 = vld [vmem:[#allocation2 + $0x188] sm:$0xf]  ;;  %v13049_v11 = vld [vmem:[#allocation2 + $0x294] sm:$0xf0] }
 0x1ab   :  { %5562 = vmatpush.bf16.msrb.mxu2 %v11541_v7  ;;  %v8792_v7 = vld [vmem:[#allocation2 + $0x88] sm:$0xf]  ;;  %v13081_v16 = vld [vmem:[#allocation2 + $0x394] sm:$0xf0] }
 0x1ac   :  { %5576 = vmatpush.bf16.msrb.mxu3 %v11669_v28  ;;  %5535 = vmatmul.bf16.vlgmr.msrb.gmra.mxu0 %v14539_v26  ;;  %v9193_v28 = vor.u32 %v13085_v18, %v9192_v63  ;;  %v9176_v30 = vld [vmem:[#allocation2 + $0x388] sm:$0xf]  ;;  %v8793_v49 = vor.u32 %v12985_v9, %v8792_v7  ;;  %v12981_v25 = vld [vmem:[#allocation2 + $0x74] sm:$0xf0] }
 0x1ad   :  { %5583 = vmatpush.bf16.msra.mxu0 %v8841_v37  ;;  %5549 = vmatmul.bf16.vlgmr.msrb.gmra.mxu1 %v14543_v34  ;;  %v14649_v37 = vpop.f32.mrf.mxu3  ;;  %v8776_v27 = vld [vmem:[#allocation2 + $0x68] sm:$0xf]  ;;  %v13013_v19 = vld [vmem:[#allocation2 + $0x174] sm:$0xf0] }
 0x1ae   :  { %5597 = vmatpush.bf16.msra.mxu1 %v8969_v20  ;;  %5563 = vmatmul.bf16.vlgmr.msrb.gmra.mxu2 %v14541_v33  ;;  %15113 = vst [vmem:[#allocation43_spill] sm:$0xff] %v14649_v37  ;;  %v13017_v20 = vld [vmem:[#allocation2 + $0x194] sm:$0xf0]  ;;  %v8904_v53 = vld [vmem:[#allocation2 + $0x168] sm:$0xf] }
 0x1af   :  { %5611 = vmatpush.bf16.msra.mxu2 %v9097_v29  ;;  %5577 = vmatmul.bf16.vlgmr.msrb.gmra.mxu3 %v14547_v48  ;;  %v9048_v29 = vld [vmem:[#allocation2 + $0x288] sm:$0xf]  ;;  %v13045_v63 = vld [vmem:[#allocation2 + $0x274] sm:$0xf0] }
 0x1b0   :  { %5625 = vmatpush.bf16.msra.mxu3 %v9225_v24  ;;  %v5312_v24 = vpop.f32.mrf.mxu0  ;;  %v9032_v23 = vld [vmem:[#allocation2 + $0x268] sm:$0xf]  ;;  %v12977_v7 = vld [vmem:[#allocation2 + $0x54] sm:$0xf0] }
 0x1b1   :  { %5584 = vmatpush.bf16.msra.mxu0 %v8825_v50  ;;  %v5313_v15 = vadd.f32 %v5312_v24, %v14637_v12  ;;  %v8921_v50 = vor.u32 %v13017_v20, %v8920_v0  ;;  %v9160_v18 = vld [vmem:[#allocation2 + $0x368] sm:$0xf]  ;;  %v8905_v12 = vor.u32 %v13013_v19, %v8904_v53  ;;  %v5340_v20 = vpop.f32.mrf.mxu2 }
 0x1b2   :  { %5598 = vmatpush.bf16.msra.mxu1 %v8953_v13  ;;  %v9049_v13 = vor.u32 %v13049_v11, %v9048_v29  ;;  %v8888_v9 = vld [vmem:[#allocation2 + $0x148] sm:$0xf]  ;;  %v9161_v0 = vor.u32 %v13077_v57, %v9160_v18  ;;  %v13041_v11 = vld [vmem:[#allocation2 + $0x254] sm:$0xf0] }
 0x1b3   :  { %5612 = vmatpush.bf16.msra.mxu2 %v9081_v42  ;;  %v5326_v42 = vpop.f32.mrf.mxu1  ;;  %v9016_v29 = vld [vmem:[#allocation2 + $0x248] sm:$0xf] }
 0x1b4   :  { %5626 = vmatpush.bf16.msra.mxu3 %v9209_v62  ;;  %v9177_v62 = vor.u32 %v13081_v16, %v9176_v30  ;;  %v5327_v61 = vadd.f32 %v5326_v42, %v5313_v15  ;;  %v9144_v30 = vld [vmem:[#allocation2 + $0x348] sm:$0xf]  ;;  %v13073_v16 = vld [vmem:[#allocation2 + $0x354] sm:$0xf0]  ;;  %v9017_v42 = vor.u32 %v13041_v11, %v9016_v29 }
 0x1b5   :  { %5585 = vmatpush.bf16.msra.mxu0 %v8809_v22  ;;  %v8777_v22 = vor.u32 %v12981_v25, %v8776_v27  ;;  %v5354_v15 = vpop.f32.mrf.mxu3  ;;  %v8744_v27 = vld [vmem:[#allocation2 + $0x28] sm:$0xf]  ;;  %v12973_v25 = vld [vmem:[#allocation2 + $0x34] sm:$0xf0]  ;;  %v9145_v57 = vor.u32 %v13073_v16, %v9144_v30 }
 0x1b6   :  { %5599 = vmatpush.bf16.msra.mxu1 %v8937_v8  ;;  %v9033_v8 = vor.u32 %v13045_v63, %v9032_v23  ;;  %v5341_v24 = vadd.f32 %v5340_v20, %v5327_v61  ;;  %v8872_v53 = vld [vmem:[#allocation2 + $0x128] sm:$0xf]  ;;  %v13037_v23 = vld [vmem:[#allocation2 + $0x234] sm:$0xf0]  ;;  %v8745_v18 = vor.u32 %v12973_v25, %v8744_v27 }
 0x1b7   :  { %5613 = vmatpush.bf16.msra.mxu2 %v9065_v3  ;;  %v8760_v3 = vld [vmem:[#allocation2 + $0x48] sm:$0xf]  ;;  %v13069_v63 = vld [vmem:[#allocation2 + $0x334] sm:$0xf0] }
 0x1b8   :  { %5627 = vmatpush.bf16.msra.mxu3 %v9193_v28  ;;  %v13009_v28 = vld [vmem:[#allocation2 + $0x154] sm:$0xf0]  ;;  %v9000_v19 = vld [vmem:[#allocation2 + $0x228] sm:$0xf]  ;;  %v14654_v54 = vpop.f32.mrf.mxu0 }
 0x1b9   :  { %5586 = vmatpush.bf16.msra.mxu0 %v8793_v49  ;;  %v8761_v49 = vor.u32 %v12977_v7, %v8760_v3  ;;  %v9128_v61 = vld [vmem:[#allocation2 + $0x328] sm:$0xf]  ;;  %v12969_v3 = vld [vmem:[#allocation2 + $0x14] sm:$0xf0]  ;;  %15114 = vst [vmem:[#allocation44_spill] sm:$0xff] %v14654_v54 }
 0x1ba   :  { %5600 = vmatpush.bf16.msra.mxu1 %v8921_v50  ;;  %v14652_v50 = vadd.f32 %v5354_v15, %v5341_v24  ;;  %v8856_v7 = vld [vmem:[#allocation2 + $0x108] sm:$0xf]  ;;  %v13065_v11 = vld [vmem:[#allocation2 + $0x314] sm:$0xf0] }
 0x1bb   :  { %5614 = vmatpush.bf16.msra.mxu2 %v9049_v13  ;;  %v8889_v13 = vor.u32 %v13009_v28, %v8888_v9  ;;  %v13001_v9 = vld [vmem:[#allocation2 + $0x114] sm:$0xf0]  ;;  %v8984_v20 = vld [vmem:[#allocation2 + $0x208] sm:$0xf]  ;;  %v9129_v28 = vor.u32 %v13069_v63, %v9128_v61 }
 0x1bc   :  { %5628 = vmatpush.bf16.msra.mxu3 %v9177_v62  ;;  %v13005_v62 = vld [vmem:[#allocation2 + $0x134] sm:$0xf0]  ;;  %v9112_v29 = vld [vmem:[#allocation2 + $0x308] sm:$0xf] }
 0x1bd   :  { %5587 = vmatpush.bf16.msra.mxu0 %v8777_v22  ;;  %v8728_v22 = vld [vmem:[#allocation2 + $0x8] sm:$0xf]  ;;  %v13125_v30 = vld [vmem:[#allocation2 + $0x4f4] sm:$0xf0] }
 0x1be   :  { %5601 = vmatpush.bf16.msra.mxu1 %v8905_v12  ;;  %v8873_v12 = vor.u32 %v13005_v62, %v8872_v53  ;;  %v9352_v24 = vld [vmem:[#allocation2 + $0x4e8] sm:$0xf]  ;;  %v8729_v15 = vor.u32 %v12969_v3, %v8728_v22  ;;  %v13189_v25 = vld [vmem:[#allocation2 + $0x6f4] sm:$0xf0] }
 0x1bf   :  { %5615 = vmatpush.bf16.msra.mxu2 %v9033_v8  ;;  %v9001_v8 = vor.u32 %v13037_v23, %v9000_v19  ;;  %v9480_v16 = vld [vmem:[#allocation2 + $0x5e8] sm:$0xf]  ;;  %v13221_v62 = vld [vmem:[#allocation2 + $0x7f4] sm:$0xf0]  ;;  %v9353_v19 = vor.u32 %v13125_v30, %v9352_v24 }
 0x1c0   :  { %5629 = vmatpush.bf16.msra.mxu3 %v9161_v0  ;;  %v13033_v0 = vld [vmem:[#allocation2 + $0x214] sm:$0xf0]  ;;  %v9608_v27 = vld [vmem:[#allocation2 + $0x6e8] sm:$0xf] }
 0x1c1   :  { %5588 = vmatpush.bf16.msra.mxu0 %v8761_v49  ;;  %v13157_v49 = vld [vmem:[#allocation2 + $0x5f4] sm:$0xf0]  ;;  %v9736_v53 = vld [vmem:[#allocation2 + $0x7e8] sm:$0xf]  ;;  %v9609_v61 = vor.u32 %v13189_v25, %v9608_v27 }
 0x1c2   :  { %5602 = vmatpush.bf16.msra.mxu1 %v8889_v13  ;;  %v8857_v13 = vor.u32 %v13001_v9, %v8856_v7  ;;  %v9481_v23 = vor.u32 %v13157_v49, %v9480_v16  ;;  %v9336_v63 = vld [vmem:[#allocation2 + $0x4c8] sm:$0xf]  ;;  %v13153_v22 = vld [vmem:[#allocation2 + $0x5d4] sm:$0xf0]  ;;  %v14656_v7 = vpop.f32.mrf.mxu1 }
 0x1c3   :  { %5616 = vmatpush.bf16.msra.mxu2 %v9017_v42  ;;  %v8985_v42 = vor.u32 %v13033_v0, %v8984_v20  ;;  %v9464_v37 = vld [vmem:[#allocation2 + $0x5c8] sm:$0xf]  ;;  %15115 = vst [vmem:[#allocation45_spill] sm:$0xff] %v14656_v7  ;;  %v9337_v9 = vor.u32 %v13121_v52, %v9336_v63  ;;  %v13149_v30 = vld [vmem:[#allocation2 + $0x5b4] sm:$0xf0] }
 0x1c4   :  { %5630 = vmatpush.bf16.msra.mxu3 %v9145_v57  ;;  %v9113_v57 = vor.u32 %v13065_v11, %v9112_v29  ;;  %v9592_v3 = vld [vmem:[#allocation2 + $0x6c8] sm:$0xf]  ;;  %v9465_v20 = vor.u32 %v13153_v22, %v9464_v37  ;;  %v13117_v29 = vld [vmem:[#allocation2 + $0x4b4] sm:$0xf0] }
 0x1c5   :  { %5589 = vmatpush.bf16.msra.mxu0 %v8745_v18  ;;  %v9737_v18 = vor.u32 %v13221_v62, %v9736_v53  ;;  %v9320_v0 = vld [vmem:[#allocation2 + $0x4a8] sm:$0xf]  ;;  %v13213_v27 = vld [vmem:[#allocation2 + $0x7b4] sm:$0xf0]  ;;  %v14662_v53 = vpop.f32.mrf.mxu2 }
 0x1c6   :  { %5603 = vmatpush.bf16.msra.mxu1 %v8873_v12  ;;  %v9720_v12 = vld [vmem:[#allocation2 + $0x7c8] sm:$0xf]  ;;  %v9321_v52 = vor.u32 %v13117_v29, %v9320_v0  ;;  %15116 = vst [vmem:[#allocation46_spill] sm:$0xff] %v14662_v53  ;;  %v13209_v22 = vld [vmem:[#allocation2 + $0x794] sm:$0xf0] }
 0x1c7   :  { %5617 = vmatpush.bf16.msra.mxu2 %v9001_v8  ;;  %v13217_v8 = vld [vmem:[#allocation2 + $0x7d4] sm:$0xf0]  ;;  %v9448_v11 = vld [vmem:[#allocation2 + $0x5a8] sm:$0xf] }
 0x1c8   :  { %5631 = vmatpush.bf16.msra.mxu3 %v9129_v28  ;;  %v9593_v28 = vor.u32 %v13185_v14, %v9592_v3  ;;  %v9721_v24 = vor.u32 %v13217_v8, %v9720_v12  ;;  %v9576_v16 = vld [vmem:[#allocation2 + $0x6a8] sm:$0xf]  ;;  %v9449_v14 = vor.u32 %v13149_v30, %v9448_v11  ;;  %v13109_v0 = vld [vmem:[#allocation2 + $0x474] sm:$0xf0] }
 0x1c9   :  { %5590 = vmatpush.bf16.msra.mxu0 %v8729_v15  ;;  %v13181_v15 = vld [vmem:[#allocation2 + $0x6b4] sm:$0xf0]  ;;  %v9704_v49 = vld [vmem:[#allocation2 + $0x7a8] sm:$0xf]  ;;  %v5368_v63 = vpop.f32.mrf.mxu0 }
 0x1ca   :  { %5604 = vmatpush.bf16.msra.mxu1 %v8857_v13  ;;  %v9577_v37 = vor.u32 %v13181_v15, %v9576_v16  ;;  %v9304_v25 = vld [vmem:[#allocation2 + $0x488] sm:$0xf]  ;;  %v13113_v13 = vld [vmem:[#allocation2 + $0x494] sm:$0xf0]  ;;  %v9705_v62 = vor.u32 %v13213_v27, %v9704_v49  ;;  %v5369_v3 = vadd.f32 %v5368_v63, %v14652_v50  ;;  %v5382_v8 = vpop.f32.mrf.mxu1 }
 0x1cb   :  { %5618 = vmatpush.bf16.msra.mxu2 %v8985_v42  ;;  %v9432_v42 = vld [vmem:[#allocation2 + $0x588] sm:$0xf]  ;;  %v9305_v12 = vor.u32 %v13113_v13, %v9304_v25  ;;  %v13141_v30 = vld [vmem:[#allocation2 + $0x574] sm:$0xf0] }
 0x1cc   :  { %5632 = vmatpush.bf16.msra.mxu3 %v9113_v57  ;;  %5591 = vmatmul.bf16.vlgmr.msra.gmra.mxu0 %v14335_v58  ;;  %v13145_v57 = vld [vmem:[#allocation2 + $0x594] sm:$0xf0]  ;;  %v9416_v29 = vld [vmem:[#allocation2 + $0x568] sm:$0xf] }
 0x1cd   :  { %5639 = vmatpush.bf16.msrb.mxu0 %v9353_v19  ;;  %5605 = vmatmul.bf16.vlgmr.msra.gmra.mxu1 %v14353_v10  ;;  %v9560_v19 = vld [vmem:[#allocation2 + $0x688] sm:$0xf]  ;;  %v13173_v15 = vld [vmem:[#allocation2 + $0x674] sm:$0xf0]  ;;  %v9417_v50 = vor.u32 %v13141_v30, %v9416_v29 }
 0x1ce   :  { %5653 = vmatpush.bf16.msrb.mxu1 %v9481_v23  ;;  %5619 = vmatmul.bf16.vlgmr.msra.gmra.mxu2 %v14340_v1  ;;  %v13177_v23 = vld [vmem:[#allocation2 + $0x694] sm:$0xf0]  ;;  %v9544_v16 = vld [vmem:[#allocation2 + $0x668] sm:$0xf] }
 0x1cf   :  { %5667 = vmatpush.bf16.msrb.mxu2 %v9609_v61  ;;  %5633 = vmatmul.bf16.vlgmr.msra.gmra.mxu3 %v14358_v17  ;;  %v14664_v61 = vpop.f32.mrf.mxu3  ;;  %v9672_v49 = vld [vmem:[#allocation2 + $0x768] sm:$0xf]  ;;  %v13205_v27 = vld [vmem:[#allocation2 + $0x774] sm:$0xf0] }
 0x1d0   :  { %5681 = vmatpush.bf16.msrb.mxu3 %v9737_v18  ;;  %15117 = vst [vmem:[#allocation47_spill] sm:$0xff] %v14664_v61  ;;  %v9688_v18 = vld [vmem:[#allocation2 + $0x788] sm:$0xf]  ;;  %v13105_v25 = vld [vmem:[#allocation2 + $0x454] sm:$0xf0] }
 0x1d1   :  { %5640 = vmatpush.bf16.msrb.mxu0 %v9337_v9  ;;  %v9433_v9 = vor.u32 %v13145_v57, %v9432_v42  ;;  %v9689_v11 = vor.u32 %v13209_v22, %v9688_v18  ;;  %v9400_v13 = vld [vmem:[#allocation2 + $0x548] sm:$0xf]  ;;  %v9673_v42 = vor.u32 %v13205_v27, %v9672_v49  ;;  %v5396_v57 = vpop.f32.mrf.mxu2  ;;  %v13133_v30 = vld [vmem:[#allocation2 + $0x534] sm:$0xf0]  ;;  %v14669_v54 = vpop.f32.mrf.mxu0 }
 0x1d2   :  { %5654 = vmatpush.bf16.msrb.mxu1 %v9465_v20  ;;  %v9561_v20 = vor.u32 %v13177_v23, %v9560_v19  ;;  %v9528_v19 = vld [vmem:[#allocation2 + $0x648] sm:$0xf]  ;;  %v13169_v23 = vld [vmem:[#allocation2 + $0x654] sm:$0xf0]  ;;  %15118 = vst [vmem:[#allocation48_spill] sm:$0xff] %v14669_v54 }
 0x1d3   :  { %5668 = vmatpush.bf16.msrb.mxu2 %v9593_v28  ;;  %v9288_v28 = vld [vmem:[#allocation2 + $0x468] sm:$0xf]  ;;  %v13197_v49 = vld [vmem:[#allocation2 + $0x734] sm:$0xf0] }
 0x1d4   :  { %5682 = vmatpush.bf16.msrb.mxu3 %v9721_v24  ;;  %v5383_v24 = vadd.f32 %v5382_v8, %v5369_v3  ;;  %v9656_v22 = vld [vmem:[#allocation2 + $0x748] sm:$0xf]  ;;  %v13201_v3 = vld [vmem:[#allocation2 + $0x754] sm:$0xf0] }
 0x1d5   :  { %5641 = vmatpush.bf16.msrb.mxu0 %v9321_v52  ;;  %v9289_v52 = vor.u32 %v13109_v0, %v9288_v28  ;;  %v9256_v28 = vld [vmem:[#allocation2 + $0x428] sm:$0xf]  ;;  %v13101_v0 = vld [vmem:[#allocation2 + $0x434] sm:$0xf0] }
 0x1d6   :  { %5655 = vmatpush.bf16.msrb.mxu1 %v9449_v14  ;;  %v9545_v14 = vor.u32 %v13173_v15, %v9544_v16  ;;  %v5397_v63 = vadd.f32 %v5396_v57, %v5383_v24  ;;  %v9384_v29 = vld [vmem:[#allocation2 + $0x528] sm:$0xf]  ;;  %v13165_v15 = vld [vmem:[#allocation2 + $0x634] sm:$0xf0]  ;;  %v9257_v27 = vor.u32 %v13101_v0, %v9256_v28 }
 0x1d7   :  { %5669 = vmatpush.bf16.msrb.mxu2 %v9577_v37  ;;  %v9272_v37 = vld [vmem:[#allocation2 + $0x448] sm:$0xf]  ;;  %v5410_v18 = vpop.f32.mrf.mxu3  ;;  %v13317_v0 = vld [vmem:[#allocation2 + $0xaf4] sm:$0xf0] }
 0x1d8   :  { %5683 = vmatpush.bf16.msrb.mxu3 %v9705_v62  ;;  %v13137_v62 = vld [vmem:[#allocation2 + $0x554] sm:$0xf0]  ;;  %v14667_v8 = vadd.f32 %v5410_v18, %v5397_v63  ;;  %v9512_v16 = vld [vmem:[#allocation2 + $0x628] sm:$0xf] }
 0x1d9   :  { %5642 = vmatpush.bf16.msrb.mxu0 %v9305_v12  ;;  %v9273_v12 = vor.u32 %v13105_v25, %v9272_v37  ;;  %v9640_v24 = vld [vmem:[#allocation2 + $0x728] sm:$0xf]  ;;  %v13097_v37 = vld [vmem:[#allocation2 + $0x414] sm:$0xf0] }
 0x1da   :  { %5656 = vmatpush.bf16.msrb.mxu1 %v9433_v9  ;;  %v9401_v9 = vor.u32 %v13137_v62, %v9400_v13  ;;  %v9368_v25 = vld [vmem:[#allocation2 + $0x508] sm:$0xf]  ;;  %v13129_v13 = vld [vmem:[#allocation2 + $0x514] sm:$0xf0]  ;;  %v9641_v62 = vor.u32 %v13197_v49, %v9640_v24 }
 0x1db   :  { %5670 = vmatpush.bf16.msrb.mxu2 %v9561_v20  ;;  %v9529_v20 = vor.u32 %v13169_v23, %v9528_v19  ;;  %v9496_v57 = vld [vmem:[#allocation2 + $0x608] sm:$0xf]  ;;  %v13193_v23 = vld [vmem:[#allocation2 + $0x714] sm:$0xf0] }
 0x1dc   :  { %5684 = vmatpush.bf16.msrb.mxu3 %v9689_v11  ;;  %v9657_v11 = vor.u32 %v13201_v3, %v9656_v22  ;;  %v9624_v19 = vld [vmem:[#allocation2 + $0x708] sm:$0xf]  ;;  %v13253_v18 = vld [vmem:[#allocation2 + $0x8f4] sm:$0xf0] }
 0x1dd   :  { %5643 = vmatpush.bf16.msrb.mxu0 %v9289_v52  ;;  %v9240_v52 = vld [vmem:[#allocation2 + $0x408] sm:$0xf]  ;;  %v13249_v61 = vld [vmem:[#allocation2 + $0x8d4] sm:$0xf0] }
 0x1de   :  { %5657 = vmatpush.bf16.msrb.mxu1 %v9417_v50  ;;  %v9385_v50 = vor.u32 %v13133_v30, %v9384_v29  ;;  %v9864_v63 = vld [vmem:[#allocation2 + $0x8e8] sm:$0xf]  ;;  %v9241_v3 = vor.u32 %v13097_v37, %v9240_v52  ;;  %v13349_v30 = vld [vmem:[#allocation2 + $0xbf4] sm:$0xf0] }
 0x1df   :  { %5671 = vmatpush.bf16.msrb.mxu2 %v9545_v14  ;;  %v9513_v14 = vor.u32 %v13165_v15, %v9512_v16  ;;  %v9992_v22 = vld [vmem:[#allocation2 + $0x9e8] sm:$0xf]  ;;  %v9865_v16 = vor.u32 %v13253_v18, %v9864_v63  ;;  %v13281_v52 = vld [vmem:[#allocation2 + $0x9d4] sm:$0xf0] }
 0x1e0   :  { %5685 = vmatpush.bf16.msrb.mxu3 %v9673_v42  ;;  %v13161_v42 = vld [vmem:[#allocation2 + $0x614] sm:$0xf0]  ;;  %v10120_v28 = vld [vmem:[#allocation2 + $0xae8] sm:$0xf] }
 0x1e1   :  { %5644 = vmatpush.bf16.msrb.mxu0 %v9273_v12  ;;  %v13285_v12 = vld [vmem:[#allocation2 + $0x9f4] sm:$0xf0]  ;;  %v10248_v29 = vld [vmem:[#allocation2 + $0xbe8] sm:$0xf]  ;;  %v10121_v24 = vor.u32 %v13317_v0, %v10120_v28 }
 0x1e2   :  { %5658 = vmatpush.bf16.msrb.mxu1 %v9401_v9  ;;  %v9369_v9 = vor.u32 %v13129_v13, %v9368_v25  ;;  %v9993_v15 = vor.u32 %v13285_v12, %v9992_v22  ;;  %v9848_v49 = vld [vmem:[#allocation2 + $0x8c8] sm:$0xf]  ;;  %v13313_v7 = vld [vmem:[#allocation2 + $0xad4] sm:$0xf0]  ;;  %v14671_v25 = vpop.f32.mrf.mxu1 }
 0x1e3   :  { %5672 = vmatpush.bf16.msrb.mxu2 %v9529_v20  ;;  %v9497_v20 = vor.u32 %v13161_v42, %v9496_v57  ;;  %v9976_v53 = vld [vmem:[#allocation2 + $0x9c8] sm:$0xf]  ;;  %15119 = vst [vmem:[#allocation49_spill] sm:$0xff] %v14671_v25  ;;  %v9849_v13 = vor.u32 %v13249_v61, %v9848_v49  ;;  %v13277_v18 = vld [vmem:[#allocation2 + $0x9b4] sm:$0xf0] }
 0x1e4   :  { %5686 = vmatpush.bf16.msrb.mxu3 %v9657_v11  ;;  %v9625_v11 = vor.u32 %v13193_v23, %v9624_v19  ;;  %v10104_v37 = vld [vmem:[#allocation2 + $0xac8] sm:$0xf]  ;;  %v9977_v57 = vor.u32 %v13281_v52, %v9976_v53  ;;  %v13245_v19 = vld [vmem:[#allocation2 + $0x8b4] sm:$0xf0] }
 0x1e5   :  { %5645 = vmatpush.bf16.msrb.mxu0 %v9257_v27  ;;  %v10249_v27 = vor.u32 %v13349_v30, %v10248_v29  ;;  %v9832_v42 = vld [vmem:[#allocation2 + $0x8a8] sm:$0xf]  ;;  %v13341_v61 = vld [vmem:[#allocation2 + $0xbb4] sm:$0xf0]  ;;  %v14677_v29 = vpop.f32.mrf.mxu2 }
 0x1e6   :  { %5659 = vmatpush.bf16.msrb.mxu1 %v9385_v50  ;;  %v10232_v50 = vld [vmem:[#allocation2 + $0xbc8] sm:$0xf]  ;;  %15120 = vst [vmem:[#allocation50_spill] sm:$0xff] %v14677_v29  ;;  %v13337_v52 = vld [vmem:[#allocation2 + $0xb94] sm:$0xf0] }
 0x1e7   :  { %5673 = vmatpush.bf16.msrb.mxu2 %v9513_v14  ;;  %v13345_v14 = vld [vmem:[#allocation2 + $0xbd4] sm:$0xf0]  ;;  %v9960_v23 = vld [vmem:[#allocation2 + $0x9a8] sm:$0xf] }
 0x1e8   :  { %5687 = vmatpush.bf16.msrb.mxu3 %v9641_v62  ;;  %v10105_v62 = vor.u32 %v13313_v7, %v10104_v37  ;;  %v10233_v63 = vor.u32 %v13345_v14, %v10232_v50  ;;  %v10088_v22 = vld [vmem:[#allocation2 + $0xaa8] sm:$0xf]  ;;  %v9833_v7 = vor.u32 %v13245_v19, %v9832_v42  ;;  %v9961_v53 = vor.u32 %v13277_v18, %v9960_v23  ;;  %v13237_v42 = vld [vmem:[#allocation2 + $0x874] sm:$0xf0] }
 0x1e9   :  { %5646 = vmatpush.bf16.msrb.mxu0 %v9241_v3  ;;  %v13309_v3 = vld [vmem:[#allocation2 + $0xab4] sm:$0xf0]  ;;  %v10216_v12 = vld [vmem:[#allocation2 + $0xba8] sm:$0xf]  ;;  %v5424_v49 = vpop.f32.mrf.mxu0 }
 0x1ea   :  { %5660 = vmatpush.bf16.msrb.mxu1 %v9369_v9  ;;  %v10089_v28 = vor.u32 %v13309_v3, %v10088_v22  ;;  %v9816_v0 = vld [vmem:[#allocation2 + $0x888] sm:$0xf]  ;;  %v13241_v9 = vld [vmem:[#allocation2 + $0x894] sm:$0xf0]  ;;  %v10217_v30 = vor.u32 %v13341_v61, %v10216_v12  ;;  %v5425_v37 = vadd.f32 %v5424_v49, %v14667_v8  ;;  %v5438_v14 = vpop.f32.mrf.mxu1 }
 0x1eb   :  { %5674 = vmatpush.bf16.msrb.mxu2 %v9497_v20  ;;  %v9944_v20 = vld [vmem:[#allocation2 + $0x988] sm:$0xf]  ;;  %v9817_v50 = vor.u32 %v13241_v9, %v9816_v0  ;;  %v13269_v18 = vld [vmem:[#allocation2 + $0x974] sm:$0xf0] }
 0x1ec   :  { %5688 = vmatpush.bf16.msrb.mxu3 %v9625_v11  ;;  %5647 = vmatmul.bf16.vlgmr.msrb.gmra.mxu0 %v14386_v39  ;;  %v13273_v11 = vld [vmem:[#allocation2 + $0x994] sm:$0xf0]  ;;  %v9928_v19 = vld [vmem:[#allocation2 + $0x968] sm:$0xf] }
 0x1ed   :  { %5695 = vmatpush.bf16.msra.mxu0 %v9865_v16  ;;  %5661 = vmatmul.bf16.vlgmr.msrb.gmra.mxu1 %v14390_v44  ;;  %v10072_v16 = vld [vmem:[#allocation2 + $0xa88] sm:$0xf]  ;;  %v13301_v3 = vld [vmem:[#allocation2 + $0xa74] sm:$0xf0]  ;;  %v9929_v8 = vor.u32 %v13269_v18, %v9928_v19 }
 0x1ee   :  { %5709 = vmatpush.bf16.msra.mxu1 %v9993_v15  ;;  %5675 = vmatmul.bf16.vlgmr.msrb.gmra.mxu2 %v14388_v43  ;;  %v13305_v15 = vld [vmem:[#allocation2 + $0xa94] sm:$0xf0]  ;;  %v10056_v22 = vld [vmem:[#allocation2 + $0xa68] sm:$0xf] }
 0x1ef   :  { %5723 = vmatpush.bf16.msra.mxu2 %v10121_v24  ;;  %5689 = vmatmul.bf16.vlgmr.msrb.gmra.mxu3 %v14392_v47  ;;  %v14679_v24 = vpop.f32.mrf.mxu3  ;;  %v10184_v12 = vld [vmem:[#allocation2 + $0xb68] sm:$0xf]  ;;  %v13333_v61 = vld [vmem:[#allocation2 + $0xb74] sm:$0xf0] }
 0x1f0   :  { %5737 = vmatpush.bf16.msra.mxu3 %v10249_v27  ;;  %15121 = vst [vmem:[#allocation51_spill] sm:$0xff] %v14679_v24  ;;  %v10200_v27 = vld [vmem:[#allocation2 + $0xb88] sm:$0xf]  ;;  %v13233_v0 = vld [vmem:[#allocation2 + $0x854] sm:$0xf0] }
 0x1f1   :  { %5696 = vmatpush.bf16.msra.mxu0 %v9849_v13  ;;  %v9945_v13 = vor.u32 %v13273_v11, %v9944_v20  ;;  %v10201_v23 = vor.u32 %v13337_v52, %v10200_v27  ;;  %v9912_v9 = vld [vmem:[#allocation2 + $0x948] sm:$0xf]  ;;  %v10185_v20 = vor.u32 %v13333_v61, %v10184_v12  ;;  %v5452_v11 = vpop.f32.mrf.mxu2  ;;  %v13261_v18 = vld [vmem:[#allocation2 + $0x934] sm:$0xf0]  ;;  %v14684_v54 = vpop.f32.mrf.mxu0 }
 0x1f2   :  { %5710 = vmatpush.bf16.msra.mxu1 %v9977_v57  ;;  %v10073_v57 = vor.u32 %v13305_v15, %v10072_v16  ;;  %v10040_v16 = vld [vmem:[#allocation2 + $0xa48] sm:$0xf]  ;;  %v13297_v15 = vld [vmem:[#allocation2 + $0xa54] sm:$0xf0]  ;;  %15122 = vst [vmem:[#allocation52_spill] sm:$0xff] %v14684_v54 }
 0x1f3   :  { %5724 = vmatpush.bf16.msra.mxu2 %v10105_v62  ;;  %v9800_v62 = vld [vmem:[#allocation2 + $0x868] sm:$0xf]  ;;  %v13325_v12 = vld [vmem:[#allocation2 + $0xb34] sm:$0xf0] }
 0x1f4   :  { %5738 = vmatpush.bf16.msra.mxu3 %v10233_v63  ;;  %v5439_v63 = vadd.f32 %v5438_v14, %v5425_v37  ;;  %v10168_v52 = vld [vmem:[#allocation2 + $0xb48] sm:$0xf]  ;;  %v13329_v37 = vld [vmem:[#allocation2 + $0xb54] sm:$0xf0] }
 0x1f5   :  { %5697 = vmatpush.bf16.msra.mxu0 %v9833_v7  ;;  %v9801_v7 = vor.u32 %v13237_v42, %v9800_v62  ;;  %v9768_v62 = vld [vmem:[#allocation2 + $0x828] sm:$0xf]  ;;  %v13229_v42 = vld [vmem:[#allocation2 + $0x834] sm:$0xf0] }
 0x1f6   :  { %5711 = vmatpush.bf16.msra.mxu1 %v9961_v53  ;;  %v10057_v53 = vor.u32 %v13301_v3, %v10056_v22  ;;  %v5453_v49 = vadd.f32 %v5452_v11, %v5439_v63  ;;  %v9896_v19 = vld [vmem:[#allocation2 + $0x928] sm:$0xf]  ;;  %v13293_v3 = vld [vmem:[#allocation2 + $0xa34] sm:$0xf0]  ;;  %v9769_v61 = vor.u32 %v13229_v42, %v9768_v62 }
 0x1f7   :  { %5725 = vmatpush.bf16.msra.mxu2 %v10089_v28  ;;  %v9784_v28 = vld [vmem:[#allocation2 + $0x848] sm:$0xf]  ;;  %v5466_v27 = vpop.f32.mrf.mxu3  ;;  %v13445_v42 = vld [vmem:[#allocation2 + $0xef4] sm:$0xf0] }
 0x1f8   :  { %5739 = vmatpush.bf16.msra.mxu3 %v10217_v30  ;;  %v13265_v30 = vld [vmem:[#allocation2 + $0x954] sm:$0xf0]  ;;  %v14682_v14 = vadd.f32 %v5466_v27, %v5453_v49  ;;  %v10024_v22 = vld [vmem:[#allocation2 + $0xa28] sm:$0xf] }
 0x1f9   :  { %5698 = vmatpush.bf16.msra.mxu0 %v9817_v50  ;;  %v9785_v50 = vor.u32 %v13233_v0, %v9784_v28  ;;  %v10152_v63 = vld [vmem:[#allocation2 + $0xb28] sm:$0xf]  ;;  %v13225_v28 = vld [vmem:[#allocation2 + $0x814] sm:$0xf0] }
 0x1fa   :  { %5712 = vmatpush.bf16.msra.mxu1 %v9945_v13  ;;  %v9913_v13 = vor.u32 %v13265_v30, %v9912_v9  ;;  %v9880_v0 = vld [vmem:[#allocation2 + $0x908] sm:$0xf]  ;;  %v13257_v9 = vld [vmem:[#allocation2 + $0x914] sm:$0xf0]  ;;  %v10153_v30 = vor.u32 %v13325_v12, %v10152_v63 }
 0x1fb   :  { %5726 = vmatpush.bf16.msra.mxu2 %v10073_v57  ;;  %v10041_v57 = vor.u32 %v13297_v15, %v10040_v16  ;;  %v10008_v11 = vld [vmem:[#allocation2 + $0xa08] sm:$0xf]  ;;  %v13321_v15 = vld [vmem:[#allocation2 + $0xb14] sm:$0xf0] }
 0x1fc   :  { %5740 = vmatpush.bf16.msra.mxu3 %v10201_v23  ;;  %v10169_v23 = vor.u32 %v13329_v37, %v10168_v52  ;;  %v10136_v16 = vld [vmem:[#allocation2 + $0xb08] sm:$0xf]  ;;  %v13381_v27 = vld [vmem:[#allocation2 + $0xcf4] sm:$0xf0] }
 0x1fd   :  { %5699 = vmatpush.bf16.msra.mxu0 %v9801_v7  ;;  %v9752_v7 = vld [vmem:[#allocation2 + $0x808] sm:$0xf]  ;;  %v13377_v24 = vld [vmem:[#allocation2 + $0xcd4] sm:$0xf0] }
 0x1fe   :  { %5713 = vmatpush.bf16.msra.mxu1 %v9929_v8  ;;  %v9897_v8 = vor.u32 %v13261_v18, %v9896_v19  ;;  %v10376_v49 = vld [vmem:[#allocation2 + $0xce8] sm:$0xf]  ;;  %v9753_v37 = vor.u32 %v13225_v28, %v9752_v7  ;;  %v13477_v18 = vld [vmem:[#allocation2 + $0xff4] sm:$0xf0] }
 0x1ff   :  { %5727 = vmatpush.bf16.msra.mxu2 %v10057_v53  ;;  %v10025_v53 = vor.u32 %v13293_v3, %v10024_v22  ;;  %v10504_v52 = vld [vmem:[#allocation2 + $0xde8] sm:$0xf]  ;;  %v10377_v22 = vor.u32 %v13381_v27, %v10376_v49  ;;  %v13409_v7 = vld [vmem:[#allocation2 + $0xdd4] sm:$0xf0] }
 0x200   :  { %5741 = vmatpush.bf16.msra.mxu3 %v10185_v20  ;;  %v13289_v20 = vld [vmem:[#allocation2 + $0xa14] sm:$0xf0]  ;;  %v10632_v62 = vld [vmem:[#allocation2 + $0xee8] sm:$0xf] }
 0x201   :  { %5700 = vmatpush.bf16.msra.mxu0 %v9785_v50  ;;  %v13413_v50 = vld [vmem:[#allocation2 + $0xdf4] sm:$0xf0]  ;;  %v10760_v19 = vld [vmem:[#allocation2 + $0xfe8] sm:$0xf]  ;;  %v10633_v63 = vor.u32 %v13445_v42, %v10632_v62 }
 0x202   :  { %5714 = vmatpush.bf16.msra.mxu1 %v9913_v13  ;;  %v9881_v13 = vor.u32 %v13257_v9, %v9880_v0  ;;  %v10505_v3 = vor.u32 %v13413_v50, %v10504_v52  ;;  %v10360_v12 = vld [vmem:[#allocation2 + $0xcc8] sm:$0xf]  ;;  %v13441_v25 = vld [vmem:[#allocation2 + $0xed4] sm:$0xf0]  ;;  %v14686_v0 = vpop.f32.mrf.mxu1 }
 0x203   :  { %5728 = vmatpush.bf16.msra.mxu2 %v10041_v57  ;;  %v10009_v57 = vor.u32 %v13289_v20, %v10008_v11  ;;  %v10488_v29 = vld [vmem:[#allocation2 + $0xdc8] sm:$0xf]  ;;  %15123 = vst [vmem:[#allocation53_spill] sm:$0xff] %v14686_v0  ;;  %v10361_v9 = vor.u32 %v13377_v24, %v10360_v12  ;;  %v13405_v27 = vld [vmem:[#allocation2 + $0xdb4] sm:$0xf0] }
 0x204   :  { %5742 = vmatpush.bf16.msra.mxu3 %v10169_v23  ;;  %v10137_v23 = vor.u32 %v13321_v15, %v10136_v16  ;;  %v10616_v28 = vld [vmem:[#allocation2 + $0xec8] sm:$0xf]  ;;  %v10489_v11 = vor.u32 %v13409_v7, %v10488_v29  ;;  %v13373_v16 = vld [vmem:[#allocation2 + $0xcb4] sm:$0xf0] }
 0x205   :  { %5701 = vmatpush.bf16.msra.mxu0 %v9769_v61  ;;  %v10761_v61 = vor.u32 %v13477_v18, %v10760_v19  ;;  %v10344_v20 = vld [vmem:[#allocation2 + $0xca8] sm:$0xf]  ;;  %v13469_v24 = vld [vmem:[#allocation2 + $0xfb4] sm:$0xf0]  ;;  %v14692_v19 = vpop.f32.mrf.mxu2 }
 0x206   :  { %5715 = vmatpush.bf16.msra.mxu1 %v9897_v8  ;;  %v10744_v8 = vld [vmem:[#allocation2 + $0xfc8] sm:$0xf]  ;;  %15124 = vst [vmem:[#allocation54_spill] sm:$0xff] %v14692_v19  ;;  %v13465_v7 = vld [vmem:[#allocation2 + $0xf94] sm:$0xf0] }
 0x207   :  { %5729 = vmatpush.bf16.msra.mxu2 %v10025_v53  ;;  %v13473_v53 = vld [vmem:[#allocation2 + $0xfd4] sm:$0xf0]  ;;  %v10472_v15 = vld [vmem:[#allocation2 + $0xda8] sm:$0xf] }
 0x208   :  { %5743 = vmatpush.bf16.msra.mxu3 %v10153_v30  ;;  %v10617_v30 = vor.u32 %v13441_v25, %v10616_v28  ;;  %v10745_v49 = vor.u32 %v13473_v53, %v10744_v8  ;;  %v10600_v52 = vld [vmem:[#allocation2 + $0xea8] sm:$0xf]  ;;  %v10345_v25 = vor.u32 %v13373_v16, %v10344_v20  ;;  %v10473_v29 = vor.u32 %v13405_v27, %v10472_v15  ;;  %v13365_v20 = vld [vmem:[#allocation2 + $0xc74] sm:$0xf0] }
 0x209   :  { %5702 = vmatpush.bf16.msra.mxu0 %v9753_v37  ;;  %v13437_v37 = vld [vmem:[#allocation2 + $0xeb4] sm:$0xf0]  ;;  %v10728_v50 = vld [vmem:[#allocation2 + $0xfa8] sm:$0xf]  ;;  %v5480_v12 = vpop.f32.mrf.mxu0 }
 0x20a   :  { %5716 = vmatpush.bf16.msra.mxu1 %v9881_v13  ;;  %v10601_v62 = vor.u32 %v13437_v37, %v10600_v52  ;;  %v10328_v42 = vld [vmem:[#allocation2 + $0xc88] sm:$0xf]  ;;  %v13369_v13 = vld [vmem:[#allocation2 + $0xc94] sm:$0xf0]  ;;  %v10729_v18 = vor.u32 %v13469_v24, %v10728_v50  ;;  %v5481_v28 = vadd.f32 %v5480_v12, %v14682_v14  ;;  %v5494_v53 = vpop.f32.mrf.mxu1 }
 0x20b   :  { %5730 = vmatpush.bf16.msra.mxu2 %v10009_v57  ;;  %v10456_v57 = vld [vmem:[#allocation2 + $0xd88] sm:$0xf]  ;;  %v10329_v8 = vor.u32 %v13369_v13, %v10328_v42  ;;  %v13397_v27 = vld [vmem:[#allocation2 + $0xd74] sm:$0xf0] }
 0x20c   :  { %5744 = vmatpush.bf16.msra.mxu3 %v10137_v23  ;;  %5703 = vmatmul.bf16.vlgmr.msra.gmra.mxu0 %v14422_v31  ;;  %v13401_v23 = vld [vmem:[#allocation2 + $0xd94] sm:$0xf0]  ;;  %v10440_v16 = vld [vmem:[#allocation2 + $0xd68] sm:$0xf] }
 0x20d   :  { %5751 = vmatpush.bf16.msrb.mxu0 %v10377_v22  ;;  %5717 = vmatmul.bf16.vlgmr.msra.gmra.mxu1 %v14426_v36  ;;  %v10584_v22 = vld [vmem:[#allocation2 + $0xe88] sm:$0xf]  ;;  %v13429_v37 = vld [vmem:[#allocation2 + $0xe74] sm:$0xf0]  ;;  %v10441_v14 = vor.u32 %v13397_v27, %v10440_v16 }
 0x20e   :  { %5765 = vmatpush.bf16.msrb.mxu1 %v10505_v3  ;;  %5731 = vmatmul.bf16.vlgmr.msra.gmra.mxu2 %v14424_v35  ;;  %v13433_v3 = vld [vmem:[#allocation2 + $0xe94] sm:$0xf0]  ;;  %v10568_v52 = vld [vmem:[#allocation2 + $0xe68] sm:$0xf] }
 0x20f   :  { %5779 = vmatpush.bf16.msrb.mxu2 %v10633_v63  ;;  %5745 = vmatmul.bf16.vlgmr.msra.gmra.mxu3 %v14428_v40  ;;  %v14694_v63 = vpop.f32.mrf.mxu3  ;;  %v10696_v50 = vld [vmem:[#allocation2 + $0xf68] sm:$0xf]  ;;  %v13461_v24 = vld [vmem:[#allocation2 + $0xf74] sm:$0xf0] }
 0x210   :  { %5793 = vmatpush.bf16.msrb.mxu3 %v10761_v61  ;;  %15125 = vst [vmem:[#allocation55_spill] sm:$0xff] %v14694_v63  ;;  %v10712_v61 = vld [vmem:[#allocation2 + $0xf88] sm:$0xf]  ;;  %v13361_v42 = vld [vmem:[#allocation2 + $0xc54] sm:$0xf0] }
 0x211   :  { %5752 = vmatpush.bf16.msrb.mxu0 %v10361_v9  ;;  %v10457_v9 = vor.u32 %v13401_v23, %v10456_v57  ;;  %v10713_v15 = vor.u32 %v13465_v7, %v10712_v61  ;;  %v10424_v13 = vld [vmem:[#allocation2 + $0xd48] sm:$0xf]  ;;  %v10697_v57 = vor.u32 %v13461_v24, %v10696_v50  ;;  %v5508_v23 = vpop.f32.mrf.mxu2  ;;  %v13389_v27 = vld [vmem:[#allocation2 + $0xd34] sm:$0xf0]  ;;  %v14699_v54 = vpop.f32.mrf.mxu0 }
 0x212   :  { %5766 = vmatpush.bf16.msrb.mxu1 %v10489_v11  ;;  %v10585_v11 = vor.u32 %v13433_v3, %v10584_v22  ;;  %v10552_v22 = vld [vmem:[#allocation2 + $0xe48] sm:$0xf]  ;;  %v13425_v3 = vld [vmem:[#allocation2 + $0xe54] sm:$0xf0] }
 0x213   :  { %5780 = vmatpush.bf16.msrb.mxu2 %v10617_v30  ;;  %v10312_v30 = vld [vmem:[#allocation2 + $0xc68] sm:$0xf]  ;;  %v13453_v50 = vld [vmem:[#allocation2 + $0xf34] sm:$0xf0] }
 0x214   :  { %5794 = vmatpush.bf16.msrb.mxu3 %v10745_v49  ;;  %v5495_v49 = vadd.f32 %v5494_v53, %v5481_v28  ;;  %v10680_v7 = vld [vmem:[#allocation2 + $0xf48] sm:$0xf]  ;;  %v13457_v28 = vld [vmem:[#allocation2 + $0xf54] sm:$0xf0] }
 0x215   :  { %5753 = vmatpush.bf16.msrb.mxu0 %v10345_v25  ;;  %v10313_v25 = vor.u32 %v13365_v20, %v10312_v30  ;;  %v10280_v30 = vld [vmem:[#allocation2 + $0xc28] sm:$0xf]  ;;  %v13357_v20 = vld [vmem:[#allocation2 + $0xc34] sm:$0xf0] }
 0x216   :  { %5767 = vmatpush.bf16.msrb.mxu1 %v10473_v29  ;;  %v10569_v29 = vor.u32 %v13429_v37, %v10568_v52  ;;  %v5509_v12 = vadd.f32 %v5508_v23, %v5495_v49  ;;  %v10408_v16 = vld [vmem:[#allocation2 + $0xd28] sm:$0xf]  ;;  %v13421_v37 = vld [vmem:[#allocation2 + $0xe34] sm:$0xf0]  ;;  %v10281_v24 = vor.u32 %v13357_v20, %v10280_v30 }
 0x217   :  { %5781 = vmatpush.bf16.msrb.mxu2 %v10601_v62  ;;  %v10296_v62 = vld [vmem:[#allocation2 + $0xc48] sm:$0xf]  ;;  %v5522_v61 = vpop.f32.mrf.mxu3  ;;  %v13573_v20 = vld [vmem:[#allocation2 + $0x12f4] sm:$0xf0] }
 0x218   :  { %5795 = vmatpush.bf16.msrb.mxu3 %v10729_v18  ;;  %v13393_v18 = vld [vmem:[#allocation2 + $0xd54] sm:$0xf0]  ;;  %v14697_v53 = vadd.f32 %v5522_v61, %v5509_v12  ;;  %v10536_v52 = vld [vmem:[#allocation2 + $0xe28] sm:$0xf] }
 0x219   :  { %5754 = vmatpush.bf16.msrb.mxu0 %v10329_v8  ;;  %v10297_v8 = vor.u32 %v13361_v42, %v10296_v62  ;;  %v10664_v49 = vld [vmem:[#allocation2 + $0xf28] sm:$0xf]  ;;  %v13353_v62 = vld [vmem:[#allocation2 + $0xc14] sm:$0xf0] }
 0x21a   :  { %5768 = vmatpush.bf16.msrb.mxu1 %v10457_v9  ;;  %v10425_v9 = vor.u32 %v13393_v18, %v10424_v13  ;;  %v10392_v42 = vld [vmem:[#allocation2 + $0xd08] sm:$0xf]  ;;  %v13385_v13 = vld [vmem:[#allocation2 + $0xd14] sm:$0xf0]  ;;  %v10665_v18 = vor.u32 %v13453_v50, %v10664_v49 }
 0x21b   :  { %5782 = vmatpush.bf16.msrb.mxu2 %v10585_v11  ;;  %v10553_v11 = vor.u32 %v13425_v3, %v10552_v22  ;;  %v10520_v23 = vld [vmem:[#allocation2 + $0xe08] sm:$0xf]  ;;  %v13449_v3 = vld [vmem:[#allocation2 + $0xf14] sm:$0xf0] }
 0x21c   :  { %5796 = vmatpush.bf16.msrb.mxu3 %v10713_v15  ;;  %v10681_v15 = vor.u32 %v13457_v28, %v10680_v7  ;;  %v10648_v22 = vld [vmem:[#allocation2 + $0xf08] sm:$0xf]  ;;  %v13509_v61 = vld [vmem:[#allocation2 + $0x10f4] sm:$0xf0] }
 0x21d   :  { %5755 = vmatpush.bf16.msrb.mxu0 %v10313_v25  ;;  %v10264_v25 = vld [vmem:[#allocation2 + $0xc08] sm:$0xf]  ;;  %v13505_v63 = vld [vmem:[#allocation2 + $0x10d4] sm:$0xf0] }
 0x21e   :  { %5769 = vmatpush.bf16.msrb.mxu1 %v10441_v14  ;;  %v10409_v14 = vor.u32 %v13389_v27, %v10408_v16  ;;  %v10888_v12 = vld [vmem:[#allocation2 + $0x10e8] sm:$0xf]  ;;  %v10265_v28 = vor.u32 %v13353_v62, %v10264_v25  ;;  %v13605_v27 = vld [vmem:[#allocation2 + $0x13f4] sm:$0xf0] }
 0x21f   :  { %5783 = vmatpush.bf16.msrb.mxu2 %v10569_v29  ;;  %v10537_v29 = vor.u32 %v13421_v37, %v10536_v52  ;;  %v11016_v7 = vld [vmem:[#allocation2 + $0x11e8] sm:$0xf]  ;;  %v10889_v52 = vor.u32 %v13509_v61, %v10888_v12  ;;  %v13537_v25 = vld [vmem:[#allocation2 + $0x11d4] sm:$0xf0] }
 0x220   :  { %5797 = vmatpush.bf16.msrb.mxu3 %v10697_v57  ;;  %v13417_v57 = vld [vmem:[#allocation2 + $0xe14] sm:$0xf0]  ;;  %v11144_v30 = vld [vmem:[#allocation2 + $0x12e8] sm:$0xf] }
 0x221   :  { %5756 = vmatpush.bf16.msrb.mxu0 %v10297_v8  ;;  %v13541_v8 = vld [vmem:[#allocation2 + $0x11f4] sm:$0xf0]  ;;  %v11272_v16 = vld [vmem:[#allocation2 + $0x13e8] sm:$0xf]  ;;  %v11145_v49 = vor.u32 %v13573_v20, %v11144_v30 }
 0x222   :  { %5770 = vmatpush.bf16.msrb.mxu1 %v10425_v9  ;;  %v10393_v9 = vor.u32 %v13385_v13, %v10392_v42  ;;  %v11017_v37 = vor.u32 %v13541_v8, %v11016_v7  ;;  %v10872_v50 = vld [vmem:[#allocation2 + $0x10c8] sm:$0xf]  ;;  %v13569_v0 = vld [vmem:[#allocation2 + $0x12d4] sm:$0xf0]  ;;  %v14701_v42 = vpop.f32.mrf.mxu1 }
 0x223   :  { %5784 = vmatpush.bf16.msrb.mxu2 %v10553_v11  ;;  %v10521_v11 = vor.u32 %v13417_v57, %v10520_v23  ;;  %v11000_v19 = vld [vmem:[#allocation2 + $0x11c8] sm:$0xf]  ;;  %v10873_v13 = vor.u32 %v13505_v63, %v10872_v50  ;;  %v13533_v61 = vld [vmem:[#allocation2 + $0x11b4] sm:$0xf0] }
 0x224   :  { %5798 = vmatpush.bf16.msrb.mxu3 %v10681_v15  ;;  %v10649_v15 = vor.u32 %v13449_v3, %v10648_v22  ;;  %v11128_v62 = vld [vmem:[#allocation2 + $0x12c8] sm:$0xf]  ;;  %v11001_v23 = vor.u32 %v13537_v25, %v11000_v19  ;;  %v13501_v22 = vld [vmem:[#allocation2 + $0x10b4] sm:$0xf0] }
 0x225   :  { %5757 = vmatpush.bf16.msrb.mxu0 %v10281_v24  ;;  %v11273_v24 = vor.u32 %v13605_v27, %v11272_v16  ;;  %v10856_v57 = vld [vmem:[#allocation2 + $0x10a8] sm:$0xf]  ;;  %v13597_v63 = vld [vmem:[#allocation2 + $0x13b4] sm:$0xf0]  ;;  %v14707_v16 = vpop.f32.mrf.mxu2 }
 0x226   :  { %5771 = vmatpush.bf16.msrb.mxu1 %v10409_v14  ;;  %v11256_v14 = vld [vmem:[#allocation2 + $0x13c8] sm:$0xf]  ;;  %15126 = vst [vmem:[#allocation56_spill] sm:$0xff] %v14707_v16  ;;  %v13593_v25 = vld [vmem:[#allocation2 + $0x1394] sm:$0xf0] }
 0x227   :  { %5785 = vmatpush.bf16.msrb.mxu2 %v10537_v29  ;;  %v13601_v29 = vld [vmem:[#allocation2 + $0x13d4] sm:$0xf0]  ;;  %v10984_v3 = vld [vmem:[#allocation2 + $0x11a8] sm:$0xf] }
 0x228   :  { %5799 = vmatpush.bf16.msrb.mxu3 %v10665_v18  ;;  %v11129_v18 = vor.u32 %v13569_v0, %v11128_v62  ;;  %v11257_v12 = vor.u32 %v13601_v29, %v11256_v14  ;;  %v11112_v7 = vld [vmem:[#allocation2 + $0x12a8] sm:$0xf]  ;;  %v10857_v0 = vor.u32 %v13501_v22, %v10856_v57  ;;  %v10985_v19 = vor.u32 %v13533_v61, %v10984_v3  ;;  %v13493_v57 = vld [vmem:[#allocation2 + $0x1074] sm:$0xf0] }
 0x229   :  { %5758 = vmatpush.bf16.msrb.mxu0 %v10265_v28  ;;  %v13565_v28 = vld [vmem:[#allocation2 + $0x12b4] sm:$0xf0]  ;;  %v11240_v8 = vld [vmem:[#allocation2 + $0x13a8] sm:$0xf]  ;;  %v5536_v50 = vpop.f32.mrf.mxu0 }
 0x22a   :  { %5772 = vmatpush.bf16.msrb.mxu1 %v10393_v9  ;;  %v11113_v30 = vor.u32 %v13565_v28, %v11112_v7  ;;  %v10840_v20 = vld [vmem:[#allocation2 + $0x1088] sm:$0xf]  ;;  %v13497_v9 = vld [vmem:[#allocation2 + $0x1094] sm:$0xf0]  ;;  %v11241_v27 = vor.u32 %v13597_v63, %v11240_v8  ;;  %v5537_v62 = vadd.f32 %v5536_v50, %v14697_v53  ;;  %v5550_v29 = vpop.f32.mrf.mxu1 }
 0x22b   :  { %5786 = vmatpush.bf16.msrb.mxu2 %v10521_v11  ;;  %v10968_v11 = vld [vmem:[#allocation2 + $0x1188] sm:$0xf]  ;;  %v10841_v14 = vor.u32 %v13497_v9, %v10840_v20  ;;  %v13525_v61 = vld [vmem:[#allocation2 + $0x1174] sm:$0xf0] }
 0x22c   :  { %5800 = vmatpush.bf16.msrb.mxu3 %v10649_v15  ;;  %5759 = vmatmul.bf16.vlgmr.msrb.gmra.mxu0 %v14458_v32  ;;  %v13529_v15 = vld [vmem:[#allocation2 + $0x1194] sm:$0xf0]  ;;  %v10952_v22 = vld [vmem:[#allocation2 + $0x1168] sm:$0xf] }
 0x22d   :  { %5807 = vmatpush.bf16.msra.mxu0 %v10889_v52  ;;  %5773 = vmatmul.bf16.vlgmr.msrb.gmra.mxu1 %v14462_v41  ;;  %v11096_v52 = vld [vmem:[#allocation2 + $0x1288] sm:$0xf]  ;;  %v13557_v28 = vld [vmem:[#allocation2 + $0x1274] sm:$0xf0]  ;;  %v10953_v53 = vor.u32 %v13525_v61, %v10952_v22 }
 0x22e   :  { %5821 = vmatpush.bf16.msra.mxu1 %v11017_v37  ;;  %5787 = vmatmul.bf16.vlgmr.msrb.gmra.mxu2 %v14460_v38  ;;  %v13561_v37 = vld [vmem:[#allocation2 + $0x1294] sm:$0xf0]  ;;  %v11080_v7 = vld [vmem:[#allocation2 + $0x1268] sm:$0xf] }
 0x22f   :  { %5835 = vmatpush.bf16.msra.mxu2 %v11145_v49  ;;  %5801 = vmatmul.bf16.vlgmr.msrb.gmra.mxu3 %v14464_v46  ;;  %v14709_v49 = vpop.f32.mrf.mxu3  ;;  %v11208_v8 = vld [vmem:[#allocation2 + $0x1368] sm:$0xf]  ;;  %v13589_v63 = vld [vmem:[#allocation2 + $0x1374] sm:$0xf0] }
 0x230   :  { %5849 = vmatpush.bf16.msra.mxu3 %v11273_v24  ;;  %15127 = vst [vmem:[#allocation57_spill] sm:$0xff] %v14709_v49  ;;  %v11224_v24 = vld [vmem:[#allocation2 + $0x1388] sm:$0xf]  ;;  %v13489_v20 = vld [vmem:[#allocation2 + $0x1054] sm:$0xf0] }
 0x231   :  { %5808 = vmatpush.bf16.msra.mxu0 %v10873_v13  ;;  %v10969_v13 = vor.u32 %v13529_v15, %v10968_v11  ;;  %v11225_v3 = vor.u32 %v13593_v25, %v11224_v24  ;;  %v10936_v9 = vld [vmem:[#allocation2 + $0x1148] sm:$0xf]  ;;  %v11209_v11 = vor.u32 %v13589_v63, %v11208_v8  ;;  %v5564_v15 = vpop.f32.mrf.mxu2  ;;  %v13517_v61 = vld [vmem:[#allocation2 + $0x1134] sm:$0xf0] }
 0x232   :  { %5822 = vmatpush.bf16.msra.mxu1 %v11001_v23  ;;  %v11097_v23 = vor.u32 %v13561_v37, %v11096_v52  ;;  %v11064_v52 = vld [vmem:[#allocation2 + $0x1248] sm:$0xf]  ;;  %v13553_v37 = vld [vmem:[#allocation2 + $0x1254] sm:$0xf0] }
 0x233   :  { %5836 = vmatpush.bf16.msra.mxu2 %v11129_v18  ;;  %v10824_v18 = vld [vmem:[#allocation2 + $0x1068] sm:$0xf]  ;;  %v13581_v8 = vld [vmem:[#allocation2 + $0x1334] sm:$0xf0] }
 0x234   :  { %5850 = vmatpush.bf16.msra.mxu3 %v11257_v12  ;;  %v5551_v12 = vadd.f32 %v5550_v29, %v5537_v62  ;;  %v11192_v25 = vld [vmem:[#allocation2 + $0x1348] sm:$0xf]  ;;  %v13585_v62 = vld [vmem:[#allocation2 + $0x1354] sm:$0xf0] }
 0x235   :  { %5809 = vmatpush.bf16.msra.mxu0 %v10857_v0  ;;  %v10825_v0 = vor.u32 %v13493_v57, %v10824_v18  ;;  %v10792_v18 = vld [vmem:[#allocation2 + $0x1028] sm:$0xf]  ;;  %v13485_v57 = vld [vmem:[#allocation2 + $0x1034] sm:$0xf0] }
 0x236   :  { %5823 = vmatpush.bf16.msra.mxu1 %v10985_v19  ;;  %v11081_v19 = vor.u32 %v13557_v28, %v11080_v7  ;;  %v5565_v50 = vadd.f32 %v5564_v15, %v5551_v12  ;;  %v10920_v22 = vld [vmem:[#allocation2 + $0x1128] sm:$0xf]  ;;  %v13549_v28 = vld [vmem:[#allocation2 + $0x1234] sm:$0xf0]  ;;  %v10793_v63 = vor.u32 %v13485_v57, %v10792_v18 }
 0x237   :  { %5837 = vmatpush.bf16.msra.mxu2 %v11113_v30  ;;  %v10808_v30 = vld [vmem:[#allocation2 + $0x1048] sm:$0xf]  ;;  %v5578_v24 = vpop.f32.mrf.mxu3  ;;  %v13701_v57 = vld [vmem:[#allocation2 + $0x16f4] sm:$0xf0] }
 0x238   :  { %5851 = vmatpush.bf16.msra.mxu3 %v11241_v27  ;;  %v13521_v27 = vld [vmem:[#allocation2 + $0x1154] sm:$0xf0]  ;;  %v14712_v29 = vadd.f32 %v5578_v24, %v5565_v50  ;;  %v11048_v7 = vld [vmem:[#allocation2 + $0x1228] sm:$0xf] }
 0x239   :  { %5810 = vmatpush.bf16.msra.mxu0 %v10841_v14  ;;  %v10809_v14 = vor.u32 %v13489_v20, %v10808_v30  ;;  %v11176_v12 = vld [vmem:[#allocation2 + $0x1328] sm:$0xf]  ;;  %v13481_v30 = vld [vmem:[#allocation2 + $0x1014] sm:$0xf0] }
 0x23a   :  { %5824 = vmatpush.bf16.msra.mxu1 %v10969_v13  ;;  %15128 = vst [vmem:[#allocation58_spill] sm:$0xff] %v14712_v29  ;;  %v10937_v13 = vor.u32 %v13521_v27, %v10936_v9  ;;  %v10904_v20 = vld [vmem:[#allocation2 + $0x1108] sm:$0xf]  ;;  %v13513_v9 = vld [vmem:[#allocation2 + $0x1114] sm:$0xf0]  ;;  %v11177_v27 = vor.u32 %v13581_v8, %v11176_v12 }
 0x23b   :  { %5838 = vmatpush.bf16.msra.mxu2 %v11097_v23  ;;  %v11065_v23 = vor.u32 %v13553_v37, %v11064_v52  ;;  %v11032_v15 = vld [vmem:[#allocation2 + $0x1208] sm:$0xf]  ;;  %v13577_v37 = vld [vmem:[#allocation2 + $0x1314] sm:$0xf0] }
 0x23c   :  { %5852 = vmatpush.bf16.msra.mxu3 %v11225_v3  ;;  %v11193_v3 = vor.u32 %v13585_v62, %v11192_v25  ;;  %v11160_v52 = vld [vmem:[#allocation2 + $0x1308] sm:$0xf]  ;;  %v13637_v24 = vld [vmem:[#allocation2 + $0x14f4] sm:$0xf0] }
 0x23d   :  { %5811 = vmatpush.bf16.msra.mxu0 %v10825_v0  ;;  %v10776_v0 = vld [vmem:[#allocation2 + $0x1008] sm:$0xf]  ;;  %v13633_v29 = vld [vmem:[#allocation2 + $0x14d4] sm:$0xf0] }
 0x23e   :  { %5825 = vmatpush.bf16.msra.mxu1 %v10953_v53  ;;  %v10921_v53 = vor.u32 %v13517_v61, %v10920_v22  ;;  %v11400_v50 = vld [vmem:[#allocation2 + $0x14e8] sm:$0xf]  ;;  %v10777_v62 = vor.u32 %v13481_v30, %v10776_v0  ;;  %v13733_v61 = vld [vmem:[#allocation2 + $0x17f4] sm:$0xf0] }
 0x23f   :  { %5839 = vmatpush.bf16.msra.mxu2 %v11081_v19  ;;  %v11049_v19 = vor.u32 %v13549_v28, %v11048_v7  ;;  %v11528_v25 = vld [vmem:[#allocation2 + $0x15e8] sm:$0xf]  ;;  %v11401_v7 = vor.u32 %v13637_v24, %v11400_v50  ;;  %v13665_v0 = vld [vmem:[#allocation2 + $0x15d4] sm:$0xf0] }
 0x240   :  { %5853 = vmatpush.bf16.msra.mxu3 %v11209_v11  ;;  %v13545_v11 = vld [vmem:[#allocation2 + $0x1214] sm:$0xf0]  ;;  %v11656_v18 = vld [vmem:[#allocation2 + $0x16e8] sm:$0xf] }
 0x241   :  { %5812 = vmatpush.bf16.msra.mxu0 %v10809_v14  ;;  %v13669_v14 = vld [vmem:[#allocation2 + $0x15f4] sm:$0xf0]  ;;  %v11784_v22 = vld [vmem:[#allocation2 + $0x17e8] sm:$0xf]  ;;  %v11657_v12 = vor.u32 %v13701_v57, %v11656_v18 }
 0x242   :  { %5826 = vmatpush.bf16.msra.mxu1 %v10937_v13  ;;  %v10905_v13 = vor.u32 %v13513_v9, %v10904_v20  ;;  %v11529_v28 = vor.u32 %v13669_v14, %v11528_v25  ;;  %v11384_v8 = vld [vmem:[#allocation2 + $0x14c8] sm:$0xf]  ;;  %v13697_v16 = vld [vmem:[#allocation2 + $0x16d4] sm:$0xf0] }
 0x243   :  { %5840 = vmatpush.bf16.msra.mxu2 %v11065_v23  ;;  %v11033_v23 = vor.u32 %v13545_v11, %v11032_v15  ;;  %v11512_v49 = vld [vmem:[#allocation2 + $0x15c8] sm:$0xf]  ;;  %v11385_v20 = vor.u32 %v13633_v29, %v11384_v8  ;;  %v13629_v11 = vld [vmem:[#allocation2 + $0x14b4] sm:$0xf0] }
 0x244   :  { %5854 = vmatpush.bf16.msra.mxu3 %v11193_v3  ;;  %v11161_v3 = vor.u32 %v13577_v37, %v11160_v52  ;;  %v11640_v30 = vld [vmem:[#allocation2 + $0x16c8] sm:$0xf]  ;;  %v11513_v9 = vor.u32 %v13665_v0, %v11512_v49  ;;  %v13661_v50 = vld [vmem:[#allocation2 + $0x15b4] sm:$0xf0] }
 0x245   :  { %5813 = vmatpush.bf16.msra.mxu0 %v10793_v63  ;;  %v11785_v63 = vor.u32 %v13733_v61, %v11784_v22  ;;  %v11641_v15 = vor.u32 %v13697_v16, %v11640_v30  ;;  %v11496_v52 = vld [vmem:[#allocation2 + $0x15a8] sm:$0xf]  ;;  %v13693_v25 = vld [vmem:[#allocation2 + $0x16b4] sm:$0xf0] }
 0x246   :  { %5827 = vmatpush.bf16.msra.mxu1 %v10921_v53  ;;  %v11768_v53 = vld [vmem:[#allocation2 + $0x17c8] sm:$0xf]  ;;  %v13725_v29 = vld [vmem:[#allocation2 + $0x17b4] sm:$0xf0]  ;;  %v11497_v49 = vor.u32 %v13661_v50, %v11496_v52 }
 0x247   :  { %5841 = vmatpush.bf16.msra.mxu2 %v11049_v19  ;;  %v13729_v19 = vld [vmem:[#allocation2 + $0x17d4] sm:$0xf0]  ;;  %v11624_v24 = vld [vmem:[#allocation2 + $0x16a8] sm:$0xf] }
 0x248   :  { %5855 = vmatpush.bf16.msra.mxu3 %v11177_v27  ;;  %v11368_v27 = vld [vmem:[#allocation2 + $0x14a8] sm:$0xf]  ;;  %v11769_v37 = vor.u32 %v13729_v19, %v11768_v53  ;;  %v11625_v14 = vor.u32 %v13693_v25, %v11624_v24  ;;  %v13625_v57 = vld [vmem:[#allocation2 + $0x1494] sm:$0xf0] }
 0x249   :  { %5814 = vmatpush.bf16.msra.mxu0 %v10777_v62  ;;  %v11752_v62 = vld [vmem:[#allocation2 + $0x17a8] sm:$0xf]  ;;  %v11369_v16 = vor.u32 %v13629_v11, %v11368_v27  ;;  %v13657_v22 = vld [vmem:[#allocation2 + $0x1594] sm:$0xf0] }
 0x24a   :  { %5828 = vmatpush.bf16.msra.mxu1 %v10905_v13  ;;  %v11352_v18 = vld [vmem:[#allocation2 + $0x1488] sm:$0xf]  ;;  %v13621_v30 = vld [vmem:[#allocation2 + $0x1474] sm:$0xf0] }
 0x24b   :  { %5842 = vmatpush.bf16.msra.mxu2 %v11033_v23  ;;  %v11480_v13 = vld [vmem:[#allocation2 + $0x1588] sm:$0xf]  ;;  %v11753_v23 = vor.u32 %v13725_v29, %v11752_v62  ;;  %v13717_v11 = vld [vmem:[#allocation2 + $0x1774] sm:$0xf0] }
 0x24c   :  { %5856 = vmatpush.bf16.msra.mxu3 %v11161_v3  ;;  %5815 = vmatmul.bf16.vlgmr.msra.gmra.mxu0 %v14494_v51  ;;  %v11608_v61 = vld [vmem:[#allocation2 + $0x1688] sm:$0xf]  ;;  %v13689_v3 = vld [vmem:[#allocation2 + $0x1694] sm:$0xf0]  ;;  %v11481_v8 = vor.u32 %v13657_v22, %v11480_v13 }
 0x24d   :  { %5863 = vmatpush.bf16.msrb.mxu0 %v11401_v7  ;;  %5829 = vmatmul.bf16.vlgmr.msra.gmra.mxu1 %v14498_v56  ;;  %v11736_v7 = vld [vmem:[#allocation2 + $0x1788] sm:$0xf]  ;;  %v13617_v25 = vld [vmem:[#allocation2 + $0x1454] sm:$0xf0] }
 0x24e   :  { %5877 = vmatpush.bf16.msrb.mxu1 %v11529_v28  ;;  %5843 = vmatmul.bf16.vlgmr.msra.gmra.mxu2 %v14496_v55  ;;  %v13721_v28 = vld [vmem:[#allocation2 + $0x1794] sm:$0xf0]  ;;  %v11336_v0 = vld [vmem:[#allocation2 + $0x1468] sm:$0xf] }
 0x24f   :  { %5891 = vmatpush.bf16.msrb.mxu2 %v11657_v12  ;;  %5857 = vmatmul.bf16.vlgmr.msra.gmra.mxu3 %v14500_v60  ;;  %v11353_v12 = vor.u32 %v13625_v57, %v11352_v18  ;;  %v11464_v53 = vld [vmem:[#allocation2 + $0x1568] sm:$0xf]  ;;  %v11737_v19 = vor.u32 %v13721_v28, %v11736_v7  ;;  %v11337_v52 = vor.u32 %v13621_v30, %v11336_v0  ;;  %v13713_v57 = vld [vmem:[#allocation2 + $0x1754] sm:$0xf0] }
 0x250   :  { %5905 = vmatpush.bf16.msrb.mxu3 %v11785_v63  ;;  %v11609_v63 = vor.u32 %v13689_v3, %v11608_v61  ;;  %v11720_v27 = vld [vmem:[#allocation2 + $0x1768] sm:$0xf]  ;;  %v13613_v3 = vld [vmem:[#allocation2 + $0x1434] sm:$0xf0] }
 0x251   :  { %5864 = vmatpush.bf16.msrb.mxu0 %v11385_v20  ;;  %v13653_v20 = vld [vmem:[#allocation2 + $0x1574] sm:$0xf0]  ;;  %v11320_v24 = vld [vmem:[#allocation2 + $0x1448] sm:$0xf]  ;;  %v11721_v29 = vor.u32 %v13717_v11, %v11720_v27 }
 0x252   :  { %5878 = vmatpush.bf16.msrb.mxu1 %v11513_v9  ;;  %v11592_v9 = vld [vmem:[#allocation2 + $0x1668] sm:$0xf]  ;;  %v11321_v13 = vor.u32 %v13617_v25, %v11320_v24  ;;  %v13709_v30 = vld [vmem:[#allocation2 + $0x1734] sm:$0xf0] }
 0x253   :  { %5892 = vmatpush.bf16.msrb.mxu2 %v11641_v15  ;;  %v13685_v15 = vld [vmem:[#allocation2 + $0x1674] sm:$0xf0]  ;;  %v11448_v62 = vld [vmem:[#allocation2 + $0x1548] sm:$0xf] }
 0x254   :  { %5906 = vmatpush.bf16.msrb.mxu3 %v11769_v37  ;;  %v11465_v37 = vor.u32 %v13653_v20, %v11464_v53  ;;  %v11593_v50 = vor.u32 %v13685_v15, %v11592_v9  ;;  %v11704_v18 = vld [vmem:[#allocation2 + $0x1748] sm:$0xf]  ;;  %v13609_v20 = vld [vmem:[#allocation2 + $0x1414] sm:$0xf0] }
 0x255   :  { %5865 = vmatpush.bf16.msrb.mxu0 %v11369_v16  ;;  %v13649_v16 = vld [vmem:[#allocation2 + $0x1554] sm:$0xf0]  ;;  %v11304_v61 = vld [vmem:[#allocation2 + $0x1428] sm:$0xf]  ;;  %v11705_v28 = vor.u32 %v13713_v57, %v11704_v18  ;;  %v13059_v18 = vld [vmem:[#allocation2 + $0x2ec] sm:$0xf] }
 0x256   :  { %5879 = vmatpush.bf16.msrb.mxu1 %v11497_v49  ;;  %v11576_v49 = vld [vmem:[#allocation2 + $0x1648] sm:$0xf]  ;;  %v11305_v53 = vor.u32 %v13613_v3, %v11304_v61  ;;  %v13641_v11 = vld [vmem:[#allocation2 + $0x1514] sm:$0xf0]  ;;  %v9098_v57 = vld [vmem:[#allocation2 + $0x2f8] sm:$0xf0] }
 0x257   :  { %5893 = vmatpush.bf16.msrb.mxu2 %v11625_v14  ;;  %v13681_v14 = vld [vmem:[#allocation2 + $0x1654] sm:$0xf0]  ;;  %v11432_v7 = vld [vmem:[#allocation2 + $0x1528] sm:$0xf]  ;;  %v9226_v61 = vld [vmem:[#allocation2 + $0x3f8] sm:$0xf0] }
 0x258   :  { %5907 = vmatpush.bf16.msrb.mxu3 %v11753_v23  ;;  %v11449_v23 = vor.u32 %v13649_v16, %v11448_v62  ;;  %v11577_v22 = vor.u32 %v13681_v14, %v11576_v49  ;;  %v11688_v0 = vld [vmem:[#allocation2 + $0x1728] sm:$0xf]  ;;  %v13705_v25 = vld [vmem:[#allocation2 + $0x1714] sm:$0xf0]  ;;  %v12995_v62 = vld [vmem:[#allocation2 + $0xec] sm:$0xf] }
 0x259   :  { %5866 = vmatpush.bf16.msrb.mxu0 %v11353_v12  ;;  %v13645_v12 = vld [vmem:[#allocation2 + $0x1534] sm:$0xf0]  ;;  %v11416_v27 = vld [vmem:[#allocation2 + $0x1508] sm:$0xf]  ;;  %v13027_v16 = vld [vmem:[#allocation2 + $0x1ec] sm:$0xf] }
 0x25a   :  { %5880 = vmatpush.bf16.msrb.mxu1 %v11481_v8  ;;  %v11560_v8 = vld [vmem:[#allocation2 + $0x1628] sm:$0xf]  ;;  %v11433_v9 = vor.u32 %v13645_v12, %v11432_v7  ;;  %v8970_v14 = vld [vmem:[#allocation2 + $0x1f8] sm:$0xf0]  ;;  %v9101_v12 = vor.u32 %v13059_v18, %v9098_v57 }
 0x25b   :  { %5894 = vmatpush.bf16.msrb.mxu2 %v11609_v63  ;;  %v13677_v63 = vld [vmem:[#allocation2 + $0x1634] sm:$0xf0]  ;;  %v11672_v24 = vld [vmem:[#allocation2 + $0x1708] sm:$0xf] }
 0x25c   :  { %5908 = vmatpush.bf16.msrb.mxu3 %v11737_v19  ;;  %v11288_v19 = vld [vmem:[#allocation2 + $0x1408] sm:$0xf]  ;;  %v11561_v15 = vor.u32 %v13677_v63, %v11560_v8  ;;  %v11673_v3 = vor.u32 %v13705_v25, %v11672_v24  ;;  %v12991_v8 = vld [vmem:[#allocation2 + $0xcc] sm:$0xf]  ;;  %v8826_v63 = vld [vmem:[#allocation2 + $0xd8] sm:$0xf0] }
 0x25d   :  { %5867 = vmatpush.bf16.msrb.mxu0 %v11337_v52  ;;  %v11544_v52 = vld [vmem:[#allocation2 + $0x1608] sm:$0xf]  ;;  %v11289_v49 = vor.u32 %v13609_v20, %v11288_v19  ;;  %v13055_v19 = vld [vmem:[#allocation2 + $0x2cc] sm:$0xf]  ;;  %v9082_v20 = vld [vmem:[#allocation2 + $0x2d8] sm:$0xf0] }
 0x25e   :  { %5881 = vmatpush.bf16.msrb.mxu1 %v11465_v37  ;;  %v11689_v37 = vor.u32 %v13709_v30, %v11688_v0  ;;  %v13023_v0 = vld [vmem:[#allocation2 + $0x1cc] sm:$0xf] }
 0x25f   :  { %5895 = vmatpush.bf16.msrb.mxu2 %v11593_v50  ;;  %v13673_v50 = vld [vmem:[#allocation2 + $0x1614] sm:$0xf0]  ;;  %v13019_v24 = vld [vmem:[#allocation2 + $0x1ac] sm:$0xf] }
 0x260   :  { %5909 = vmatpush.bf16.msrb.mxu3 %v11721_v29  ;;  %v8842_v29 = vld [vmem:[#allocation2 + $0xf8] sm:$0xf0] }
 0x261   :  { %5868 = vmatpush.bf16.msrb.mxu0 %v11321_v13  ;;  %v11417_v13 = vor.u32 %v13641_v11, %v11416_v27  ;;  %v8845_v7 = vor.u32 %v12995_v62, %v8842_v29  ;;  %v8829_v27 = vor.u32 %v12991_v8, %v8826_v63  ;;  %v8938_v62 = vld [vmem:[#allocation2 + $0x1b8] sm:$0xf0]  ;;  %v13051_v29 = vld [vmem:[#allocation2 + $0x2ac] sm:$0xf] }
 0x262   :  { %5882 = vmatpush.bf16.msrb.mxu1 %v11449_v23  ;;  %v11545_v23 = vor.u32 %v13673_v50, %v11544_v52  ;;  %v9085_v52 = vor.u32 %v13055_v19, %v9082_v20  ;;  %v8810_v50 = vld [vmem:[#allocation2 + $0xb8] sm:$0xf0]  ;;  %v8941_v57 = vor.u32 %v13019_v24, %v8938_v62  ;;  %v13079_v8 = vld [vmem:[#allocation2 + $0x38c] sm:$0xf] }
 0x263   :  { %5896 = vmatpush.bf16.msrb.mxu2 %v11577_v22  ;;  %v13091_v22 = vld [vmem:[#allocation2 + $0x3ec] sm:$0xf]  ;;  %v9178_v63 = vld [vmem:[#allocation2 + $0x398] sm:$0xf0] }
 0x264   :  { %5910 = vmatpush.bf16.msrb.mxu3 %v11705_v28  ;;  %v8973_v28 = vor.u32 %v13027_v16, %v8970_v14  ;;  %v9229_v30 = vor.u32 %v13091_v22, %v9226_v61  ;;  %v9066_v16 = vld [vmem:[#allocation2 + $0x2b8] sm:$0xf0]  ;;  %v13015_v61 = vld [vmem:[#allocation2 + $0x18c] sm:$0xf] }
 0x265   :  { %5869 = vmatpush.bf16.msrb.mxu0 %v11305_v53  ;;  %v8954_v53 = vld [vmem:[#allocation2 + $0x1d8] sm:$0xf0]  ;;  %v12979_v19 = vld [vmem:[#allocation2 + $0x6c] sm:$0xf] }
 0x266   :  { %5883 = vmatpush.bf16.msrb.mxu1 %v11433_v9  ;;  %v13087_v9 = vld [vmem:[#allocation2 + $0x3cc] sm:$0xf]  ;;  %v8957_v11 = vor.u32 %v13023_v0, %v8954_v53  ;;  %v9194_v14 = vld [vmem:[#allocation2 + $0x3b8] sm:$0xf0] }
 0x267   :  { %5897 = vmatpush.bf16.msrb.mxu2 %v11561_v15  ;;  %v9210_v15 = vld [vmem:[#allocation2 + $0x3d8] sm:$0xf0] }
 0x268   :  { %5911 = vmatpush.bf16.msrb.mxu3 %v11689_v37  ;;  %v12987_v37 = vld [vmem:[#allocation2 + $0xac] sm:$0xf]  ;;  %v9213_v25 = vor.u32 %v13087_v9, %v9210_v15  ;;  %v8794_v22 = vld [vmem:[#allocation2 + $0x98] sm:$0xf0]  ;;  %v9181_v15 = vor.u32 %v13079_v8, %v9178_v63 }
 0x269   :  { %5870 = vmatpush.bf16.msrb.mxu0 %v11289_v49  ;;  %v13083_v49 = vld [vmem:[#allocation2 + $0x3ac] sm:$0xf]  ;;  %v8813_v18 = vor.u32 %v12987_v37, %v8810_v50  ;;  %v8778_v20 = vld [vmem:[#allocation2 + $0x78] sm:$0xf0] }
 0x26a   :  { %5884 = vmatpush.bf16.msrb.mxu1 %v11417_v13  ;;  %v9069_v13 = vor.u32 %v13051_v29, %v9066_v16  ;;  %v13011_v9 = vld [vmem:[#allocation2 + $0x16c] sm:$0xf]  ;;  %v9162_v50 = vld [vmem:[#allocation2 + $0x378] sm:$0xf0]  ;;  %v8781_v24 = vor.u32 %v12979_v19, %v8778_v20 }
 0x26b   :  { %5898 = vmatpush.bf16.msrb.mxu2 %v11545_v23  ;;  %v12983_v23 = vld [vmem:[#allocation2 + $0x8c] sm:$0xf]  ;;  %v8762_v16 = vld [vmem:[#allocation2 + $0x58] sm:$0xf0] }
 0x26c   :  { %5912 = vmatpush.bf16.msrb.mxu3 %v11673_v3  ;;  %5871 = vmatmul.bf16.vlgmr.msrb.gmra.mxu0 %v14539_v26  ;;  %v9197_v3 = vor.u32 %v13083_v49, %v9194_v14  ;;  %v8797_v0 = vor.u32 %v12983_v23, %v8794_v22  ;;  %v13075_v37 = vld [vmem:[#allocation2 + $0x36c] sm:$0xf]  ;;  %v9146_v22 = vld [vmem:[#allocation2 + $0x358] sm:$0xf0] }
 0x26d   :  { %5919 = vmatpush.bf16.msra.mxu0 %v8845_v7  ;;  %5885 = vmatmul.bf16.vlgmr.msrb.gmra.mxu1 %v14543_v34  ;;  %v8922_v7 = vld [vmem:[#allocation2 + $0x198] sm:$0xf0]  ;;  %v12975_v29 = vld [vmem:[#allocation2 + $0x4c] sm:$0xf]  ;;  %v9165_v14 = vor.u32 %v13075_v37, %v9162_v50 }
 0x26e   :  { %5933 = vmatpush.bf16.msra.mxu1 %v8973_v28  ;;  %5899 = vmatmul.bf16.vlgmr.msrb.gmra.mxu2 %v14541_v33  ;;  %v13047_v28 = vld [vmem:[#allocation2 + $0x28c] sm:$0xf]  ;;  %v9130_v20 = vld [vmem:[#allocation2 + $0x338] sm:$0xf0] }
 0x26f   :  { %5947 = vmatpush.bf16.msra.mxu2 %v9101_v12  ;;  %5913 = vmatmul.bf16.vlgmr.msrb.gmra.mxu3 %v14547_v48  ;;  %v9050_v12 = vld [vmem:[#allocation2 + $0x298] sm:$0xf0]  ;;  %v13007_v49 = vld [vmem:[#allocation2 + $0x14c] sm:$0xf] }
 0x270   :  { %5961 = vmatpush.bf16.msra.mxu3 %v9229_v30  ;;  %v8925_v30 = vor.u32 %v13015_v61, %v8922_v7  ;;  %v9053_v53 = vor.u32 %v13047_v28, %v9050_v12  ;;  %v13071_v23 = vld [vmem:[#allocation2 + $0x34c] sm:$0xf]  ;;  %v8765_v61 = vor.u32 %v12975_v29, %v8762_v16  ;;  %v8746_v12 = vld [vmem:[#allocation2 + $0x38] sm:$0xf0] }
 0x271   :  { %5920 = vmatpush.bf16.msra.mxu0 %v8829_v27  ;;  %v8906_v27 = vld [vmem:[#allocation2 + $0x178] sm:$0xf0]  ;;  %v12971_v28 = vld [vmem:[#allocation2 + $0x2c] sm:$0xf]  ;;  %v9149_v63 = vor.u32 %v13071_v23, %v9146_v22 }
 0x272   :  { %5934 = vmatpush.bf16.msra.mxu1 %v8957_v11  ;;  %v13043_v11 = vld [vmem:[#allocation2 + $0x26c] sm:$0xf]  ;;  %v8858_v50 = vld [vmem:[#allocation2 + $0x118] sm:$0xf0] }
 0x273   :  { %5948 = vmatpush.bf16.msra.mxu2 %v9085_v52  ;;  %v9034_v52 = vld [vmem:[#allocation2 + $0x278] sm:$0xf0]  ;;  %v13003_v8 = vld [vmem:[#allocation2 + $0x12c] sm:$0xf] }
 0x274   :  { %5962 = vmatpush.bf16.msra.mxu3 %v9213_v25  ;;  %v8909_v25 = vor.u32 %v13011_v9, %v8906_v27  ;;  %v9037_v62 = vor.u32 %v13043_v11, %v9034_v52  ;;  %v13067_v19 = vld [vmem:[#allocation2 + $0x32c] sm:$0xf]  ;;  %v8749_v9 = vor.u32 %v12971_v28, %v8746_v12  ;;  %v8730_v27 = vld [vmem:[#allocation2 + $0x18] sm:$0xf0] }
 0x275   :  { %5921 = vmatpush.bf16.msra.mxu0 %v8813_v18  ;;  %v8890_v18 = vld [vmem:[#allocation2 + $0x158] sm:$0xf0]  ;;  %v12999_v37 = vld [vmem:[#allocation2 + $0x10c] sm:$0xf] }
 0x276   :  { %5935 = vmatpush.bf16.msra.mxu1 %v8941_v57  ;;  %v13039_v57 = vld [vmem:[#allocation2 + $0x24c] sm:$0xf]  ;;  %v9114_v16 = vld [vmem:[#allocation2 + $0x318] sm:$0xf0] }
 0x277   :  { %5949 = vmatpush.bf16.msra.mxu2 %v9069_v13  ;;  %v9018_v13 = vld [vmem:[#allocation2 + $0x258] sm:$0xf0]  ;;  %v13063_v29 = vld [vmem:[#allocation2 + $0x30c] sm:$0xf] }
 0x278   :  { %5963 = vmatpush.bf16.msra.mxu3 %v9197_v3  ;;  %v8893_v3 = vor.u32 %v13007_v49, %v8890_v18  ;;  %v9021_v7 = vor.u32 %v13039_v57, %v9018_v13  ;;  %v13123_v49 = vld [vmem:[#allocation2 + $0x4ec] sm:$0xf]  ;;  %v9482_v13 = vld [vmem:[#allocation2 + $0x5f8] sm:$0xf0]  ;;  %v9117_v12 = vor.u32 %v13063_v29, %v9114_v16 }
 0x279   :  { %5922 = vmatpush.bf16.msra.mxu0 %v8797_v0  ;;  %v8874_v0 = vld [vmem:[#allocation2 + $0x138] sm:$0xf0]  ;;  %v13155_v18 = vld [vmem:[#allocation2 + $0x5ec] sm:$0xf] }
 0x27a   :  { %5936 = vmatpush.bf16.msra.mxu1 %v8925_v30  ;;  %v13035_v30 = vld [vmem:[#allocation2 + $0x22c] sm:$0xf]  ;;  %v8877_v11 = vor.u32 %v13003_v8, %v8874_v0  ;;  %v9610_v22 = vld [vmem:[#allocation2 + $0x6f8] sm:$0xf0] }
 0x27b   :  { %5950 = vmatpush.bf16.msra.mxu2 %v9053_v53  ;;  %v9002_v53 = vld [vmem:[#allocation2 + $0x238] sm:$0xf0]  ;;  %v13187_v23 = vld [vmem:[#allocation2 + $0x6ec] sm:$0xf] }
 0x27c   :  { %5964 = vmatpush.bf16.msra.mxu3 %v9181_v15  ;;  %v12967_v15 = vld [vmem:[#allocation2 + $0xc] sm:$0xf]  ;;  %v9005_v52 = vor.u32 %v13035_v30, %v9002_v53  ;;  %v9738_v28 = vld [vmem:[#allocation2 + $0x7f8] sm:$0xf0]  ;;  %v9613_v0 = vor.u32 %v13187_v23, %v9610_v22 }
 0x27d   :  { %5923 = vmatpush.bf16.msra.mxu0 %v8781_v24  ;;  %v13031_v24 = vld [vmem:[#allocation2 + $0x20c] sm:$0xf]  ;;  %v8733_v57 = vor.u32 %v12967_v15, %v8730_v27  ;;  %v9338_v53 = vld [vmem:[#allocation2 + $0x4d8] sm:$0xf0] }
 0x27e   :  { %5937 = vmatpush.bf16.msra.mxu1 %v8909_v25  ;;  %v9133_v25 = vor.u32 %v13067_v19, %v9130_v20  ;;  %v13119_v30 = vld [vmem:[#allocation2 + $0x4cc] sm:$0xf]  ;;  %v9594_v27 = vld [vmem:[#allocation2 + $0x6d8] sm:$0xf0] }
 0x27f   :  { %5951 = vmatpush.bf16.msra.mxu2 %v9037_v62  ;;  %v8986_v62 = vld [vmem:[#allocation2 + $0x218] sm:$0xf0]  ;;  %v13151_v19 = vld [vmem:[#allocation2 + $0x5cc] sm:$0xf] }
 0x280   :  { %5965 = vmatpush.bf16.msra.mxu3 %v9165_v14  ;;  %v9354_v14 = vld [vmem:[#allocation2 + $0x4f8] sm:$0xf0]  ;;  %v13183_v15 = vld [vmem:[#allocation2 + $0x6cc] sm:$0xf] }
 0x281   :  { %5924 = vmatpush.bf16.msra.mxu0 %v8765_v61  ;;  %v8861_v61 = vor.u32 %v12999_v37, %v8858_v50  ;;  %v9357_v8 = vor.u32 %v13123_v49, %v9354_v14  ;;  %v9341_v37 = vor.u32 %v13119_v30, %v9338_v53  ;;  %v13147_v29 = vld [vmem:[#allocation2 + $0x5ac] sm:$0xf]  ;;  %v9450_v49 = vld [vmem:[#allocation2 + $0x5b8] sm:$0xf0] }
 0x282   :  { %5938 = vmatpush.bf16.msra.mxu1 %v8893_v3  ;;  %v8989_v3 = vor.u32 %v13031_v24, %v8986_v62  ;;  %v9597_v24 = vor.u32 %v13183_v15, %v9594_v27  ;;  %v9322_v62 = vld [vmem:[#allocation2 + $0x4b8] sm:$0xf0]  ;;  %v13179_v14 = vld [vmem:[#allocation2 + $0x6ac] sm:$0xf]  ;;  %v9453_v22 = vor.u32 %v13147_v29, %v9450_v49 }
 0x283   :  { %5952 = vmatpush.bf16.msra.mxu2 %v9021_v7  ;;  %v13219_v7 = vld [vmem:[#allocation2 + $0x7ec] sm:$0xf]  ;;  %v9418_v15 = vld [vmem:[#allocation2 + $0x578] sm:$0xf0] }
 0x284   :  { %5966 = vmatpush.bf16.msra.mxu3 %v9149_v63  ;;  %v9485_v63 = vor.u32 %v13155_v18, %v9482_v13  ;;  %v9741_v20 = vor.u32 %v13219_v7, %v9738_v28  ;;  %v9578_v18 = vld [vmem:[#allocation2 + $0x6b8] sm:$0xf0]  ;;  %v13143_v28 = vld [vmem:[#allocation2 + $0x58c] sm:$0xf] }
 0x285   :  { %5925 = vmatpush.bf16.msra.mxu0 %v8749_v9  ;;  %v9466_v9 = vld [vmem:[#allocation2 + $0x5d8] sm:$0xf0]  ;;  %v13107_v53 = vld [vmem:[#allocation2 + $0x46c] sm:$0xf] }
 0x286   :  { %5939 = vmatpush.bf16.msra.mxu1 %v8877_v11  ;;  %v13215_v11 = vld [vmem:[#allocation2 + $0x7cc] sm:$0xf]  ;;  %v9469_v50 = vor.u32 %v13151_v19, %v9466_v9  ;;  %v9706_v13 = vld [vmem:[#allocation2 + $0x7b8] sm:$0xf0] }
 0x287   :  { %5953 = vmatpush.bf16.msra.mxu2 %v9005_v52  ;;  %v9722_v52 = vld [vmem:[#allocation2 + $0x7d8] sm:$0xf0]  ;;  %v13171_v27 = vld [vmem:[#allocation2 + $0x66c] sm:$0xf] }
 0x288   :  { %5967 = vmatpush.bf16.msra.mxu3 %v9133_v25  ;;  %v13115_v25 = vld [vmem:[#allocation2 + $0x4ac] sm:$0xf]  ;;  %v9725_v16 = vor.u32 %v13215_v11, %v9722_v52  ;;  %v9306_v7 = vld [vmem:[#allocation2 + $0x498] sm:$0xf0] }
 0x289   :  { %5926 = vmatpush.bf16.msra.mxu0 %v8733_v57  ;;  %v13211_v57 = vld [vmem:[#allocation2 + $0x7ac] sm:$0xf]  ;;  %v9325_v23 = vor.u32 %v13115_v25, %v9322_v62  ;;  %v9290_v19 = vld [vmem:[#allocation2 + $0x478] sm:$0xf0] }
 0x28a   :  { %5940 = vmatpush.bf16.msra.mxu1 %v8861_v61  ;;  %v9581_v61 = vor.u32 %v13179_v14, %v9578_v18  ;;  %v9546_v11 = vld [vmem:[#allocation2 + $0x678] sm:$0xf0]  ;;  %v13203_v52 = vld [vmem:[#allocation2 + $0x76c] sm:$0xf] }
 0x28b   :  { %5954 = vmatpush.bf16.msra.mxu2 %v8989_v3  ;;  %v13111_v3 = vld [vmem:[#allocation2 + $0x48c] sm:$0xf]  ;;  %v9549_v25 = vor.u32 %v13171_v27, %v9546_v11  ;;  %v9274_v29 = vld [vmem:[#allocation2 + $0x458] sm:$0xf0] }
 0x28c   :  { %5968 = vmatpush.bf16.msra.mxu3 %v9117_v12  ;;  %5927 = vmatmul.bf16.vlgmr.msra.gmra.mxu0 %v14335_v58  ;;  %v9709_v12 = vor.u32 %v13211_v57, %v9706_v13  ;;  %v9434_v58 = vld [vmem:[#allocation2 + $0x598] sm:$0xf0]  ;;  %v13103_v62 = vld [vmem:[#allocation2 + $0x44c] sm:$0xf] }
 0x28d   :  { %5975 = vmatpush.bf16.msrb.mxu0 %v9357_v8  ;;  %5941 = vmatmul.bf16.vlgmr.msra.gmra.mxu1 %v14353_v10  ;;  %v13175_v8 = vld [vmem:[#allocation2 + $0x68c] sm:$0xf]  ;;  %v9309_v10 = vor.u32 %v13111_v3, %v9306_v7  ;;  %v9437_v30 = vor.u32 %v13143_v28, %v9434_v58  ;;  %v9402_v14 = vld [vmem:[#allocation2 + $0x558] sm:$0xf0] }
 0x28e   :  { %5989 = vmatpush.bf16.msrb.mxu1 %v9485_v63  ;;  %5955 = vmatmul.bf16.vlgmr.msra.gmra.mxu2 %v14340_v1  ;;  %v9562_v63 = vld [vmem:[#allocation2 + $0x698] sm:$0xf0]  ;;  %v13167_v18 = vld [vmem:[#allocation2 + $0x64c] sm:$0xf] }
 0x28f   :  { %6003 = vmatpush.bf16.msrb.mxu2 %v9613_v0  ;;  %5969 = vmatmul.bf16.vlgmr.msra.gmra.mxu3 %v14358_v17  ;;  %v13207_v0 = vld [vmem:[#allocation2 + $0x78c] sm:$0xf]  ;;  %v9690_v1 = vld [vmem:[#allocation2 + $0x798] sm:$0xf0]  ;;  %v9565_v17 = vor.u32 %v13175_v8, %v9562_v63 }
 0x290   :  { %6017 = vmatpush.bf16.msrb.mxu3 %v9741_v20  ;;  %v13139_v20 = vld [vmem:[#allocation2 + $0x56c] sm:$0xf]  ;;  %v9693_v9 = vor.u32 %v13207_v0, %v9690_v1  ;;  %v9530_v57 = vld [vmem:[#allocation2 + $0x658] sm:$0xf0] }
 0x291   :  { %5976 = vmatpush.bf16.msrb.mxu0 %v9341_v37  ;;  %v9674_v37 = vld [vmem:[#allocation2 + $0x778] sm:$0xf0]  ;;  %v13199_v13 = vld [vmem:[#allocation2 + $0x74c] sm:$0xf]  ;;  %v9533_v3 = vor.u32 %v13167_v18, %v9530_v57 }
 0x292   :  { %5990 = vmatpush.bf16.msrb.mxu1 %v9469_v50  ;;  %v9293_v50 = vor.u32 %v13107_v53, %v9290_v19  ;;  %v9677_v49 = vor.u32 %v13203_v52, %v9674_v37  ;;  %v13099_v7 = vld [vmem:[#allocation2 + $0x42c] sm:$0xf]  ;;  %v9258_v28 = vld [vmem:[#allocation2 + $0x438] sm:$0xf0] }
 0x293   :  { %6004 = vmatpush.bf16.msrb.mxu2 %v9597_v24  ;;  %v9421_v24 = vor.u32 %v13139_v20, %v9418_v15  ;;  %v9386_v8 = vld [vmem:[#allocation2 + $0x538] sm:$0xf0]  ;;  %v13163_v63 = vld [vmem:[#allocation2 + $0x62c] sm:$0xf] }
 0x294   :  { %6018 = vmatpush.bf16.msrb.mxu3 %v9725_v16  ;;  %v13135_v16 = vld [vmem:[#allocation2 + $0x54c] sm:$0xf]  ;;  %v9514_v0 = vld [vmem:[#allocation2 + $0x638] sm:$0xf0] }
 0x295   :  { %5977 = vmatpush.bf16.msrb.mxu0 %v9325_v23  ;;  %v9658_v23 = vld [vmem:[#allocation2 + $0x758] sm:$0xf0]  ;;  %v13195_v1 = vld [vmem:[#allocation2 + $0x72c] sm:$0xf]  ;;  %v9517_v20 = vor.u32 %v13163_v63, %v9514_v0 }
 0x296   :  { %5991 = vmatpush.bf16.msrb.mxu1 %v9453_v22  ;;  %v9277_v22 = vor.u32 %v13103_v62, %v9274_v29  ;;  %v9661_v58 = vor.u32 %v13199_v13, %v9658_v23  ;;  %v9242_v53 = vld [vmem:[#allocation2 + $0x418] sm:$0xf0]  ;;  %v13159_v27 = vld [vmem:[#allocation2 + $0x60c] sm:$0xf] }
 0x297   :  { %6005 = vmatpush.bf16.msrb.mxu2 %v9581_v61  ;;  %v9405_v61 = vor.u32 %v13135_v16, %v9402_v14  ;;  %v9370_v15 = vld [vmem:[#allocation2 + $0x518] sm:$0xf0]  ;;  %v13191_v37 = vld [vmem:[#allocation2 + $0x70c] sm:$0xf] }
 0x298   :  { %6019 = vmatpush.bf16.msrb.mxu3 %v9709_v12  ;;  %v13131_v12 = vld [vmem:[#allocation2 + $0x52c] sm:$0xf]  ;;  %v9498_v52 = vld [vmem:[#allocation2 + $0x618] sm:$0xf0] }
 0x299   :  { %5978 = vmatpush.bf16.msrb.mxu0 %v9309_v10  ;;  %v9642_v10 = vld [vmem:[#allocation2 + $0x738] sm:$0xf0]  ;;  %v9389_v19 = vor.u32 %v13131_v12, %v9386_v8  ;;  %v13283_v62 = vld [vmem:[#allocation2 + $0x9ec] sm:$0xf]  ;;  %v9501_v57 = vor.u32 %v13159_v27, %v9498_v52 }
 0x29a   :  { %5992 = vmatpush.bf16.msrb.mxu1 %v9437_v30  ;;  %v9261_v30 = vor.u32 %v13099_v7, %v9258_v28  ;;  %v9645_v11 = vor.u32 %v13195_v1, %v9642_v10  ;;  %v9994_v16 = vld [vmem:[#allocation2 + $0x9f8] sm:$0xf0]  ;;  %v13347_v13 = vld [vmem:[#allocation2 + $0xbec] sm:$0xf] }
 0x29b   :  { %6006 = vmatpush.bf16.msrb.mxu2 %v9565_v17  ;;  %v13095_v17 = vld [vmem:[#allocation2 + $0x40c] sm:$0xf]  ;;  %v10122_v14 = vld [vmem:[#allocation2 + $0xaf8] sm:$0xf0] }
 0x29c   :  { %6020 = vmatpush.bf16.msrb.mxu3 %v9693_v9  ;;  %v13127_v9 = vld [vmem:[#allocation2 + $0x50c] sm:$0xf]  ;;  %v9245_v29 = vor.u32 %v13095_v17, %v9242_v53  ;;  %v10250_v23 = vld [vmem:[#allocation2 + $0xbf8] sm:$0xf0] }
 0x29d   :  { %5979 = vmatpush.bf16.msrb.mxu0 %v9293_v50  ;;  %v9626_v50 = vld [vmem:[#allocation2 + $0x718] sm:$0xf0]  ;;  %v9373_v18 = vor.u32 %v13127_v9, %v9370_v15  ;;  %v13247_v28 = vld [vmem:[#allocation2 + $0x8cc] sm:$0xf]  ;;  %v10253_v8 = vor.u32 %v13347_v13, %v10250_v23 }
 0x29e   :  { %5993 = vmatpush.bf16.msrb.mxu1 %v9421_v24  ;;  %v13251_v24 = vld [vmem:[#allocation2 + $0x8ec] sm:$0xf]  ;;  %v9850_v12 = vld [vmem:[#allocation2 + $0x8d8] sm:$0xf0] }
 0x29f   :  { %6007 = vmatpush.bf16.msrb.mxu2 %v9549_v25  ;;  %v9866_v25 = vld [vmem:[#allocation2 + $0x8f8] sm:$0xf0]  ;;  %v13311_v0 = vld [vmem:[#allocation2 + $0xacc] sm:$0xf]  ;;  %v9853_v17 = vor.u32 %v13247_v28, %v9850_v12 }
 0x2a0   :  { %6021 = vmatpush.bf16.msrb.mxu3 %v9677_v49  ;;  %v13315_v49 = vld [vmem:[#allocation2 + $0xaec] sm:$0xf]  ;;  %v9978_v63 = vld [vmem:[#allocation2 + $0x9d8] sm:$0xf0] }
 0x2a1   :  { %5980 = vmatpush.bf16.msrb.mxu0 %v9277_v22  ;;  %v9629_v22 = vor.u32 %v13191_v37, %v9626_v50  ;;  %v10125_v7 = vor.u32 %v13315_v49, %v10122_v14  ;;  %v10106_v1 = vld [vmem:[#allocation2 + $0xad8] sm:$0xf0]  ;;  %v13343_v10 = vld [vmem:[#allocation2 + $0xbcc] sm:$0xf] }
 0x2a2   :  { %5994 = vmatpush.bf16.msrb.mxu1 %v9405_v61  ;;  %v9869_v61 = vor.u32 %v13251_v24, %v9866_v25  ;;  %v9834_v9 = vld [vmem:[#allocation2 + $0x8b8] sm:$0xf0]  ;;  %v13275_v15 = vld [vmem:[#allocation2 + $0x9ac] sm:$0xf] }
 0x2a3   :  { %6008 = vmatpush.bf16.msrb.mxu2 %v9533_v3  ;;  %v9997_v3 = vor.u32 %v13283_v62, %v9994_v16  ;;  %v13307_v52 = vld [vmem:[#allocation2 + $0xaac] sm:$0xf]  ;;  %v10090_v37 = vld [vmem:[#allocation2 + $0xab8] sm:$0xf0] }
 0x2a4   :  { %6022 = vmatpush.bf16.msrb.mxu3 %v9661_v58  ;;  %v13279_v58 = vld [vmem:[#allocation2 + $0x9cc] sm:$0xf]  ;;  %v10218_v24 = vld [vmem:[#allocation2 + $0xbb8] sm:$0xf0] }
 0x2a5   :  { %5981 = vmatpush.bf16.msrb.mxu0 %v9261_v30  ;;  %v10234_v30 = vld [vmem:[#allocation2 + $0xbd8] sm:$0xf0]  ;;  %v9981_v53 = vor.u32 %v13279_v58, %v9978_v63  ;;  %v13339_v50 = vld [vmem:[#allocation2 + $0xbac] sm:$0xf] }
 0x2a6   :  { %5995 = vmatpush.bf16.msrb.mxu1 %v9389_v19  ;;  %v10109_v19 = vor.u32 %v13311_v0, %v10106_v1  ;;  %v10237_v27 = vor.u32 %v13343_v10, %v10234_v30  ;;  %v13239_v16 = vld [vmem:[#allocation2 + $0x88c] sm:$0xf]  ;;  %v10221_v14 = vor.u32 %v13339_v50, %v10218_v24  ;;  %v9930_v12 = vld [vmem:[#allocation2 + $0x978] sm:$0xf0] }
 0x2a7   :  { %6009 = vmatpush.bf16.msrb.mxu2 %v9517_v20  ;;  %v13243_v20 = vld [vmem:[#allocation2 + $0x8ac] sm:$0xf]  ;;  %v10186_v0 = vld [vmem:[#allocation2 + $0xb78] sm:$0xf0] }
 0x2a8   :  { %6023 = vmatpush.bf16.msrb.mxu3 %v9645_v11  ;;  %v9962_v11 = vld [vmem:[#allocation2 + $0x9b8] sm:$0xf0]  ;;  %v9837_v25 = vor.u32 %v13243_v20, %v9834_v9  ;;  %v13271_v49 = vld [vmem:[#allocation2 + $0x98c] sm:$0xf] }
 0x2a9   :  { %5982 = vmatpush.bf16.msrb.mxu0 %v9245_v29  ;;  %v9965_v62 = vor.u32 %v13275_v15, %v9962_v11  ;;  %v10093_v29 = vor.u32 %v13307_v52, %v10090_v37  ;;  %v13335_v13 = vld [vmem:[#allocation2 + $0xb8c] sm:$0xf]  ;;  %v9914_v9 = vld [vmem:[#allocation2 + $0x958] sm:$0xf0] }
 0x2aa   :  { %5996 = vmatpush.bf16.msrb.mxu1 %v9373_v18  ;;  %v9946_v18 = vld [vmem:[#allocation2 + $0x998] sm:$0xf0]  ;;  %v13299_v58 = vld [vmem:[#allocation2 + $0xa6c] sm:$0xf] }
 0x2ab   :  { %6010 = vmatpush.bf16.msrb.mxu2 %v9501_v57  ;;  %v13303_v57 = vld [vmem:[#allocation2 + $0xa8c] sm:$0xf]  ;;  %v10170_v52 = vld [vmem:[#allocation2 + $0xb58] sm:$0xf0] }
 0x2ac   :  { %6024 = vmatpush.bf16.msrb.mxu3 %v9629_v22  ;;  %5983 = vmatmul.bf16.vlgmr.msrb.gmra.mxu0 %v14386_v39  ;;  %v9818_v39 = vld [vmem:[#allocation2 + $0x898] sm:$0xf0]  ;;  %v13331_v63 = vld [vmem:[#allocation2 + $0xb6c] sm:$0xf] }
 0x2ad   :  { %6031 = vmatpush.bf16.msra.mxu0 %v9869_v61  ;;  %5997 = vmatmul.bf16.vlgmr.msrb.gmra.mxu1 %v14390_v44  ;;  %v10202_v44 = vld [vmem:[#allocation2 + $0xb98] sm:$0xf0]  ;;  %v9821_v23 = vor.u32 %v13239_v16, %v9818_v39  ;;  %v13235_v61 = vld [vmem:[#allocation2 + $0x86c] sm:$0xf]  ;;  %v10189_v20 = vor.u32 %v13331_v63, %v10186_v0  ;;  %v14732_v63 = vpop.f32.mrf.mxu1 }
 0x2ae   :  { %6045 = vmatpush.bf16.msra.mxu1 %v9997_v3  ;;  %6011 = vmatmul.bf16.vlgmr.msrb.gmra.mxu2 %v14388_v43  ;;  %v10074_v43 = vld [vmem:[#allocation2 + $0xa98] sm:$0xf0]  ;;  %v10205_v28 = vor.u32 %v13335_v13, %v10202_v44  ;;  %v13295_v15 = vld [vmem:[#allocation2 + $0xa4c] sm:$0xf] }
 0x2af   :  { %6059 = vmatpush.bf16.msra.mxu2 %v10125_v7  ;;  %6025 = vmatmul.bf16.vlgmr.msrb.gmra.mxu3 %v14392_v47  ;;  %v9949_v47 = vor.u32 %v13271_v49, %v9946_v18  ;;  %v10077_v22 = vor.u32 %v13303_v57, %v10074_v43  ;;  %v9802_v3 = vld [vmem:[#allocation2 + $0x878] sm:$0xf0]  ;;  %v13267_v7 = vld [vmem:[#allocation2 + $0x96c] sm:$0xf]  ;;  %v14730_v18 = vpop.f32.mrf.mxu0 }
 0x2b0   :  { %6073 = vmatpush.bf16.msra.mxu3 %v10253_v8  ;;  %v10058_v8 = vld [vmem:[#allocation2 + $0xa78] sm:$0xf0]  ;;  %v9805_v1 = vor.u32 %v13235_v61, %v9802_v3  ;;  %v9933_v10 = vor.u32 %v13267_v7, %v9930_v12  ;;  %v13327_v11 = vld [vmem:[#allocation2 + $0xb4c] sm:$0xf] }
 0x2b1   :  { %6032 = vmatpush.bf16.msra.mxu0 %v9853_v17  ;;  %v10061_v30 = vor.u32 %v13299_v58, %v10058_v8  ;;  %v13231_v17 = vld [vmem:[#allocation2 + $0x84c] sm:$0xf]  ;;  %v10173_v16 = vor.u32 %v13327_v11, %v10170_v52  ;;  %v9898_v39 = vld [vmem:[#allocation2 + $0x938] sm:$0xf0] }
 0x2b2   :  { %6046 = vmatpush.bf16.msra.mxu1 %v9981_v53  ;;  %v9786_v53 = vld [vmem:[#allocation2 + $0x858] sm:$0xf0]  ;;  %v13291_v49 = vld [vmem:[#allocation2 + $0xa2c] sm:$0xf] }
 0x2b3   :  { %6060 = vmatpush.bf16.msra.mxu2 %v10109_v19  ;;  %v13263_v19 = vld [vmem:[#allocation2 + $0x94c] sm:$0xf]  ;;  %v9789_v37 = vor.u32 %v13231_v17, %v9786_v53  ;;  %v10154_v43 = vld [vmem:[#allocation2 + $0xb38] sm:$0xf0] }
 0x2b4   :  { %6074 = vmatpush.bf16.msra.mxu3 %v10237_v27  ;;  %v10042_v27 = vld [vmem:[#allocation2 + $0xa58] sm:$0xf0]  ;;  %v9917_v50 = vor.u32 %v13263_v19, %v9914_v9  ;;  %v13323_v57 = vld [vmem:[#allocation2 + $0xb2c] sm:$0xf] }
 0x2b5   :  { %6033 = vmatpush.bf16.msra.mxu0 %v9837_v25  ;;  %v10045_v24 = vor.u32 %v13295_v15, %v10042_v27  ;;  %v13227_v25 = vld [vmem:[#allocation2 + $0x82c] sm:$0xf]  ;;  %v9882_v3 = vld [vmem:[#allocation2 + $0x918] sm:$0xf0] }
 0x2b6   :  { %6047 = vmatpush.bf16.msra.mxu1 %v9965_v62  ;;  %v9770_v62 = vld [vmem:[#allocation2 + $0x838] sm:$0xf0]  ;;  %v13223_v44 = vld [vmem:[#allocation2 + $0x80c] sm:$0xf] }
 0x2b7   :  { %6061 = vmatpush.bf16.msra.mxu2 %v10093_v29  ;;  %v13259_v29 = vld [vmem:[#allocation2 + $0x92c] sm:$0xf]  ;;  %v9773_v13 = vor.u32 %v13227_v25, %v9770_v62  ;;  %v10010_v12 = vld [vmem:[#allocation2 + $0xa18] sm:$0xf0] }
 0x2b8   :  { %6075 = vmatpush.bf16.msra.mxu3 %v10221_v14  ;;  %v10026_v14 = vld [vmem:[#allocation2 + $0xa38] sm:$0xf0]  ;;  %v13255_v61 = vld [vmem:[#allocation2 + $0x90c] sm:$0xf] }
 0x2b9   :  { %6034 = vmatpush.bf16.msra.mxu0 %v9821_v23  ;;  %v9754_v23 = vld [vmem:[#allocation2 + $0x818] sm:$0xf0]  ;;  %v13287_v7 = vld [vmem:[#allocation2 + $0xa0c] sm:$0xf]  ;;  %v9885_v9 = vor.u32 %v13255_v61, %v9882_v3 }
 0x2ba   :  { %6048 = vmatpush.bf16.msra.mxu1 %v9949_v47  ;;  %v9901_v47 = vor.u32 %v13259_v29, %v9898_v39  ;;  %v13319_v58 = vld [vmem:[#allocation2 + $0xb0c] sm:$0xf]  ;;  %v10138_v8 = vld [vmem:[#allocation2 + $0xb18] sm:$0xf0]  ;;  %v10013_v15 = vor.u32 %v13287_v7, %v10010_v12 }
 0x2bb   :  { %6062 = vmatpush.bf16.msra.mxu2 %v10077_v22  ;;  %v10029_v22 = vor.u32 %v13291_v49, %v10026_v14  ;;  %v13379_v0 = vld [vmem:[#allocation2 + $0xcec] sm:$0xf]  ;;  %v10506_v17 = vld [vmem:[#allocation2 + $0xdf8] sm:$0xf0]  ;;  %v10141_v52 = vor.u32 %v13319_v58, %v10138_v8 }
 0x2bc   :  { %6076 = vmatpush.bf16.msra.mxu3 %v10205_v28  ;;  %v10157_v28 = vor.u32 %v13323_v57, %v10154_v43  ;;  %v13443_v53 = vld [vmem:[#allocation2 + $0xeec] sm:$0xf]  ;;  %v10634_v19 = vld [vmem:[#allocation2 + $0xef8] sm:$0xf0]  ;;  %v14738_v43 = vpop.f32.mrf.mxu3 }
 0x2bd   :  { %6035 = vmatpush.bf16.msra.mxu0 %v9805_v1  ;;  %v10378_v1 = vld [vmem:[#allocation2 + $0xcf8] sm:$0xf0]  ;;  %v13475_v27 = vld [vmem:[#allocation2 + $0xfec] sm:$0xf]  ;;  %v10637_v25 = vor.u32 %v13443_v53, %v10634_v19  ;;  %15130 = vst [vmem:[#allocation60_spill] sm:$0xff] %v14738_v43 }
 0x2be   :  { %6049 = vmatpush.bf16.msra.mxu1 %v9933_v10  ;;  %v13411_v10 = vld [vmem:[#allocation2 + $0xdec] sm:$0xf]  ;;  %v10762_v11 = vld [vmem:[#allocation2 + $0xff8] sm:$0xf0] }
 0x2bf   :  { %6063 = vmatpush.bf16.msra.mxu2 %v10061_v30  ;;  %v9757_v30 = vor.u32 %v13223_v44, %v9754_v23  ;;  %v13375_v62 = vld [vmem:[#allocation2 + $0xccc] sm:$0xf]  ;;  %v10362_v29 = vld [vmem:[#allocation2 + $0xcd8] sm:$0xf0]  ;;  %v10765_v39 = vor.u32 %v13475_v27, %v10762_v11 }
 0x2c0   :  { %6077 = vmatpush.bf16.msra.mxu3 %v10189_v20  ;;  %v14734_v20 = vpop.f32.mrf.mxu2  ;;  %v10490_v49 = vld [vmem:[#allocation2 + $0xdd8] sm:$0xf0]  ;;  %v13439_v14 = vld [vmem:[#allocation2 + $0xecc] sm:$0xf]  ;;  %v10365_v23 = vor.u32 %v13375_v62, %v10362_v29 }
 0x2c1   :  { %6036 = vmatpush.bf16.msra.mxu0 %v9789_v37  ;;  %15129 = vst [vmem:[#allocation59_spill] sm:$0xff] %v14734_v20  ;;  %v10381_v37 = vor.u32 %v13379_v0, %v10378_v1  ;;  %v10618_v57 = vld [vmem:[#allocation2 + $0xed8] sm:$0xf0]  ;;  %v13371_v3 = vld [vmem:[#allocation2 + $0xcac] sm:$0xf] }
 0x2c2   :  { %6050 = vmatpush.bf16.msra.mxu1 %v9917_v50  ;;  %v14736_v50 = vpop.f32.mrf.mxu0  ;;  %v10746_v44 = vld [vmem:[#allocation2 + $0xfd8] sm:$0xf0]  ;;  %v10621_v61 = vor.u32 %v13439_v14, %v10618_v57  ;;  %v13435_v8 = vld [vmem:[#allocation2 + $0xeac] sm:$0xf] }
 0x2c3   :  { %6064 = vmatpush.bf16.msra.mxu2 %v10045_v24  ;;  %v10509_v24 = vor.u32 %v13411_v10, %v10506_v17  ;;  %v10346_v7 = vld [vmem:[#allocation2 + $0xcb8] sm:$0xf0]  ;;  %v13467_v10 = vld [vmem:[#allocation2 + $0xfac] sm:$0xf] }
 0x2c4   :  { %6078 = vmatpush.bf16.msra.mxu3 %v10173_v16  ;;  %v13407_v16 = vld [vmem:[#allocation2 + $0xdcc] sm:$0xf]  ;;  %v10474_v58 = vld [vmem:[#allocation2 + $0xdb8] sm:$0xf0]  ;;  %v10349_v17 = vor.u32 %v13371_v3, %v10346_v7 }
 0x2c5   :  { %6037 = vmatpush.bf16.msra.mxu0 %v9773_v13  ;;  %v13471_v13 = vld [vmem:[#allocation2 + $0xfcc] sm:$0xf]  ;;  %v10602_v0 = vld [vmem:[#allocation2 + $0xeb8] sm:$0xf0] }
 0x2c6   :  { %6051 = vmatpush.bf16.msra.mxu1 %v9901_v47  ;;  %v14740_v47 = vpop.f32.mrf.mxu1  ;;  %v10749_v12 = vor.u32 %v13471_v13, %v10746_v44  ;;  %v13367_v19 = vld [vmem:[#allocation2 + $0xc8c] sm:$0xf]  ;;  %v10458_v11 = vld [vmem:[#allocation2 + $0xd98] sm:$0xf0] }
 0x2c7   :  { %6065 = vmatpush.bf16.msra.mxu2 %v10029_v22  ;;  %v10493_v22 = vor.u32 %v13407_v16, %v10490_v49  ;;  %v13363_v16 = vld [vmem:[#allocation2 + $0xc6c] sm:$0xf]  ;;  %v10442_v57 = vld [vmem:[#allocation2 + $0xd78] sm:$0xf0] }
 0x2c8   :  { %6079 = vmatpush.bf16.msra.mxu3 %v10157_v28  ;;  %v13403_v28 = vld [vmem:[#allocation2 + $0xdac] sm:$0xf]  ;;  %v14743_v1 = vpop.f32.mrf.mxu2  ;;  %v10570_v44 = vld [vmem:[#allocation2 + $0xe78] sm:$0xf0] }
 0x2c9   :  { %6038 = vmatpush.bf16.msra.mxu0 %v9757_v30  ;;  %v10730_v30 = vld [vmem:[#allocation2 + $0xfb8] sm:$0xf0]  ;;  %v10477_v53 = vor.u32 %v13403_v28, %v10474_v58  ;;  %v13395_v49 = vld [vmem:[#allocation2 + $0xd6c] sm:$0xf] }
 0x2ca   :  { %6052 = vmatpush.bf16.msra.mxu1 %v9885_v9  ;;  %v10330_v9 = vld [vmem:[#allocation2 + $0xc98] sm:$0xf0]  ;;  %v10733_v27 = vor.u32 %v13467_v10, %v10730_v30  ;;  %v13427_v13 = vld [vmem:[#allocation2 + $0xe6c] sm:$0xf]  ;;  %v10445_v28 = vor.u32 %v13395_v49, %v10442_v57 }
 0x2cb   :  { %6066 = vmatpush.bf16.msra.mxu2 %v10013_v15  ;;  %v13399_v15 = vld [vmem:[#allocation2 + $0xd8c] sm:$0xf]  ;;  %v10426_v30 = vld [vmem:[#allocation2 + $0xd58] sm:$0xf0] }
 0x2cc   :  { %6080 = vmatpush.bf16.msra.mxu3 %v10141_v52  ;;  %6039 = vmatmul.bf16.vlgmr.msra.gmra.mxu0 %v14422_v31  ;;  %v10605_v31 = vor.u32 %v13435_v8, %v10602_v0  ;;  %v13431_v52 = vld [vmem:[#allocation2 + $0xe8c] sm:$0xf]  ;;  %v10461_v62 = vor.u32 %v13399_v15, %v10458_v11  ;;  %v10298_v8 = vld [vmem:[#allocation2 + $0xc58] sm:$0xf0] }
 0x2cd   :  { %6087 = vmatpush.bf16.msrb.mxu0 %v10381_v37  ;;  %6053 = vmatmul.bf16.vlgmr.msra.gmra.mxu1 %v14426_v36  ;;  %v14748_v37 = vpop.f32.mrf.mxu0  ;;  %v14750_v36 = vpop.f32.mrf.mxu3  ;;  %v13359_v58 = vld [vmem:[#allocation2 + $0xc4c] sm:$0xf]  ;;  %v10666_v49 = vld [vmem:[#allocation2 + $0xf38] sm:$0xf0] }
 0x2ce   :  { %6101 = vmatpush.bf16.msrb.mxu1 %v10509_v24  ;;  %6067 = vmatmul.bf16.vlgmr.msra.gmra.mxu2 %v14424_v35  ;;  %v10586_v35 = vld [vmem:[#allocation2 + $0xe98] sm:$0xf0]  ;;  %v13463_v24 = vld [vmem:[#allocation2 + $0xf8c] sm:$0xf] }
 0x2cf   :  { %6115 = vmatpush.bf16.msrb.mxu2 %v10637_v25  ;;  %6081 = vmatmul.bf16.vlgmr.msra.gmra.mxu3 %v14428_v40  ;;  %v10714_v40 = vld [vmem:[#allocation2 + $0xf98] sm:$0xf0]  ;;  %v10333_v25 = vor.u32 %v13367_v19, %v10330_v9  ;;  %v10589_v29 = vor.u32 %v13431_v52, %v10586_v35  ;;  %v13391_v0 = vld [vmem:[#allocation2 + $0xd4c] sm:$0xf]  ;;  %v10301_v9 = vor.u32 %v13359_v58, %v10298_v8 }
 0x2d0   :  { %6129 = vmatpush.bf16.msrb.mxu3 %v10765_v39  ;;  %v10314_v39 = vld [vmem:[#allocation2 + $0xc78] sm:$0xf0]  ;;  %v10717_v14 = vor.u32 %v13463_v24, %v10714_v40  ;;  %v14754_v7 = vpop.f32.mrf.mxu2  ;;  %v10429_v11 = vor.u32 %v13391_v0, %v10426_v30  ;;  %v13355_v35 = vld [vmem:[#allocation2 + $0xc2c] sm:$0xf] }
 0x2d1   :  { %6088 = vmatpush.bf16.msrb.mxu0 %v10365_v23  ;;  %v14752_v23 = vpop.f32.mrf.mxu1  ;;  %v10317_v3 = vor.u32 %v13363_v16, %v10314_v39  ;;  %v10682_v19 = vld [vmem:[#allocation2 + $0xf58] sm:$0xf0]  ;;  %v13387_v40 = vld [vmem:[#allocation2 + $0xd2c] sm:$0xf] }
 0x2d2   :  { %6102 = vmatpush.bf16.msrb.mxu1 %v10493_v22  ;;  %v13459_v22 = vld [vmem:[#allocation2 + $0xf6c] sm:$0xf]  ;;  %v10282_v24 = vld [vmem:[#allocation2 + $0xc38] sm:$0xf0] }
 0x2d3   :  { %6116 = vmatpush.bf16.msrb.mxu2 %v10621_v61  ;;  %v10698_v61 = vld [vmem:[#allocation2 + $0xf78] sm:$0xf0]  ;;  %v13451_v39 = vld [vmem:[#allocation2 + $0xf2c] sm:$0xf] }
 0x2d4   :  { %6130 = vmatpush.bf16.msrb.mxu3 %v10749_v12  ;;  %v10573_v12 = vor.u32 %v13427_v13, %v10570_v44  ;;  %v10701_v10 = vor.u32 %v13459_v22, %v10698_v61  ;;  %v10538_v16 = vld [vmem:[#allocation2 + $0xe38] sm:$0xf0]  ;;  %v13351_v57 = vld [vmem:[#allocation2 + $0xc0c] sm:$0xf]  ;;  %v10669_v58 = vor.u32 %v13451_v39, %v10666_v49 }
 0x2d5   :  { %6089 = vmatpush.bf16.msrb.mxu0 %v10349_v17  ;;  %v13423_v17 = vld [vmem:[#allocation2 + $0xe4c] sm:$0xf]  ;;  %v14756_v15 = vpop.f32.mrf.mxu3  ;;  %v10266_v13 = vld [vmem:[#allocation2 + $0xc18] sm:$0xf0] }
 0x2d6   :  { %6103 = vmatpush.bf16.msrb.mxu1 %v10477_v53  ;;  %v10554_v53 = vld [vmem:[#allocation2 + $0xe58] sm:$0xf0]  ;;  %v13447_v0 = vld [vmem:[#allocation2 + $0xf0c] sm:$0xf] }
 0x2d7   :  { %6117 = vmatpush.bf16.msrb.mxu2 %v10605_v31  ;;  %v13455_v31 = vld [vmem:[#allocation2 + $0xf4c] sm:$0xf]  ;;  %v10557_v52 = vor.u32 %v13423_v17, %v10554_v53  ;;  %v10522_v8 = vld [vmem:[#allocation2 + $0xe18] sm:$0xf0] }
 0x2d8   :  { %6131 = vmatpush.bf16.msrb.mxu3 %v10733_v27  ;;  %v14758_v27 = vpop.f32.mrf.mxu0  ;;  %v14762_v30 = vpop.f32.mrf.mxu2  ;;  %v13507_v17 = vld [vmem:[#allocation2 + $0x10ec] sm:$0xf]  ;;  %v10890_v53 = vld [vmem:[#allocation2 + $0x10f8] sm:$0xf0] }
 0x2d9   :  { %6090 = vmatpush.bf16.msrb.mxu0 %v10333_v25  ;;  %v10685_v25 = vor.u32 %v13455_v31, %v10682_v19  ;;  %v14760_v44 = vpop.f32.mrf.mxu1  ;;  %v13539_v31 = vld [vmem:[#allocation2 + $0x11ec] sm:$0xf]  ;;  %v10269_v19 = vor.u32 %v13351_v57, %v10266_v13  ;;  %v10874_v57 = vld [vmem:[#allocation2 + $0x10d8] sm:$0xf0] }
 0x2da   :  { %6104 = vmatpush.bf16.msrb.mxu1 %v10461_v62  ;;  %v10410_v62 = vld [vmem:[#allocation2 + $0xd38] sm:$0xf0]  ;;  %v13535_v13 = vld [vmem:[#allocation2 + $0x11cc] sm:$0xf] }
 0x2db   :  { %6118 = vmatpush.bf16.msrb.mxu2 %v10589_v29  ;;  %v13419_v29 = vld [vmem:[#allocation2 + $0xe2c] sm:$0xf]  ;;  %v10413_v22 = vor.u32 %v13387_v40, %v10410_v62 }
 0x2dc   :  { %6132 = vmatpush.bf16.msrb.mxu3 %v10717_v14  ;;  %v10285_v14 = vor.u32 %v13355_v35, %v10282_v24  ;;  %v10541_v61 = vor.u32 %v13419_v29, %v10538_v16  ;;  %v13603_v40 = vld [vmem:[#allocation2 + $0x13ec] sm:$0xf]  ;;  %v10893_v29 = vor.u32 %v13507_v17, %v10890_v53  ;;  %v10858_v53 = vld [vmem:[#allocation2 + $0x10b8] sm:$0xf0] }
 0x2dd   :  { %6091 = vmatpush.bf16.msrb.mxu0 %v10317_v3  ;;  %v13383_v3 = vld [vmem:[#allocation2 + $0xd0c] sm:$0xf]  ;;  %v14766_v39 = vpop.f32.mrf.mxu3 }
 0x2de   :  { %6105 = vmatpush.bf16.msrb.mxu1 %v10445_v28  ;;  %v10394_v28 = vld [vmem:[#allocation2 + $0xd18] sm:$0xf0]  ;;  %v13499_v17 = vld [vmem:[#allocation2 + $0x10ac] sm:$0xf] }
 0x2df   :  { %6119 = vmatpush.bf16.msrb.mxu2 %v10573_v12  ;;  %v13415_v12 = vld [vmem:[#allocation2 + $0xe0c] sm:$0xf]  ;;  %v10397_v35 = vor.u32 %v13383_v3, %v10394_v28  ;;  %v11130_v3 = vld [vmem:[#allocation2 + $0x12d8] sm:$0xf0] }
 0x2e0   :  { %6133 = vmatpush.bf16.msrb.mxu3 %v10701_v10  ;;  %v10650_v10 = vld [vmem:[#allocation2 + $0xf18] sm:$0xf0]  ;;  %v10525_v24 = vor.u32 %v13415_v12, %v10522_v8  ;;  %v14764_v16 = vpop.f32.mrf.mxu0  ;;  %v13599_v28 = vld [vmem:[#allocation2 + $0x13cc] sm:$0xf] }
 0x2e1   :  { %6092 = vmatpush.bf16.msrb.mxu0 %v10301_v9  ;;  %v11018_v9 = vld [vmem:[#allocation2 + $0x11f8] sm:$0xf0]  ;;  %v10653_v62 = vor.u32 %v13447_v0, %v10650_v10  ;;  %v14768_v8 = vpop.f32.mrf.mxu1 }
 0x2e2   :  { %6106 = vmatpush.bf16.msrb.mxu1 %v10429_v11  ;;  %v13571_v11 = vld [vmem:[#allocation2 + $0x12ec] sm:$0xf]  ;;  %v11021_v49 = vor.u32 %v13539_v31, %v11018_v9  ;;  %v11258_v12 = vld [vmem:[#allocation2 + $0x13d8] sm:$0xf0] }
 0x2e3   :  { %6120 = vmatpush.bf16.msrb.mxu2 %v10557_v52  ;;  %v11146_v52 = vld [vmem:[#allocation2 + $0x12f8] sm:$0xf0]  ;;  %v13531_v31 = vld [vmem:[#allocation2 + $0x11ac] sm:$0xf] }
 0x2e4   :  { %6134 = vmatpush.bf16.msrb.mxu3 %v10685_v25  ;;  %v11274_v25 = vld [vmem:[#allocation2 + $0x13f8] sm:$0xf0]  ;;  %v11149_v43 = vor.u32 %v13571_v11, %v11146_v52  ;;  %v13563_v11 = vld [vmem:[#allocation2 + $0x12ac] sm:$0xf] }
 0x2e5   :  { %6093 = vmatpush.bf16.msrb.mxu0 %v10285_v14  ;;  %v13503_v14 = vld [vmem:[#allocation2 + $0x10cc] sm:$0xf]  ;;  %v11277_v20 = vor.u32 %v13603_v40, %v11274_v25  ;;  %v10986_v9 = vld [vmem:[#allocation2 + $0x11b8] sm:$0xf0]  ;;  %v14036_v40 = vld [vmem:[#allocation4] sm:$0xf] }
 0x2e6   :  { %6107 = vmatpush.bf16.msrb.mxu1 %v10413_v22  ;;  %v11002_v22 = vld [vmem:[#allocation2 + $0x11d8] sm:$0xf0]  ;;  %v945_v25 = vperm.slane %v14036_v40, 2  ;;  %v13587_v40 = vld [vmem:[#allocation2 + $0x136c] sm:$0xf] }
 0x2e7   :  { %6121 = vmatpush.bf16.msrb.mxu2 %v10541_v61  ;;  %v13567_v61 = vld [vmem:[#allocation2 + $0x12cc] sm:$0xf]  ;;  %v11005_v0 = vor.u32 %v13535_v13, %v11002_v22  ;;  %v11114_v52 = vld [vmem:[#allocation2 + $0x12b8] sm:$0xf0] }
 0x2e8   :  { %6135 = vmatpush.bf16.msrb.mxu3 %v10669_v58  ;;  %v10877_v58 = vor.u32 %v13503_v14, %v10874_v57  ;;  %v11133_v10 = vor.u32 %v13567_v61, %v11130_v3  ;;  %v10842_v14 = vld [vmem:[#allocation2 + $0x1098] sm:$0xf0]  ;;  %v13527_v57 = vld [vmem:[#allocation2 + $0x118c] sm:$0xf]  ;;  %v15132_v3 = vperm.slane %v14628_v6, 1 }
 0x2e9   :  { %6094 = vmatpush.bf16.msrb.mxu0 %v10269_v19  ;;  %v11261_v19 = vor.u32 %v13599_v28, %v11258_v12  ;;  %v10970_v22 = vld [vmem:[#allocation2 + $0x1198] sm:$0xf0]  ;;  %v13559_v61 = vld [vmem:[#allocation2 + $0x128c] sm:$0xf]  ;;  %v14784_v12 = vpop.f32.mrf.mxu3 }
 0x2ea   :  { %6108 = vmatpush.bf16.msrb.mxu1 %v10397_v35  ;;  %v14771_v35 = vpop.f32.mrf.mxu2  ;;  %v5259_v28 = vadd.f32 %v14639_v2, %v15132_v3  ;;  %v10826_v6 = vld [vmem:[#allocation2 + $0x1078] sm:$0xf0] }
 0x2eb   :  { %6122 = vmatpush.bf16.msrb.mxu2 %v10525_v24  ;;  %v13595_v24 = vld [vmem:[#allocation2 + $0x13ac] sm:$0xf] }
 0x2ec   :  { %6136 = vmatpush.bf16.msrb.mxu3 %v10653_v62  ;;  %6095 = vmatmul.bf16.vlgmr.msrb.gmra.mxu0 %v14458_v32  ;;  %v14776_v62 = vpop.f32.mrf.mxu0  ;;  %v10989_v32 = vor.u32 %v13531_v31, %v10986_v9  ;;  %v13523_v9 = vld [vmem:[#allocation2 + $0x116c] sm:$0xf] }
 0x2ed   :  { %6143 = vmatpush.bf16.msra.mxu0 %v10893_v29  ;;  %6109 = vmatmul.bf16.vlgmr.msrb.gmra.mxu1 %v14462_v41  ;;  %v11117_v29 = vor.u32 %v13563_v11, %v11114_v52  ;;  %v10954_v52 = vld [vmem:[#allocation2 + $0x1178] sm:$0xf0] }
 0x2ee   :  { %6157 = vmatpush.bf16.msra.mxu1 %v11021_v49  ;;  %6123 = vmatmul.bf16.vlgmr.msrb.gmra.mxu2 %v14460_v38  ;;  %v13495_v49 = vld [vmem:[#allocation2 + $0x108c] sm:$0xf]  ;;  %v15131_v38 = vperm.slane %v14502_v4, 0 }
 0x2ef   :  { %6171 = vmatpush.bf16.msra.mxu2 %v11149_v43  ;;  %v11242_v43 = vld [vmem:[#allocation2 + $0x13b8] sm:$0xf0]  ;;  %6137 = vmatmul.bf16.vlgmr.msrb.gmra.mxu3 %v14464_v46  ;;  %v10845_v4 = vor.u32 %v13495_v49, %v10842_v14  ;;  %v13487_v14 = vld [vmem:[#allocation2 + $0x104c] sm:$0xf] }
 0x2f0   :  { %6185 = vmatpush.bf16.msra.mxu3 %v11277_v20  ;;  %v10861_v20 = vor.u32 %v13499_v17, %v10858_v53  ;;  %v4923_v41 = vadd.f32 %v14537_v21, %v15131_v38  ;;  %v11245_v13 = vor.u32 %v13595_v24, %v11242_v43  ;;  %v11098_v46 = vld [vmem:[#allocation2 + $0x1298] sm:$0xf0]  ;;  %v5595_v17 = vadd.f32 %v14748_v37, %v945_v25  ;;  %v14788_v21 = vpop.f32.mrf.mxu1  ;;  %v13555_v24 = vld [vmem:[#allocation2 + $0x126c] sm:$0xf] }
 0x2f1   :  { %6144 = vmatpush.bf16.msra.mxu0 %v10877_v58  ;;  %v13591_v58 = vld [vmem:[#allocation2 + $0x138c] sm:$0xf]  ;;  %v10973_v53 = vor.u32 %v13527_v57, %v10970_v22  ;;  %v11101_v31 = vor.u32 %v13559_v61, %v11098_v46  ;;  %v5273_v37 = vadd.f32 %v14641_v59, %v5259_v28  ;;  %v10810_v57 = vld [vmem:[#allocation2 + $0x1058] sm:$0xf0] }
 0x2f2   :  { %6158 = vmatpush.bf16.msra.mxu1 %v11005_v0  ;;  %v11226_v0 = vld [vmem:[#allocation2 + $0x1398] sm:$0xf0]  ;;  %v4937_v2 = vadd.f32 %v14545_v45, %v4923_v41  ;;  %v14792_v43 = vpop.f32.mrf.mxu2  ;;  %v10957_v45 = vor.u32 %v13523_v9, %v10954_v52  ;;  %v13519_v38 = vld [vmem:[#allocation2 + $0x114c] sm:$0xf] }
 0x2f3   :  { %6172 = vmatpush.bf16.msra.mxu2 %v11133_v10  ;;  %v5593_v10 = vadd.f32 %v14736_v50, %v945_v25  ;;  %v11229_v11 = vor.u32 %v13591_v58, %v11226_v0  ;;  %v11082_v50 = vld [vmem:[#allocation2 + $0x1278] sm:$0xf0]  ;;  %v13551_v22 = vld [vmem:[#allocation2 + $0x124c] sm:$0xf] }
 0x2f4   :  { %6186 = vmatpush.bf16.msra.mxu3 %v11261_v19  ;;  %v13491_v19 = vld [vmem:[#allocation2 + $0x106c] sm:$0xf]  ;;  %v11210_v25 = vld [vmem:[#allocation2 + $0x1378] sm:$0xf0]  ;;  %v11085_v49 = vor.u32 %v13555_v24, %v11082_v50  ;;  %v4951_v41 = vadd.f32 %v14553_v5, %v4937_v2  ;;  %v14798_v3 = vpop.f32.mrf.mxu0 }
 0x2f5   :  { %6145 = vmatpush.bf16.msra.mxu0 %v10861_v20  ;;  %v5607_v20 = vadd.f32 %v14740_v47, %v5593_v10  ;;  %v11213_v59 = vor.u32 %v13587_v40, %v11210_v25  ;;  %v11066_v61 = vld [vmem:[#allocation2 + $0x1258] sm:$0xf0]  ;;  %v13583_v28 = vld [vmem:[#allocation2 + $0x134c] sm:$0xf] }
 0x2f6   :  { %6159 = vmatpush.bf16.msra.mxu1 %v10989_v32  ;;  %v5609_v32 = vadd.f32 %v14752_v23, %v5595_v17  ;;  %v15133_v46 = vld [vmem:[#allocation42_spill] sm:$0xff]  ;;  %v14800_v23 = vpop.f32.mrf.mxu3  ;;  %v10813_v17 = vor.u32 %v13487_v14, %v10810_v57  ;;  %v13547_v52 = vld [vmem:[#allocation2 + $0x122c] sm:$0xf] }
 0x2f7   :  { %6173 = vmatpush.bf16.msra.mxu2 %v11117_v29  ;;  %v10829_v29 = vor.u32 %v13491_v19, %v10826_v6  ;;  %v5287_v47 = vadd.f32 %v15133_v46, %v5273_v37  ;;  %v11194_v58 = vld [vmem:[#allocation2 + $0x1358] sm:$0xf0]  ;;  %v5621_v0 = vadd.f32 %v14743_v1, %v5607_v20  ;;  %v13515_v19 = vld [vmem:[#allocation2 + $0x112c] sm:$0xf] }
 0x2f8   :  { %6187 = vmatpush.bf16.msra.mxu3 %v11245_v13  ;;  %v10938_v13 = vld [vmem:[#allocation2 + $0x1158] sm:$0xf0]  ;;  %v5623_v10 = vadd.f32 %v14754_v7, %v5609_v32  ;;  %v15134_v6 = vld [vmem:[#allocation20_spill] sm:$0xff]  ;;  %v11197_v2 = vor.u32 %v13583_v28, %v11194_v58  ;;  %v15135_v50 = vld [vmem:[#allocation43_spill] sm:$0xff]  ;;  %v14806_v37 = vpop.f32.mrf.mxu1 }
 0x2f9   :  { %6146 = vmatpush.bf16.msra.mxu0 %v10845_v4  ;;  %v10941_v5 = vor.u32 %v13519_v38, %v10938_v13  ;;  %v11069_v4 = vor.u32 %v13551_v22, %v11066_v61  ;;  %v4965_v9 = vadd.f32 %v15134_v6, %v4951_v41  ;;  %v11050_v24 = vld [vmem:[#allocation2 + $0x1238] sm:$0xf0]  ;;  %v5301_v1 = vadd.f32 %v15135_v50, %v5287_v47  ;;  %v13579_v7 = vld [vmem:[#allocation2 + $0x132c] sm:$0xf] }
 0x2fa   :  { %6160 = vmatpush.bf16.msra.mxu1 %v10973_v53  ;;  %v13483_v53 = vld [vmem:[#allocation2 + $0x102c] sm:$0xf]  ;;  %v11178_v40 = vld [vmem:[#allocation2 + $0x1338] sm:$0xf0]  ;;  %v5635_v25 = vadd.f32 %v14750_v36, %v5621_v0  ;;  %v5637_v20 = vadd.f32 %v14756_v15, %v5623_v10  ;;  %v11053_v57 = vor.u32 %v13547_v52, %v11050_v24 }
 0x2fb   :  { %6174 = vmatpush.bf16.msra.mxu2 %v11101_v31  ;;  %v10794_v31 = vld [vmem:[#allocation2 + $0x1038] sm:$0xf0]  ;;  %v13511_v38 = vld [vmem:[#allocation2 + $0x110c] sm:$0xf]  ;;  %v11181_v61 = vor.u32 %v13579_v7, %v11178_v40 }
 0x2fc   :  { %6188 = vmatpush.bf16.msra.mxu3 %v11229_v11  ;;  %v10922_v11 = vld [vmem:[#allocation2 + $0x1138] sm:$0xf0]  ;;  %v10797_v32 = vor.u32 %v13483_v53, %v10794_v31  ;;  %v13575_v46 = vld [vmem:[#allocation2 + $0x130c] sm:$0xf]  ;;  %v14814_v58 = vpop.f32.mrf.mxu0 }
 0x2fd   :  { %6147 = vmatpush.bf16.msra.mxu0 %v10829_v29  ;;  %v13479_v29 = vld [vmem:[#allocation2 + $0x100c] sm:$0xf]  ;;  %v10925_v14 = vor.u32 %v13515_v19, %v10922_v11  ;;  %v10906_v41 = vld [vmem:[#allocation2 + $0x1118] sm:$0xf0] }
 0x2fe   :  { %6161 = vmatpush.bf16.msra.mxu1 %v10957_v45  ;;  %v10778_v45 = vld [vmem:[#allocation2 + $0x1018] sm:$0xf0]  ;;  %v15137_v47 = vld [vmem:[#allocation44_spill] sm:$0xff] }
 0x2ff   :  { %6175 = vmatpush.bf16.msra.mxu2 %v11085_v49  ;;  %v14810_v49 = vpop.f32.mrf.mxu2  ;;  %v15136_v13 = vld [vmem:[#allocation21_spill] sm:$0xff]  ;;  %v5315_v28 = vadd.f32 %v15137_v47, %v5301_v1  ;;  %v13635_v0 = vld [vmem:[#allocation2 + $0x14ec] sm:$0xf]  ;;  %v10781_v53 = vor.u32 %v13479_v29, %v10778_v45  ;;  %v15138_v50 = vld [vmem:[#allocation22_spill] sm:$0xff] }
 0x300   :  { %6189 = vmatpush.bf16.msra.mxu3 %v11213_v59  ;;  %v13543_v59 = vld [vmem:[#allocation2 + $0x120c] sm:$0xf]  ;;  %v4979_v22 = vadd.f32 %v15136_v13, %v4965_v9  ;;  %v11034_v36 = vld [vmem:[#allocation2 + $0x1218] sm:$0xf0]  ;;  %v14818_v9 = vpop.f32.mrf.mxu3 }
 0x301   :  { %6148 = vmatpush.bf16.msra.mxu0 %v10813_v17  ;;  %v11162_v15 = vld [vmem:[#allocation2 + $0x1318] sm:$0xf0]  ;;  %v13667_v17 = vld [vmem:[#allocation2 + $0x15ec] sm:$0xf]  ;;  %v11037_v11 = vor.u32 %v13543_v59, %v11034_v36 }
 0x302   :  { %6162 = vmatpush.bf16.msra.mxu1 %v10941_v5  ;;  %v11402_v10 = vld [vmem:[#allocation2 + $0x14f8] sm:$0xf0]  ;;  %v5649_v5 = vadd.f32 %v14758_v27, %v5635_v25  ;;  %v13699_v19 = vld [vmem:[#allocation2 + $0x16ec] sm:$0xf]  ;;  %v4993_v1 = vadd.f32 %v15138_v50, %v4979_v22  ;;  %v11165_v7 = vor.u32 %v13575_v46, %v11162_v15  ;;  %v14822_v25 = vpop.f32.mrf.mxu1 }
 0x303   :  { %6176 = vmatpush.bf16.msra.mxu2 %v11069_v4  ;;  %v5651_v4 = vadd.f32 %v14764_v16, %v5637_v20  ;;  %v11530_v31 = vld [vmem:[#allocation2 + $0x15f8] sm:$0xf0]  ;;  %v13731_v52 = vld [vmem:[#allocation2 + $0x17ec] sm:$0xf]  ;;  %v11405_v27 = vor.u32 %v13635_v0, %v11402_v10 }
 0x304   :  { %6190 = vmatpush.bf16.msra.mxu3 %v11197_v2  ;;  %v11658_v6 = vld [vmem:[#allocation2 + $0x16f8] sm:$0xf0]  ;;  %v10909_v2 = vor.u32 %v13511_v38, %v10906_v41  ;;  %v11533_v20 = vor.u32 %v13667_v17, %v11530_v31  ;;  %v13631_v29 = vld [vmem:[#allocation2 + $0x14cc] sm:$0xf]  ;;  %v5663_v38 = vadd.f32 %v14760_v44, %v5649_v5 }
 0x305   :  { %6149 = vmatpush.bf16.msra.mxu0 %v10797_v32  ;;  %v11786_v24 = vld [vmem:[#allocation2 + $0x17f8] sm:$0xf0]  ;;  %v11661_v32 = vor.u32 %v13699_v19, %v11658_v6  ;;  %v13663_v13 = vld [vmem:[#allocation2 + $0x15cc] sm:$0xf]  ;;  %v5665_v41 = vadd.f32 %v14768_v8, %v5651_v4 }
 0x306   :  { %6163 = vmatpush.bf16.msra.mxu1 %v10925_v14  ;;  %v15139_v40 = vld [vmem:[#allocation45_spill] sm:$0xff]  ;;  %v15140_v14 = vld [vmem:[#allocation23_spill] sm:$0xff]  ;;  %v11789_v59 = vor.u32 %v13731_v52, %v11786_v24  ;;  %v15141_v46 = vld [vmem:[#allocation46_spill] sm:$0xff]  ;;  %v5677_v6 = vadd.f32 %v14762_v30, %v5663_v38 }
 0x307   :  { %6177 = vmatpush.bf16.msra.mxu2 %v11053_v57  ;;  %v5329_v16 = vadd.f32 %v15139_v40, %v5315_v28  ;;  %v11386_v45 = vld [vmem:[#allocation2 + $0x14d8] sm:$0xf0]  ;;  %v5007_v57 = vadd.f32 %v15140_v14, %v4993_v1  ;;  %v14828_v47 = vpop.f32.mrf.mxu2  ;;  %v13727_v28 = vld [vmem:[#allocation2 + $0x17cc] sm:$0xf]  ;;  %v5679_v10 = vadd.f32 %v14771_v35, %v5665_v41  ;;  %v14835_v1 = vpop.f32.mrf.mxu0 }
 0x308   :  { %6191 = vmatpush.bf16.msra.mxu3 %v11181_v61  ;;  %v11514_v22 = vld [vmem:[#allocation2 + $0x15d8] sm:$0xf0]  ;;  %v13695_v61 = vld [vmem:[#allocation2 + $0x16cc] sm:$0xf]  ;;  %v11389_v44 = vor.u32 %v13631_v29, %v11386_v45 }
 0x309   :  { %6150 = vmatpush.bf16.msra.mxu0 %v10781_v53  ;;  %v11642_v36 = vld [vmem:[#allocation2 + $0x16d8] sm:$0xf0]  ;;  %v5343_v15 = vadd.f32 %v15141_v46, %v5329_v16  ;;  %v11517_v8 = vor.u32 %v13663_v13, %v11514_v22  ;;  %v13627_v5 = vld [vmem:[#allocation2 + $0x14ac] sm:$0xf] }
 0x30a   :  { %6164 = vmatpush.bf16.msra.mxu1 %v10909_v2  ;;  %v11770_v0 = vld [vmem:[#allocation2 + $0x17d8] sm:$0xf0]  ;;  %v11645_v17 = vor.u32 %v13695_v61, %v11642_v36  ;;  %v13659_v53 = vld [vmem:[#allocation2 + $0x15ac] sm:$0xf]  ;;  %v14847_v22 = vpop.f32.mrf.mxu1 }
 0x30b   :  { %6178 = vmatpush.bf16.msra.mxu2 %v11037_v11  ;;  %v11370_v4 = vld [vmem:[#allocation2 + $0x14b8] sm:$0xf0]  ;;  %v15142_v31 = vld [vmem:[#allocation24_spill] sm:$0xff]  ;;  %v11773_v2 = vor.u32 %v13727_v28, %v11770_v0  ;;  %v15143_v24 = vld [vmem:[#allocation47_spill] sm:$0xff] }
 0x30c   :  { %6192 = vmatpush.bf16.msra.mxu3 %v11165_v7  ;;  %v5021_v19 = vadd.f32 %v15142_v31, %v5007_v57  ;;  %6151 = vmatmul.bf16.vlgmr.msra.gmra.mxu0 %v14494_v51  ;;  %v11498_v11 = vld [vmem:[#allocation2 + $0x15b8] sm:$0xf0]  ;;  %v13691_v35 = vld [vmem:[#allocation2 + $0x16ac] sm:$0xf]  ;;  %v5357_v50 = vadd.f32 %v15143_v24, %v5343_v15  ;;  %v14837_v7 = vpop.f32.mrf.mxu3  ;;  %v5693_v51 = vadd.f32 %v14784_v12, %v5679_v10 }
 0x30d   :  { %6199 = vmatpush.bf16.msrb.mxu0 %v11405_v27  ;;  %v11626_v52 = vld [vmem:[#allocation2 + $0x16b8] sm:$0xf0]  ;;  %6165 = vmatmul.bf16.vlgmr.msra.gmra.mxu1 %v14498_v56  ;;  %v13723_v27 = vld [vmem:[#allocation2 + $0x17ac] sm:$0xf]  ;;  %v11501_v45 = vor.u32 %v13659_v53, %v11498_v11  ;;  %v5691_v56 = vadd.f32 %v14766_v39, %v5677_v6 }
 0x30e   :  { %6213 = vmatpush.bf16.msrb.mxu1 %v11533_v20  ;;  %6179 = vmatmul.bf16.vlgmr.msra.gmra.mxu2 %v14496_v55  ;;  %v11754_v40 = vld [vmem:[#allocation2 + $0x17b8] sm:$0xf0]  ;;  %v11373_v20 = vor.u32 %v13627_v5, %v11370_v4  ;;  %v11629_v13 = vor.u32 %v13691_v35, %v11626_v52  ;;  %v13623_v14 = vld [vmem:[#allocation2 + $0x148c] sm:$0xf]  ;;  %v5707_v38 = vadd.f32 %v14798_v3, %v5693_v51 }
 0x30f   :  { %6227 = vmatpush.bf16.msrb.mxu2 %v11661_v32  ;;  %v15144_v30 = vld [vmem:[#allocation25_spill] sm:$0xff]  ;;  %6193 = vmatmul.bf16.vlgmr.msra.gmra.mxu3 %v14500_v60  ;;  %v15145_v32 = vld [vmem:[#allocation48_spill] sm:$0xff]  ;;  %v11757_v41 = vor.u32 %v13723_v27, %v11754_v40  ;;  %v15146_v46 = vld [vmem:[#allocation26_spill] sm:$0xff]  ;;  %v5705_v28 = vadd.f32 %v14776_v62, %v5691_v56  ;;  %v14852_v39 = vpop.f32.mrf.mxu2  ;;  %v14857_v24 = vpop.f32.mrf.mxu0 }
 0x310   :  { %6241 = vmatpush.bf16.msrb.mxu3 %v11789_v59  ;;  %v5035_v16 = vadd.f32 %v15144_v30, %v5021_v19  ;;  %v5371_v29 = vadd.f32 %v15145_v32, %v5357_v50  ;;  %v11354_v55 = vld [vmem:[#allocation2 + $0x1498] sm:$0xf0]  ;;  %v13655_v57 = vld [vmem:[#allocation2 + $0x158c] sm:$0xf]  ;;  %v5721_v19 = vadd.f32 %v14806_v37, %v5707_v38 }
 0x311   :  { %6200 = vmatpush.bf16.msrb.mxu0 %v11389_v44  ;;  %v11482_v12 = vld [vmem:[#allocation2 + $0x1598] sm:$0xf0]  ;;  %v13687_v59 = vld [vmem:[#allocation2 + $0x168c] sm:$0xf]  ;;  %v11357_v0 = vor.u32 %v13623_v14, %v11354_v55  ;;  %v5719_v40 = vadd.f32 %v14788_v21, %v5705_v28 }
 0x312   :  { %6214 = vmatpush.bf16.msrb.mxu1 %v11517_v8  ;;  %v11610_v60 = vld [vmem:[#allocation2 + $0x1698] sm:$0xf0]  ;;  %v13719_v61 = vld [vmem:[#allocation2 + $0x178c] sm:$0xf]  ;;  %v5049_v15 = vadd.f32 %v15146_v46, %v5035_v16  ;;  %v11485_v3 = vor.u32 %v13655_v57, %v11482_v12  ;;  %v5735_v30 = vadd.f32 %v14810_v49, %v5721_v19  ;;  %v14866_v12 = vpop.f32.mrf.mxu1 }
 0x313   :  { %6228 = vmatpush.bf16.msrb.mxu2 %v11645_v17  ;;  %v11738_v36 = vld [vmem:[#allocation2 + $0x1798] sm:$0xf0]  ;;  %v11613_v8 = vor.u32 %v13687_v59, %v11610_v60  ;;  %v13619_v17 = vld [vmem:[#allocation2 + $0x146c] sm:$0xf]  ;;  %v5733_v55 = vadd.f32 %v14792_v43, %v5719_v40 }
 0x314   :  { %6242 = vmatpush.bf16.msrb.mxu3 %v11773_v2  ;;  %v15147_v10 = vld [vmem:[#allocation49_spill] sm:$0xff]  ;;  %v13651_v4 = vld [vmem:[#allocation2 + $0x156c] sm:$0xf]  ;;  %v11741_v6 = vor.u32 %v13719_v61, %v11738_v36  ;;  %v15149_v35 = vld [vmem:[#allocation50_spill] sm:$0xff]  ;;  %v14861_v51 = vpop.f32.mrf.mxu3  ;;  %v5749_v46 = vadd.f32 %v14818_v9, %v5735_v30 }
 0x315   :  { %6201 = vmatpush.bf16.msrb.mxu0 %v11373_v20  ;;  %v5385_v44 = vadd.f32 %v15147_v10, %v5371_v29  ;;  %v11338_v5 = vld [vmem:[#allocation2 + $0x1478] sm:$0xf0]  ;;  %v15148_v53 = vld [vmem:[#allocation27_spill] sm:$0xff]  ;;  %v15153_v28 = vld [vmem:[#allocation52_spill] sm:$0xff] }
 0x316   :  { %6215 = vmatpush.bf16.msrb.mxu1 %v11501_v45  ;;  %v5063_v31 = vadd.f32 %v15148_v53, %v5049_v15  ;;  %v11466_v62 = vld [vmem:[#allocation2 + $0x1578] sm:$0xf0]  ;;  %v13683_v2 = vld [vmem:[#allocation2 + $0x166c] sm:$0xf]  ;;  %v11341_v16 = vor.u32 %v13619_v17, %v11338_v5  ;;  %v5747_v5 = vadd.f32 %v14800_v23, %v5733_v55 }
 0x317   :  { %6229 = vmatpush.bf16.msrb.mxu2 %v11629_v13  ;;  %v11594_v11 = vld [vmem:[#allocation2 + $0x1678] sm:$0xf0]  ;;  %v5399_v52 = vadd.f32 %v15149_v35, %v5385_v44  ;;  %v13715_v50 = vld [vmem:[#allocation2 + $0x176c] sm:$0xf]  ;;  %v11469_v37 = vor.u32 %v13651_v4, %v11466_v62  ;;  %v14871_v43 = vpop.f32.mrf.mxu2  ;;  %v5763_v4 = vadd.f32 %v14835_v1, %v5749_v46  ;;  %v5818_v23 = vpop.f32.mrf.mxu0  ;;  %v13796_v46 = vld [vmem:[#allocation6 + $0x1ec] sm:$0xf0] }
 0x318   :  { %6243 = vmatpush.bf16.msrb.mxu3 %v11757_v41  ;;  %v11722_v27 = vld [vmem:[#allocation2 + $0x1778] sm:$0xf0]  ;;  %v11597_v20 = vor.u32 %v13683_v2, %v11594_v11  ;;  %v13615_v32 = vld [vmem:[#allocation2 + $0x144c] sm:$0xf]  ;;  %v5761_v35 = vadd.f32 %v14814_v58, %v5747_v5 }
 0x319   :  { %6202 = vmatpush.bf16.msrb.mxu0 %v11357_v0  ;;  %v11322_v29 = vld [vmem:[#allocation2 + $0x1458] sm:$0xf0]  ;;  %v13647_v45 = vld [vmem:[#allocation2 + $0x154c] sm:$0xf]  ;;  %v11725_v57 = vor.u32 %v13715_v50, %v11722_v27  ;;  %v5777_v58 = vadd.f32 %v14847_v22, %v5763_v4 }
 0x31a   :  { %6216 = vmatpush.bf16.msrb.mxu1 %v11485_v3  ;;  %v15150_v13 = vld [vmem:[#allocation28_spill] sm:$0xff]  ;;  %v11450_v21 = vld [vmem:[#allocation2 + $0x1558] sm:$0xf0]  ;;  %v15151_v38 = vld [vmem:[#allocation51_spill] sm:$0xff]  ;;  %v11325_v15 = vor.u32 %v13615_v32, %v11322_v29  ;;  %v5832_v22 = vpop.f32.mrf.mxu1 }
 0x31b   :  { %6230 = vmatpush.bf16.msrb.mxu2 %v11613_v8  ;;  %v5077_v14 = vadd.f32 %v15150_v13, %v5063_v31  ;;  %v13679_v56 = vld [vmem:[#allocation2 + $0x164c] sm:$0xf]  ;;  %v11578_v49 = vld [vmem:[#allocation2 + $0x1658] sm:$0xf0]  ;;  %v5413_v41 = vadd.f32 %v15151_v38, %v5399_v52  ;;  %v11453_v10 = vor.u32 %v13647_v45, %v11450_v21  ;;  %v11904_v38 = vld [vmem:[#allocation6 + $0xe0] sm:$0xf] }
 0x31c   :  { %6244 = vmatpush.bf16.msrb.mxu3 %v11741_v6  ;;  %v13711_v59 = vld [vmem:[#allocation2 + $0x174c] sm:$0xf]  ;;  %v11706_v60 = vld [vmem:[#allocation2 + $0x1758] sm:$0xf0]  ;;  %v11581_v44 = vor.u32 %v13679_v56, %v11578_v49 }
 0x31d   :  { %v15152_v61 = vld [vmem:[#allocation29_spill] sm:$0xff]  ;;  %6203 = vmatpush.bf16.msrb.mxu0 %v11341_v16  ;;  %v5427_v0 = vadd.f32 %v15153_v28, %v5413_v41  ;;  %v13611_v3 = vld [vmem:[#allocation2 + $0x142c] sm:$0xf]  ;;  %v11709_v53 = vor.u32 %v13711_v59, %v11706_v60  ;;  %v15154_v2 = vld [vmem:[#allocation30_spill] sm:$0xff]  ;;  %v14878_v16 = vpop.f32.mrf.mxu3  ;;  %v5775_v60 = vadd.f32 %v14822_v25, %v5761_v35 }
 0x31e   :  { %v5091_v36 = vadd.f32 %v15152_v61, %v5077_v14  ;;  %6217 = vmatpush.bf16.msrb.mxu1 %v11469_v37  ;;  %v11306_v8 = vld [vmem:[#allocation2 + $0x1438] sm:$0xf0]  ;;  %v13643_v17 = vld [vmem:[#allocation2 + $0x152c] sm:$0xf]  ;;  %v13764_v41 = vld [vmem:[#allocation6 + $0xec] sm:$0xf0]  ;;  %v5791_v61 = vadd.f32 %v14852_v39, %v5777_v58 }
 0x31f   :  { %6231 = vmatpush.bf16.msrb.mxu2 %v11597_v20  ;;  %v11434_v9 = vld [vmem:[#allocation2 + $0x1538] sm:$0xf0]  ;;  %v13675_v31 = vld [vmem:[#allocation2 + $0x162c] sm:$0xf]  ;;  %v11309_v52 = vor.u32 %v13611_v3, %v11306_v8  ;;  %v12032_v59 = vld [vmem:[#allocation6 + $0x1e0] sm:$0xf]  ;;  %v5789_v8 = vadd.f32 %v14828_v47, %v5775_v60  ;;  %v11905_v5 = vor.u32 %v13764_v41, %v11904_v38  ;;  %v5846_v39 = vpop.f32.mrf.mxu2 }
 0x320   :  { %6245 = vmatpush.bf16.msrb.mxu3 %v11725_v57  ;;  %v11562_v19 = vld [vmem:[#allocation2 + $0x1638] sm:$0xf0]  ;;  %v13707_v6 = vld [vmem:[#allocation2 + $0x172c] sm:$0xf]  ;;  %v5105_v11 = vadd.f32 %v15154_v2, %v5091_v36  ;;  %v11437_v1 = vor.u32 %v13643_v17, %v11434_v9  ;;  %v13828_v28 = vld [vmem:[#allocation6 + $0x2ec] sm:$0xf0] }
 0x321   :  { %v11690_v62 = vld [vmem:[#allocation2 + $0x1738] sm:$0xf0]  ;;  %6204 = vmatpush.bf16.msrb.mxu0 %v11325_v15  ;;  %v13607_v50 = vld [vmem:[#allocation2 + $0x140c] sm:$0xf]  ;;  %v11565_v37 = vor.u32 %v13675_v31, %v11562_v19  ;;  %v12160_v15 = vld [vmem:[#allocation6 + $0x2e0] sm:$0xf] }
 0x322   :  { %v11290_v27 = vld [vmem:[#allocation2 + $0x1418] sm:$0xf0]  ;;  %6218 = vmatpush.bf16.msrb.mxu1 %v11453_v10  ;;  %v13639_v20 = vld [vmem:[#allocation2 + $0x150c] sm:$0xf]  ;;  %v11693_v14 = vor.u32 %v13707_v6, %v11690_v62  ;;  %v12161_v9 = vor.u32 %v13828_v28, %v12160_v15  ;;  %v11888_v31 = vld [vmem:[#allocation6 + $0xc0] sm:$0xf] }
 0x323   :  { %v15155_v40 = vld [vmem:[#allocation53_spill] sm:$0xff]  ;;  %6232 = vmatpush.bf16.msrb.mxu2 %v11581_v44  ;;  %v13671_v29 = vld [vmem:[#allocation2 + $0x160c] sm:$0xf]  ;;  %v15157_v56 = vld [vmem:[#allocation54_spill] sm:$0xff]  ;;  %v11293_v36 = vor.u32 %v13607_v50, %v11290_v27  ;;  %v14891_v27 = vpop.f32.mrf.mxu0 }
 0x324   :  { %v5441_v30 = vadd.f32 %v15155_v40, %v5427_v0  ;;  %v11418_v32 = vld [vmem:[#allocation2 + $0x1518] sm:$0xf0]  ;;  %v15156_v45 = vld [vmem:[#allocation31_spill] sm:$0xff]  ;;  %6246 = vmatpush.bf16.msrb.mxu3 %v11709_v53  ;;  %v15158_v44 = vld [vmem:[#allocation32_spill] sm:$0xff]  ;;  %v12033_v53 = vor.u32 %v13796_v46, %v12032_v59  ;;  %v5803_v40 = vadd.f32 %v14837_v7, %v5789_v8 }
 0x325   :  { %v5119_v13 = vadd.f32 %v15156_v45, %v5105_v11  ;;  %v11546_v55 = vld [vmem:[#allocation2 + $0x1618] sm:$0xf0]  ;;  %v13703_v57 = vld [vmem:[#allocation2 + $0x170c] sm:$0xf]  ;;  %6205 = vmatpush.bf16.msrb.mxu0 %v11309_v52  ;;  %v11421_v0 = vor.u32 %v13639_v20, %v11418_v32  ;;  %v13760_v19 = vld [vmem:[#allocation6 + $0xcc] sm:$0xf0]  ;;  %v5805_v11 = vadd.f32 %v14861_v51, %v5791_v61 }
 0x326   :  { %v11674_v21 = vld [vmem:[#allocation2 + $0x1718] sm:$0xf0]  ;;  %v5455_v49 = vadd.f32 %v15157_v56, %v5441_v30  ;;  %6219 = vmatpush.bf16.msrb.mxu1 %v11437_v1  ;;  %v11549_v10 = vor.u32 %v13671_v29, %v11546_v55  ;;  %v15159_v25 = vld [vmem:[#allocation55_spill] sm:$0xff]  ;;  %v13792_v35 = vld [vmem:[#allocation6 + $0x1cc] sm:$0xf0]  ;;  %v11889_v1 = vor.u32 %v13760_v19, %v11888_v31  ;;  %v5817_v58 = vadd.f32 %v14857_v24, %v5803_v40 }
 0x327   :  { %6233 = vmatpush.bf16.msrb.mxu2 %v11565_v37  ;;  %v5133_v3 = vadd.f32 %v15158_v44, %v5119_v13  ;;  %v11677_v17 = vor.u32 %v13703_v57, %v11674_v21  ;;  %v12016_v6 = vld [vmem:[#allocation6 + $0x1c0] sm:$0xf]  ;;  %v15160_v62 = vld [vmem:[#allocation33_spill] sm:$0xff]  ;;  %v5819_v30 = vadd.f32 %v5818_v23, %v5805_v11  ;;  %v5860_v37 = vpop.f32.mrf.mxu3  ;;  %v14899_v57 = vpop.f32.mrf.mxu1  ;;  %v15163_v38 = vld [vmem:[#allocation56_spill] sm:$0xff] }
 0x328   :  { %6247 = vmatpush.bf16.msrb.mxu3 %v11693_v14  ;;  %v5469_v4 = vadd.f32 %v15159_v25, %v5455_v49  ;;  %v12144_v52 = vld [vmem:[#allocation6 + $0x2c0] sm:$0xf]  ;;  %v13824_v50 = vld [vmem:[#allocation6 + $0x2cc] sm:$0xf0]  ;;  %v12017_v51 = vor.u32 %v13792_v35, %v12016_v6  ;;  %v14905_v41 = vpop.f32.mrf.mxu2 }
 0x329   :  { %v5147_v2 = vadd.f32 %v15160_v62, %v5133_v3  ;;  %6206 = vmatpush.bf16.msrb.mxu0 %v11293_v36  ;;  %v12145_v20 = vor.u32 %v13824_v50, %v12144_v52  ;;  %v11872_v32 = vld [vmem:[#allocation6 + $0xa0] sm:$0xf]  ;;  %v13756_v29 = vld [vmem:[#allocation6 + $0xac] sm:$0xf0]  ;;  %v5833_v49 = vadd.f32 %v5832_v22, %v5819_v30 }
 0x32a   :  { %v5483_v47 = vadd.f32 %v14699_v54, %v5469_v4  ;;  %6220 = vmatpush.bf16.msrb.mxu1 %v11421_v0  ;;  %v12000_v45 = vld [vmem:[#allocation6 + $0x1a0] sm:$0xf]  ;;  %v13788_v7 = vld [vmem:[#allocation6 + $0x1ac] sm:$0xf0]  ;;  %v11873_v24 = vor.u32 %v13756_v29, %v11872_v32 }
 0x32b   :  { %6234 = vmatpush.bf16.msrb.mxu2 %v11549_v10  ;;  %v15161_v13 = vld [vmem:[#allocation34_spill] sm:$0xff]  ;;  %v13820_v14 = vld [vmem:[#allocation6 + $0x2ac] sm:$0xf0]  ;;  %v15162_v21 = vld [vmem:[#allocation35_spill] sm:$0xff]  ;;  %v5847_v36 = vadd.f32 %v5846_v39, %v5833_v49  ;;  %v5874_v8 = vpop.f32.mrf.mxu0 }
 0x32c   :  { %6248 = vmatpush.bf16.msrb.mxu3 %v11677_v17  ;;  %v5161_v54 = vadd.f32 %v15161_v13, %v5147_v2  ;;  %6207 = vmatmul.bf16.vlgmr.msrb.gmra.mxu0 %v14539_v26  ;;  %v12128_v23 = vld [vmem:[#allocation6 + $0x2a0] sm:$0xf]  ;;  %v5497_v55 = vadd.f32 %v14701_v42, %v5483_v47  ;;  %v13752_v60 = vld [vmem:[#allocation6 + $0x8c] sm:$0xf0] }
 0x32d   :  { %7045 = vmatpush.bf16.msra.mxu0 %v11905_v5  ;;  %6221 = vmatmul.bf16.vlgmr.msrb.gmra.mxu1 %v14543_v34  ;;  %v12001_v34 = vor.u32 %v13788_v7, %v12000_v45  ;;  %v12129_v59 = vor.u32 %v13820_v14, %v12128_v23  ;;  %v11856_v42 = vld [vmem:[#allocation6 + $0x80] sm:$0xf]  ;;  %v13816_v15 = vld [vmem:[#allocation6 + $0x28c] sm:$0xf0]  ;;  %v5861_v31 = vadd.f32 %v5860_v37, %v5847_v36 }
 0x32e   :  { %7059 = vmatpush.bf16.msra.mxu1 %v12033_v53  ;;  %6235 = vmatmul.bf16.vlgmr.msrb.gmra.mxu2 %v14541_v33  ;;  %v5175_v56 = vadd.f32 %v15162_v21, %v5161_v54  ;;  %v5511_v26 = vadd.f32 %v15163_v38, %v5497_v55  ;;  %v11984_v61 = vld [vmem:[#allocation6 + $0x180] sm:$0xf]  ;;  %v5831_v33 = vadd.f32 %v14866_v12, %v5817_v58  ;;  %v15164_v28 = vld [vmem:[#allocation36_spill] sm:$0xff]  ;;  %v15165_v44 = vld [vmem:[#allocation57_spill] sm:$0xff] }
 0x32f   :  { %7073 = vmatpush.bf16.msra.mxu2 %v12161_v9  ;;  %6249 = vmatmul.bf16.vlgmr.msrb.gmra.mxu3 %v14547_v48  ;;  %v13784_v48 = vld [vmem:[#allocation6 + $0x18c] sm:$0xf0]  ;;  %v12112_v46 = vld [vmem:[#allocation6 + $0x280] sm:$0xf]  ;;  %v11857_v10 = vor.u32 %v13752_v60, %v11856_v42  ;;  %v14911_v17 = vpop.f32.mrf.mxu3  ;;  %v5875_v11 = vadd.f32 %v5874_v8, %v5861_v31  ;;  %v5888_v52 = vpop.f32.mrf.mxu1  ;;  %v13762_v8 = vld [vmem:[#allocation6 + $0xe4] sm:$0xf] }
 0x330   :  { %v5189_v22 = vadd.f32 %v15164_v28, %v5175_v56  ;;  %v5845_v0 = vadd.f32 %v14871_v43, %v5831_v33  ;;  %v5525_v3 = vadd.f32 %v15165_v44, %v5511_v26  ;;  %v11985_v5 = vor.u32 %v13784_v48, %v11984_v61  ;;  %v11840_v12 = vld [vmem:[#allocation6 + $0x60] sm:$0xf]  ;;  %v13748_v4 = vld [vmem:[#allocation6 + $0x6c] sm:$0xf0]  ;;  %v5902_v45 = vpop.f32.mrf.mxu2  ;;  %v12162_v31 = vld [vmem:[#allocation6 + $0x2f0] sm:$0xf0] }
 0x331   :  { %7046 = vmatpush.bf16.msra.mxu0 %v11889_v1  ;;  %v12113_v25 = vor.u32 %v13816_v15, %v12112_v46  ;;  %v11968_v39 = vld [vmem:[#allocation6 + $0x160] sm:$0xf]  ;;  %v13780_v19 = vld [vmem:[#allocation6 + $0x16c] sm:$0xf0]  ;;  %v11841_v35 = vor.u32 %v13748_v4, %v11840_v12  ;;  %v5889_v58 = vadd.f32 %v5888_v52, %v5875_v11  ;;  %v12034_v12 = vld [vmem:[#allocation6 + $0x1f0] sm:$0xf0] }
 0x332   :  { %7060 = vmatpush.bf16.msra.mxu1 %v12017_v51  ;;  %v15166_v53 = vld [vmem:[#allocation38_spill] sm:$0xff]  ;;  %v13812_v43 = vld [vmem:[#allocation6 + $0x26c] sm:$0xf0]  ;;  %v5539_v62 = vadd.f32 %v14730_v18, %v5525_v3  ;;  %v5859_v2 = vadd.f32 %v14878_v16, %v5845_v0  ;;  %v11969_v50 = vor.u32 %v13780_v19, %v11968_v39  ;;  %v15167_v51 = vld [vmem:[#allocation39_spill] sm:$0xff] }
 0x333   :  { %7074 = vmatpush.bf16.msra.mxu2 %v12145_v20  ;;  %v5203_v9 = vadd.f32 %v15166_v53, %v5189_v22  ;;  %v12096_v6 = vld [vmem:[#allocation6 + $0x260] sm:$0xf]  ;;  %v13744_v30 = vld [vmem:[#allocation6 + $0x4c] sm:$0xf0]  ;;  %v5903_v38 = vadd.f32 %v5902_v45, %v5889_v58  ;;  %v11874_v58 = vld [vmem:[#allocation6 + $0xb0] sm:$0xf0] }
 0x334   :  { %v12097_v47 = vor.u32 %v13812_v43, %v12096_v6  ;;  %v11824_v40 = vld [vmem:[#allocation6 + $0x40] sm:$0xf]  ;;  %v5873_v20 = vadd.f32 %v14891_v27, %v5859_v2  ;;  %v13776_v32 = vld [vmem:[#allocation6 + $0x14c] sm:$0xf0]  ;;  %v5553_v16 = vadd.f32 %v14732_v63, %v5539_v62 }
 0x335   :  { %7047 = vmatpush.bf16.msra.mxu0 %v11873_v24  ;;  %v11952_v1 = vld [vmem:[#allocation6 + $0x140] sm:$0xf]  ;;  %v5217_v37 = vadd.f32 %v15167_v51, %v5203_v9  ;;  %v13808_v18 = vld [vmem:[#allocation6 + $0x24c] sm:$0xf0]  ;;  %v11825_v7 = vor.u32 %v13744_v30, %v11824_v40  ;;  %v13826_v9 = vld [vmem:[#allocation6 + $0x2e4] sm:$0xf] }
 0x336   :  { %7061 = vmatpush.bf16.msra.mxu1 %v12001_v34  ;;  %v12080_v29 = vld [vmem:[#allocation6 + $0x240] sm:$0xf]  ;;  %v15168_v13 = vld [vmem:[#allocation40_spill] sm:$0xff]  ;;  %v11953_v55 = vor.u32 %v13776_v32, %v11952_v1  ;;  %v5887_v24 = vadd.f32 %v14899_v57, %v5873_v20  ;;  %v15170_v42 = vld [vmem:[#allocation41_spill] sm:$0xff]  ;;  %v12165_v40 = vor.u32 %v13826_v9, %v12162_v31 }
 0x337   :  { %7075 = vmatpush.bf16.msra.mxu2 %v12129_v59  ;;  %v5231_v54 = vadd.f32 %v15168_v13, %v5217_v37  ;;  %v15169_v23 = vld [vmem:[#allocation59_spill] sm:$0xff]  ;;  %v12081_v21 = vor.u32 %v13808_v18, %v12080_v29  ;;  %v13740_v49 = vld [vmem:[#allocation6 + $0x2c] sm:$0xf0]  ;;  %v5916_v59 = vpop.f32.mrf.mxu3  ;;  %v15173_v2 = vld [vmem:[#allocation58_spill] sm:$0xff] }
 0x338   :  { %v5567_v14 = vadd.f32 %v15169_v23, %v5553_v16  ;;  %v11808_v56 = vld [vmem:[#allocation6 + $0x20] sm:$0xf]  ;;  %v13772_v26 = vld [vmem:[#allocation6 + $0x12c] sm:$0xf0]  ;;  %v5901_v61 = vadd.f32 %v14905_v41, %v5887_v24  ;;  %v6256_v11 = vmax.f32 %v15173_v2, 0.0 }
 0x339   :  { %7048 = vmatpush.bf16.msra.mxu0 %v11857_v10  ;;  %v11936_v27 = vld [vmem:[#allocation6 + $0x120] sm:$0xf]  ;;  %v13804_v34 = vld [vmem:[#allocation6 + $0x22c] sm:$0xf0]  ;;  %v5245_v60 = vadd.f32 %v15170_v42, %v5231_v54  ;;  %v11809_v33 = vor.u32 %v13740_v49, %v11808_v56  ;;  %v5917_v10 = vadd.f32 %v5916_v59, %v5903_v38  ;;  %v11890_v30 = vld [vmem:[#allocation6 + $0xd0] sm:$0xf0]  ;;  %v14939_v42 = vpop.f32.mrf.mxu1 }
 0x33a   :  { %7062 = vmatpush.bf16.msra.mxu1 %v11985_v5  ;;  %v12064_v63 = vld [vmem:[#allocation6 + $0x220] sm:$0xf]  ;;  %v15171_v48 = vld [vmem:[#allocation60_spill] sm:$0xff]  ;;  %v11937_v15 = vor.u32 %v13772_v26, %v11936_v27  ;;  %v11906_v5 = vld [vmem:[#allocation6 + $0xf0] sm:$0xf0]  ;;  %v5915_v39 = vadd.f32 %v14911_v17, %v5901_v61  ;;  %v14937_v27 = vpop.f32.mrf.mxu0 }
 0x33b   :  { %7076 = vmatpush.bf16.msra.mxu2 %v12113_v25  ;;  %v11792_v36 = vld [vmem:[#allocation6] sm:$0xf]  ;;  %v5581_v46 = vadd.f32 %v15171_v48, %v5567_v14  ;;  %v12065_v28 = vor.u32 %v13804_v34, %v12064_v63  ;;  %v13736_v22 = vld [vmem:[#allocation6 + $0xc] sm:$0xf0]  ;;  %v13794_v25 = vld [vmem:[#allocation6 + $0x1e4] sm:$0xf]  ;;  %v11909_v52 = vor.u32 %v13762_v8, %v11906_v5 }
 0x33c   :  { %v11920_v57 = vld [vmem:[#allocation6 + $0x100] sm:$0xf]  ;;  %v13768_v0 = vld [vmem:[#allocation6 + $0x10c] sm:$0xf0]  ;;  %v11793_v53 = vor.u32 %v13736_v22, %v11792_v36  ;;  %v6259_v19 = vmax.f32 %v5245_v60, 0.0  ;;  %v6257_v51 = vmax.f32 %v5915_v39, 0.0 }
 0x33d   :  { %7049 = vmatpush.bf16.msra.mxu0 %v11841_v35  ;;  %v12048_v44 = vld [vmem:[#allocation6 + $0x200] sm:$0xf]  ;;  %v13800_v3 = vld [vmem:[#allocation6 + $0x20c] sm:$0xf0]  ;;  %v6260_v6 = vmax.f32 %v5581_v46, 0.0  ;;  %v11921_v43 = vor.u32 %v13768_v0, %v11920_v57  ;;  %v6261_v35 = vmax.f32 %v5917_v10, 0.0  ;;  %v14941_v57 = vpop.f32.mrf.mxu2 }
 0x33e   :  { %7063 = vmatpush.bf16.msra.mxu1 %v11969_v50  ;;  %v15172_v41 = vld [vmem:[#allocation37_spill] sm:$0xff]  ;;  %v12049_v62 = vor.u32 %v13800_v3, %v12048_v44  ;;  %v12037_v50 = vor.u32 %v13794_v25, %v12034_v12  ;;  %v13790_v1 = vld [vmem:[#allocation6 + $0x1c4] sm:$0xf] }
 0x33f   :  { %7077 = vmatpush.bf16.msra.mxu2 %v12097_v47  ;;  %v6255_v4 = vmax.f32 %v15172_v41, 0.0  ;;  %v13758_v47 = vld [vmem:[#allocation6 + $0xc4] sm:$0xf]  ;;  %v12018_v17 = vld [vmem:[#allocation6 + $0x1d0] sm:$0xf0]  ;;  %v14930_v29 = vpack.c.bf16 %v6260_v6, %v6256_v11  ;;  %v14932_v18 = vpack.c.bf16 %v6261_v35, %v6257_v51  ;;  %v14943_v0 = vpop.f32.mrf.mxu3 }
 0x340   :  { %v13822_v37 = vld [vmem:[#allocation6 + $0x2c4] sm:$0xf]  ;;  %v12146_v20 = vld [vmem:[#allocation6 + $0x2d0] sm:$0xf0]  ;;  %v11893_v16 = vor.u32 %v13758_v47, %v11890_v30  ;;  %v12021_v45 = vor.u32 %v13790_v1, %v12018_v17 }
 0x341   :  { %7050 = vmatpush.bf16.msra.mxu0 %v11825_v7  ;;  %v14928_v32 = vpack.c.bf16 %v6259_v19, %v6255_v4  ;;  %v13754_v13 = vld [vmem:[#allocation6 + $0xa4] sm:$0xf]  ;;  %v12149_v54 = vor.u32 %v13822_v37, %v12146_v20  ;;  %v12002_v23 = vld [vmem:[#allocation6 + $0x1b0] sm:$0xf0]  ;;  %v14947_v2 = vpop.f32.mrf.mxu1 }
 0x342   :  { %7064 = vmatpush.bf16.msra.mxu1 %v11953_v55  ;;  %v13786_v7 = vld [vmem:[#allocation6 + $0x1a4] sm:$0xf]  ;;  %v12130_v55 = vld [vmem:[#allocation6 + $0x2b0] sm:$0xf0]  ;;  %v14945_v39 = vpop.f32.mrf.mxu0 }
 0x343   :  { %7078 = vmatpush.bf16.msra.mxu2 %v12081_v21  ;;  %v13818_v14 = vld [vmem:[#allocation6 + $0x2a4] sm:$0xf]  ;;  %v11877_v21 = vor.u32 %v13754_v13, %v11874_v58  ;;  %v12005_v56 = vor.u32 %v13786_v7, %v12002_v23  ;;  %v11858_v38 = vld [vmem:[#allocation6 + $0x90] sm:$0xf0]  ;;  %v13765_v13 = vld [vmem:[#allocation6 + $0xf4] sm:$0xf0] }
 0x344   :  { %v13750_v49 = vld [vmem:[#allocation6 + $0x84] sm:$0xf]  ;;  %v12133_v24 = vor.u32 %v13818_v14, %v12130_v55  ;;  %v11986_v63 = vld [vmem:[#allocation6 + $0x190] sm:$0xf0]  ;;  %v13797_v58 = vld [vmem:[#allocation6 + $0x1f4] sm:$0xf0] }
 0x345   :  { %7051 = vmatpush.bf16.msra.mxu0 %v11809_v33  ;;  %v13782_v26 = vld [vmem:[#allocation6 + $0x184] sm:$0xf]  ;;  %v12114_v59 = vld [vmem:[#allocation6 + $0x290] sm:$0xf0]  ;;  %v11861_v60 = vor.u32 %v13750_v49, %v11858_v38  ;;  %v14949_v20 = vpop.f32.mrf.mxu2  ;;  %v12168_v7 = vld [vmem:[#allocation6 + $0x2e8] sm:$0xf] }
 0x346   :  { %7065 = vmatpush.bf16.msra.mxu1 %v11937_v15  ;;  %v13814_v34 = vld [vmem:[#allocation6 + $0x284] sm:$0xf]  ;;  %v11989_v61 = vor.u32 %v13782_v26, %v11986_v63  ;;  %v11842_v48 = vld [vmem:[#allocation6 + $0x70] sm:$0xf0]  ;;  %v13829_v23 = vld [vmem:[#allocation6 + $0x2f4] sm:$0xf0] }
 0x347   :  { %7079 = vmatpush.bf16.msra.mxu2 %v12065_v28  ;;  %v13746_v33 = vld [vmem:[#allocation6 + $0x64] sm:$0xf]  ;;  %v12117_v36 = vor.u32 %v13814_v34, %v12114_v59  ;;  %v11970_v15 = vld [vmem:[#allocation6 + $0x170] sm:$0xf0]  ;;  %v12169_v38 = vor.u32 %v13829_v23, %v12168_v7  ;;  %v11896_v26 = vld [vmem:[#allocation6 + $0xc8] sm:$0xf] }
 0x348   :  { %v13778_v46 = vld [vmem:[#allocation6 + $0x164] sm:$0xf]  ;;  %v12098_v22 = vld [vmem:[#allocation6 + $0x270] sm:$0xf0]  ;;  %v11845_v10 = vor.u32 %v13746_v33, %v11842_v48  ;;  %v13761_v63 = vld [vmem:[#allocation6 + $0xd4] sm:$0xf0] }
 0x349   :  { %7052 = vmatpush.bf16.msra.mxu0 %v11793_v53  ;;  %v13810_v28 = vld [vmem:[#allocation6 + $0x264] sm:$0xf]  ;;  %v11973_v44 = vor.u32 %v13778_v46, %v11970_v15  ;;  %v11826_v5 = vld [vmem:[#allocation6 + $0x50] sm:$0xf0]  ;;  %v12024_v34 = vld [vmem:[#allocation6 + $0x1c8] sm:$0xf]  ;;  %v14955_v33 = vpop.f32.mrf.mxu1 }
 0x34a   :  { %7066 = vmatpush.bf16.msra.mxu1 %v11921_v43  ;;  %v13742_v3 = vld [vmem:[#allocation6 + $0x44] sm:$0xf]  ;;  %v12101_v8 = vor.u32 %v13810_v28, %v12098_v22  ;;  %v11954_v12 = vld [vmem:[#allocation6 + $0x150] sm:$0xf0]  ;;  %v13793_v59 = vld [vmem:[#allocation6 + $0x1d4] sm:$0xf0] }
 0x34b   :  { %7080 = vmatpush.bf16.msra.mxu2 %v12049_v62  ;;  %v13774_v25 = vld [vmem:[#allocation6 + $0x144] sm:$0xf]  ;;  %v12082_v4 = vld [vmem:[#allocation6 + $0x250] sm:$0xf0]  ;;  %v11829_v53 = vor.u32 %v13742_v3, %v11826_v5  ;;  %v11880_v48 = vld [vmem:[#allocation6 + $0xa8] sm:$0xf]  ;;  %v12025_v15 = vor.u32 %v13793_v59, %v12024_v34 }
 0x34c   :  { %7053 = vmatmul.bf16.vlgmr.msra.gmra.mxu0 %v14928_v32  ;;  %v13806_v41 = vld [vmem:[#allocation6 + $0x244] sm:$0xf]  ;;  %v11957_v9 = vor.u32 %v13774_v25, %v11954_v12  ;;  %v11810_v6 = vld [vmem:[#allocation6 + $0x30] sm:$0xf0]  ;;  %v13757_v46 = vld [vmem:[#allocation6 + $0xb4] sm:$0xf0] }
 0x34d   :  { %7101 = vmatpush.bf16.msrb.mxu0 %v11909_v52  ;;  %7067 = vmatmul.bf16.vlgmr.msra.gmra.mxu1 %v14930_v29  ;;  %v13738_v31 = vld [vmem:[#allocation6 + $0x24] sm:$0xf]  ;;  %v12085_v19 = vor.u32 %v13806_v41, %v12082_v4  ;;  %v11938_v62 = vld [vmem:[#allocation6 + $0x130] sm:$0xf0]  ;;  %v12008_v22 = vld [vmem:[#allocation6 + $0x1a8] sm:$0xf]  ;;  %v14959_v41 = vpop.f32.mrf.mxu2 }
 0x34e   :  { %7115 = vmatpush.bf16.msrb.mxu1 %v12037_v50  ;;  %7081 = vmatmul.bf16.vlgmr.msra.gmra.mxu2 %v14932_v18  ;;  %v13770_v43 = vld [vmem:[#allocation6 + $0x124] sm:$0xf]  ;;  %v12066_v35 = vld [vmem:[#allocation6 + $0x230] sm:$0xf0]  ;;  %v11813_v52 = vor.u32 %v13738_v31, %v11810_v6  ;;  %v13821_v3 = vld [vmem:[#allocation6 + $0x2b4] sm:$0xf0] }
 0x34f   :  { %7129 = vmatpush.bf16.msrb.mxu2 %v12165_v40  ;;  %v13802_v11 = vld [vmem:[#allocation6 + $0x224] sm:$0xf]  ;;  %v11941_v50 = vor.u32 %v13770_v43, %v11938_v62  ;;  %v11794_v40 = vld [vmem:[#allocation6 + $0x10] sm:$0xf0]  ;;  %v13860_v5 = vld [vmem:[#allocation6 + $0x3ec] sm:$0xf0] }
 0x350   :  { %v13734_v47 = vld [vmem:[#allocation6 + $0x4] sm:$0xf]  ;;  %v12069_v1 = vor.u32 %v13802_v11, %v12066_v35  ;;  %v11922_v17 = vld [vmem:[#allocation6 + $0x110] sm:$0xf0]  ;;  %v14037_v25 = vld [vmem:[#allocation4] sm:$0xf] }
 0x351   :  { %7102 = vmatpush.bf16.msrb.mxu0 %v11893_v16  ;;  %v13766_v30 = vld [vmem:[#allocation6 + $0x104] sm:$0xf]  ;;  %v12050_v37 = vld [vmem:[#allocation6 + $0x210] sm:$0xf0]  ;;  %v14951_v16 = vpop.f32.mrf.mxu3  ;;  %v11797_v14 = vor.u32 %v13734_v47, %v11794_v40  ;;  %v946_v12 = vperm.slane %v14037_v25, 3 }
 0x352   :  { %7116 = vmatpush.bf16.msrb.mxu1 %v12021_v45  ;;  %v13798_v51 = vld [vmem:[#allocation6 + $0x204] sm:$0xf]  ;;  %v11912_v45 = vld [vmem:[#allocation6 + $0xe8] sm:$0xf]  ;;  %v11925_v55 = vor.u32 %v13766_v30, %v11922_v17  ;;  %v12272_v11 = vld [vmem:[#allocation6 + $0x3c0] sm:$0xf] }
 0x353   :  { %7130 = vmatpush.bf16.msrb.mxu2 %v12149_v54  ;;  %v12040_v54 = vld [vmem:[#allocation6 + $0x1e8] sm:$0xf]  ;;  %v11913_v49 = vor.u32 %v13765_v13, %v11912_v45  ;;  %v13856_v35 = vld [vmem:[#allocation6 + $0x3cc] sm:$0xf0]  ;;  %v13817_v40 = vld [vmem:[#allocation6 + $0x294] sm:$0xf0]  ;;  %v14967_v45 = vpop.f32.mrf.mxu1 }
 0x354   :  { %v11864_v31 = vld [vmem:[#allocation6 + $0x88] sm:$0xf]  ;;  %v12273_v30 = vor.u32 %v13856_v35, %v12272_v11  ;;  %v12256_v7 = vld [vmem:[#allocation6 + $0x3a0] sm:$0xf]  ;;  %v13852_v23 = vld [vmem:[#allocation6 + $0x3ac] sm:$0xf0] }
 0x355   :  { %7103 = vmatpush.bf16.msrb.mxu0 %v11877_v21  ;;  %v14953_v21 = vpop.f32.mrf.mxu0  ;;  %v11992_v62 = vld [vmem:[#allocation6 + $0x188] sm:$0xf] }
 0x356   :  { %7117 = vmatpush.bf16.msrb.mxu1 %v12005_v56  ;;  %v12053_v56 = vor.u32 %v13798_v51, %v12050_v37  ;;  %v12120_v47 = vld [vmem:[#allocation6 + $0x288] sm:$0xf]  ;;  %v13749_v37 = vld [vmem:[#allocation6 + $0x74] sm:$0xf0] }
 0x357   :  { %7131 = vmatpush.bf16.msrb.mxu2 %v12133_v24  ;;  %v12041_v24 = vor.u32 %v13797_v58, %v12040_v54  ;;  %v11848_v51 = vld [vmem:[#allocation6 + $0x68] sm:$0xf]  ;;  %v12121_v54 = vor.u32 %v13817_v40, %v12120_v47  ;;  %v13737_v47 = vld [vmem:[#allocation6 + $0x14] sm:$0xf0] }
 0x358   :  { %v11976_v58 = vld [vmem:[#allocation6 + $0x168] sm:$0xf] }
 0x359   :  { %7104 = vmatpush.bf16.msrb.mxu0 %v11861_v60  ;;  %v12152_v60 = vld [vmem:[#allocation6 + $0x2c8] sm:$0xf]  ;;  %v14961_v4 = vpop.f32.mrf.mxu3 }
 0x35a   :  { %7118 = vmatpush.bf16.msrb.mxu1 %v11989_v61  ;;  %v13825_v61 = vld [vmem:[#allocation6 + $0x2d4] sm:$0xf0]  ;;  %v11928_v40 = vld [vmem:[#allocation6 + $0x108] sm:$0xf] }
 0x35b   :  { %7132 = vmatpush.bf16.msrb.mxu2 %v12117_v36  ;;  %v11897_v36 = vor.u32 %v13761_v63, %v11896_v26  ;;  %v12153_v28 = vor.u32 %v13825_v61, %v12152_v60  ;;  %v13745_v26 = vld [vmem:[#allocation6 + $0x54] sm:$0xf0]  ;;  %v14970_v63 = vpop.f32.mrf.mxu2  ;;  %v11960_v61 = vld [vmem:[#allocation6 + $0x148] sm:$0xf]  ;;  %v14978_v25 = vpop.f32.mrf.mxu1 }
 0x35d   :  { %7105 = vmatpush.bf16.msrb.mxu0 %v11845_v10  ;;  %v13789_v10 = vld [vmem:[#allocation6 + $0x1b4] sm:$0xf0] }
 0x35e   :  { %7119 = vmatpush.bf16.msrb.mxu1 %v11973_v44  ;;  %v12136_v44 = vld [vmem:[#allocation6 + $0x2a8] sm:$0xf]  ;;  %v12009_v6 = vor.u32 %v13789_v10, %v12008_v22  ;;  %v13809_v22 = vld [vmem:[#allocation6 + $0x254] sm:$0xf0] }
 0x35f   :  { %7133 = vmatpush.bf16.msrb.mxu2 %v12101_v8  ;;  %v12288_v8 = vld [vmem:[#allocation6 + $0x3e0] sm:$0xf]  ;;  %v12137_v43 = vor.u32 %v13821_v3, %v12136_v44 }
 0x361   :  { %7106 = vmatpush.bf16.msrb.mxu0 %v11829_v53  ;;  %v12289_v53 = vor.u32 %v13860_v5, %v12288_v8  ;;  %v14972_v34 = vpop.f32.mrf.mxu3  ;;  %v11816_v8 = vld [vmem:[#allocation6 + $0x28] sm:$0xf]  ;;  %v13741_v5 = vld [vmem:[#allocation6 + $0x34] sm:$0xf0] }
 0x362   :  { %7120 = vmatpush.bf16.msrb.mxu1 %v11957_v9  ;;  %v11881_v9 = vor.u32 %v13757_v46, %v11880_v48  ;;  %v13848_v48 = vld [vmem:[#allocation6 + $0x38c] sm:$0xf0]  ;;  %v5931_v46 = vadd.f32 %v14945_v39, %v946_v12  ;;  %v11944_v39 = vld [vmem:[#allocation6 + $0x128] sm:$0xf]  ;;  %v11817_v35 = vor.u32 %v13741_v5, %v11816_v8  ;;  %v13823_v8 = vld [vmem:[#allocation6 + $0x2cc] sm:$0xf] }
 0x363   :  { %7134 = vmatpush.bf16.msrb.mxu2 %v12085_v19  ;;  %v13753_v19 = vld [vmem:[#allocation6 + $0x94] sm:$0xf0]  ;;  %7087 = vmatpush.bf16.msra.mxu3 %v12289_v53  ;;  %v12154_v5 = vld [vmem:[#allocation6 + $0x2d8] sm:$0xf0] }
 0x364   :  { %v11865_v17 = vor.u32 %v13753_v19, %v11864_v31  ;;  %v12072_v31 = vld [vmem:[#allocation6 + $0x228] sm:$0xf]  ;;  %v5945_v19 = vadd.f32 %v14947_v2, %v5931_v46  ;;  %v13836_v46 = vld [vmem:[#allocation6 + $0x32c] sm:$0xf0] }
 0x365   :  { %7107 = vmatpush.bf16.msrb.mxu0 %v11813_v52  ;;  %v14964_v52 = vpop.f32.mrf.mxu0 }
 0x366   :  { %7121 = vmatpush.bf16.msrb.mxu1 %v11941_v50  ;;  %v13785_v50 = vld [vmem:[#allocation6 + $0x194] sm:$0xf0] }
 0x367   :  { %7135 = vmatpush.bf16.msrb.mxu2 %v12069_v1  ;;  %v5929_v1 = vadd.f32 %v14937_v27, %v946_v12  ;;  %v11993_v13 = vor.u32 %v13785_v50, %v11992_v62  ;;  %7088 = vmatpush.bf16.msra.mxu3 %v12273_v30  ;;  %v13773_v12 = vld [vmem:[#allocation6 + $0x134] sm:$0xf0]  ;;  %v13844_v62 = vld [vmem:[#allocation6 + $0x36c] sm:$0xf0]  ;;  %v11800_v50 = vld [vmem:[#allocation6 + $0x8] sm:$0xf]  ;;  %v14982_v30 = vpop.f32.mrf.mxu2 }
 0x369   :  { %7108 = vmatpush.bf16.msrb.mxu0 %v11797_v14  ;;  %v13781_v14 = vld [vmem:[#allocation6 + $0x174] sm:$0xf0]  ;;  %v5943_v27 = vadd.f32 %v14939_v42, %v5929_v1  ;;  %v14984_v1 = vpop.f32.mrf.mxu3 }
 0x36a   :  { %7122 = vmatpush.bf16.msrb.mxu1 %v11925_v55  ;;  %v12104_v55 = vld [vmem:[#allocation6 + $0x268] sm:$0xf]  ;;  %v11977_v59 = vor.u32 %v13781_v14, %v11976_v58  ;;  %v13777_v42 = vld [vmem:[#allocation6 + $0x154] sm:$0xf0] }
 0x36b   :  { %7136 = vmatpush.bf16.msrb.mxu2 %v12053_v56  ;;  %v13813_v56 = vld [vmem:[#allocation6 + $0x274] sm:$0xf0]  ;;  %v5957_v44 = vadd.f32 %v14941_v57, %v5943_v27  ;;  %v11961_v53 = vor.u32 %v13777_v42, %v11960_v61 }
 0x36c   :  { %7109 = vmatmul.bf16.vlgmr.msrb.gmra.mxu0 %v14928_v32  ;;  %v12105_v60 = vor.u32 %v13813_v56, %v12104_v55  ;;  %v13801_v58 = vld [vmem:[#allocation6 + $0x214] sm:$0xf0]  ;;  %v11914_v55 = vld [vmem:[#allocation6 + $0xf8] sm:$0xf0]  ;;  %v13795_v56 = vld [vmem:[#allocation6 + $0x1ec] sm:$0xf] }
 0x36d   :  { %7157 = vmatpush.bf16.msra.mxu0 %v11913_v49  ;;  %7123 = vmatmul.bf16.vlgmr.msrb.gmra.mxu1 %v14930_v29  ;;  %v12257_v49 = vor.u32 %v13852_v23, %v12256_v7  ;;  %v5971_v57 = vadd.f32 %v14943_v0, %v5957_v44  ;;  %v12056_v0 = vld [vmem:[#allocation6 + $0x208] sm:$0xf]  ;;  %v13763_v7 = vld [vmem:[#allocation6 + $0xec] sm:$0xf] }
 0x36e   :  { %7171 = vmatpush.bf16.msra.mxu1 %v12041_v24  ;;  %7137 = vmatmul.bf16.vlgmr.msrb.gmra.mxu2 %v14932_v18  ;;  %v11849_v24 = vor.u32 %v13749_v37, %v11848_v51  ;;  %v13769_v51 = vld [vmem:[#allocation6 + $0x114] sm:$0xf0]  ;;  %v12208_v37 = vld [vmem:[#allocation6 + $0x340] sm:$0xf]  ;;  %v11917_v61 = vor.u32 %v13763_v7, %v11914_v55  ;;  %v13791_v44 = vld [vmem:[#allocation6 + $0x1cc] sm:$0xf] }
 0x36f   :  { %7185 = vmatpush.bf16.msra.mxu2 %v12169_v38  ;;  %v11832_v38 = vld [vmem:[#allocation6 + $0x48] sm:$0xf]  ;;  %7089 = vmatpush.bf16.msra.mxu3 %v12257_v49  ;;  %v5985_v14 = vadd.f32 %v14953_v21, %v5971_v57  ;;  %v12042_v49 = vld [vmem:[#allocation6 + $0x1f8] sm:$0xf0]  ;;  %v12192_v21 = vld [vmem:[#allocation6 + $0x320] sm:$0xf]  ;;  %v12157_v57 = vor.u32 %v13823_v8, %v12154_v5 }
 0x370   :  { %v11833_v3 = vor.u32 %v13745_v26, %v11832_v38  ;;  %v13827_v38 = vld [vmem:[#allocation6 + $0x2ec] sm:$0xf]  ;;  %v12170_v26 = vld [vmem:[#allocation6 + $0x2f8] sm:$0xf0] }
 0x371   :  { %7158 = vmatpush.bf16.msra.mxu0 %v11897_v36  ;;  %v12240_v36 = vld [vmem:[#allocation6 + $0x380] sm:$0xf]  ;;  %v5999_v42 = vadd.f32 %v14955_v33, %v5985_v14  ;;  %v11882_v33 = vld [vmem:[#allocation6 + $0xb8] sm:$0xf0]  ;;  %v13815_v55 = vld [vmem:[#allocation6 + $0x28c] sm:$0xf] }
 0x372   :  { %7172 = vmatpush.bf16.msra.mxu1 %v12025_v15  ;;  %v14975_v15 = vpop.f32.mrf.mxu0  ;;  %v12241_v10 = vor.u32 %v13848_v48, %v12240_v36  ;;  %v12045_v36 = vor.u32 %v13795_v56, %v12042_v49  ;;  %v13759_v48 = vld [vmem:[#allocation6 + $0xcc] sm:$0xf]  ;;  %v11994_v14 = vld [vmem:[#allocation6 + $0x198] sm:$0xf0] }
 0x373   :  { %7186 = vmatpush.bf16.msra.mxu2 %v12153_v28  ;;  %v12088_v28 = vld [vmem:[#allocation6 + $0x248] sm:$0xf] }
 0x374   :  { %7090 = vmatpush.bf16.msra.mxu3 %v12241_v10  ;;  %v11898_v10 = vld [vmem:[#allocation6 + $0xd8] sm:$0xf0] }
 0x375   :  { %7159 = vmatpush.bf16.msra.mxu0 %v11881_v9  ;;  %v12089_v9 = vor.u32 %v13809_v22, %v12088_v28  ;;  %v14992_v28 = vpop.f32.mrf.mxu1  ;;  %v12173_v22 = vor.u32 %v13827_v38, %v12170_v26  ;;  %v12274_v38 = vld [vmem:[#allocation6 + $0x3d0] sm:$0xf0] }
 0x376   :  { %7173 = vmatpush.bf16.msra.mxu1 %v12009_v6  ;;  %v13805_v6 = vld [vmem:[#allocation6 + $0x234] sm:$0xf0] }
 0x377   :  { %7187 = vmatpush.bf16.msra.mxu2 %v12137_v43  ;;  %v12224_v43 = vld [vmem:[#allocation6 + $0x360] sm:$0xf]  ;;  %v12073_v2 = vor.u32 %v13805_v6, %v12072_v31  ;;  %v6013_v6 = vadd.f32 %v14959_v41, %v5999_v42  ;;  %v12290_v41 = vld [vmem:[#allocation6 + $0x3f0] sm:$0xf0] }
 0x378   :  { %v12225_v11 = vor.u32 %v13844_v62, %v12224_v43  ;;  %v12176_v31 = vld [vmem:[#allocation6 + $0x300] sm:$0xf]  ;;  %v14996_v43 = vpop.f32.mrf.mxu2  ;;  %v14998_v62 = vpop.f32.mrf.mxu3 }
 0x379   :  { %7160 = vmatpush.bf16.msra.mxu0 %v11865_v17  ;;  %v11945_v17 = vor.u32 %v13773_v12, %v11944_v39  ;;  %v11901_v39 = vor.u32 %v13759_v48, %v11898_v10  ;;  %v13850_v10 = vld [vmem:[#allocation6 + $0x3a4] sm:$0xf] }
 0x37a   :  { %7174 = vmatpush.bf16.msra.mxu1 %v11993_v13  ;;  %v13840_v13 = vld [vmem:[#allocation6 + $0x34c] sm:$0xf0]  ;;  %7091 = vmatpush.bf16.msra.mxu3 %v12225_v11  ;;  %v14988_v27 = vpop.f32.mrf.mxu0  ;;  %v13787_v11 = vld [vmem:[#allocation6 + $0x1ac] sm:$0xf] }
 0x37b   :  { %7188 = vmatpush.bf16.msra.mxu2 %v12121_v54  ;;  %v5959_v54 = vadd.f32 %v14949_v20, %v5945_v19  ;;  %v12209_v23 = vor.u32 %v13840_v13, %v12208_v37  ;;  %v12057_v20 = vor.u32 %v13801_v58, %v12056_v0  ;;  %v13832_v19 = vld [vmem:[#allocation6 + $0x30c] sm:$0xf0]  ;;  %v13751_v13 = vld [vmem:[#allocation6 + $0x8c] sm:$0xf]  ;;  %v6027_v0 = vadd.f32 %v14961_v4, %v6013_v6 }
 0x37d   :  { %7161 = vmatpush.bf16.msra.mxu0 %v11849_v24  ;;  %v11801_v24 = vor.u32 %v13737_v47, %v11800_v50  ;;  %v12138_v47 = vld [vmem:[#allocation6 + $0x2b8] sm:$0xf0]  ;;  %v15007_v58 = vpop.f32.mrf.mxu1  ;;  %v6041_v26 = vadd.f32 %v14975_v15, %v6027_v0 }
 0x37e   :  { %7175 = vmatpush.bf16.msra.mxu1 %v11977_v59  ;;  %v11929_v59 = vor.u32 %v13769_v51, %v11928_v40  ;;  %7092 = vmatpush.bf16.msra.mxu3 %v12209_v23  ;;  %v13858_v40 = vld [vmem:[#allocation6 + $0x3e4] sm:$0xf]  ;;  %v13783_v23 = vld [vmem:[#allocation6 + $0x18c] sm:$0xf]  ;;  %v12074_v0 = vld [vmem:[#allocation6 + $0x238] sm:$0xf0] }
 0x37f   :  { %7189 = vmatpush.bf16.msra.mxu2 %v12105_v60  ;;  %v5973_v60 = vadd.f32 %v14951_v16, %v5959_v54  ;;  %v13755_v16 = vld [vmem:[#allocation6 + $0xac] sm:$0xf]  ;;  %v11866_v54 = vld [vmem:[#allocation6 + $0x98] sm:$0xf0]  ;;  %v12293_v56 = vor.u32 %v13858_v40, %v12290_v41  ;;  %v11997_v4 = vor.u32 %v13783_v23, %v11994_v14 }
 0x380   :  { %v11885_v51 = vor.u32 %v13755_v16, %v11882_v33  ;;  %v13739_v40 = vld [vmem:[#allocation6 + $0x2c] sm:$0xf]  ;;  %v11818_v41 = vld [vmem:[#allocation6 + $0x38] sm:$0xf0] }
 0x381   :  { %7162 = vmatpush.bf16.msra.mxu0 %v11833_v3  ;;  %v12026_v3 = vld [vmem:[#allocation6 + $0x1d8] sm:$0xf0] }
 0x382   :  { %7176 = vmatpush.bf16.msra.mxu1 %v11961_v53  ;;  %v12193_v53 = vor.u32 %v13836_v46, %v12192_v21  ;;  %v12029_v12 = vor.u32 %v13791_v44, %v12026_v3  ;;  %v15001_v50 = vpop.f32.mrf.mxu0  ;;  %v13779_v21 = vld [vmem:[#allocation6 + $0x16c] sm:$0xf]  ;;  %v12258_v44 = vld [vmem:[#allocation6 + $0x3b0] sm:$0xf0]  ;;  %v6055_v3 = vadd.f32 %v14978_v25, %v6041_v26  ;;  %v13846_v25 = vld [vmem:[#allocation6 + $0x384] sm:$0xf] }
 0x383   :  { %7190 = vmatpush.bf16.msra.mxu2 %v12089_v9  ;;  %v5987_v9 = vadd.f32 %v14964_v52, %v5973_v60  ;;  %v13819_v52 = vld [vmem:[#allocation6 + $0x2ac] sm:$0xf]  ;;  %v11850_v60 = vld [vmem:[#allocation6 + $0x78] sm:$0xf0]  ;;  %v12261_v6 = vor.u32 %v13850_v10, %v12258_v44 }
 0x384   :  { %7093 = vmatpush.bf16.msra.mxu3 %v12193_v53  ;;  %v12141_v7 = vor.u32 %v13819_v52, %v12138_v47  ;;  %v13811_v46 = vld [vmem:[#allocation6 + $0x26c] sm:$0xf] }
 0x385   :  { %7163 = vmatpush.bf16.msra.mxu0 %v11817_v35  ;;  %v12010_v35 = vld [vmem:[#allocation6 + $0x1b8] sm:$0xf0]  ;;  %v13767_v26 = vld [vmem:[#allocation6 + $0x10c] sm:$0xf] }
 0x386   :  { %7177 = vmatpush.bf16.msra.mxu1 %v11945_v17  ;;  %v12177_v17 = vor.u32 %v13832_v19, %v12176_v31  ;;  %v12013_v37 = vor.u32 %v13787_v11, %v12010_v35  ;;  %v13775_v31 = vld [vmem:[#allocation6 + $0x14c] sm:$0xf]  ;;  %v12242_v11 = vld [vmem:[#allocation6 + $0x390] sm:$0xf0] }
 0x387   :  { %7191 = vmatpush.bf16.msra.mxu2 %v12073_v2  ;;  %v6001_v2 = vadd.f32 %v14967_v45, %v5987_v9  ;;  %v13854_v45 = vld [vmem:[#allocation6 + $0x3c4] sm:$0xf]  ;;  %v13743_v9 = vld [vmem:[#allocation6 + $0x4c] sm:$0xf] }
 0x388   :  { %7094 = vmatpush.bf16.msra.mxu3 %v12177_v17  ;;  %v12277_v42 = vor.u32 %v13854_v45, %v12274_v38  ;;  %v13807_v19 = vld [vmem:[#allocation6 + $0x24c] sm:$0xf]  ;;  %v11802_v45 = vld [vmem:[#allocation6 + $0x18] sm:$0xf0] }
 0x389   :  { %7164 = vmatpush.bf16.msra.mxu0 %v11801_v24  ;;  %v6015_v49 = vadd.f32 %v14970_v63, %v6001_v2  ;;  %v12122_v24 = vld [vmem:[#allocation6 + $0x298] sm:$0xf0]  ;;  %v13771_v2 = vld [vmem:[#allocation6 + $0x12c] sm:$0xf] }
 0x38a   :  { %7178 = vmatpush.bf16.msra.mxu1 %v11929_v59  ;;  %v11869_v59 = vor.u32 %v13751_v13, %v11866_v54  ;;  %v12125_v48 = vor.u32 %v13815_v55, %v12122_v24  ;;  %v11978_v63 = vld [vmem:[#allocation6 + $0x178] sm:$0xf0]  ;;  %v6098_v5 = vpop.f32.mrf.mxu0  ;;  %v12245_v13 = vor.u32 %v13846_v25, %v12242_v11  ;;  %v13735_v24 = vld [vmem:[#allocation6 + $0xc] sm:$0xf] }
 0x38b   :  { %7192 = vmatpush.bf16.msra.mxu2 %v12057_v20  ;;  %v13747_v20 = vld [vmem:[#allocation6 + $0x6c] sm:$0xf]  ;;  %v6029_v15 = vadd.f32 %v14972_v34, %v6015_v49  ;;  %v11981_v53 = vor.u32 %v13779_v21, %v11978_v63  ;;  %v11962_v34 = vld [vmem:[#allocation6 + $0x158] sm:$0xf0] }
 0x38c   :  { %7165 = vmatmul.bf16.vlgmr.msra.gmra.mxu0 %v14928_v32  ;;  %7143 = vmatpush.bf16.msrb.mxu3 %v12293_v56  ;;  %v11853_v16 = vor.u32 %v13747_v20, %v11850_v60  ;;  %v11965_v47 = vor.u32 %v13775_v31, %v11962_v34  ;;  %v12058_v60 = vld [vmem:[#allocation6 + $0x218] sm:$0xf0] }
 0x38d   :  { %7213 = vmatpush.bf16.msrb.mxu0 %v11917_v61  ;;  %7179 = vmatmul.bf16.vlgmr.msra.gmra.mxu1 %v14930_v29  ;;  %v15011_v61 = vpop.f32.mrf.mxu2  ;;  %v6043_v8 = vadd.f32 %v14988_v27, %v6029_v15  ;;  %v6112_v27 = vpop.f32.mrf.mxu1 }
 0x38e   :  { %7227 = vmatpush.bf16.msrb.mxu1 %v12045_v36  ;;  %7193 = vmatmul.bf16.vlgmr.msra.gmra.mxu2 %v14932_v18  ;;  %v15013_v36 = vpop.f32.mrf.mxu3 }
 0x38f   :  { %7241 = vmatpush.bf16.msrb.mxu2 %v12173_v22  ;;  %v12106_v22 = vld [vmem:[#allocation6 + $0x278] sm:$0xf0]  ;;  %v6057_v35 = vadd.f32 %v14992_v28, %v6043_v8  ;;  %v12226_v28 = vld [vmem:[#allocation6 + $0x370] sm:$0xf0] }
 0x390   :  { %v12109_v33 = vor.u32 %v13811_v46, %v12106_v22  ;;  %7144 = vmatpush.bf16.msrb.mxu3 %v12277_v42  ;;  %v11805_v42 = vor.u32 %v13735_v24, %v11802_v45  ;;  %v12194_v8 = vld [vmem:[#allocation6 + $0x330] sm:$0xf0]  ;;  %v12280_v45 = vld [vmem:[#allocation6 + $0x3c8] sm:$0xf] }
 0x391   :  { %7214 = vmatpush.bf16.msrb.mxu0 %v11901_v39  ;;  %v11834_v39 = vld [vmem:[#allocation6 + $0x58] sm:$0xf0]  ;;  %v6071_v54 = vadd.f32 %v14996_v43, %v6057_v35 }
 0x392   :  { %7228 = vmatpush.bf16.msrb.mxu1 %v12029_v12  ;;  %v6069_v12 = vadd.f32 %v14982_v30, %v6055_v3  ;;  %v11837_v52 = vor.u32 %v13743_v9, %v11834_v39  ;;  %v6152_v56 = vpop.f32.mrf.mxu0  ;;  %v13834_v3 = vld [vmem:[#allocation6 + $0x324] sm:$0xf] }
 0x393   :  { %7242 = vmatpush.bf16.msrb.mxu2 %v12157_v57  ;;  %v12090_v57 = vld [vmem:[#allocation6 + $0x258] sm:$0xf0]  ;;  %v6085_v20 = vadd.f32 %v14998_v62, %v6071_v54 }
 0x394   :  { %v6083_v30 = vadd.f32 %v14984_v1, %v6069_v12  ;;  %v12093_v17 = vor.u32 %v13807_v19, %v12090_v57  ;;  %7145 = vmatpush.bf16.msrb.mxu3 %v12261_v6  ;;  %v11821_v1 = vor.u32 %v13739_v40, %v11818_v41  ;;  %v13830_v12 = vld [vmem:[#allocation6 + $0x304] sm:$0xf] }
 0x395   :  { %7215 = vmatpush.bf16.msrb.mxu0 %v11885_v51  ;;  %v11946_v51 = vld [vmem:[#allocation6 + $0x138] sm:$0xf0]  ;;  %v6126_v14 = vpop.f32.mrf.mxu2  ;;  %v6166_v63 = vpop.f32.mrf.mxu1  ;;  %v6099_v46 = vadd.f32 %v6098_v5, %v6085_v20  ;;  %v12248_v20 = vld [vmem:[#allocation6 + $0x388] sm:$0xf] }
 0x396   :  { %7229 = vmatpush.bf16.msrb.mxu1 %v12013_v37  ;;  %v13803_v37 = vld [vmem:[#allocation6 + $0x22c] sm:$0xf]  ;;  %v6097_v23 = vadd.f32 %v15001_v50, %v6083_v30  ;;  %v6140_v55 = vpop.f32.mrf.mxu3  ;;  %v11949_v49 = vor.u32 %v13771_v2, %v11946_v51  ;;  %v13838_v50 = vld [vmem:[#allocation6 + $0x344] sm:$0xf] }
 0x397   :  { %7243 = vmatpush.bf16.msrb.mxu2 %v12141_v7  ;;  %v13842_v7 = vld [vmem:[#allocation6 + $0x364] sm:$0xf]  ;;  %v12077_v38 = vor.u32 %v13803_v37, %v12074_v0 }
 0x398   :  { %7146 = vmatpush.bf16.msrb.mxu3 %v12245_v13  ;;  %v12229_v43 = vor.u32 %v13842_v7, %v12226_v28  ;;  %v6111_v21 = vadd.f32 %v15007_v58, %v6097_v23  ;;  %v12197_v58 = vor.u32 %v13834_v3, %v12194_v8  ;;  %v12184_v3 = vld [vmem:[#allocation6 + $0x308] sm:$0xf]  ;;  %v13833_v8 = vld [vmem:[#allocation6 + $0x314] sm:$0xf0] }
 0x399   :  { %7216 = vmatpush.bf16.msrb.mxu0 %v11869_v59  ;;  %v11930_v59 = vld [vmem:[#allocation6 + $0x118] sm:$0xf0] }
 0x39a   :  { %7230 = vmatpush.bf16.msrb.mxu1 %v11997_v4  ;;  %v13799_v4 = vld [vmem:[#allocation6 + $0x20c] sm:$0xf]  ;;  %v11933_v15 = vor.u32 %v13767_v26, %v11930_v59  ;;  %v6125_v44 = vadd.f32 %v15011_v61, %v6111_v21  ;;  %v6154_v39 = vpop.f32.mrf.mxu0  ;;  %v12264_v59 = vld [vmem:[#allocation6 + $0x3a8] sm:$0xf]  ;;  %v13845_v21 = vld [vmem:[#allocation6 + $0x374] sm:$0xf0] }
 0x39b   :  { %7244 = vmatpush.bf16.msrb.mxu2 %v12125_v48  ;;  %v12210_v48 = vld [vmem:[#allocation6 + $0x350] sm:$0xf0]  ;;  %v12061_v22 = vor.u32 %v13799_v4, %v12058_v60  ;;  %v13853_v4 = vld [vmem:[#allocation6 + $0x3b4] sm:$0xf0] }
 0x39c   :  { %7147 = vmatpush.bf16.msrb.mxu3 %v12229_v43  ;;  %v12213_v10 = vor.u32 %v13838_v50, %v12210_v48  ;;  %v6139_v5 = vadd.f32 %v15013_v36, %v6125_v44  ;;  %v12265_v43 = vor.u32 %v13853_v4, %v12264_v59  ;;  %v13849_v60 = vld [vmem:[#allocation6 + $0x394] sm:$0xf0]  ;;  %v12232_v48 = vld [vmem:[#allocation6 + $0x368] sm:$0xf]  ;;  %v13920_v59 = vld [vmem:[#allocation9 + $0x1cc] sm:$0xf0] }
 0x39d   :  { %7217 = vmatpush.bf16.msrb.mxu0 %v11853_v16  ;;  %v6180_v62 = vpop.f32.mrf.mxu2  ;;  %v6168_v31 = vpop.f32.mrf.mxu1  ;;  %v12249_v50 = vor.u32 %v13849_v60, %v12248_v20  ;;  %v13868_v20 = vld [vmem:[#allocation9 + $0x2c] sm:$0xf0]  ;;  %v12512_v60 = vld [vmem:[#allocation9 + $0x1a0] sm:$0xf] }
 0x39e   :  { %7231 = vmatpush.bf16.msrb.mxu1 %v11981_v53  ;;  %v6194_v16 = vpop.f32.mrf.mxu3  ;;  %v6113_v53 = vadd.f32 %v6112_v27, %v6099_v46  ;;  %v6153_v61 = vadd.f32 %v6152_v56, %v6139_v5  ;;  %v12216_v46 = vld [vmem:[#allocation6 + $0x348] sm:$0xf]  ;;  %v13855_v5 = vld [vmem:[#allocation6 + $0x3cc] sm:$0xf] }
 0x39f   :  { %7245 = vmatpush.bf16.msrb.mxu2 %v12109_v33  ;;  %v12178_v33 = vld [vmem:[#allocation6 + $0x310] sm:$0xf0] }
 0x3a0   :  { %7148 = vmatpush.bf16.msrb.mxu3 %v12213_v10  ;;  %v6127_v9 = vadd.f32 %v6126_v14, %v6113_v53  ;;  %v12181_v34 = vor.u32 %v13830_v12, %v12178_v33  ;;  %v6167_v6 = vadd.f32 %v6166_v63, %v6153_v61  ;;  %v12296_v14 = vld [vmem:[#allocation6 + $0x3e8] sm:$0xf]  ;;  %v12233_v63 = vor.u32 %v13845_v21, %v12232_v48  ;;  %v13837_v10 = vld [vmem:[#allocation6 + $0x334] sm:$0xf0]  ;;  %v13851_v12 = vld [vmem:[#allocation6 + $0x3ac] sm:$0xf] }
 0x3a1   :  { %7218 = vmatpush.bf16.msrb.mxu0 %v11837_v52  ;;  %v12185_v53 = vor.u32 %v13833_v8, %v12184_v3  ;;  %v12266_v33 = vld [vmem:[#allocation6 + $0x3b8] sm:$0xf0]  ;;  %v13916_v48 = vld [vmem:[#allocation9 + $0x1ac] sm:$0xf0]  ;;  %v12304_v21 = vld [vmem:[#allocation9] sm:$0xf] }
 0x3a2   :  { %7232 = vmatpush.bf16.msrb.mxu1 %v11965_v47  ;;  %v6141_v19 = vadd.f32 %v6140_v55, %v6127_v9  ;;  %v6181_v36 = vadd.f32 %v6180_v62, %v6167_v6  ;;  %v13861_v55 = vld [vmem:[#allocation6 + $0x3f4] sm:$0xf0]  ;;  %v13859_v62 = vld [vmem:[#allocation6 + $0x3ec] sm:$0xf]  ;;  %v12282_v9 = vld [vmem:[#allocation6 + $0x3d8] sm:$0xf0]  ;;  %v12269_v61 = vor.u32 %v13851_v12, %v12266_v33 }
 0x3a3   :  { %7246 = vmatpush.bf16.msrb.mxu2 %v12093_v17  ;;  %v13843_v6 = vld [vmem:[#allocation6 + $0x36c] sm:$0xf]  ;;  %v12672_v3 = vld [vmem:[#allocation9 + $0x2e0] sm:$0xf]  ;;  %v13956_v8 = vld [vmem:[#allocation9 + $0x2ec] sm:$0xf0] }
 0x3a4   :  { %7149 = vmatpush.bf16.msrb.mxu3 %v12197_v58  ;;  %v6155_v57 = vadd.f32 %v6154_v39, %v6141_v19  ;;  %v6195_v47 = vadd.f32 %v6194_v16, %v6181_v36  ;;  %v12298_v16 = vld [vmem:[#allocation6 + $0x3f8] sm:$0xf0]  ;;  %v12285_v39 = vor.u32 %v13855_v5, %v12282_v9  ;;  %v12673_v5 = vor.u32 %v13956_v8, %v12672_v3  ;;  %v13886_v9 = vld [vmem:[#allocation9 + $0xc4] sm:$0xf]  ;;  %v12656_v12 = vld [vmem:[#allocation9 + $0x2c0] sm:$0xf] }
 0x3a5   :  { %7219 = vmatpush.bf16.msrb.mxu0 %v11821_v1  ;;  %v6182_v25 = vpop.f32.mrf.mxu2  ;;  %v12301_v58 = vor.u32 %v13859_v62, %v12298_v16  ;;  %v12218_v36 = vld [vmem:[#allocation6 + $0x358] sm:$0xf0]  ;;  %v13952_v33 = vld [vmem:[#allocation9 + $0x2cc] sm:$0xf0]  ;;  %v13910_v3 = vld [vmem:[#allocation9 + $0x184] sm:$0xf] }
 0x3a6   :  { %7233 = vmatpush.bf16.msrb.mxu1 %v11949_v49  ;;  %v6196_v11 = vpop.f32.mrf.mxu3  ;;  %v6169_v35 = vadd.f32 %v6168_v31, %v6155_v57  ;;  %v12297_v49 = vor.u32 %v13861_v55, %v12296_v14  ;;  %v13847_v31 = vld [vmem:[#allocation6 + $0x38c] sm:$0xf]  ;;  %v12234_v57 = vld [vmem:[#allocation6 + $0x378] sm:$0xf0]  ;;  %v13876_v14 = vld [vmem:[#allocation9 + $0x6c] sm:$0xf0] }
 0x3a7   :  { %7247 = vmatpush.bf16.msrb.mxu2 %v12077_v38  ;;  %v13857_v38 = vld [vmem:[#allocation6 + $0x3d4] sm:$0xf0]  ;;  %v12544_v55 = vld [vmem:[#allocation9 + $0x1e0] sm:$0xf] }
 0x3a8   :  { %7150 = vmatpush.bf16.msrb.mxu3 %v12181_v34  ;;  %v12281_v26 = vor.u32 %v13857_v38, %v12280_v45  ;;  %v12250_v34 = vld [vmem:[#allocation6 + $0x398] sm:$0xf0]  ;;  %v12336_v45 = vld [vmem:[#allocation9 + $0x40] sm:$0xf]  ;;  %v13872_v38 = vld [vmem:[#allocation9 + $0x4c] sm:$0xf0] }
 0x3a9   :  { %7220 = vmatpush.bf16.msrb.mxu0 %v11805_v42  ;;  %v6208_v27 = vpop.f32.mrf.mxu0  ;;  %v13841_v42 = vld [vmem:[#allocation6 + $0x354] sm:$0xf0]  ;;  %v12253_v19 = vor.u32 %v13847_v31, %v12250_v34  ;;  %v12640_v31 = vld [vmem:[#allocation9 + $0x2a0] sm:$0xf]  ;;  %v13948_v34 = vld [vmem:[#allocation9 + $0x2ac] sm:$0xf0] }
 0x3aa   :  { %7234 = vmatpush.bf16.msrb.mxu1 %v11933_v15  ;;  %v6222_v52 = vpop.f32.mrf.mxu1  ;;  %v6209_v40 = vadd.f32 %v6208_v27, %v6195_v47  ;;  %v12217_v15 = vor.u32 %v13841_v42, %v12216_v46  ;;  %v12416_v47 = vld [vmem:[#allocation9 + $0xe0] sm:$0xf]  ;;  %v12513_v46 = vor.u32 %v13916_v48, %v12512_v60  ;;  %v13866_v60 = vld [vmem:[#allocation9 + $0x24] sm:$0xf] }
 0x3ab   :  { %7248 = vmatpush.bf16.msrb.mxu2 %v12061_v22  ;;  %v12200_v22 = vld [vmem:[#allocation6 + $0x328] sm:$0xf]  ;;  %v12496_v42 = vld [vmem:[#allocation9 + $0x180] sm:$0xf] }
 0x3ac   :  { %7221 = vmatmul.bf16.vlgmr.msrb.gmra.mxu0 %v14928_v32  ;;  %v6183_v32 = vadd.f32 %v6182_v25, %v6169_v35  ;;  %v6223_v17 = vadd.f32 %v6222_v52, %v6209_v40  ;;  %v12201_v44 = vor.u32 %v13837_v10, %v12200_v22  ;;  %v12237_v25 = vor.u32 %v13843_v6, %v12234_v57  ;;  %v13835_v35 = vld [vmem:[#allocation6 + $0x32c] sm:$0xf]  ;;  %v12202_v52 = vld [vmem:[#allocation6 + $0x338] sm:$0xf0]  ;;  %v12400_v40 = vld [vmem:[#allocation9 + $0xc0] sm:$0xf] }
 0x3ad   :  { %7235 = vmatmul.bf16.vlgmr.msrb.gmra.mxu1 %v14930_v29  ;;  %v13890_v22 = vld [vmem:[#allocation9 + $0xe4] sm:$0xf]  ;;  %v12418_v10 = vld [vmem:[#allocation9 + $0xf0] sm:$0xf0]  ;;  %v12464_v57 = vld [vmem:[#allocation9 + $0x140] sm:$0xf] }
 0x3ae   :  { %7249 = vmatmul.bf16.vlgmr.msrb.gmra.mxu2 %v14932_v18  ;;  %v6197_v30 = vadd.f32 %v6196_v11, %v6183_v32  ;;  %v13839_v11 = vld [vmem:[#allocation6 + $0x34c] sm:$0xf]  ;;  %v13892_v32 = vld [vmem:[#allocation9 + $0xec] sm:$0xf0]  ;;  %v12421_v16 = vor.u32 %v13890_v22, %v12418_v10  ;;  %v13914_v48 = vld [vmem:[#allocation9 + $0x1a4] sm:$0xf] }
 0x3af   :  { %v12221_v27 = vor.u32 %v13839_v11, %v12218_v36  ;;  %8087 = vmatpush.bf16.msra.mxu2 %v12673_v5  ;;  %v13882_v11 = vld [vmem:[#allocation9 + $0xa4] sm:$0xf]  ;;  %v12386_v36 = vld [vmem:[#allocation9 + $0xb0] sm:$0xf0]  ;;  %v13928_v5 = vld [vmem:[#allocation9 + $0x20c] sm:$0xf0] }
 0x3b0   :  { %v13862_v10 = vld [vmem:[#allocation9 + $0x4] sm:$0xf] }
 0x3b1   :  { %v6236_v29 = vpop.f32.mrf.mxu2  ;;  %v6210_v18 = vpop.f32.mrf.mxu0 }
 0x3b2   :  { %v6250_v41 = vpop.f32.mrf.mxu3  ;;  %v6211_v2 = vadd.f32 %v6210_v18, %v6197_v30  ;;  %v6237_v51 = vadd.f32 %v6236_v29, %v6223_v17  ;;  %v6224_v37 = vpop.f32.mrf.mxu1  ;;  %v12417_v29 = vor.u32 %v13892_v32, %v12416_v47  ;;  %v12205_v30 = vor.u32 %v13835_v35, %v12202_v52  ;;  %v13831_v18 = vld [vmem:[#allocation6 + $0x30c] sm:$0xf]  ;;  %v12186_v17 = vld [vmem:[#allocation6 + $0x318] sm:$0xf0]  ;;  %v12448_v47 = vld [vmem:[#allocation9 + $0x120] sm:$0xf] }
 0x3b3   :  { %v12389_v52 = vor.u32 %v13882_v11, %v12386_v36  ;;  %v13900_v32 = vld [vmem:[#allocation9 + $0x12c] sm:$0xf0]  ;;  %v13902_v36 = vld [vmem:[#allocation9 + $0x144] sm:$0xf] }
 0x3b4   :  { %v6225_v13 = vadd.f32 %v6224_v37, %v6211_v2  ;;  %v6251_v0 = vadd.f32 %v6250_v41, %v6237_v51  ;;  %v13888_v41 = vld [vmem:[#allocation9 + $0xcc] sm:$0xf0]  ;;  %8059 = vmatpush.bf16.msra.mxu0 %v12417_v29  ;;  %v12189_v51 = vor.u32 %v13831_v18, %v12186_v17  ;;  %v12384_v37 = vld [vmem:[#allocation9 + $0xa0] sm:$0xf]  ;;  %v12370_v29 = vld [vmem:[#allocation9 + $0x90] sm:$0xf0] }
 0x3b5   :  { %v12401_v2 = vor.u32 %v13888_v41, %v12400_v40  ;;  %v13878_v40 = vld [vmem:[#allocation9 + $0x84] sm:$0xf]  ;;  %v12449_v41 = vor.u32 %v13900_v32, %v12448_v47  ;;  %v12432_v18 = vld [vmem:[#allocation9 + $0x100] sm:$0xf]  ;;  %v13896_v17 = vld [vmem:[#allocation9 + $0x10c] sm:$0xf0] }
 0x3b6   :  { %v6258_v56 = vmax.f32 %v6251_v0, 0.0  ;;  %v12368_v0 = vld [vmem:[#allocation9 + $0x80] sm:$0xf]  ;;  %v13984_v11 = vld [vmem:[#allocation9 + $0x3cc] sm:$0xf0] }
 0x3b7   :  { %v13950_v47 = vld [vmem:[#allocation9 + $0x2c4] sm:$0xf]  ;;  %v12658_v32 = vld [vmem:[#allocation9 + $0x2d0] sm:$0xf0] }
 0x3b8   :  { %8060 = vmatpush.bf16.msra.mxu0 %v12401_v2  ;;  %v12624_v2 = vld [vmem:[#allocation9 + $0x280] sm:$0xf] }
 0x3b9   :  { %v6238_v54 = vpop.f32.mrf.mxu2 }
 0x3ba   :  { %v6239_v7 = vadd.f32 %v6238_v54, %v6225_v13  ;;  %v6252_v28 = vpop.f32.mrf.mxu3  ;;  %v13884_v13 = vld [vmem:[#allocation9 + $0xac] sm:$0xf0] }
 0x3bb   :  { %v12385_v54 = vor.u32 %v13884_v13, %v12384_v37  ;;  %v13944_v37 = vld [vmem:[#allocation9 + $0x28c] sm:$0xf0]  ;;  %v13874_v13 = vld [vmem:[#allocation9 + $0x64] sm:$0xf] }
 0x3bc   :  { %v6253_v23 = vadd.f32 %v6252_v28, %v6239_v7  ;;  %v13880_v7 = vld [vmem:[#allocation9 + $0x8c] sm:$0xf0] }
 0x3bd   :  { %8061 = vmatpush.bf16.msra.mxu0 %v12385_v54  ;;  %v12369_v28 = vor.u32 %v13880_v7, %v12368_v0  ;;  %v12354_v54 = vld [vmem:[#allocation9 + $0x70] sm:$0xf0]  ;;  %v12625_v0 = vor.u32 %v13944_v37, %v12624_v2 }
 0x3be   :  { %v6262_v1 = vmax.f32 %v6253_v23, 0.0  ;;  %v12352_v23 = vld [vmem:[#allocation9 + $0x60] sm:$0xf]  ;;  %v12357_v7 = vor.u32 %v13874_v13, %v12354_v54  ;;  %v12450_v37 = vld [vmem:[#allocation9 + $0x130] sm:$0xf0] }
 0x3bf   :  { %v13946_v13 = vld [vmem:[#allocation9 + $0x2a4] sm:$0xf] }
 0x3c0   :  { %v15030_v24 = vpack.c.bf16 %v6262_v1, %v6258_v56  ;;  %v12353_v56 = vor.u32 %v13876_v14, %v12352_v23  ;;  %v13924_v1 = vld [vmem:[#allocation9 + $0x1ec] sm:$0xf0]  ;;  %v12546_v23 = vld [vmem:[#allocation9 + $0x1f0] sm:$0xf0] }
 0x3c1   :  { %8062 = vmatpush.bf16.msra.mxu0 %v12369_v28  ;;  %v13922_v28 = vld [vmem:[#allocation9 + $0x1e4] sm:$0xf] }
 0x3c2   :  { %7095 = vmatmul.bf16.vlgmr.msra.gmra.mxu3 %v15030_v24  ;;  %v12549_v14 = vor.u32 %v13922_v28, %v12546_v23 }
 0x3c3   :  { %7199 = vmatpush.bf16.msra.mxu3 %v12297_v49  ;;  %v12545_v49 = vor.u32 %v13924_v1, %v12544_v55  ;;  %v12608_v55 = vld [vmem:[#allocation9 + $0x260] sm:$0xf]  ;;  %v13870_v1 = vld [vmem:[#allocation9 + $0x44] sm:$0xf] }
 0x3c5   :  { %8063 = vmatpush.bf16.msra.mxu0 %v12353_v56  ;;  %8073 = vmatpush.bf16.msra.mxu1 %v12545_v49  ;;  %v13940_v56 = vld [vmem:[#allocation9 + $0x26c] sm:$0xf0] }
 0x3c6   :  { %v12609_v49 = vor.u32 %v13940_v56, %v12608_v55  ;;  %v13976_v55 = vld [vmem:[#allocation9 + $0x38c] sm:$0xf0] }
 0x3c7   :  { %7200 = vmatpush.bf16.msra.mxu3 %v12281_v26  ;;  %v12528_v26 = vld [vmem:[#allocation9 + $0x1c0] sm:$0xf] }
 0x3c8   :  { %v12529_v4 = vor.u32 %v13920_v59, %v12528_v26  ;;  %v12530_v26 = vld [vmem:[#allocation9 + $0x1d0] sm:$0xf0] }
 0x3ca   :  { %8074 = vmatpush.bf16.msra.mxu1 %v12529_v4  ;;  %v12592_v4 = vld [vmem:[#allocation9 + $0x240] sm:$0xf] }
 0x3cb   :  { %7201 = vmatpush.bf16.msra.mxu3 %v12265_v43  ;;  %v12320_v43 = vld [vmem:[#allocation9 + $0x20] sm:$0xf] }
 0x3ce   :  { %8075 = vmatpush.bf16.msra.mxu1 %v12513_v46 }
 0x3cf   :  { %7202 = vmatpush.bf16.msra.mxu3 %v12249_v50  ;;  %v12321_v50 = vor.u32 %v13868_v20, %v12320_v43  ;;  %v13936_v43 = vld [vmem:[#allocation9 + $0x24c] sm:$0xf0] }
 0x3d0   :  { %v12593_v20 = vor.u32 %v13936_v43, %v12592_v4 }
 0x3d2   :  { %7151 = vmatmul.bf16.vlgmr.msrb.gmra.mxu3 %v15030_v24 }
 0x3d3   :  { %7203 = vmatpush.bf16.msra.mxu3 %v12233_v63  ;;  %v13864_v63 = vld [vmem:[#allocation9 + $0xc] sm:$0xf0] }
 0x3d7   :  { %7204 = vmatpush.bf16.msra.mxu3 %v12217_v15  ;;  %v13912_v15 = vld [vmem:[#allocation9 + $0x18c] sm:$0xf0] }
 0x3d8   :  { %v12497_v62 = vor.u32 %v13912_v15, %v12496_v42  ;;  %v12576_v42 = vld [vmem:[#allocation9 + $0x220] sm:$0xf]  ;;  %v13932_v15 = vld [vmem:[#allocation9 + $0x22c] sm:$0xf0] }
 0x3d9   :  { %v12577_v22 = vor.u32 %v13932_v15, %v12576_v42 }
 0x3da   :  { %8076 = vmatpush.bf16.msra.mxu1 %v12497_v62  ;;  %v12498_v62 = vld [vmem:[#allocation9 + $0x190] sm:$0xf0] }
 0x3db   :  { %7205 = vmatpush.bf16.msra.mxu3 %v12201_v44  ;;  %v12305_v44 = vor.u32 %v13864_v63, %v12304_v21  ;;  %v12514_v63 = vld [vmem:[#allocation9 + $0x1b0] sm:$0xf0] }
 0x3dc   :  { %v12517_v46 = vor.u32 %v13914_v48, %v12514_v63  ;;  %v13938_v63 = vld [vmem:[#allocation9 + $0x264] sm:$0xf] }
 0x3df   :  { %7206 = vmatpush.bf16.msra.mxu3 %v12185_v53  ;;  %v12480_v53 = vld [vmem:[#allocation9 + $0x160] sm:$0xf] }
 0x3e2   :  { %7207 = vmatmul.bf16.vlgmr.msra.gmra.mxu3 %v15030_v24 }
 0x3e3   :  { %7255 = vmatpush.bf16.msrb.mxu3 %v12301_v58  ;;  %v13908_v58 = vld [vmem:[#allocation9 + $0x16c] sm:$0xf0] }
 0x3e7   :  { %7256 = vmatpush.bf16.msrb.mxu3 %v12285_v39  ;;  %v12402_v39 = vld [vmem:[#allocation9 + $0xd0] sm:$0xf0] }
 0x3e8   :  { %v12405_v6 = vor.u32 %v13886_v9, %v12402_v39  ;;  %v12800_v9 = vld [vmem:[#allocation9 + $0x3e0] sm:$0xf] }
 0x3eb   :  { %7257 = vmatpush.bf16.msrb.mxu3 %v12269_v61  ;;  %v12657_v61 = vor.u32 %v13952_v33, %v12656_v12  ;;  %v13988_v12 = vld [vmem:[#allocation9 + $0x3ec] sm:$0xf0]  ;;  %v13906_v33 = vld [vmem:[#allocation9 + $0x164] sm:$0xf] }
 0x3ed   :  { %8088 = vmatpush.bf16.msra.mxu2 %v12657_v61  ;;  %v12482_v61 = vld [vmem:[#allocation9 + $0x170] sm:$0xf0] }
 0x3ef   :  { %7258 = vmatpush.bf16.msrb.mxu3 %v12253_v19  ;;  %v12481_v19 = vor.u32 %v13908_v58, %v12480_v53  ;;  %v7054_v53 = vpop.f32.mrf.mxu0  ;;  %v12560_v58 = vld [vmem:[#allocation9 + $0x200] sm:$0xf] }
 0x3f0   :  { %v12561_v39 = vor.u32 %v13928_v5, %v12560_v58 }
 0x3f1   :  { %8077 = vmatpush.bf16.msra.mxu1 %v12481_v19  ;;  %v13954_v19 = vld [vmem:[#allocation9 + $0x2e4] sm:$0xf] }
 0x3f3   :  { %7259 = vmatpush.bf16.msrb.mxu3 %v12237_v25  ;;  %v13904_v25 = vld [vmem:[#allocation9 + $0x14c] sm:$0xf0] }
 0x3f4   :  { %v12465_v35 = vor.u32 %v13904_v25, %v12464_v57  ;;  %v12784_v25 = vld [vmem:[#allocation9 + $0x3c0] sm:$0xf] }
 0x3f6   :  { %8078 = vmatpush.bf16.msra.mxu1 %v12465_v35  ;;  %v12785_v35 = vor.u32 %v13984_v11, %v12784_v25  ;;  %v13930_v25 = vld [vmem:[#allocation9 + $0x224] sm:$0xf]  ;;  %v12578_v11 = vld [vmem:[#allocation9 + $0x230] sm:$0xf0] }
 0x3f7   :  { %7260 = vmatpush.bf16.msrb.mxu3 %v12221_v27  ;;  %v12641_v27 = vor.u32 %v13948_v34, %v12640_v31  ;;  %v12801_v31 = vor.u32 %v13988_v12, %v12800_v9  ;;  %v12485_v34 = vor.u32 %v13906_v33, %v12482_v61  ;;  %v7056_v54 = vpop.f32.mrf.mxu0  ;;  %v12424_v61 = vld [vmem:[#allocation9 + $0xe8] sm:$0xf] }
 0x3f9   :  { %8089 = vmatpush.bf16.msra.mxu2 %v12641_v27  ;;  %v7068_v27 = vpop.f32.mrf.mxu1 }
 0x3fa   :  { %8079 = vmatpush.bf16.msra.mxu1 %v12449_v41  ;;  %v12661_v41 = vor.u32 %v13950_v47, %v12658_v32  ;;  %v12408_v47 = vld [vmem:[#allocation9 + $0xc8] sm:$0xf] }
 0x3fb   :  { %7261 = vmatpush.bf16.msrb.mxu3 %v12205_v30  ;;  %v12373_v30 = vor.u32 %v13878_v40, %v12370_v29  ;;  %v7082_v40 = vpop.f32.mrf.mxu2 }
 0x3fd   :  { %8090 = vmatpush.bf16.msra.mxu2 %v12625_v0 }
 0x3ff   :  { %7262 = vmatpush.bf16.msrb.mxu3 %v12189_v51  ;;  %v12433_v51 = vor.u32 %v13896_v17, %v12432_v18  ;;  %v12768_v18 = vld [vmem:[#allocation9 + $0x3a0] sm:$0xf]  ;;  %v13980_v17 = vld [vmem:[#allocation9 + $0x3ac] sm:$0xf0]  ;;  %v7110_v42 = vpop.f32.mrf.mxu0 }
 0x400   :  { %v12769_v2 = vor.u32 %v13980_v17, %v12768_v18  ;;  %v13960_v18 = vld [vmem:[#allocation9 + $0x30c] sm:$0xf0] }
 0x401   :  { %8080 = vmatpush.bf16.msra.mxu1 %v12433_v51  ;;  %8091 = vmatpush.bf16.msra.mxu2 %v12609_v49  ;;  %v13898_v51 = vld [vmem:[#allocation9 + $0x124] sm:$0xf]  ;;  %v12434_v49 = vld [vmem:[#allocation9 + $0x110] sm:$0xf0] }
 0x402   :  { %7263 = vmatmul.bf16.vlgmr.msrb.gmra.mxu3 %v15030_v24  ;;  %v12337_v24 = vor.u32 %v13872_v38, %v12336_v45  ;;  %v12338_v45 = vld [vmem:[#allocation9 + $0x50] sm:$0xf0]  ;;  %v13918_v38 = vld [vmem:[#allocation9 + $0x1c4] sm:$0xf]  ;;  %v12453_v0 = vor.u32 %v13898_v51, %v12450_v37 }
 0x403   :  { %v12533_v59 = vor.u32 %v13918_v38, %v12530_v26  ;;  %8101 = vmatpush.bf16.msra.mxu3 %v12801_v31  ;;  %v12626_v26 = vld [vmem:[#allocation9 + $0x290] sm:$0xf0]  ;;  %v7084_v43 = vpop.f32.mrf.mxu2  ;;  %v12704_v31 = vld [vmem:[#allocation9 + $0x320] sm:$0xf]  ;;  %v13926_v51 = vld [vmem:[#allocation9 + $0x204] sm:$0xf] }
 0x404   :  { %8064 = vmatpush.bf16.msra.mxu0 %v12337_v24  ;;  %v12341_v24 = vor.u32 %v13870_v1, %v12338_v45  ;;  %v13894_v1 = vld [vmem:[#allocation9 + $0x104] sm:$0xf]  ;;  %v12562_v37 = vld [vmem:[#allocation9 + $0x210] sm:$0xf0] }
 0x405   :  { %8129 = vmatpush.bf16.msrb.mxu1 %v12549_v14  ;;  %8092 = vmatpush.bf16.msra.mxu2 %v12593_v20  ;;  %v12752_v14 = vld [vmem:[#allocation9 + $0x380] sm:$0xf]  ;;  %v13942_v45 = vld [vmem:[#allocation9 + $0x284] sm:$0xf]  ;;  %v12437_v38 = vor.u32 %v13894_v1, %v12434_v49  ;;  %v13885_v1 = vld [vmem:[#allocation9 + $0xb4] sm:$0xf0] }
 0x406   :  { %v12753_v56 = vor.u32 %v13976_v55, %v12752_v14  ;;  %v12629_v4 = vor.u32 %v13942_v45, %v12626_v26  ;;  %v12392_v55 = vld [vmem:[#allocation9 + $0xa8] sm:$0xf]  ;;  %v13982_v49 = vld [vmem:[#allocation9 + $0x3c4] sm:$0xf]  ;;  %v12786_v45 = vld [vmem:[#allocation9 + $0x3d0] sm:$0xf0] }
 0x407   :  { %8102 = vmatpush.bf16.msra.mxu3 %v12785_v35  ;;  %v7112_v32 = vpop.f32.mrf.mxu0 }
 0x408   :  { %8065 = vmatpush.bf16.msra.mxu0 %v12321_v50  ;;  %v12322_v50 = vld [vmem:[#allocation9 + $0x30] sm:$0xf0] }
 0x409   :  { %8130 = vmatpush.bf16.msrb.mxu1 %v12533_v59  ;;  %v12325_v21 = vor.u32 %v13866_v60, %v12322_v50  ;;  %8093 = vmatpush.bf16.msra.mxu2 %v12577_v22  ;;  %v7070_v59 = vpop.f32.mrf.mxu1  ;;  %v12736_v60 = vld [vmem:[#allocation9 + $0x360] sm:$0xf]  ;;  %v13972_v50 = vld [vmem:[#allocation9 + $0x36c] sm:$0xf0] }
 0x40b   :  { %8103 = vmatpush.bf16.msra.mxu3 %v12769_v2  ;;  %v7138_v12 = vpop.f32.mrf.mxu2 }
 0x40c   :  { %8066 = vmatpush.bf16.msra.mxu0 %v12305_v44  ;;  %v12306_v44 = vld [vmem:[#allocation9 + $0x10] sm:$0xf0] }
 0x40d   :  { %8131 = vmatpush.bf16.msrb.mxu1 %v12517_v46  ;;  %v12309_v8 = vor.u32 %v13862_v10, %v12306_v44  ;;  %8094 = vmatpush.bf16.msra.mxu2 %v12561_v39  ;;  %v12610_v46 = vld [vmem:[#allocation9 + $0x270] sm:$0xf0]  ;;  %v12720_v10 = vld [vmem:[#allocation9 + $0x340] sm:$0xf]  ;;  %v13968_v44 = vld [vmem:[#allocation9 + $0x34c] sm:$0xf0] }
 0x40e   :  { %v12613_v15 = vor.u32 %v13938_v63, %v12610_v46  ;;  %v12770_v63 = vld [vmem:[#allocation9 + $0x3b0] sm:$0xf0] }
 0x40f   :  { %8104 = vmatpush.bf16.msra.mxu3 %v12753_v56 }
 0x410   :  { %8115 = vmatpush.bf16.msrb.mxu0 %v12421_v16  ;;  %v12501_v16 = vor.u32 %v13910_v3, %v12498_v62  ;;  %v13934_v3 = vld [vmem:[#allocation9 + $0x244] sm:$0xf] }
 0x411   :  { %v7124_v9 = vpop.f32.mrf.mxu1 }
 0x412   :  { %8132 = vmatpush.bf16.msrb.mxu1 %v12501_v16  ;;  %v12721_v16 = vor.u32 %v13968_v44, %v12720_v10  ;;  %v12360_v44 = vld [vmem:[#allocation9 + $0x68] sm:$0xf] }
 0x413   :  { %v7140_v26 = vpop.f32.mrf.mxu2 }
 0x414   :  { %8116 = vmatpush.bf16.msrb.mxu0 %v12405_v6  ;;  %v12674_v6 = vld [vmem:[#allocation9 + $0x2f0] sm:$0xf0] }
 0x415   :  { %v12677_v57 = vor.u32 %v13954_v19, %v12674_v6  ;;  %v13893_v6 = vld [vmem:[#allocation9 + $0xf4] sm:$0xf0] }
 0x416   :  { %8133 = vmatpush.bf16.msrb.mxu1 %v12485_v34  ;;  %v13964_v34 = vld [vmem:[#allocation9 + $0x32c] sm:$0xf0] }
 0x417   :  { %8143 = vmatpush.bf16.msrb.mxu2 %v12677_v57  ;;  %v12705_v57 = vor.u32 %v13964_v34, %v12704_v31 }
 0x418   :  { %8117 = vmatpush.bf16.msrb.mxu0 %v12389_v52  ;;  %v12466_v52 = vld [vmem:[#allocation9 + $0x150] sm:$0xf0] }
 0x419   :  { %v12469_v29 = vor.u32 %v13902_v36, %v12466_v52  ;;  %v12581_v36 = vor.u32 %v13930_v25, %v12578_v11  ;;  %v13921_v11 = vld [vmem:[#allocation9 + $0x1d4] sm:$0xf0] }
 0x41b   :  { %8134 = vmatpush.bf16.msrb.mxu1 %v12469_v29  ;;  %8144 = vmatpush.bf16.msrb.mxu2 %v12661_v41  ;;  %v13889_v29 = vld [vmem:[#allocation9 + $0xd4] sm:$0xf0]  ;;  %v12688_v41 = vld [vmem:[#allocation9 + $0x300] sm:$0xf] }
 0x41c   :  { %8118 = vmatpush.bf16.msrb.mxu0 %v12373_v30  ;;  %v15036_v30 = vld [vmem:[#allocation7] sm:$0xf]  ;;  %v12689_v2 = vor.u32 %v13960_v18, %v12688_v41  ;;  %v12409_v14 = vor.u32 %v13889_v29, %v12408_v47  ;;  %v12328_v41 = vld [vmem:[#allocation9 + $0x28] sm:$0xf]  ;;  %v13869_v18 = vld [vmem:[#allocation9 + $0x34] sm:$0xf0] }
 0x41d   :  { %v6397_v28 = vperm.slane %v15036_v30, 0 }
 0x41f   :  { %8135 = vmatpush.bf16.msrb.mxu1 %v12453_v0  ;;  %v7057_v48 = vadd.f32 %v7056_v54, %v6397_v28  ;;  %v12565_v54 = vor.u32 %v13926_v51, %v12562_v37  ;;  %v12802_v0 = vld [vmem:[#allocation9 + $0x3f0] sm:$0xf0]  ;;  %v13917_v37 = vld [vmem:[#allocation9 + $0x1b4] sm:$0xf0] }
 0x420   :  { %8119 = vmatpush.bf16.msrb.mxu0 %v12357_v7  ;;  %v12642_v7 = vld [vmem:[#allocation9 + $0x2b0] sm:$0xf0] }
 0x421   :  { %v12645_v23 = vor.u32 %v13946_v13, %v12642_v7  ;;  %v7071_v62 = vadd.f32 %v7070_v59, %v7057_v48  ;;  %v13986_v13 = vld [vmem:[#allocation9 + $0x3e4] sm:$0xf]  ;;  %v13881_v48 = vld [vmem:[#allocation9 + $0x94] sm:$0xf0] }
 0x423   :  { %8145 = vmatpush.bf16.msrb.mxu2 %v12645_v23  ;;  %8136 = vmatpush.bf16.msrb.mxu1 %v12437_v38  ;;  %v7085_v5 = vadd.f32 %v7084_v43, %v7071_v62  ;;  %v7126_v38 = vpop.f32.mrf.mxu1  ;;  %v12393_v43 = vor.u32 %v13885_v1, %v12392_v55  ;;  %v13865_v1 = vld [vmem:[#allocation9 + $0x14] sm:$0xf0] }
 0x424   :  { %8120 = vmatpush.bf16.msrb.mxu0 %v12341_v24  ;;  %v7055_v24 = vadd.f32 %v7054_v53, %v6397_v28  ;;  %v12594_v53 = vld [vmem:[#allocation9 + $0x250] sm:$0xf0]  ;;  %v12805_v28 = vor.u32 %v13986_v13, %v12802_v0  ;;  %v13966_v13 = vld [vmem:[#allocation9 + $0x344] sm:$0xf] }
 0x425   :  { %v12597_v58 = vor.u32 %v13934_v3, %v12594_v53  ;;  %v13877_v3 = vld [vmem:[#allocation9 + $0x74] sm:$0xf0]  ;;  %v13974_v53 = vld [vmem:[#allocation9 + $0x384] sm:$0xf] }
 0x426   :  { %v7069_v22 = vadd.f32 %v7068_v27, %v7055_v24  ;;  %v6398_v27 = vperm.slane %v15036_v30, 1  ;;  %v12789_v24 = vor.u32 %v13982_v49, %v12786_v45  ;;  %v12361_v31 = vor.u32 %v13877_v3, %v12360_v44  ;;  %v12504_v49 = vld [vmem:[#allocation9 + $0x188] sm:$0xf]  ;;  %v13958_v44 = vld [vmem:[#allocation9 + $0x304] sm:$0xf] }
 0x427   :  { %8146 = vmatpush.bf16.msrb.mxu2 %v12629_v4  ;;  %v7166_v4 = vpop.f32.mrf.mxu0  ;;  %v12690_v3 = vld [vmem:[#allocation9 + $0x310] sm:$0xf0] }
 0x428   :  { %8121 = vmatpush.bf16.msrb.mxu0 %v12325_v21  ;;  %v12737_v21 = vor.u32 %v13972_v50, %v12736_v60  ;;  %v7111_v7 = vadd.f32 %v7110_v42, %v6398_v27  ;;  %v7113_v56 = vadd.f32 %v7112_v32, %v6398_v27  ;;  %v12738_v27 = vld [vmem:[#allocation9 + $0x370] sm:$0xf0] }
 0x42a   :  { %8105 = vmatpush.bf16.msra.mxu3 %v12737_v21  ;;  %v7125_v59 = vadd.f32 %v7124_v9, %v7111_v7  ;;  %v7127_v50 = vadd.f32 %v7126_v38, %v7113_v56  ;;  %v13978_v21 = vld [vmem:[#allocation9 + $0x3a4] sm:$0xf]  ;;  %v7194_v9 = vpop.f32.mrf.mxu2  ;;  %v12312_v56 = vld [vmem:[#allocation9 + $0x8] sm:$0xf] }
 0x42b   :  { %8147 = vmatpush.bf16.msrb.mxu2 %v12613_v15  ;;  %v12773_v46 = vor.u32 %v13978_v21, %v12770_v63  ;;  %v12313_v21 = vor.u32 %v13865_v1, %v12312_v56  ;;  %v12554_v56 = vld [vmem:[#allocation9 + $0x1f8] sm:$0xf0]  ;;  %v6400_v1 = vperm.slane %v15036_v30, 3 }
 0x42c   :  { %8122 = vmatpush.bf16.msrb.mxu0 %v12309_v8  ;;  %v7083_v8 = vadd.f32 %v7082_v40, %v7069_v22  ;;  %v12425_v40 = vor.u32 %v13893_v6, %v12424_v61  ;;  %v7139_v60 = vadd.f32 %v7138_v12, %v7125_v59  ;;  %v7141_v42 = vadd.f32 %v7140_v26, %v7127_v50  ;;  %v13873_v6 = vld [vmem:[#allocation9 + $0x54] sm:$0xf0]  ;;  %v12706_v59 = vld [vmem:[#allocation9 + $0x330] sm:$0xf0] }
 0x42d   :  { %v6399_v12 = vperm.slane %v15036_v30, 2  ;;  %v13913_v26 = vld [vmem:[#allocation9 + $0x194] sm:$0xf0] }
 0x42e   :  { %8106 = vmatpush.bf16.msra.mxu3 %v12721_v16  ;;  %v13925_v16 = vld [vmem:[#allocation9 + $0x1f4] sm:$0xf0]  ;;  %v12505_v63 = vor.u32 %v13913_v26, %v12504_v49  ;;  %v12616_v26 = vld [vmem:[#allocation9 + $0x268] sm:$0xf] }
 0x42f   :  { %8148 = vmatpush.bf16.msrb.mxu2 %v12597_v58  ;;  %v12754_v58 = vld [vmem:[#allocation9 + $0x390] sm:$0xf0]  ;;  %v7167_v47 = vadd.f32 %v7166_v4, %v6399_v12  ;;  %v13891_v4 = vld [vmem:[#allocation9 + $0xec] sm:$0xf] }
 0x432   :  { %8107 = vmatpush.bf16.msra.mxu3 %v12705_v57  ;;  %v12536_v57 = vld [vmem:[#allocation9 + $0x1c8] sm:$0xf] }
 0x433   :  { %8149 = vmatpush.bf16.msrb.mxu2 %v12581_v36  ;;  %v13970_v36 = vld [vmem:[#allocation9 + $0x364] sm:$0xf]  ;;  %v12537_v29 = vor.u32 %v13921_v11, %v12536_v57  ;;  %v12394_v57 = vld [vmem:[#allocation9 + $0xb8] sm:$0xf0] }
 0x436   :  { %8108 = vmatpush.bf16.msra.mxu3 %v12689_v2  ;;  %v12520_v2 = vld [vmem:[#allocation9 + $0x1a8] sm:$0xf] }
 0x437   :  { %8150 = vmatpush.bf16.msrb.mxu2 %v12565_v54  ;;  %v12722_v54 = vld [vmem:[#allocation9 + $0x350] sm:$0xf0]  ;;  %v12521_v55 = vor.u32 %v13917_v37, %v12520_v2  ;;  %v12440_v37 = vld [vmem:[#allocation9 + $0x108] sm:$0xf] }
 0x438   :  { %v12725_v0 = vor.u32 %v13966_v13, %v12722_v54  ;;  %v13897_v13 = vld [vmem:[#allocation9 + $0x114] sm:$0xf0]  ;;  %v12632_v54 = vld [vmem:[#allocation9 + $0x288] sm:$0xf] }
 0x439   :  { %v12441_v49 = vor.u32 %v13897_v13, %v12440_v37  ;;  %v13955_v37 = vld [vmem:[#allocation9 + $0x2ec] sm:$0xf]  ;;  %v12682_v13 = vld [vmem:[#allocation9 + $0x2f8] sm:$0xf0] }
 0x43a   :  { %8157 = vmatpush.bf16.msrb.mxu3 %v12805_v28 }
 0x43e   :  { %8158 = vmatpush.bf16.msrb.mxu3 %v12789_v24  ;;  %v13962_v24 = vld [vmem:[#allocation9 + $0x324] sm:$0xf] }
 0x442   :  { %8159 = vmatpush.bf16.msrb.mxu3 %v12773_v46  ;;  %v12488_v46 = vld [vmem:[#allocation9 + $0x168] sm:$0xf] }
 0x445   :  { %v7096_v20 = vpop.f32.mrf.mxu3 }
 0x446   :  { %v7097_v39 = vadd.f32 %v7096_v20, %v7083_v8  ;;  %v12376_v20 = vld [vmem:[#allocation9 + $0x88] sm:$0xf] }
 0x447   :  { %v12377_v10 = vor.u32 %v13881_v48, %v12376_v20  ;;  %v12552_v8 = vld [vmem:[#allocation9 + $0x1e8] sm:$0xf]  ;;  %v12709_v20 = vor.u32 %v13962_v24, %v12706_v59  ;;  %v13941_v59 = vld [vmem:[#allocation9 + $0x274] sm:$0xf0] }
 0x448   :  { %v7269_v35 = vmax.f32 %v7097_v39, 0.0  ;;  %v12757_v39 = vor.u32 %v13974_v53, %v12754_v58  ;;  %v12553_v34 = vor.u32 %v13925_v16, %v12552_v8  ;;  %v13957_v8 = vld [vmem:[#allocation9 + $0x2f4] sm:$0xf0]  ;;  %v12410_v16 = vld [vmem:[#allocation9 + $0xd8] sm:$0xf0]  ;;  %v12693_v53 = vor.u32 %v13958_v44, %v12690_v3 }
 0x449   :  { %v12617_v30 = vor.u32 %v13941_v59, %v12616_v26  ;;  %v12330_v44 = vld [vmem:[#allocation9 + $0x38] sm:$0xf0]  ;;  %v13915_v3 = vld [vmem:[#allocation9 + $0x1ac] sm:$0xf] }
 0x44a   :  { %8160 = vmatpush.bf16.msrb.mxu3 %v12757_v39  ;;  %v12666_v26 = vld [vmem:[#allocation9 + $0x2d8] sm:$0xf0] }
 0x44d   :  { %v7098_v33 = vpop.f32.mrf.mxu3 }
 0x44e   :  { %v7099_v19 = vadd.f32 %v7098_v33, %v7085_v5  ;;  %v7180_v5 = vpop.f32.mrf.mxu1 }
 0x44f   :  { %v7181_v7 = vadd.f32 %v7180_v5, %v7167_v47  ;;  %v13901_v47 = vld [vmem:[#allocation9 + $0x134] sm:$0xf0] }
 0x450   :  { %v7273_v52 = vmax.f32 %v7099_v19, 0.0  ;;  %v12344_v19 = vld [vmem:[#allocation9 + $0x48] sm:$0xf] }
 0x451   :  { %v7195_v45 = vadd.f32 %v7194_v9, %v7181_v7  ;;  %v13875_v7 = vld [vmem:[#allocation9 + $0x6c] sm:$0xf] }
 0x452   :  { %v15040_v17 = vpack.c.bf16 %v7273_v52, %v7269_v35  ;;  %v7168_v35 = vpop.f32.mrf.mxu0  ;;  %v12741_v52 = vor.u32 %v13970_v36, %v12738_v27 }
 0x453   :  { %v7169_v51 = vadd.f32 %v7168_v35, %v6399_v12 }
 0x454   :  { %8067 = vmatmul.bf16.vlgmr.msra.gmra.mxu0 %v15040_v17  ;;  %8161 = vmatpush.bf16.msrb.mxu3 %v12741_v52  ;;  %v12456_v52 = vld [vmem:[#allocation9 + $0x128] sm:$0xf] }
 0x455   :  { %8171 = vmatpush.bf16.msra.mxu0 %v12425_v40  ;;  %v7152_v23 = vpop.f32.mrf.mxu3  ;;  %v12345_v40 = vor.u32 %v13873_v6, %v12344_v19  ;;  %v13953_v19 = vld [vmem:[#allocation9 + $0x2d4] sm:$0xf0]  ;;  %v13883_v6 = vld [vmem:[#allocation9 + $0xac] sm:$0xf] }
 0x456   :  { %v7153_v15 = vadd.f32 %v7152_v23, %v7139_v60  ;;  %v7182_v28 = vpop.f32.mrf.mxu1  ;;  %v7196_v23 = vpop.f32.mrf.mxu2  ;;  %v12397_v35 = vor.u32 %v13883_v6, %v12394_v57  ;;  %v13911_v6 = vld [vmem:[#allocation9 + $0x18c] sm:$0xf]  ;;  %v12506_v57 = vld [vmem:[#allocation9 + $0x198] sm:$0xf0] }
 0x457   :  { %v7183_v38 = vadd.f32 %v7182_v28, %v7169_v51  ;;  %v12362_v28 = vld [vmem:[#allocation9 + $0x78] sm:$0xf0] }
 0x458   :  { %v7270_v33 = vmax.f32 %v7153_v15, 0.0  ;;  %8162 = vmatpush.bf16.msrb.mxu3 %v12725_v0  ;;  %v13945_v0 = vld [vmem:[#allocation9 + $0x294] sm:$0xf0] }
 0x459   :  { %8172 = vmatpush.bf16.msra.mxu0 %v12409_v14  ;;  %v12329_v14 = vor.u32 %v13869_v18, %v12328_v41  ;;  %v7197_v60 = vadd.f32 %v7196_v23, %v7183_v38  ;;  %v12378_v41 = vld [vmem:[#allocation9 + $0x98] sm:$0xf0]  ;;  %v12457_v18 = vor.u32 %v13901_v47, %v12456_v52  ;;  %v12365_v38 = vor.u32 %v13875_v7, %v12362_v28  ;;  %v12568_v47 = vld [vmem:[#allocation9 + $0x208] sm:$0xf] }
 0x45a   :  { %v7222_v36 = vpop.f32.mrf.mxu0 }
 0x45c   :  { %8163 = vmatpush.bf16.msrb.mxu3 %v12709_v20 }
 0x45d   :  { %8173 = vmatpush.bf16.msra.mxu0 %v12393_v43  ;;  %v7154_v22 = vpop.f32.mrf.mxu3  ;;  %v12426_v43 = vld [vmem:[#allocation9 + $0xf8] sm:$0xf0] }
 0x45e   :  { %v7155_v62 = vadd.f32 %v7154_v22, %v7141_v42  ;;  %v13909_v42 = vld [vmem:[#allocation9 + $0x174] sm:$0xf0]  ;;  %v12429_v22 = vor.u32 %v13891_v4, %v12426_v43  ;;  %v7236_v23 = vpop.f32.mrf.mxu1  ;;  %v13871_v4 = vld [vmem:[#allocation9 + $0x4c] sm:$0xf]  ;;  %v12346_v43 = vld [vmem:[#allocation9 + $0x58] sm:$0xf0] }
 0x45f   :  { %v12489_v9 = vor.u32 %v13909_v42, %v12488_v46  ;;  %v12600_v46 = vld [vmem:[#allocation9 + $0x248] sm:$0xf] }
 0x460   :  { %v7274_v61 = vmax.f32 %v7155_v62, 0.0  ;;  %v13887_v62 = vld [vmem:[#allocation9 + $0xcc] sm:$0xf]  ;;  %8164 = vmatpush.bf16.msrb.mxu3 %v12693_v53 }
 0x461   :  { %8174 = vmatpush.bf16.msra.mxu0 %v12377_v10  ;;  %v12680_v10 = vld [vmem:[#allocation9 + $0x2e8] sm:$0xf] }
 0x462   :  { %v15044_v25 = vpack.c.bf16 %v7274_v61, %v7270_v33  ;;  %v12681_v12 = vor.u32 %v13957_v8, %v12680_v10  ;;  %v12413_v33 = vor.u32 %v13887_v62, %v12410_v16  ;;  %v12472_v61 = vld [vmem:[#allocation9 + $0x148] sm:$0xf]  ;;  %v7224_v20 = vpop.f32.mrf.mxu0  ;;  %v13867_v10 = vld [vmem:[#allocation9 + $0x2c] sm:$0xf]  ;;  %v12522_v8 = vld [vmem:[#allocation9 + $0x1b8] sm:$0xf0] }
 0x463   :  { %v7225_v42 = vadd.f32 %v7224_v20, %v6400_v1  ;;  %v13981_v20 = vld [vmem:[#allocation9 + $0x3b4] sm:$0xf0] }
 0x464   :  { %8081 = vmatmul.bf16.vlgmr.msra.gmra.mxu1 %v15044_v25  ;;  %8123 = vmatmul.bf16.vlgmr.msrb.gmra.mxu0 %v15040_v17 }
 0x465   :  { %8175 = vmatpush.bf16.msra.mxu0 %v12361_v31  ;;  %8185 = vmatpush.bf16.msra.mxu1 %v12553_v34  ;;  %v7208_v32 = vpop.f32.mrf.mxu3  ;;  %v13905_v31 = vld [vmem:[#allocation9 + $0x154] sm:$0xf0]  ;;  %v12664_v34 = vld [vmem:[#allocation9 + $0x2c8] sm:$0xf] }
 0x466   :  { %v7209_v50 = vadd.f32 %v7208_v32, %v7195_v45  ;;  %v12473_v11 = vor.u32 %v13905_v31, %v12472_v61  ;;  %v12665_v27 = vor.u32 %v13953_v19, %v12664_v34  ;;  %v12648_v32 = vld [vmem:[#allocation9 + $0x2a8] sm:$0xf]  ;;  %v12633_v45 = vor.u32 %v13945_v0, %v12632_v54  ;;  %v7238_v16 = vpop.f32.mrf.mxu1  ;;  %v13933_v31 = vld [vmem:[#allocation9 + $0x234] sm:$0xf0]  ;;  %v13863_v34 = vld [vmem:[#allocation9 + $0xc] sm:$0xf] }
 0x467   :  { %v12525_v61 = vor.u32 %v13915_v3, %v12522_v8  ;;  %v12314_v19 = vld [vmem:[#allocation9 + $0x18] sm:$0xf0] }
 0x468   :  { %v7271_v58 = vmax.f32 %v7209_v50, 0.0  ;;  %v12538_v50 = vld [vmem:[#allocation9 + $0x1d8] sm:$0xf0]  ;;  %v12317_v52 = vor.u32 %v13863_v34, %v12314_v19 }
 0x469   :  { %8176 = vmatpush.bf16.msra.mxu0 %v12345_v40  ;;  %8186 = vmatpush.bf16.msra.mxu1 %v12537_v29  ;;  %v13949_v40 = vld [vmem:[#allocation9 + $0x2b4] sm:$0xf0]  ;;  %v13879_v29 = vld [vmem:[#allocation9 + $0x8c] sm:$0xf]  ;;  %v12602_v34 = vld [vmem:[#allocation9 + $0x258] sm:$0xf0] }
 0x46a   :  { %v12649_v2 = vor.u32 %v13949_v40, %v12648_v32  ;;  %v12381_v51 = vor.u32 %v13879_v29, %v12378_v41  ;;  %v13929_v32 = vld [vmem:[#allocation9 + $0x214] sm:$0xf0]  ;;  %v12509_v29 = vor.u32 %v13911_v6, %v12506_v57  ;;  %v12808_v41 = vld [vmem:[#allocation9 + $0x3e8] sm:$0xf] }
 0x46b   :  { %v12569_v7 = vor.u32 %v13929_v32, %v12568_v47  ;;  %v12712_v57 = vld [vmem:[#allocation9 + $0x328] sm:$0xf]  ;;  %v13961_v32 = vld [vmem:[#allocation9 + $0x314] sm:$0xf0] }
 0x46c   :  { %v12696_v47 = vld [vmem:[#allocation9 + $0x308] sm:$0xf] }
 0x46d   :  { %8177 = vmatpush.bf16.msra.mxu0 %v12329_v14  ;;  %8187 = vmatpush.bf16.msra.mxu1 %v12521_v55  ;;  %v7210_v48 = vpop.f32.mrf.mxu3  ;;  %v7250_v14 = vpop.f32.mrf.mxu2  ;;  %v13923_v55 = vld [vmem:[#allocation9 + $0x1ec] sm:$0xf] }
 0x46e   :  { %v7211_v15 = vadd.f32 %v7210_v48, %v7197_v60  ;;  %v12557_v24 = vor.u32 %v13923_v55, %v12554_v56  ;;  %v13919_v60 = vld [vmem:[#allocation9 + $0x1cc] sm:$0xf]  ;;  %v7223_v48 = vadd.f32 %v7222_v36, %v6400_v1  ;;  %v12685_v55 = vor.u32 %v13955_v37, %v12682_v13  ;;  %v12792_v56 = vld [vmem:[#allocation9 + $0x3c8] sm:$0xf]  ;;  %v13985_v1 = vld [vmem:[#allocation9 + $0x3d4] sm:$0xf0] }
 0x46f   :  { %v13983_v37 = vld [vmem:[#allocation9 + $0x3cc] sm:$0xf]  ;;  %v12794_v13 = vld [vmem:[#allocation9 + $0x3d8] sm:$0xf0] }
 0x470   :  { %v7275_v5 = vmax.f32 %v7211_v15, 0.0  ;;  %v12541_v15 = vor.u32 %v13919_v60, %v12538_v50  ;;  %v7237_v62 = vadd.f32 %v7236_v23, %v7223_v48  ;;  %v13899_v60 = vld [vmem:[#allocation9 + $0x12c] sm:$0xf]  ;;  %v12458_v50 = vld [vmem:[#allocation9 + $0x138] sm:$0xf0] }
 0x471   :  { %8178 = vmatpush.bf16.msra.mxu0 %v12313_v21  ;;  %8188 = vmatpush.bf16.msra.mxu1 %v12505_v63  ;;  %v12349_v63 = vor.u32 %v13871_v4, %v12346_v43  ;;  %v12776_v43 = vld [vmem:[#allocation9 + $0x3a8] sm:$0xf]  ;;  %v13947_v48 = vld [vmem:[#allocation9 + $0x2ac] sm:$0xf] }
 0x472   :  { %v15048_v39 = vpack.c.bf16 %v7275_v5, %v7271_v58  ;;  %v12333_v5 = vor.u32 %v13867_v10, %v12330_v44  ;;  %v13943_v10 = vld [vmem:[#allocation9 + $0x28c] sm:$0xf]  ;;  %v12634_v44 = vld [vmem:[#allocation9 + $0x298] sm:$0xf0] }
 0x474   :  { %8095 = vmatmul.bf16.vlgmr.msra.gmra.mxu2 %v15048_v39  ;;  %8137 = vmatmul.bf16.vlgmr.msrb.gmra.mxu1 %v15044_v25 }
 0x475   :  { %8227 = vmatpush.bf16.msrb.mxu0 %v12429_v22  ;;  %8189 = vmatpush.bf16.msra.mxu1 %v12489_v9  ;;  %v13937_v22 = vld [vmem:[#allocation9 + $0x254] sm:$0xf0]  ;;  %v7252_v53 = vpop.f32.mrf.mxu2  ;;  %v12584_v9 = vld [vmem:[#allocation9 + $0x228] sm:$0xf] }
 0x476   :  { %8179 = vmatmul.bf16.vlgmr.msra.gmra.mxu0 %v15040_v17  ;;  %8199 = vmatpush.bf16.msra.mxu2 %v12681_v12  ;;  %v12601_v58 = vor.u32 %v13937_v22, %v12600_v46  ;;  %v7251_v12 = vadd.f32 %v7250_v14, %v7237_v62  ;;  %v12760_v46 = vld [vmem:[#allocation9 + $0x388] sm:$0xf]  ;;  %v12442_v22 = vld [vmem:[#allocation9 + $0x118] sm:$0xf0]  ;;  %v12637_v62 = vor.u32 %v13943_v10, %v12634_v44 }
 0x477   :  { %v14002_v10 = vld [vmem:[#allocation12 + $0x60] sm:$0xff] }
 0x479   :  { %8228 = vmatpush.bf16.msrb.mxu0 %v12413_v33  ;;  %8190 = vmatpush.bf16.msra.mxu1 %v12473_v11  ;;  %v7239_v33 = vadd.f32 %v7238_v16, %v7225_v42  ;;  %v13977_v42 = vld [vmem:[#allocation9 + $0x394] sm:$0xf0]  ;;  %v12744_v16 = vld [vmem:[#allocation9 + $0x368] sm:$0xf] }
 0x47a   :  { %8200 = vmatpush.bf16.msra.mxu2 %v12665_v27  ;;  %v12761_v3 = vor.u32 %v13977_v42, %v12760_v46  ;;  %v13992_v46 = vld [vmem:[#allocation12 + $0x10] sm:$0xff] }
 0x47b   :  { %v7253_v11 = vadd.f32 %v7252_v53, %v7239_v33  ;;  %v13973_v53 = vld [vmem:[#allocation9 + $0x374] sm:$0xf0]  ;;  %v12728_v33 = vld [vmem:[#allocation9 + $0x348] sm:$0xf] }
 0x47c   :  { %v14004_v42 = vld [vmem:[#allocation12 + $0x70] sm:$0xff] }
 0x47d   :  { %8229 = vmatpush.bf16.msrb.mxu0 %v12397_v35  ;;  %8191 = vmatpush.bf16.msra.mxu1 %v12457_v18  ;;  %v12585_v35 = vor.u32 %v13933_v31, %v12584_v9  ;;  %v13989_v18 = vld [vmem:[#allocation9 + $0x3f4] sm:$0xf0]  ;;  %v12745_v9 = vor.u32 %v13973_v53, %v12744_v16  ;;  %v13935_v31 = vld [vmem:[#allocation9 + $0x24c] sm:$0xf] }
 0x47e   :  { %8201 = vmatpush.bf16.msra.mxu2 %v12649_v2  ;;  %v13907_v2 = vld [vmem:[#allocation9 + $0x16c] sm:$0xf]  ;;  %v12809_v28 = vor.u32 %v13989_v18, %v12808_v41  ;;  %v12605_v6 = vor.u32 %v13935_v31, %v12602_v34  ;;  %v12810_v18 = vld [vmem:[#allocation9 + $0x3f8] sm:$0xf0]  ;;  %v14000_v53 = vld [vmem:[#allocation12 + $0x50] sm:$0xff] }
 0x47f   :  { %v13987_v41 = vld [vmem:[#allocation9 + $0x3ec] sm:$0xf]  ;;  %v13998_v31 = vld [vmem:[#allocation12 + $0x40] sm:$0xff] }
 0x480   :  { %v14010_v34 = vld [vmem:[#allocation12 + $0xa0] sm:$0xff] }
 0x481   :  { %8230 = vmatpush.bf16.msrb.mxu0 %v12381_v51  ;;  %8192 = vmatpush.bf16.msra.mxu1 %v12441_v49  ;;  %v12490_v51 = vld [vmem:[#allocation9 + $0x178] sm:$0xf0]  ;;  %v13903_v49 = vld [vmem:[#allocation9 + $0x14c] sm:$0xf] }
 0x482   :  { %8202 = vmatpush.bf16.msra.mxu2 %v12633_v45  ;;  %v12493_v14 = vor.u32 %v13907_v2, %v12490_v51  ;;  %v12474_v45 = vld [vmem:[#allocation9 + $0x158] sm:$0xf0]  ;;  %v12697_v2 = vor.u32 %v13961_v32, %v12696_v47  ;;  %v12813_v51 = vor.u32 %v13987_v41, %v12810_v18  ;;  %v14008_v47 = vld [vmem:[#allocation12 + $0x90] sm:$0xff] }
 0x483   :  { %v12477_v59 = vor.u32 %v13903_v49, %v12474_v45  ;;  %v12746_v49 = vld [vmem:[#allocation9 + $0x378] sm:$0xf0] }
 0x484   :  { %8151 = vmatmul.bf16.vlgmr.msrb.gmra.mxu2 %v15048_v39  ;;  %8193 = vmatmul.bf16.vlgmr.msra.gmra.mxu1 %v15044_v25 }
 0x485   :  { %v7264_v21 = vpop.f32.mrf.mxu3  ;;  %8231 = vmatpush.bf16.msrb.mxu0 %v12365_v38  ;;  %8241 = vmatpush.bf16.msrb.mxu1 %v12557_v24  ;;  %v13951_v38 = vld [vmem:[#allocation9 + $0x2cc] sm:$0xf]  ;;  %v12793_v24 = vor.u32 %v13985_v1, %v12792_v56 }
 0x486   :  { %8203 = vmatpush.bf16.msra.mxu2 %v12617_v30  ;;  %v7265_v36 = vadd.f32 %v7264_v21, %v7251_v12  ;;  %v12669_v4 = vor.u32 %v13951_v38, %v12666_v26  ;;  %v12650_v21 = vld [vmem:[#allocation9 + $0x2b8] sm:$0xf0]  ;;  %v12777_v30 = vor.u32 %v13981_v20, %v12776_v43  ;;  %v13971_v1 = vld [vmem:[#allocation9 + $0x36c] sm:$0xf] }
 0x487   :  { %v12749_v45 = vor.u32 %v13971_v1, %v12746_v49  ;;  %v13967_v38 = vld [vmem:[#allocation9 + $0x34c] sm:$0xf]  ;;  %v12730_v26 = vld [vmem:[#allocation9 + $0x358] sm:$0xf0]  ;;  %v14020_v1 = vld [vmem:[#allocation12 + $0xf0] sm:$0xff] }
 0x488   :  { %v7272_v54 = vmax.f32 %v7265_v36, 0.0  ;;  %v13931_v36 = vld [vmem:[#allocation9 + $0x22c] sm:$0xf] }
 0x489   :  { %8232 = vmatpush.bf16.msrb.mxu0 %v12349_v63  ;;  %8242 = vmatpush.bf16.msrb.mxu1 %v12541_v15  ;;  %v12653_v63 = vor.u32 %v13947_v48, %v12650_v21  ;;  %v13895_v15 = vld [vmem:[#allocation9 + $0x10c] sm:$0xf]  ;;  %v13996_v48 = vld [vmem:[#allocation12 + $0x30] sm:$0xff] }
 0x48a   :  { %8204 = vmatpush.bf16.msra.mxu2 %v12601_v58  ;;  %v12445_v8 = vor.u32 %v13895_v15, %v12442_v22  ;;  %v13939_v58 = vld [vmem:[#allocation9 + $0x26c] sm:$0xf] }
 0x48b   :  { %v13959_v20 = vld [vmem:[#allocation9 + $0x30c] sm:$0xf] }
 0x48c   :  { %v13995_v21 = vld [vmem:[#allocation12 + $0x28] sm:$0xff] }
 0x48d   :  { %v7266_v27 = vpop.f32.mrf.mxu3  ;;  %8233 = vmatpush.bf16.msrb.mxu0 %v12333_v5  ;;  %8243 = vmatpush.bf16.msrb.mxu1 %v12525_v61  ;;  %v12618_v5 = vld [vmem:[#allocation9 + $0x278] sm:$0xf0]  ;;  %v13969_v61 = vld [vmem:[#allocation9 + $0x354] sm:$0xf0]  ;;  %v13991_v15 = vld [vmem:[#allocation12 + $0x8] sm:$0xff] }
 0x48e   :  { %v7267_v40 = vadd.f32 %v7266_v27, %v7253_v11  ;;  %8205 = vmatpush.bf16.msra.mxu2 %v12585_v35  ;;  %v12621_v12 = vor.u32 %v13939_v58, %v12618_v5  ;;  %v12729_v19 = vor.u32 %v13969_v61, %v12728_v33  ;;  %v13965_v11 = vld [vmem:[#allocation9 + $0x334] sm:$0xf0]  ;;  %v12586_v27 = vld [vmem:[#allocation9 + $0x238] sm:$0xf0]  ;;  %v14003_v22 = vld [vmem:[#allocation12 + $0x68] sm:$0xff] }
 0x48f   :  { %v12713_v35 = vor.u32 %v13965_v11, %v12712_v57  ;;  %v14012_v58 = vld [vmem:[#allocation12 + $0xb0] sm:$0xff]  ;;  %v13999_v5 = vld [vmem:[#allocation12 + $0x48] sm:$0xff]  ;;  %v15066_v33 = vld [vmem:[#allocation10] sm:$0xf] }
 0x490   :  { %v7276_v0 = vmax.f32 %v7267_v40, 0.0  ;;  %v13927_v40 = vld [vmem:[#allocation9 + $0x20c] sm:$0xf]  ;;  %v14009_v57 = vld [vmem:[#allocation12 + $0x98] sm:$0xff] }
 0x491   :  { %8234 = vmatpush.bf16.msrb.mxu0 %v12317_v52  ;;  %8244 = vmatpush.bf16.msrb.mxu1 %v12509_v29  ;;  %v12589_v52 = vor.u32 %v13931_v36, %v12586_v27  ;;  %v12570_v29 = vld [vmem:[#allocation9 + $0x218] sm:$0xf0] }
 0x492   :  { %v15056_v23 = vpack.c.bf16 %v7276_v0, %v7272_v54  ;;  %8206 = vmatpush.bf16.msra.mxu2 %v12569_v7  ;;  %v12797_v54 = vor.u32 %v13983_v37, %v12794_v13  ;;  %v13979_v0 = vld [vmem:[#allocation9 + $0x3ac] sm:$0xf]  ;;  %v12778_v7 = vld [vmem:[#allocation9 + $0x3b8] sm:$0xf0] }
 0x494   :  { %8109 = vmatmul.bf16.vlgmr.msra.gmra.mxu3 %v15056_v23  ;;  %8235 = vmatmul.bf16.vlgmr.msrb.gmra.mxu0 %v15040_v17  ;;  %v12461_v17 = vor.u32 %v13899_v60, %v12458_v50  ;;  %v13997_v50 = vld [vmem:[#allocation12 + $0x38] sm:$0xff] }
 0x495   :  { %8213 = vmatpush.bf16.msra.mxu3 %v12809_v28  ;;  %8245 = vmatpush.bf16.msrb.mxu1 %v12493_v14  ;;  %v12781_v28 = vor.u32 %v13979_v0, %v12778_v7  ;;  %v13975_v14 = vld [vmem:[#allocation9 + $0x38c] sm:$0xf]  ;;  %v14006_v0 = vld [vmem:[#allocation12 + $0x80] sm:$0xff]  ;;  %v14021_v7 = vld [vmem:[#allocation12 + $0xf8] sm:$0xff] }
 0x496   :  { %8255 = vmatpush.bf16.msrb.mxu2 %v12685_v55  ;;  %v12762_v55 = vld [vmem:[#allocation9 + $0x398] sm:$0xf0]  ;;  %8555 = vmatpush.bf16.msra.mxu0 %v13997_v50 }
 0x497   :  { %8207 = vmatmul.bf16.vlgmr.msra.gmra.mxu2 %v15048_v39  ;;  %v12765_v56 = vor.u32 %v13975_v14, %v12762_v55  ;;  %v7412_v14 = vperm.slane %v15066_v33, 1 }
 0x499   :  { %8214 = vmatpush.bf16.msra.mxu3 %v12793_v24  ;;  %8246 = vmatpush.bf16.msrb.mxu1 %v12477_v59  ;;  %v12733_v24 = vor.u32 %v13967_v38, %v12730_v26  ;;  %v13963_v59 = vld [vmem:[#allocation9 + $0x32c] sm:$0xf] }
 0x49a   :  { %8256 = vmatpush.bf16.msrb.mxu2 %v12669_v4  ;;  %v12714_v4 = vld [vmem:[#allocation9 + $0x338] sm:$0xf0]  ;;  %8556 = vmatpush.bf16.msra.mxu0 %v13996_v48  ;;  %v14019_v26 = vld [vmem:[#allocation12 + $0xe8] sm:$0xff] }
 0x49b   :  { %v12717_v43 = vor.u32 %v13963_v59, %v12714_v4 }
 0x49d   :  { %8215 = vmatpush.bf16.msra.mxu3 %v12777_v30  ;;  %8247 = vmatpush.bf16.msrb.mxu1 %v12461_v17  ;;  %v13994_v30 = vld [vmem:[#allocation12 + $0x20] sm:$0xff]  ;;  %v13993_v17 = vld [vmem:[#allocation12 + $0x18] sm:$0xff] }
 0x49e   :  { %8257 = vmatpush.bf16.msrb.mxu2 %v12653_v63  ;;  %8557 = vmatpush.bf16.msra.mxu0 %v13995_v21  ;;  %v14005_v63 = vld [vmem:[#allocation12 + $0x78] sm:$0xff] }
 0x4a1   :  { %8216 = vmatpush.bf16.msra.mxu3 %v12761_v3  ;;  %8248 = vmatpush.bf16.msrb.mxu1 %v12445_v8  ;;  %v14001_v3 = vld [vmem:[#allocation12 + $0x58] sm:$0xff] }
 0x4a2   :  { %8258 = vmatpush.bf16.msrb.mxu2 %v12637_v62  ;;  %8558 = vmatpush.bf16.msra.mxu0 %v13994_v30  ;;  %v14013_v8 = vld [vmem:[#allocation12 + $0xb8] sm:$0xff] }
 0x4a4   :  { %8165 = vmatmul.bf16.vlgmr.msrb.gmra.mxu3 %v15056_v23  ;;  %8249 = vmatmul.bf16.vlgmr.msrb.gmra.mxu1 %v15044_v25  ;;  %v12573_v25 = vor.u32 %v13927_v40, %v12570_v29 }
 0x4a5   :  { %8217 = vmatpush.bf16.msra.mxu3 %v12745_v9  ;;  %8569 = vmatpush.bf16.msra.mxu1 %v14005_v63  ;;  %v14011_v9 = vld [vmem:[#allocation12 + $0xa8] sm:$0xff] }
 0x4a6   :  { %8259 = vmatpush.bf16.msrb.mxu2 %v12621_v12  ;;  %8559 = vmatpush.bf16.msra.mxu0 %v13993_v17 }
 0x4a9   :  { %8218 = vmatpush.bf16.msra.mxu3 %v12729_v19  ;;  %8570 = vmatpush.bf16.msra.mxu1 %v14004_v42  ;;  %v14017_v42 = vld [vmem:[#allocation12 + $0xd8] sm:$0xff] }
 0x4aa   :  { %8260 = vmatpush.bf16.msrb.mxu2 %v12605_v6  ;;  %8560 = vmatpush.bf16.msra.mxu0 %v13992_v46  ;;  %v7411_v6 = vperm.slane %v15066_v33, 0 }
 0x4ad   :  { %8219 = vmatpush.bf16.msra.mxu3 %v12713_v35  ;;  %8571 = vmatpush.bf16.msra.mxu1 %v14003_v22 }
 0x4ae   :  { %8261 = vmatpush.bf16.msrb.mxu2 %v12589_v52  ;;  %8561 = vmatpush.bf16.msra.mxu0 %v13991_v15  ;;  %v7413_v15 = vperm.slane %v15066_v33, 2 }
 0x4b1   :  { %8220 = vmatpush.bf16.msra.mxu3 %v12697_v2  ;;  %8572 = vmatpush.bf16.msra.mxu1 %v14002_v10 }
 0x4b2   :  { %8262 = vmatpush.bf16.msrb.mxu2 %v12573_v25  ;;  %v14007_v25 = vld [vmem:[#allocation12 + $0x88] sm:$0xff] }
 0x4b4   :  { %8221 = vmatmul.bf16.vlgmr.msra.gmra.mxu3 %v15056_v23 }
 0x4b5   :  { %8269 = vmatpush.bf16.msrb.mxu3 %v12813_v51  ;;  %8263 = vmatmul.bf16.vlgmr.msrb.gmra.mxu2 %v15048_v39  ;;  %v12698_v39 = vld [vmem:[#allocation9 + $0x318] sm:$0xf0] }
 0x4b6   :  { %v12701_v60 = vor.u32 %v13959_v20, %v12698_v39  ;;  %8573 = vmatpush.bf16.msra.mxu1 %v14001_v3  ;;  %8583 = vmatpush.bf16.msra.mxu2 %v14013_v8  ;;  %v14018_v20 = vld [vmem:[#allocation12 + $0xe0] sm:$0xff] }
 0x4b9   :  { %8270 = vmatpush.bf16.msrb.mxu3 %v12797_v54 }
 0x4ba   :  { %8574 = vmatpush.bf16.msra.mxu1 %v14000_v53  ;;  %8584 = vmatpush.bf16.msra.mxu2 %v14012_v58  ;;  %v14015_v53 = vld [vmem:[#allocation12 + $0xc8] sm:$0xff] }
 0x4bd   :  { %8271 = vmatpush.bf16.msrb.mxu3 %v12781_v28 }
 0x4be   :  { %8575 = vmatpush.bf16.msra.mxu1 %v13999_v5  ;;  %8585 = vmatpush.bf16.msra.mxu2 %v14011_v9 }
 0x4c1   :  { %8272 = vmatpush.bf16.msrb.mxu3 %v12765_v56 }
 0x4c2   :  { %8576 = vmatpush.bf16.msra.mxu1 %v13998_v31  ;;  %8586 = vmatpush.bf16.msra.mxu2 %v14010_v34  ;;  %v14014_v31 = vld [vmem:[#allocation12 + $0xc0] sm:$0xff] }
 0x4c5   :  { %8273 = vmatpush.bf16.msrb.mxu3 %v12749_v45 }
 0x4c6   :  { %8587 = vmatpush.bf16.msra.mxu2 %v14009_v57 }
 0x4c9   :  { %8274 = vmatpush.bf16.msrb.mxu3 %v12733_v24 }
 0x4ca   :  { %8588 = vmatpush.bf16.msra.mxu2 %v14008_v47 }
 0x4cd   :  { %8275 = vmatpush.bf16.msrb.mxu3 %v12717_v43 }
 0x4ce   :  { %8589 = vmatpush.bf16.msra.mxu2 %v14007_v25 }
 0x4d1   :  { %8276 = vmatpush.bf16.msrb.mxu3 %v12701_v60  ;;  %v8068_v44 = vpop.f32.mrf.mxu0 }
 0x4d2   :  { %v8069_v36 = vadd.f32 %v8068_v44, %v7411_v6  ;;  %8590 = vmatpush.bf16.msra.mxu2 %v14006_v0 }
 0x4d4   :  { %8277 = vmatmul.bf16.vlgmr.msrb.gmra.mxu3 %v15056_v23  ;;  %v13990_v23 = vld [vmem:[#allocation12] sm:$0xff] }
 0x4d5   :  { %8562 = vmatpush.bf16.msra.mxu0 %v13990_v23  ;;  %8597 = vmatpush.bf16.msra.mxu3 %v14021_v7  ;;  %v14016_v23 = vld [vmem:[#allocation12 + $0xd0] sm:$0xff] }
 0x4d9   :  { %v8070_v12 = vpop.f32.mrf.mxu0  ;;  %8598 = vmatpush.bf16.msra.mxu3 %v14020_v1 }
 0x4da   :  { %v8071_v35 = vadd.f32 %v8070_v12, %v7411_v6 }
 0x4dd   :  { %8599 = vmatpush.bf16.msra.mxu3 %v14019_v26 }
 0x4e1   :  { %v8082_v62 = vpop.f32.mrf.mxu1  ;;  %v8124_v27 = vpop.f32.mrf.mxu0  ;;  %8600 = vmatpush.bf16.msra.mxu3 %v14018_v20 }
 0x4e2   :  { %v8083_v52 = vadd.f32 %v8082_v62, %v8069_v36  ;;  %v8125_v38 = vadd.f32 %v8124_v27, %v7412_v14 }
 0x4e5   :  { %8601 = vmatpush.bf16.msra.mxu3 %v14017_v42 }
 0x4e9   :  { %v8084_v61 = vpop.f32.mrf.mxu1  ;;  %v8126_v28 = vpop.f32.mrf.mxu0  ;;  %8602 = vmatpush.bf16.msra.mxu3 %v14016_v23 }
 0x4ea   :  { %v8085_v40 = vadd.f32 %v8084_v61, %v8071_v35  ;;  %v8127_v24 = vadd.f32 %v8126_v28, %v7412_v14 }
 0x4ed   :  { %8603 = vmatpush.bf16.msra.mxu3 %v14015_v53 }
 0x4f1   :  { %v8138_v32 = vpop.f32.mrf.mxu1  ;;  %8604 = vmatpush.bf16.msra.mxu3 %v14014_v31 }
 0x4f2   :  { %v8139_v59 = vadd.f32 %v8138_v32, %v8125_v38 }
 0x4f3   :  { %v8180_v39 = vpop.f32.mrf.mxu0 }
 0x4f4   :  { %v8181_v3 = vadd.f32 %v8180_v39, %v7413_v15 }
 0x4f7   :  { %v8096_v16 = vpop.f32.mrf.mxu2 }
 0x4f8   :  { %v8097_v29 = vadd.f32 %v8096_v16, %v8083_v52  ;;  %v7414_v52 = vperm.slane %v15066_v33, 3 }
 0x4f9   :  { %v8140_v56 = vpop.f32.mrf.mxu1 }
 0x4fa   :  { %v8141_v4 = vadd.f32 %v8140_v56, %v8127_v24  ;;  %v14034_v56 = vld [vmem:[#allocation13] ss:$0 sm:$0xff] }
 0x4fb   :  { %v8182_v10 = vpop.f32.mrf.mxu0 }
 0x4fc   :  { %v8183_v62 = vadd.f32 %v8182_v10, %v7413_v15 }
 0x4ff   :  { %v8098_v19 = vpop.f32.mrf.mxu2 }
 0x500   :  { %v8099_v18 = vadd.f32 %v8098_v19, %v8085_v40 }
 0x501   :  { %v8194_v48 = vpop.f32.mrf.mxu1 }
 0x502   :  { %v8195_v16 = vadd.f32 %v8194_v48, %v8181_v3 }
 0x507   :  { %v8152_v41 = vpop.f32.mrf.mxu2 }
 0x508   :  { %v8153_v43 = vadd.f32 %v8152_v41, %v8139_v59 }
 0x509   :  { %v8196_v8 = vpop.f32.mrf.mxu1 }
 0x50a   :  { %v8197_v5 = vadd.f32 %v8196_v8, %v8183_v62 }
 0x50f   :  { %v8154_v49 = vpop.f32.mrf.mxu2 }
 0x510   :  { %v8155_v60 = vadd.f32 %v8154_v49, %v8141_v4 }
 0x511   :  { %v8236_v36 = vpop.f32.mrf.mxu0 }
 0x512   :  { %v8237_v40 = vadd.f32 %v8236_v36, %v7414_v52 }
 0x517   :  { %v8110_v11 = vpop.f32.mrf.mxu3 }
 0x518   :  { %v8111_v2 = vadd.f32 %v8110_v11, %v8097_v29 }
 0x519   :  { %v8238_v47 = vpop.f32.mrf.mxu0 }
 0x51a   :  { %v8283_v13 = vmax.f32 %v8111_v2, 0.0  ;;  %v8208_v17 = vpop.f32.mrf.mxu2  ;;  %v8239_v41 = vadd.f32 %v8238_v47, %v7414_v52 }
 0x51b   :  { %v8209_v9 = vadd.f32 %v8208_v17, %v8195_v16 }
 0x51f   :  { %v8112_v51 = vpop.f32.mrf.mxu3 }
 0x520   :  { %v8113_v37 = vadd.f32 %v8112_v51, %v8099_v18 }
 0x521   :  { %v8250_v27 = vpop.f32.mrf.mxu1 }
 0x522   :  { %v8287_v54 = vmax.f32 %v8113_v37, 0.0  ;;  %v8210_v58 = vpop.f32.mrf.mxu2  ;;  %v8251_v18 = vadd.f32 %v8250_v27, %v8237_v40 }
 0x523   :  { %v8211_v12 = vadd.f32 %v8210_v58, %v8197_v5 }
 0x524   :  { %v8291_v55 = vpack.c.bf16 %v8287_v54, %v8283_v13 }
 0x526   :  { %8563 = vmatmul.bf16.vlgmr.msra.gmra.mxu0 %v8291_v55 }
 0x527   :  { %v8166_v45 = vpop.f32.mrf.mxu3 }
 0x528   :  { %v8167_v50 = vadd.f32 %v8166_v45, %v8153_v43 }
 0x529   :  { %v8252_v29 = vpop.f32.mrf.mxu1 }
 0x52a   :  { %v8284_v63 = vmax.f32 %v8167_v50, 0.0  ;;  %v8253_v25 = vadd.f32 %v8252_v29, %v8239_v41 }
 0x52f   :  { %v8168_v21 = vpop.f32.mrf.mxu3 }
 0x530   :  { %v8169_v30 = vadd.f32 %v8168_v21, %v8155_v60 }
 0x532   :  { %v8288_v46 = vmax.f32 %v8169_v30, 0.0 }
 0x534   :  { %v8292_v22 = vpack.c.bf16 %v8288_v46, %v8284_v63 }
 0x536   :  { %8577 = vmatmul.bf16.vlgmr.msra.gmra.mxu1 %v8292_v22 }
 0x537   :  { %v8222_v44 = vpop.f32.mrf.mxu3 }
 0x538   :  { %v8223_v61 = vadd.f32 %v8222_v44, %v8209_v9  ;;  %v8264_v35 = vpop.f32.mrf.mxu2 }
 0x539   :  { %v8265_v51 = vadd.f32 %v8264_v35, %v8251_v18 }
 0x53a   :  { %v8285_v6 = vmax.f32 %v8223_v61, 0.0 }
 0x53f   :  { %v8224_v34 = vpop.f32.mrf.mxu3 }
 0x540   :  { %v8225_v19 = vadd.f32 %v8224_v34, %v8211_v12  ;;  %v8266_v2 = vpop.f32.mrf.mxu2 }
 0x541   :  { %v8267_v37 = vadd.f32 %v8266_v2, %v8253_v25 }
 0x542   :  { %v8289_v57 = vmax.f32 %v8225_v19, 0.0 }
 0x544   :  { %v8293_v11 = vpack.c.bf16 %v8289_v57, %v8285_v6 }
 0x546   :  { %8591 = vmatmul.bf16.vlgmr.msra.gmra.mxu2 %v8293_v11 }
 0x557   :  { %v8278_v32 = vpop.f32.mrf.mxu3 }
 0x558   :  { %v8279_v13 = vadd.f32 %v8278_v32, %v8265_v51 }
 0x55a   :  { %v8286_v7 = vmax.f32 %v8279_v13, 0.0 }
 0x55f   :  { %v8280_v54 = vpop.f32.mrf.mxu3 }
 0x560   :  { %v8281_v0 = vadd.f32 %v8280_v54, %v8267_v37 }
 0x562   :  { %v8290_v28 = vmax.f32 %v8281_v0, 0.0 }
 0x564   :  { %v8294_v14 = vpack.c.bf16 %v8290_v28, %v8286_v7 }
 0x566   :  { %8605 = vmatmul.bf16.vlgmr.msra.gmra.mxu3 %v8294_v14 }
 0x5a3   :  { %v8564_v55 = vpop.f32.mrf.mxu0 }
 0x5a4   :  { %v8565_v49 = vadd.f32 %v14034_v56, %v8564_v55 }
 0x5ab   :  { %v8566_v26 = vpop.f32.mrf.mxu0 }
 0x5ac   :  { %v8567_v43 = vadd.f32 %v14034_v56, %v8566_v26 }
 0x5b3   :  { %v8578_v33 = vpop.f32.mrf.mxu1 }
 0x5b4   :  { %v8579_v45 = vadd.f32 %v8578_v33, %v8565_v49 }
 0x5bb   :  { %v8580_v4 = vpop.f32.mrf.mxu1 }
 0x5bc   :  { %v8581_v39 = vadd.f32 %v8580_v4, %v8567_v43 }
 0x5c9   :  { %v8592_v1 = vpop.f32.mrf.mxu2 }
 0x5ca   :  { %v8593_v38 = vadd.f32 %v8592_v1, %v8579_v45 }
 0x5d1   :  { %v8594_v20 = vpop.f32.mrf.mxu2 }
 0x5d2   :  { %v8595_v60 = vadd.f32 %v8594_v20, %v8581_v39 }
 0x5e9   :  { %v8606_v24 = vpop.f32.mrf.mxu3 }
 0x5ea   :  { %v8607_v59 = vadd.f32 %v8606_v24, %v8593_v38 }
 0x5ec   :  { %8611 = vst [vmem:[%s15087_s9] sm:$0xff] %v8607_v59 }
 0x5f1   :  { %v8608_v50 = vpop.f32.mrf.mxu3 }
 0x5f2   :  { %v8609_v48 = vadd.f32 %v8608_v50, %v8595_v60 }
 0x5f4   :  { %8612 = vst [vmem:[%s15087_s9 + $0x8] sm:$0xff] %v8609_v48 }
 0x5f5   :  { %8617 = vsyncpa [#allocation3], 1 }
 0x5f6   :  { %8618 = vsyncpa [#allocation5], 1 }
 0x5f7   :  { %8619 = vsyncpa [#allocation8], 1 }
 0x5f8   :  { %8620 = vsyncpa [#allocation11], 1 }
 0x5f9   :  { %8621 = vsyncpa [#allocation14], 1 }

</bundles_post_ra>
